<compile_context>
chip_gen: v6e
topology: v6e:2x2x1
jax: 0.10.0
libtpu: 0.0.40
codegen_flags: <defaults>
</compile_context>

<pallas_src>
import functools
import math

import jax
import jax.numpy as jnp
from jax.experimental import pallas as pl
from jax.experimental.pallas import tpu as pltpu

_LN_EPS = 1e-6


# --------------------------------------------------------------------------- helpers
def _silu(x):
    # lax.logistic lowers to the EUP sigmoid (separate bundle slot, cheap vs VPU div)
    return x * jax.lax.logistic(x)


def _layernorm(x):
    # single-pass LN: var = E[x^2] - mu^2 (mean and mean-of-squares reductions issue
    # together instead of two serialized passes)
    mu = jnp.mean(x, axis=-1, keepdims=True)
    ms = jnp.mean(x * x, axis=-1, keepdims=True)
    var = jnp.maximum(ms - mu * mu, 0.0)
    return (x - mu) * jax.lax.rsqrt(var + _LN_EPS)


def _mm(x, w, b):
    # bf16 MXU matmul, f32 accumulation, bias added in f32 (shared by kernel + reference)
    return jnp.dot(x.astype(jnp.bfloat16), w.astype(jnp.bfloat16),
                   preferred_element_type=jnp.float32) + b


def _round_up(x, m):
    return ((x + m - 1) // m) * m


def _tpu_vmem_bytes():
    try:
        return int(pltpu.get_tpu_info().vmem_capacity_bytes)
    except Exception:
        return 128 * 1024 * 1024          # v5e/v6e default if the query is unavailable


def _pick_tile_n(n_rows):
    """Row tile sized against the HBM/MXU crossover and the chip's VMEM capacity."""
    vmem = _tpu_vmem_bytes()
    # AI on the streamed per-layer weights is ~tile_n FLOP/byte: 1024 is comfortably
    # compute-bound on v5e/v6e (128 MiB VMEM); 512 fits v7x's 64 MiB per-TC VMEM.
    target = 1024 if vmem >= 100 * 1024 * 1024 else 512
    # Keep >= 2 row tiles when the problem allows so the "parallel" row axis gives
    # both v7x TensorCores balanced work.
    balanced = max(128, _round_up(pl.cdiv(n_rows, 2), 128))
    return min(target, balanced)


# ---------------------------------------------------------------------------- kernel
def flow_mlp_kernel(xt_ref, tf_ref, v_ref, z_ref,
                    wt1_ref, bt1_ref, wt2_ref, bt2_ref,
                    wc_ref, bc_ref, win_ref, bin_ref,
                    wfada_ref, bfada_ref, wout_ref, bout_ref,
                    wada_ref, bada_ref, wm1_ref, bm1_ref, wm2_ref, bm2_ref,
                    sse_ref, x_scr, sy_scr,
                    *, width, tile_n, n_valid, needs_mask):
    """One AdaLN residual block per grid step; prologue/epilogue gated on the depth axis."""
    i = pl.program_id(0)                 # row tile
    d = pl.program_id(1)                 # depth (inner, "arbitrary")
    last = pl.num_programs(1) - 1

    # ---- prologue: timestep-embed MLP, cond embed, input proj (once per row tile) ----
    @pl.when(d == 0)
    def _():
        t_emb = _silu(_mm(tf_ref[...], wt1_ref[...], bt1_ref[...]))
        t_emb = _mm(t_emb, wt2_ref[...], bt2_ref[...])
        c_emb = _mm(z_ref[...], wc_ref[...], bc_ref[...])
        sy_scr[...] = _silu(t_emb + c_emb).astype(jnp.bfloat16)    # shared adaLN input
        x_scr[...] = _mm(xt_ref[...], win_ref[...], bin_ref[...])  # residual stream (f32)

    # ---- AdaLN residual block `d` (its weights are streamed along the depth axis) ----
    sy = sy_scr[...]                                   # (tile_n, width) bf16
    x = x_scr[...]                                     # (tile_n, width) f32
    # Modulation computed as three width-wide column matmuls against lane slices of
    # wada (same MXU FLOPs); each result consumed immediately -> the biggest live f32
    # intermediate is tile_n*width*4 B instead of tile_n*3*width*4 B (VMEM pressure).
    shift = _mm(sy, wada_ref[:, 0:width], bada_ref[:, 0:width])
    scale = _mm(sy, wada_ref[:, width:2 * width], bada_ref[:, width:2 * width])
    h = _layernorm(x) * (1.0 + scale) + shift
    h = _silu(_mm(h, wm1_ref[...], bm1_ref[...]))
    h = _mm(h, wm2_ref[...], bm2_ref[...])
    gate = _mm(sy, wada_ref[:, 2 * width:3 * width], bada_ref[:, 2 * width:3 * width])
    x_new = x + gate * h
    x_scr[...] = x_new

    # ---- epilogue: final AdaLN + output linear + masked squared-error partials ----
    @pl.when(d == last)
    def _():
        f_shift = _mm(sy, wfada_ref[:, 0:width], bfada_ref[:, 0:width])
        f_scale = _mm(sy, wfada_ref[:, width:2 * width], bfada_ref[:, width:2 * width])
        xn = _layernorm(x_new) * (1.0 + f_scale) + f_shift
        v_pred = _mm(xn, wout_ref[...], bout_ref[...])             # (tile_n, C) f32
        diff = v_pred - v_ref[...]
        sse = jnp.sum(diff * diff, axis=1, keepdims=True)          # (tile_n, 1)
        if needs_mask:
            # only the last row tile contains zero-padded rows -> gate the iota/where
            last_tile = pl.num_programs(0) - 1

            @pl.when(i == last_tile)
            def _():
                row = i * tile_n + jax.lax.broadcasted_iota(jnp.int32, (tile_n, 1), 0)
                sse_ref[...] = jnp.where(row < n_valid, sse, 0.0)

            @pl.when(i != last_tile)
            def _():
                sse_ref[...] = sse
        else:
            sse_ref[...] = sse


# ------------------------------------------------------------------------------ glue
def _prepare_flow_inputs(latents, noise_key, flow_mul, freq_dim):
    B, L, C = latents.shape
    target = jnp.tile(latents.reshape(B * L, C), (flow_mul, 1))    # torch .repeat(flow_mul, 1)
    z = target                                                     # condition = latents
    N = target.shape[0]
    k_noise, k_t = jax.random.split(noise_key)
    noise = jax.random.normal(k_noise, (N, C), jnp.float32)
    t = jax.random.uniform(k_t, (N, 1), jnp.float32)
    xt = t * target + (1.0 - t) * noise                            # rectified-flow interpolation
    v = target - noise                                             # target velocity
    # sinusoidal timestep features precomputed here (lane-dense kernel input)
    half = freq_dim // 2
    freqs = jnp.exp(-math.log(10000.0) * jnp.arange(half, dtype=jnp.float32) / half)
    args = t * freqs[None, :]
    tfeat = jnp.concatenate([jnp.cos(args), jnp.sin(args)], axis=-1)
    return xt, tfeat, v, z


def flow_loss_pallas(xt, tfeat, v, z, params, *, depth, width, freq_dim, tile_n=None):
    N, C = xt.shape
    if tile_n is None:
        tile_n = _pick_tile_n(N)
    n_tiles = pl.cdiv(N, tile_n)
    n_pad = n_tiles * tile_n

    def pad(a):
        return jnp.pad(a, ((0, n_pad - N), (0, 0))) if n_pad != N else a

    # bf16 operands for the MXU; accumulation stays f32 inside the kernel
    xt_b = pad(xt).astype(jnp.bfloat16)
    tf_b = pad(tfeat).astype(jnp.bfloat16)
    z_b = pad(z).astype(jnp.bfloat16)
    v_p = pad(v)                                                   # f32 target

    bf = lambda w: w.astype(jnp.bfloat16)
    f32 = lambda b: b.astype(jnp.float32)

    # VMEM-resident (constant block index, fetched once)
    resident = [bf(params["wt1"]), f32(params["bt1"]),
                bf(params["wt2"]), f32(params["bt2"]),
                bf(params["wc"]), f32(params["bc"]),
                bf(params["win"]), f32(params["bin"]),
                bf(params["wfada"]), f32(params["bfada"]),
                bf(params["wout"]), f32(params["bout"])]
    # streamed along the depth grid axis (block index = d)
    streamed = [bf(params["wada"]), f32(params["bada"]),
                bf(params["wm1"]), f32(params["bm1"]),
                bf(params["wm2"]), f32(params["bm2"])]

    row_spec_c = pl.BlockSpec((tile_n, C), lambda i, d: (i, 0))
    row_spec_f = pl.BlockSpec((tile_n, freq_dim), lambda i, d: (i, 0))

    def res_spec(a, single_buffer):
        # Constant block index -> fetched from HBM exactly once.  Single-buffering
        # (pl.Buffered(1)) halves their VMEM footprint (~7 MiB at width=1024), which is
        # the budget that lets tile_n grow on v7x.  Fall back gracefully if unsupported.
        if single_buffer:
            try:
                return pl.BlockSpec(a.shape, lambda i, d: (0, 0),
                                    pipeline_mode=pl.Buffered(1))
            except (TypeError, AttributeError):
                pass
        return pl.BlockSpec(a.shape, lambda i, d: (0, 0))

    def strm_spec(a):
        # TODO(synk): on v6e, pipeline_mode=pl.Buffered(3) here can hide the wada[0]
        # re-fetch at row-tile boundaries if DMA is still exposed after the tile_n bump.
        return pl.BlockSpec((None,) + a.shape[1:], lambda i, d: (d, 0, 0))

    # advisory cost estimate for XLA scheduling
    flops_per_row = 2 * (freq_dim * width + width * width + 2 * C * width
                         + depth * 5 * width * width + 2 * width * width + width * C)
    resident_bytes = sum(int(a.size) * a.dtype.itemsize for a in resident)
    streamed_bytes = sum(int(a.size) * a.dtype.itemsize for a in streamed)
    act_bytes = n_pad * ((3 * C + freq_dim) * 2 + C * 4)
    cost = pl.CostEstimate(
        flops=int(flops_per_row) * int(n_pad),
        transcendentals=int(n_pad) * int(width) * (depth + 2),
        bytes_accessed=int(resident_bytes + n_tiles * streamed_bytes + act_bytes),
    )

    kernel = functools.partial(flow_mlp_kernel, width=width, tile_n=tile_n,
                               n_valid=N, needs_mask=(n_pad != N))

    # ~7/8 of physical VMEM: ≈112 MiB on v5e/v6e, ≈56 MiB on v7x (headroom for the
    # compiler's internal scratch; never hand the compiler the full physical capacity).
    vmem_limit = int((_tpu_vmem_bytes() * 7) // 8)

    def build(single_buffer_resident):
        in_specs = ([row_spec_c, row_spec_f, row_spec_c, row_spec_c]
                    + [res_spec(a, single_buffer_resident) for a in resident]
                    + [strm_spec(a) for a in streamed])
        return pl.pallas_call(
            kernel,
            out_shape=jax.ShapeDtypeStruct((n_pad, 1), jnp.float32),
            grid=(n_tiles, depth),
            in_specs=in_specs,
            out_specs=pl.BlockSpec((tile_n, 1), lambda i, d: (i, 0)),
            scratch_shapes=[pltpu.VMEM((tile_n, width), jnp.float32),    # residual stream x
                            pltpu.VMEM((tile_n, width), jnp.bfloat16)],  # silu(y) modulation
            compiler_params=pltpu.CompilerParams(
                dimension_semantics=("parallel", "arbitrary"),
                vmem_limit_bytes=vmem_limit),
            cost_estimate=cost,
        )

    args = (xt_b, tf_b, v_p, z_b, *resident, *streamed)
    try:
        sse_rows = build(True)(*args)
    except Exception:
        # pl.Buffered(1) not accepted by this Pallas/Mosaic version -> default buffering
        sse_rows = build(False)(*args)

    return jnp.sum(sse_rows) / (N * C)


def flow_head_loss_forward(latents, params, noise_key, global_step=0, *,
                           flow_mul, depth, width, freq_dim, tile_n=None):
    """Mirrors FlowHeadLoss.forward: returns flow-matching loss (latent_norm is a
    logging-only scalar, computed alongside with plain jnp)."""
    xt, tfeat, v, z = _prepare_flow_inputs(latents, noise_key, flow_mul, freq_dim)
    loss = flow_loss_pallas(xt, tfeat, v, z, params,
                            depth=depth, width=width, freq_dim=freq_dim, tile_n=tile_n)
    latent_norm = jnp.mean(jnp.sqrt(jnp.sum(latents * latents, axis=-1)))
    # TODO(synk): logger.info / torch.distributed rank check / tensorboard add_scalar have
    # no kernel equivalent; logging branch skipped (forward return value unaffected).
    return loss, latent_norm


def init_flow_params(key, C, width, depth, freq_dim):
    keys = jax.random.split(key, 6 + 3 * depth)

    def lin(k, fi, fo):
        return jax.random.normal(k, (fi, fo), jnp.float32) * 0.02

    p = {}
    p["wt1"], p["bt1"] = lin(keys[0], freq_dim, width), jnp.zeros((1, width), jnp.float32)
    p["wt2"], p["bt2"] = lin(keys[1], width, width), jnp.zeros((1, width), jnp.float32)
    p["wc"], p["bc"] = lin(keys[2], C, width), jnp.zeros((1, width), jnp.float32)
    p["win"], p["bin"] = lin(keys[3], C, width), jnp.zeros((1, width), jnp.float32)
    p["wada"] = jnp.stack([lin(keys[4 + 3 * d], width, 3 * width) for d in range(depth)])
    p["bada"] = jnp.zeros((depth, 1, 3 * width), jnp.float32)
    p["wm1"] = jnp.stack([lin(keys[5 + 3 * d], width, width) for d in range(depth)])
    p["bm1"] = jnp.zeros((depth, 1, width), jnp.float32)
    p["wm2"] = jnp.stack([lin(keys[6 + 3 * d], width, width) for d in range(depth)])
    p["bm2"] = jnp.zeros((depth, 1, width), jnp.float32)
    p["wfada"] = lin(keys[4 + 3 * depth], width, 2 * width)
    p["bfada"] = jnp.zeros((1, 2 * width), jnp.float32)
    p["wout"] = lin(keys[5 + 3 * depth], width, C)
    p["bout"] = jnp.zeros((1, C), jnp.float32)
    return p


# ------------------------------------------------------------------------- reference
def flow_mlp_reference(xt, tfeat, v, z, params, *, depth, width):
    """Pure-JAX reference with the same bf16-operand / f32-accumulation policy."""
    t_emb = _mm(_silu(_mm(tfeat, params["wt1"], params["bt1"])), params["wt2"], params["bt2"])
    c_emb = _mm(z, params["wc"], params["bc"])
    sy = _silu(t_emb + c_emb)
    x = _mm(xt, params["win"], params["bin"])
    for d in range(depth):
        ada = _mm(sy, params["wada"][d], params["bada"][d])
        shift, scale, gate = jnp.split(ada, 3, axis=-1)
        h = _layernorm(x) * (1.0 + scale) + shift
        h = _mm(_silu(_mm(h, params["wm1"][d], params["bm1"][d])),
                params["wm2"][d], params["bm2"][d])
        x = x + gate * h
    fada = _mm(sy, params["wfada"], params["bfada"])
    shift, scale = jnp.split(fada, 2, axis=-1)
    v_pred = _mm(_layernorm(x) * (1.0 + scale) + shift, params["wout"], params["bout"])
    return jnp.mean((v_pred - v) ** 2)


if __name__ == "__main__":
    B, L = 2, 8
    C = 32             # flow_target_channels (module default)
    depth = 2          # flow_depth (small test value; module default 6)
    width = 128        # flow_width (small test value; module default 1024)
    flow_mul = 4       # flow_flow_mul
    freq_dim = 256     # TimestepEmbedder frequency_embedding_size

    root = jax.random.PRNGKey(0)
    k_param, k_latent, k_noise = jax.random.split(root, 3)
    latents = jax.random.normal(k_latent, (B, L, C), jnp.float32)
    params = init_flow_params(k_param, C, width, depth, freq_dim)

    loss, latent_norm = flow_head_loss_forward(
        latents, params, k_noise, global_step=0,
        flow_mul=flow_mul, depth=depth, width=width, freq_dim=freq_dim, tile_n=None)
    loss, latent_norm = jax.block_until_ready((loss, latent_norm))

    # pure-JAX reference check
    xt, tfeat, v, z = _prepare_flow_inputs(latents, k_noise, flow_mul, freq_dim)
    loss_ref = flow_mlp_reference(xt, tfeat, v, z, params, depth=depth, width=width)
    norm_ref = jnp.mean(jnp.linalg.norm(latents, axis=-1))
    assert jnp.allclose(loss, loss_ref, rtol=2e-3, atol=1e-4), (float(loss), float(loss_ref))
    assert jnp.allclose(latent_norm, norm_ref, rtol=1e-3, atol=1e-5), (float(latent_norm), float(norm_ref))

    print("KERNEL_OK")
</pallas_src>

<mosaic_0001>
module attributes {stable_mosaic.version = 11 : i64} {
  func.func @flow_mlp_kernel(%arg0: i32, %arg1: i32, %arg2: memref<128x32xbf16, #tpu.memory_space<vmem>>, %arg3: memref<128x256xbf16, #tpu.memory_space<vmem>>, %arg4: memref<128x32xf32, #tpu.memory_space<vmem>>, %arg5: memref<128x32xbf16, #tpu.memory_space<vmem>>, %arg6: memref<256x128xbf16, #tpu.memory_space<vmem>>, %arg7: memref<1x128xf32, #tpu.memory_space<vmem>>, %arg8: memref<128x128xbf16, #tpu.memory_space<vmem>>, %arg9: memref<1x128xf32, #tpu.memory_space<vmem>>, %arg10: memref<32x128xbf16, #tpu.memory_space<vmem>>, %arg11: memref<1x128xf32, #tpu.memory_space<vmem>>, %arg12: memref<32x128xbf16, #tpu.memory_space<vmem>>, %arg13: memref<1x128xf32, #tpu.memory_space<vmem>>, %arg14: memref<128x256xbf16, #tpu.memory_space<vmem>>, %arg15: memref<1x256xf32, #tpu.memory_space<vmem>>, %arg16: memref<128x32xbf16, #tpu.memory_space<vmem>>, %arg17: memref<1x32xf32, #tpu.memory_space<vmem>>, %arg18: memref<1x128x384xbf16, #tpu.memory_space<vmem>>, %arg19: memref<1x1x384xf32, #tpu.memory_space<vmem>>, %arg20: memref<1x128x128xbf16, #tpu.memory_space<vmem>>, %arg21: memref<1x1x128xf32, #tpu.memory_space<vmem>>, %arg22: memref<1x128x128xbf16, #tpu.memory_space<vmem>>, %arg23: memref<1x1x128xf32, #tpu.memory_space<vmem>>, %arg24: memref<128x1xf32, #tpu.memory_space<vmem>>, %arg25: memref<128x128xf32, #tpu.memory_space<vmem>>, %arg26: memref<128x128xbf16, #tpu.memory_space<vmem>>) attributes {dimension_semantics = [#tpu.dimension_semantics<parallel>, #tpu.dimension_semantics<arbitrary>], iteration_bounds = array<i64: 1, 2>, scalar_prefetch = 0 : i64, scratch_operands = 2 : i64, tpu.core_type = #tpu.core_type<tc>, window_params = [{transform_indices = @transform_0, window_bounds = array<i64: 128, 32>}, {transform_indices = @transform_1, window_bounds = array<i64: 128, 256>}, {transform_indices = @transform_2, window_bounds = array<i64: 128, 32>}, {transform_indices = @transform_3, window_bounds = array<i64: 128, 32>}, {pipeline_mode = #tpu.pipeline_mode<synchronous>, transform_indices = @transform_4, window_bounds = array<i64: 256, 128>}, {pipeline_mode = #tpu.pipeline_mode<synchronous>, transform_indices = @transform_5, window_bounds = array<i64: 1, 128>}, {pipeline_mode = #tpu.pipeline_mode<synchronous>, transform_indices = @transform_6, window_bounds = array<i64: 128, 128>}, {pipeline_mode = #tpu.pipeline_mode<synchronous>, transform_indices = @transform_7, window_bounds = array<i64: 1, 128>}, {pipeline_mode = #tpu.pipeline_mode<synchronous>, transform_indices = @transform_8, window_bounds = array<i64: 32, 128>}, {pipeline_mode = #tpu.pipeline_mode<synchronous>, transform_indices = @transform_9, window_bounds = array<i64: 1, 128>}, {pipeline_mode = #tpu.pipeline_mode<synchronous>, transform_indices = @transform_10, window_bounds = array<i64: 32, 128>}, {pipeline_mode = #tpu.pipeline_mode<synchronous>, transform_indices = @transform_11, window_bounds = array<i64: 1, 128>}, {pipeline_mode = #tpu.pipeline_mode<synchronous>, transform_indices = @transform_12, window_bounds = array<i64: 128, 256>}, {pipeline_mode = #tpu.pipeline_mode<synchronous>, transform_indices = @transform_13, window_bounds = array<i64: 1, 256>}, {pipeline_mode = #tpu.pipeline_mode<synchronous>, transform_indices = @transform_14, window_bounds = array<i64: 128, 32>}, {pipeline_mode = #tpu.pipeline_mode<synchronous>, transform_indices = @transform_15, window_bounds = array<i64: 1, 32>}, {transform_indices = @transform_16, window_bounds = array<i64: 1, 128, 384>}, {transform_indices = @transform_17, window_bounds = array<i64: 1, 1, 384>}, {transform_indices = @transform_18, window_bounds = array<i64: 1, 128, 128>}, {transform_indices = @transform_19, window_bounds = array<i64: 1, 1, 128>}, {transform_indices = @transform_20, window_bounds = array<i64: 1, 128, 128>}, {transform_indices = @transform_21, window_bounds = array<i64: 1, 1, 128>}, {transform_indices = @transform_22, window_bounds = array<i64: 128, 1>}]} {
    %c0_i32 = arith.constant 0 : i32
    %0 = arith.cmpi eq, %arg1, %c0_i32 : i32
    %1 = arith.extui %0 : i1 to i32
    %c0_i32_0 = arith.constant 0 : i32
    %2 = arith.cmpi ne, %1, %c0_i32_0 : i32
    scf.if %2 {
      %c0_47 = arith.constant 0 : index
      %c0_48 = arith.constant 0 : index
      %78 = vector.load %arg3[%c0_47, %c0_48] : memref<128x256xbf16, #tpu.memory_space<vmem>>, vector<128x256xbf16>
      %c0_49 = arith.constant 0 : index
      %c0_50 = arith.constant 0 : index
      %79 = vector.load %arg6[%c0_49, %c0_50] : memref<256x128xbf16, #tpu.memory_space<vmem>>, vector<256x128xbf16>
      %c0_51 = arith.constant 0 : index
      %c0_52 = arith.constant 0 : index
      %80 = vector.load %arg7[%c0_51, %c0_52] : memref<1x128xf32, #tpu.memory_space<vmem>>, vector<1x128xf32>
      %cst_53 = arith.constant dense<0.000000e+00> : vector<128x128xf32>
      %81 = tpu.matmul %78, %79, %cst_53 {dimension_numbers = #tpu.dot_dimension_numbers<[1], [0], [0], [1], [0, 0, 1, 1], [], []>} : vector<128x256xbf16>, vector<256x128xbf16>, vector<128x128xf32> -> vector<128x128xf32>
      %82 = vector.broadcast %80 : vector<1x128xf32> to vector<128x128xf32>
      %83 = arith.addf %81, %82 : vector<128x128xf32>
      %84 = arith.negf %83 : vector<128x128xf32>
      %85 = math.exp %84 : vector<128x128xf32>
      %cst_54 = arith.constant 1.000000e+00 : f32
      %86 = vector.broadcast %cst_54 : f32 to vector<128x128xf32>
      %87 = arith.addf %86, %85 : vector<128x128xf32>
      %88 = arith.divf %86, %87 : vector<128x128xf32>
      %89 = arith.mulf %83, %88 : vector<128x128xf32>
      %c0_55 = arith.constant 0 : index
      %c0_56 = arith.constant 0 : index
      %90 = vector.load %arg8[%c0_55, %c0_56] : memref<128x128xbf16, #tpu.memory_space<vmem>>, vector<128x128xbf16>
      %c0_57 = arith.constant 0 : index
      %c0_58 = arith.constant 0 : index
      %91 = vector.load %arg9[%c0_57, %c0_58] : memref<1x128xf32, #tpu.memory_space<vmem>>, vector<1x128xf32>
      %92 = arith.truncf %89 : vector<128x128xf32> to vector<128x128xbf16>
      %cst_59 = arith.constant dense<0.000000e+00> : vector<128x128xf32>
      %93 = tpu.matmul %92, %90, %cst_59 {dimension_numbers = #tpu.dot_dimension_numbers<[1], [0], [0], [1], [0, 0, 1, 1], [], []>} : vector<128x128xbf16>, vector<128x128xbf16>, vector<128x128xf32> -> vector<128x128xf32>
      %94 = vector.broadcast %91 : vector<1x128xf32> to vector<128x128xf32>
      %95 = arith.addf %93, %94 : vector<128x128xf32>
      %c0_60 = arith.constant 0 : index
      %c0_61 = arith.constant 0 : index
      %96 = vector.load %arg5[%c0_60, %c0_61] : memref<128x32xbf16, #tpu.memory_space<vmem>>, vector<128x32xbf16>
      %c0_62 = arith.constant 0 : index
      %c0_63 = arith.constant 0 : index
      %97 = vector.load %arg10[%c0_62, %c0_63] : memref<32x128xbf16, #tpu.memory_space<vmem>>, vector<32x128xbf16>
      %c0_64 = arith.constant 0 : index
      %c0_65 = arith.constant 0 : index
      %98 = vector.load %arg11[%c0_64, %c0_65] : memref<1x128xf32, #tpu.memory_space<vmem>>, vector<1x128xf32>
      %cst_66 = arith.constant dense<0.000000e+00> : vector<128x128xf32>
      %99 = tpu.matmul %96, %97, %cst_66 {dimension_numbers = #tpu.dot_dimension_numbers<[1], [0], [0], [1], [0, 0, 1, 1], [], []>} : vector<128x32xbf16>, vector<32x128xbf16>, vector<128x128xf32> -> vector<128x128xf32>
      %100 = vector.broadcast %98 : vector<1x128xf32> to vector<128x128xf32>
      %101 = arith.addf %99, %100 : vector<128x128xf32>
      %102 = arith.addf %95, %101 : vector<128x128xf32>
      %103 = arith.negf %102 : vector<128x128xf32>
      %104 = math.exp %103 : vector<128x128xf32>
      %cst_67 = arith.constant 1.000000e+00 : f32
      %105 = vector.broadcast %cst_67 : f32 to vector<128x128xf32>
      %106 = arith.addf %105, %104 : vector<128x128xf32>
      %107 = arith.divf %105, %106 : vector<128x128xf32>
      %108 = arith.mulf %102, %107 : vector<128x128xf32>
      %109 = arith.truncf %108 : vector<128x128xf32> to vector<128x128xbf16>
      %c0_68 = arith.constant 0 : index
      %c0_69 = arith.constant 0 : index
      %110 = vector.load %arg26[%c0_68, %c0_69] : memref<128x128xbf16, #tpu.memory_space<vmem>>, vector<128x128xbf16>
      tpu.vector_store %arg26[%c0_68, %c0_69], %109 {strides = array<i32>} : memref<128x128xbf16, #tpu.memory_space<vmem>>, vector<128x128xbf16>,
      %c0_70 = arith.constant 0 : index
      %c0_71 = arith.constant 0 : index
      %111 = vector.load %arg2[%c0_70, %c0_71] : memref<128x32xbf16, #tpu.memory_space<vmem>>, vector<128x32xbf16>
      %c0_72 = arith.constant 0 : index
      %c0_73 = arith.constant 0 : index
      %112 = vector.load %arg12[%c0_72, %c0_73] : memref<32x128xbf16, #tpu.memory_space<vmem>>, vector<32x128xbf16>
      %c0_74 = arith.constant 0 : index
      %c0_75 = arith.constant 0 : index
      %113 = vector.load %arg13[%c0_74, %c0_75] : memref<1x128xf32, #tpu.memory_space<vmem>>, vector<1x128xf32>
      %cst_76 = arith.constant dense<0.000000e+00> : vector<128x128xf32>
      %114 = tpu.matmul %111, %112, %cst_76 {dimension_numbers = #tpu.dot_dimension_numbers<[1], [0], [0], [1], [0, 0, 1, 1], [], []>} : vector<128x32xbf16>, vector<32x128xbf16>, vector<128x128xf32> -> vector<128x128xf32>
      %115 = vector.broadcast %113 : vector<1x128xf32> to vector<128x128xf32>
      %116 = arith.addf %114, %115 : vector<128x128xf32>
      %c0_77 = arith.constant 0 : index
      %c0_78 = arith.constant 0 : index
      %117 = vector.load %arg25[%c0_77, %c0_78] : memref<128x128xf32, #tpu.memory_space<vmem>>, vector<128x128xf32>
      tpu.vector_store %arg25[%c0_77, %c0_78], %116 {strides = array<i32>} : memref<128x128xf32, #tpu.memory_space<vmem>>, vector<128x128xf32>,
    } else {
    }
    %c0 = arith.constant 0 : index
    %c0_1 = arith.constant 0 : index
    %3 = vector.load %arg26[%c0, %c0_1] : memref<128x128xbf16, #tpu.memory_space<vmem>>, vector<128x128xbf16>
    %c0_2 = arith.constant 0 : index
    %c0_3 = arith.constant 0 : index
    %4 = vector.load %arg25[%c0_2, %c0_3] : memref<128x128xf32, #tpu.memory_space<vmem>>, vector<128x128xf32>
    %c0_4 = arith.constant 0 : index
    %c0_5 = arith.constant 0 : index
    %c0_6 = arith.constant 0 : index
    %5 = vector.load %arg18[%c0_4, %c0_5, %c0_6] : memref<1x128x384xbf16, #tpu.memory_space<vmem>>, vector<1x128x128xbf16>
    %6 = vector.shape_cast %5 : vector<1x128x128xbf16> to vector<128x128xbf16>
    %c0_7 = arith.constant 0 : index
    %c0_8 = arith.constant 0 : index
    %c0_9 = arith.constant 0 : index
    %7 = vector.load %arg19[%c0_7, %c0_8, %c0_9] : memref<1x1x384xf32, #tpu.memory_space<vmem>>, vector<1x1x128xf32>
    %8 = vector.shape_cast %7 : vector<1x1x128xf32> to vector<1x128xf32>
    %cst = arith.constant dense<0.000000e+00> : vector<128x128xf32>
    %9 = tpu.matmul %3, %6, %cst {dimension_numbers = #tpu.dot_dimension_numbers<[1], [0], [0], [1], [0, 0, 1, 1], [], []>} : vector<128x128xbf16>, vector<128x128xbf16>, vector<128x128xf32> -> vector<128x128xf32>
    %10 = vector.broadcast %8 : vector<1x128xf32> to vector<128x128xf32>
    %11 = arith.addf %9, %10 : vector<128x128xf32>
    %c0_10 = arith.constant 0 : index
    %c0_11 = arith.constant 0 : index
    %c128 = arith.constant 128 : index
    %12 = vector.load %arg18[%c0_10, %c0_11, %c128] : memref<1x128x384xbf16, #tpu.memory_space<vmem>>, vector<1x128x128xbf16>
    %13 = vector.shape_cast %12 : vector<1x128x128xbf16> to vector<128x128xbf16>
    %c0_12 = arith.constant 0 : index
    %c0_13 = arith.constant 0 : index
    %c128_14 = arith.constant 128 : index
    %14 = vector.load %arg19[%c0_12, %c0_13, %c128_14] : memref<1x1x384xf32, #tpu.memory_space<vmem>>, vector<1x1x128xf32>
    %15 = vector.shape_cast %14 : vector<1x1x128xf32> to vector<1x128xf32>
    %cst_15 = arith.constant dense<0.000000e+00> : vector<128x128xf32>
    %16 = tpu.matmul %3, %13, %cst_15 {dimension_numbers = #tpu.dot_dimension_numbers<[1], [0], [0], [1], [0, 0, 1, 1], [], []>} : vector<128x128xbf16>, vector<128x128xbf16>, vector<128x128xf32> -> vector<128x128xf32>
    %17 = vector.broadcast %15 : vector<1x128xf32> to vector<128x128xf32>
    %18 = arith.addf %16, %17 : vector<128x128xf32>
    %cst_16 = arith.constant dense<0.000000e+00> : vector<128xf32>
    %19 = vector.multi_reduction <add>, %4, %cst_16 [1] : vector<128x128xf32> to vector<128xf32>
    %20 = vector.shape_cast %19 : vector<128xf32> to vector<128x1xf32>
    %cst_17 = arith.constant 1.280000e+02 : f32
    %21 = vector.broadcast %cst_17 : f32 to vector<128x1xf32>
    %22 = arith.divf %20, %21 : vector<128x1xf32>
    %23 = arith.mulf %4, %4 : vector<128x128xf32>
    %cst_18 = arith.constant dense<0.000000e+00> : vector<128xf32>
    %24 = vector.multi_reduction <add>, %23, %cst_18 [1] : vector<128x128xf32> to vector<128xf32>
    %25 = vector.shape_cast %24 : vector<128xf32> to vector<128x1xf32>
    %cst_19 = arith.constant 1.280000e+02 : f32
    %26 = vector.broadcast %cst_19 : f32 to vector<128x1xf32>
    %27 = arith.divf %25, %26 : vector<128x1xf32>
    %28 = arith.mulf %22, %22 : vector<128x1xf32>
    %29 = arith.subf %27, %28 : vector<128x1xf32>
    %cst_20 = arith.constant 0.000000e+00 : f32
    %30 = vector.broadcast %cst_20 : f32 to vector<128x1xf32>
    %31 = arith.maximumf %29, %30 : vector<128x1xf32>
    %32 = vector.broadcast %22 : vector<128x1xf32> to vector<128x128xf32>
    %33 = arith.subf %4, %32 : vector<128x128xf32>
    %cst_21 = arith.constant 9.99999997E-7 : f32
    %34 = vector.broadcast %cst_21 : f32 to vector<128x1xf32>
    %35 = arith.addf %31, %34 : vector<128x1xf32>
    %36 = math.rsqrt %35 : vector<128x1xf32>
    %37 = vector.broadcast %36 : vector<128x1xf32> to vector<128x128xf32>
    %38 = arith.mulf %33, %37 : vector<128x128xf32>
    %cst_22 = arith.constant 1.000000e+00 : f32
    %39 = vector.broadcast %cst_22 : f32 to vector<128x128xf32>
    %40 = arith.addf %39, %18 : vector<128x128xf32>
    %41 = arith.mulf %38, %40 : vector<128x128xf32>
    %42 = arith.addf %41, %11 : vector<128x128xf32>
    %c0_23 = arith.constant 0 : index
    %c0_24 = arith.constant 0 : index
    %c0_25 = arith.constant 0 : index
    %43 = vector.load %arg20[%c0_23, %c0_24, %c0_25] : memref<1x128x128xbf16, #tpu.memory_space<vmem>>, vector<1x128x128xbf16>
    %44 = vector.shape_cast %43 : vector<1x128x128xbf16> to vector<128x128xbf16>
    %c0_26 = arith.constant 0 : index
    %c0_27 = arith.constant 0 : index
    %c0_28 = arith.constant 0 : index
    %45 = vector.load %arg21[%c0_26, %c0_27, %c0_28] : memref<1x1x128xf32, #tpu.memory_space<vmem>>, vector<1x1x128xf32>
    %46 = vector.shape_cast %45 : vector<1x1x128xf32> to vector<1x128xf32>
    %47 = arith.truncf %42 : vector<128x128xf32> to vector<128x128xbf16>
    %cst_29 = arith.constant dense<0.000000e+00> : vector<128x128xf32>
    %48 = tpu.matmul %47, %44, %cst_29 {dimension_numbers = #tpu.dot_dimension_numbers<[1], [0], [0], [1], [0, 0, 1, 1], [], []>} : vector<128x128xbf16>, vector<128x128xbf16>, vector<128x128xf32> -> vector<128x128xf32>
    %49 = vector.broadcast %46 : vector<1x128xf32> to vector<128x128xf32>
    %50 = arith.addf %48, %49 : vector<128x128xf32>
    %51 = arith.negf %50 : vector<128x128xf32>
    %52 = math.exp %51 : vector<128x128xf32>
    %cst_30 = arith.constant 1.000000e+00 : f32
    %53 = vector.broadcast %cst_30 : f32 to vector<128x128xf32>
    %54 = arith.addf %53, %52 : vector<128x128xf32>
    %55 = arith.divf %53, %54 : vector<128x128xf32>
    %56 = arith.mulf %50, %55 : vector<128x128xf32>
    %c0_31 = arith.constant 0 : index
    %c0_32 = arith.constant 0 : index
    %c0_33 = arith.constant 0 : index
    %57 = vector.load %arg22[%c0_31, %c0_32, %c0_33] : memref<1x128x128xbf16, #tpu.memory_space<vmem>>, vector<1x128x128xbf16>
    %58 = vector.shape_cast %57 : vector<1x128x128xbf16> to vector<128x128xbf16>
    %c0_34 = arith.constant 0 : index
    %c0_35 = arith.constant 0 : index
    %c0_36 = arith.constant 0 : index
    %59 = vector.load %arg23[%c0_34, %c0_35, %c0_36] : memref<1x1x128xf32, #tpu.memory_space<vmem>>, vector<1x1x128xf32>
    %60 = vector.shape_cast %59 : vector<1x1x128xf32> to vector<1x128xf32>
    %61 = arith.truncf %56 : vector<128x128xf32> to vector<128x128xbf16>
    %cst_37 = arith.constant dense<0.000000e+00> : vector<128x128xf32>
    %62 = tpu.matmul %61, %58, %cst_37 {dimension_numbers = #tpu.dot_dimension_numbers<[1], [0], [0], [1], [0, 0, 1, 1], [], []>} : vector<128x128xbf16>, vector<128x128xbf16>, vector<128x128xf32> -> vector<128x128xf32>
    %63 = vector.broadcast %60 : vector<1x128xf32> to vector<128x128xf32>
    %64 = arith.addf %62, %63 : vector<128x128xf32>
    %c0_38 = arith.constant 0 : index
    %c0_39 = arith.constant 0 : index
    %c256 = arith.constant 256 : index
    %65 = vector.load %arg18[%c0_38, %c0_39, %c256] : memref<1x128x384xbf16, #tpu.memory_space<vmem>>, vector<1x128x128xbf16>
    %66 = vector.shape_cast %65 : vector<1x128x128xbf16> to vector<128x128xbf16>
    %c0_40 = arith.constant 0 : index
    %c0_41 = arith.constant 0 : index
    %c256_42 = arith.constant 256 : index
    %67 = vector.load %arg19[%c0_40, %c0_41, %c256_42] : memref<1x1x384xf32, #tpu.memory_space<vmem>>, vector<1x1x128xf32>
    %68 = vector.shape_cast %67 : vector<1x1x128xf32> to vector<1x128xf32>
    %cst_43 = arith.constant dense<0.000000e+00> : vector<128x128xf32>
    %69 = tpu.matmul %3, %66, %cst_43 {dimension_numbers = #tpu.dot_dimension_numbers<[1], [0], [0], [1], [0, 0, 1, 1], [], []>} : vector<128x128xbf16>, vector<128x128xbf16>, vector<128x128xf32> -> vector<128x128xf32>
    %70 = vector.broadcast %68 : vector<1x128xf32> to vector<128x128xf32>
    %71 = arith.addf %69, %70 : vector<128x128xf32>
    %72 = arith.mulf %71, %64 : vector<128x128xf32>
    %73 = arith.addf %4, %72 : vector<128x128xf32>
    %c0_44 = arith.constant 0 : index
    %c0_45 = arith.constant 0 : index
    %74 = vector.load %arg25[%c0_44, %c0_45] : memref<128x128xf32, #tpu.memory_space<vmem>>, vector<128x128xf32>
    tpu.vector_store %arg25[%c0_44, %c0_45], %73 {strides = array<i32>} : memref<128x128xf32, #tpu.memory_space<vmem>>, vector<128x128xf32>,
    %c1_i32 = arith.constant 1 : i32
    %75 = arith.cmpi eq, %arg1, %c1_i32 : i32
    %76 = arith.extui %75 : i1 to i32
    %c0_i32_46 = arith.constant 0 : i32
    %77 = arith.cmpi ne, %76, %c0_i32_46 : i32
    scf.if %77 {
      %c0_47 = arith.constant 0 : index
      %c0_48 = arith.constant 0 : index
      %78 = vector.load %arg14[%c0_47, %c0_48] : memref<128x256xbf16, #tpu.memory_space<vmem>>, vector<128x128xbf16>
      %c0_49 = arith.constant 0 : index
      %c0_50 = arith.constant 0 : index
      %79 = vector.load %arg15[%c0_49, %c0_50] : memref<1x256xf32, #tpu.memory_space<vmem>>, vector<1x128xf32>
      %cst_51 = arith.constant dense<0.000000e+00> : vector<128x128xf32>
      %80 = tpu.matmul %3, %78, %cst_51 {dimension_numbers = #tpu.dot_dimension_numbers<[1], [0], [0], [1], [0, 0, 1, 1], [], []>} : vector<128x128xbf16>, vector<128x128xbf16>, vector<128x128xf32> -> vector<128x128xf32>
      %81 = vector.broadcast %79 : vector<1x128xf32> to vector<128x128xf32>
      %82 = arith.addf %80, %81 : vector<128x128xf32>
      %c0_52 = arith.constant 0 : index
      %c128_53 = arith.constant 128 : index
      %83 = vector.load %arg14[%c0_52, %c128_53] : memref<128x256xbf16, #tpu.memory_space<vmem>>, vector<128x128xbf16>
      %c0_54 = arith.constant 0 : index
      %c128_55 = arith.constant 128 : index
      %84 = vector.load %arg15[%c0_54, %c128_55] : memref<1x256xf32, #tpu.memory_space<vmem>>, vector<1x128xf32>
      %cst_56 = arith.constant dense<0.000000e+00> : vector<128x128xf32>
      %85 = tpu.matmul %3, %83, %cst_56 {dimension_numbers = #tpu.dot_dimension_numbers<[1], [0], [0], [1], [0, 0, 1, 1], [], []>} : vector<128x128xbf16>, vector<128x128xbf16>, vector<128x128xf32> -> vector<128x128xf32>
      %86 = vector.broadcast %84 : vector<1x128xf32> to vector<128x128xf32>
      %87 = arith.addf %85, %86 : vector<128x128xf32>
      %cst_57 = arith.constant dense<0.000000e+00> : vector<128xf32>
      %88 = vector.multi_reduction <add>, %73, %cst_57 [1] : vector<128x128xf32> to vector<128xf32>
      %89 = vector.shape_cast %88 : vector<128xf32> to vector<128x1xf32>
      %cst_58 = arith.constant 1.280000e+02 : f32
      %90 = vector.broadcast %cst_58 : f32 to vector<128x1xf32>
      %91 = arith.divf %89, %90 : vector<128x1xf32>
      %92 = arith.mulf %73, %73 : vector<128x128xf32>
      %cst_59 = arith.constant dense<0.000000e+00> : vector<128xf32>
      %93 = vector.multi_reduction <add>, %92, %cst_59 [1] : vector<128x128xf32> to vector<128xf32>
      %94 = vector.shape_cast %93 : vector<128xf32> to vector<128x1xf32>
      %cst_60 = arith.constant 1.280000e+02 : f32
      %95 = vector.broadcast %cst_60 : f32 to vector<128x1xf32>
      %96 = arith.divf %94, %95 : vector<128x1xf32>
      %97 = arith.mulf %91, %91 : vector<128x1xf32>
      %98 = arith.subf %96, %97 : vector<128x1xf32>
      %cst_61 = arith.constant 0.000000e+00 : f32
      %99 = vector.broadcast %cst_61 : f32 to vector<128x1xf32>
      %100 = arith.maximumf %98, %99 : vector<128x1xf32>
      %101 = vector.broadcast %91 : vector<128x1xf32> to vector<128x128xf32>
      %102 = arith.subf %73, %101 : vector<128x128xf32>
      %cst_62 = arith.constant 9.99999997E-7 : f32
      %103 = vector.broadcast %cst_62 : f32 to vector<128x1xf32>
      %104 = arith.addf %100, %103 : vector<128x1xf32>
      %105 = math.rsqrt %104 : vector<128x1xf32>
      %106 = vector.broadcast %105 : vector<128x1xf32> to vector<128x128xf32>
      %107 = arith.mulf %102, %106 : vector<128x128xf32>
      %cst_63 = arith.constant 1.000000e+00 : f32
      %108 = vector.broadcast %cst_63 : f32 to vector<128x128xf32>
      %109 = arith.addf %108, %87 : vector<128x128xf32>
      %110 = arith.mulf %107, %109 : vector<128x128xf32>
      %111 = arith.addf %110, %82 : vector<128x128xf32>
      %c0_64 = arith.constant 0 : index
      %c0_65 = arith.constant 0 : index
      %112 = vector.load %arg16[%c0_64, %c0_65] : memref<128x32xbf16, #tpu.memory_space<vmem>>, vector<128x32xbf16>
      %c0_66 = arith.constant 0 : index
      %c0_67 = arith.constant 0 : index
      %113 = vector.load %arg17[%c0_66, %c0_67] : memref<1x32xf32, #tpu.memory_space<vmem>>, vector<1x32xf32>
      %114 = arith.truncf %111 : vector<128x128xf32> to vector<128x128xbf16>
      %cst_68 = arith.constant dense<0.000000e+00> : vector<128x32xf32>
      %115 = tpu.matmul %114, %112, %cst_68 {dimension_numbers = #tpu.dot_dimension_numbers<[1], [0], [0], [1], [0, 0, 1, 1], [], []>} : vector<128x128xbf16>, vector<128x32xbf16>, vector<128x32xf32> -> vector<128x32xf32>
      %116 = vector.broadcast %113 : vector<1x32xf32> to vector<128x32xf32>
      %117 = arith.addf %115, %116 : vector<128x32xf32>
      %c0_69 = arith.constant 0 : index
      %c0_70 = arith.constant 0 : index
      %118 = vector.load %arg4[%c0_69, %c0_70] : memref<128x32xf32, #tpu.memory_space<vmem>>, vector<128x32xf32>
      %119 = arith.subf %117, %118 : vector<128x32xf32>
      %120 = arith.mulf %119, %119 : vector<128x32xf32>
      %cst_71 = arith.constant dense<0.000000e+00> : vector<128xf32>
      %121 = vector.multi_reduction <add>, %120, %cst_71 [1] : vector<128x32xf32> to vector<128xf32>
      %122 = vector.shape_cast %121 : vector<128xf32> to vector<128x1xf32>
      %c0_i32_72 = arith.constant 0 : i32
      %123 = arith.cmpi eq, %arg0, %c0_i32_72 : i32
      %124 = arith.extui %123 : i1 to i32
      %c0_i32_73 = arith.constant 0 : i32
      %125 = arith.cmpi ne, %124, %c0_i32_73 : i32
      scf.if %125 {
        %c128_i32 = arith.constant 128 : i32
        %129 = arith.muli %arg0, %c128_i32 : i32
        %130 = tpu.iota {dimensions = array<i32: 0>} : vector<128x1xi32>
        %131 = vector.broadcast %129 : i32 to vector<128x1xi32>
        %132 = arith.addi %131, %130 : vector<128x1xi32>
        %c64_i32 = arith.constant 64 : i32
        %133 = vector.broadcast %c64_i32 : i32 to vector<128x1xi32>
        %134 = arith.cmpi slt, %132, %133 : vector<128x1xi32>
        %cst_76 = arith.constant 0.000000e+00 : f32
        %135 = vector.broadcast %cst_76 : f32 to vector<128x1xf32>
        %136 = arith.select %134, %122, %135 : vector<128x1xi1>, vector<128x1xf32>
        %c0_77 = arith.constant 0 : index
        %c0_78 = arith.constant 0 : index
        %137 = vector.load %arg24[%c0_77, %c0_78] : memref<128x1xf32, #tpu.memory_space<vmem>>, vector<128x1xf32>
        tpu.vector_store %arg24[%c0_77, %c0_78], %136 {strides = array<i32>} : memref<128x1xf32, #tpu.memory_space<vmem>>, vector<128x1xf32>,
      } else {
      }
      %c0_i32_74 = arith.constant 0 : i32
      %126 = arith.cmpi ne, %arg0, %c0_i32_74 : i32
      %127 = arith.extui %126 : i1 to i32
      %c0_i32_75 = arith.constant 0 : i32
      %128 = arith.cmpi ne, %127, %c0_i32_75 : i32
      scf.if %128 {
        %c0_76 = arith.constant 0 : index
        %c0_77 = arith.constant 0 : index
        %129 = vector.load %arg24[%c0_76, %c0_77] : memref<128x1xf32, #tpu.memory_space<vmem>>, vector<128x1xf32>
        tpu.vector_store %arg24[%c0_76, %c0_77], %122 {strides = array<i32>} : memref<128x1xf32, #tpu.memory_space<vmem>>, vector<128x1xf32>,
      } else {
      }
    } else {
    }
    return
  }
  func.func @transform_0(%arg0: i32, %arg1: i32) -> (i32, i32) {
    %c0_i32 = arith.constant 0 : i32
    %c0_i32_0 = arith.constant 0 : i32
    return %arg0, %c0_i32 : i32, i32
  }
  func.func @transform_1(%arg0: i32, %arg1: i32) -> (i32, i32) {
    %c0_i32 = arith.constant 0 : i32
    %c0_i32_0 = arith.constant 0 : i32
    return %arg0, %c0_i32 : i32, i32
  }
  func.func @transform_2(%arg0: i32, %arg1: i32) -> (i32, i32) {
    %c0_i32 = arith.constant 0 : i32
    %c0_i32_0 = arith.constant 0 : i32
    return %arg0, %c0_i32 : i32, i32
  }
  func.func @transform_3(%arg0: i32, %arg1: i32) -> (i32, i32) {
    %c0_i32 = arith.constant 0 : i32
    %c0_i32_0 = arith.constant 0 : i32
    return %arg0, %c0_i32 : i32, i32
  }
  func.func @transform_4(%arg0: i32, %arg1: i32) -> (i32, i32) {
    %c0_i32 = arith.constant 0 : i32
    %c0_i32_0 = arith.constant 0 : i32
    %c0_i32_1 = arith.constant 0 : i32
    return %c0_i32, %c0_i32_0 : i32, i32
  }
  func.func @transform_5(%arg0: i32, %arg1: i32) -> (i32, i32) {
    %c0_i32 = arith.constant 0 : i32
    %c0_i32_0 = arith.constant 0 : i32
    %c0_i32_1 = arith.constant 0 : i32
    return %c0_i32, %c0_i32_0 : i32, i32
  }
  func.func @transform_6(%arg0: i32, %arg1: i32) -> (i32, i32) {
    %c0_i32 = arith.constant 0 : i32
    %c0_i32_0 = arith.constant 0 : i32
    %c0_i32_1 = arith.constant 0 : i32
    return %c0_i32, %c0_i32_0 : i32, i32
  }
  func.func @transform_7(%arg0: i32, %arg1: i32) -> (i32, i32) {
    %c0_i32 = arith.constant 0 : i32
    %c0_i32_0 = arith.constant 0 : i32
    %c0_i32_1 = arith.constant 0 : i32
    return %c0_i32, %c0_i32_0 : i32, i32
  }
  func.func @transform_8(%arg0: i32, %arg1: i32) -> (i32, i32) {
    %c0_i32 = arith.constant 0 : i32
    %c0_i32_0 = arith.constant 0 : i32
    %c0_i32_1 = arith.constant 0 : i32
    return %c0_i32, %c0_i32_0 : i32, i32
  }
  func.func @transform_9(%arg0: i32, %arg1: i32) -> (i32, i32) {
    %c0_i32 = arith.constant 0 : i32
    %c0_i32_0 = arith.constant 0 : i32
    %c0_i32_1 = arith.constant 0 : i32
    return %c0_i32, %c0_i32_0 : i32, i32
  }
  func.func @transform_10(%arg0: i32, %arg1: i32) -> (i32, i32) {
    %c0_i32 = arith.constant 0 : i32
    %c0_i32_0 = arith.constant 0 : i32
    %c0_i32_1 = arith.constant 0 : i32
    return %c0_i32, %c0_i32_0 : i32, i32
  }
  func.func @transform_11(%arg0: i32, %arg1: i32) -> (i32, i32) {
    %c0_i32 = arith.constant 0 : i32
    %c0_i32_0 = arith.constant 0 : i32
    %c0_i32_1 = arith.constant 0 : i32
    return %c0_i32, %c0_i32_0 : i32, i32
  }
  func.func @transform_12(%arg0: i32, %arg1: i32) -> (i32, i32) {
    %c0_i32 = arith.constant 0 : i32
    %c0_i32_0 = arith.constant 0 : i32
    %c0_i32_1 = arith.constant 0 : i32
    return %c0_i32, %c0_i32_0 : i32, i32
  }
  func.func @transform_13(%arg0: i32, %arg1: i32) -> (i32, i32) {
    %c0_i32 = arith.constant 0 : i32
    %c0_i32_0 = arith.constant 0 : i32
    %c0_i32_1 = arith.constant 0 : i32
    return %c0_i32, %c0_i32_0 : i32, i32
  }
  func.func @transform_14(%arg0: i32, %arg1: i32) -> (i32, i32) {
    %c0_i32 = arith.constant 0 : i32
    %c0_i32_0 = arith.constant 0 : i32
    %c0_i32_1 = arith.constant 0 : i32
    return %c0_i32, %c0_i32_0 : i32, i32
  }
  func.func @transform_15(%arg0: i32, %arg1: i32) -> (i32, i32) {
    %c0_i32 = arith.constant 0 : i32
    %c0_i32_0 = arith.constant 0 : i32
    %c0_i32_1 = arith.constant 0 : i32
    return %c0_i32, %c0_i32_0 : i32, i32
  }
  func.func @transform_16(%arg0: i32, %arg1: i32) -> (i32, i32, i32) {
    %c0_i32 = arith.constant 0 : i32
    %c0_i32_0 = arith.constant 0 : i32
    %c0_i32_1 = arith.constant 0 : i32
    return %arg1, %c0_i32, %c0_i32_0 : i32, i32, i32
  }
  func.func @transform_17(%arg0: i32, %arg1: i32) -> (i32, i32, i32) {
    %c0_i32 = arith.constant 0 : i32
    %c0_i32_0 = arith.constant 0 : i32
    %c0_i32_1 = arith.constant 0 : i32
    return %arg1, %c0_i32, %c0_i32_0 : i32, i32, i32
  }
  func.func @transform_18(%arg0: i32, %arg1: i32) -> (i32, i32, i32) {
    %c0_i32 = arith.constant 0 : i32
    %c0_i32_0 = arith.constant 0 : i32
    %c0_i32_1 = arith.constant 0 : i32
    return %arg1, %c0_i32, %c0_i32_0 : i32, i32, i32
  }
  func.func @transform_19(%arg0: i32, %arg1: i32) -> (i32, i32, i32) {
    %c0_i32 = arith.constant 0 : i32
    %c0_i32_0 = arith.constant 0 : i32
    %c0_i32_1 = arith.constant 0 : i32
    return %arg1, %c0_i32, %c0_i32_0 : i32, i32, i32
  }
  func.func @transform_20(%arg0: i32, %arg1: i32) -> (i32, i32, i32) {
    %c0_i32 = arith.constant 0 : i32
    %c0_i32_0 = arith.constant 0 : i32
    %c0_i32_1 = arith.constant 0 : i32
    return %arg1, %c0_i32, %c0_i32_0 : i32, i32, i32
  }
  func.func @transform_21(%arg0: i32, %arg1: i32) -> (i32, i32, i32) {
    %c0_i32 = arith.constant 0 : i32
    %c0_i32_0 = arith.constant 0 : i32
    %c0_i32_1 = arith.constant 0 : i32
    return %arg1, %c0_i32, %c0_i32_0 : i32, i32, i32
  }
  func.func @transform_22(%arg0: i32, %arg1: i32) -> (i32, i32) {
    %c0_i32 = arith.constant 0 : i32
    %c0_i32_0 = arith.constant 0 : i32
    return %arg0, %c0_i32 : i32, i32
  }
}

module attributes {stable_mosaic.version = 11 : i64} {
  func.func @flow_mlp_kernel(%arg0: i32, %arg1: i32, %arg2: memref<128x32xbf16, #tpu.memory_space<vmem>>, %arg3: memref<128x256xbf16, #tpu.memory_space<vmem>>, %arg4: memref<128x32xf32, #tpu.memory_space<vmem>>, %arg5: memref<128x32xbf16, #tpu.memory_space<vmem>>, %arg6: memref<256x128xbf16, #tpu.memory_space<vmem>>, %arg7: memref<1x128xf32, #tpu.memory_space<vmem>>, %arg8: memref<128x128xbf16, #tpu.memory_space<vmem>>, %arg9: memref<1x128xf32, #tpu.memory_space<vmem>>, %arg10: memref<32x128xbf16, #tpu.memory_space<vmem>>, %arg11: memref<1x128xf32, #tpu.memory_space<vmem>>, %arg12: memref<32x128xbf16, #tpu.memory_space<vmem>>, %arg13: memref<1x128xf32, #tpu.memory_space<vmem>>, %arg14: memref<128x256xbf16, #tpu.memory_space<vmem>>, %arg15: memref<1x256xf32, #tpu.memory_space<vmem>>, %arg16: memref<128x32xbf16, #tpu.memory_space<vmem>>, %arg17: memref<1x32xf32, #tpu.memory_space<vmem>>, %arg18: memref<1x128x384xbf16, #tpu.memory_space<vmem>>, %arg19: memref<1x1x384xf32, #tpu.memory_space<vmem>>, %arg20: memref<1x128x128xbf16, #tpu.memory_space<vmem>>, %arg21: memref<1x1x128xf32, #tpu.memory_space<vmem>>, %arg22: memref<1x128x128xbf16, #tpu.memory_space<vmem>>, %arg23: memref<1x1x128xf32, #tpu.memory_space<vmem>>, %arg24: memref<128x1xf32, #tpu.memory_space<vmem>>, %arg25: memref<128x128xf32, #tpu.memory_space<vmem>>, %arg26: memref<128x128xbf16, #tpu.memory_space<vmem>>) attributes {dimension_semantics = [#tpu.dimension_semantics<parallel>, #tpu.dimension_semantics<arbitrary>], iteration_bounds = array<i64: 1, 2>, scalar_prefetch = 0 : i64, scratch_operands = 2 : i64, tpu.core_type = #tpu.core_type<tc>, window_params = [{transform_indices = @transform_0, window_bounds = array<i64: 128, 32>}, {transform_indices = @transform_1, window_bounds = array<i64: 128, 256>}, {transform_indices = @transform_2, window_bounds = array<i64: 128, 32>}, {transform_indices = @transform_3, window_bounds = array<i64: 128, 32>}, {pipeline_mode = #tpu.pipeline_mode<synchronous>, transform_indices = @transform_4, window_bounds = array<i64: 256, 128>}, {pipeline_mode = #tpu.pipeline_mode<synchronous>, transform_indices = @transform_5, window_bounds = array<i64: 1, 128>}, {pipeline_mode = #tpu.pipeline_mode<synchronous>, transform_indices = @transform_6, window_bounds = array<i64: 128, 128>}, {pipeline_mode = #tpu.pipeline_mode<synchronous>, transform_indices = @transform_7, window_bounds = array<i64: 1, 128>}, {pipeline_mode = #tpu.pipeline_mode<synchronous>, transform_indices = @transform_8, window_bounds = array<i64: 32, 128>}, {pipeline_mode = #tpu.pipeline_mode<synchronous>, transform_indices = @transform_9, window_bounds = array<i64: 1, 128>}, {pipeline_mode = #tpu.pipeline_mode<synchronous>, transform_indices = @transform_10, window_bounds = array<i64: 32, 128>}, {pipeline_mode = #tpu.pipeline_mode<synchronous>, transform_indices = @transform_11, window_bounds = array<i64: 1, 128>}, {pipeline_mode = #tpu.pipeline_mode<synchronous>, transform_indices = @transform_12, window_bounds = array<i64: 128, 256>}, {pipeline_mode = #tpu.pipeline_mode<synchronous>, transform_indices = @transform_13, window_bounds = array<i64: 1, 256>}, {pipeline_mode = #tpu.pipeline_mode<synchronous>, transform_indices = @transform_14, window_bounds = array<i64: 128, 32>}, {pipeline_mode = #tpu.pipeline_mode<synchronous>, transform_indices = @transform_15, window_bounds = array<i64: 1, 32>}, {transform_indices = @transform_16, window_bounds = array<i64: 1, 128, 384>}, {transform_indices = @transform_17, window_bounds = array<i64: 1, 1, 384>}, {transform_indices = @transform_18, window_bounds = array<i64: 1, 128, 128>}, {transform_indices = @transform_19, window_bounds = array<i64: 1, 1, 128>}, {transform_indices = @transform_20, window_bounds = array<i64: 1, 128, 128>}, {transform_indices = @transform_21, window_bounds = array<i64: 1, 1, 128>}, {transform_indices = @transform_22, window_bounds = array<i64: 128, 1>}]} {
    %c0_i32 = arith.constant 0 : i32
    %0 = arith.cmpi eq, %arg1, %c0_i32 : i32
    %1 = arith.extui %0 : i1 to i32
    %c0_i32_0 = arith.constant 0 : i32
    %2 = arith.cmpi ne, %1, %c0_i32_0 : i32
    scf.if %2 {
      %c0_47 = arith.constant 0 : index
      %c0_48 = arith.constant 0 : index
      %78 = vector.load %arg3[%c0_47, %c0_48] : memref<128x256xbf16, #tpu.memory_space<vmem>>, vector<128x256xbf16>
      %c0_49 = arith.constant 0 : index
      %c0_50 = arith.constant 0 : index
      %79 = vector.load %arg6[%c0_49, %c0_50] : memref<256x128xbf16, #tpu.memory_space<vmem>>, vector<256x128xbf16>
      %c0_51 = arith.constant 0 : index
      %c0_52 = arith.constant 0 : index
      %80 = vector.load %arg7[%c0_51, %c0_52] : memref<1x128xf32, #tpu.memory_space<vmem>>, vector<1x128xf32>
      %cst_53 = arith.constant dense<0.000000e+00> : vector<128x128xf32>
      %81 = tpu.matmul %78, %79, %cst_53 {dimension_numbers = #tpu.dot_dimension_numbers<[1], [0], [0], [1], [0, 0, 1, 1], [], []>} : vector<128x256xbf16>, vector<256x128xbf16>, vector<128x128xf32> -> vector<128x128xf32>
      %82 = vector.broadcast %80 : vector<1x128xf32> to vector<128x128xf32>
      %83 = arith.addf %81, %82 : vector<128x128xf32>
      %84 = arith.negf %83 : vector<128x128xf32>
      %85 = math.exp %84 : vector<128x128xf32>
      %cst_54 = arith.constant 1.000000e+00 : f32
      %86 = vector.broadcast %cst_54 : f32 to vector<128x128xf32>
      %87 = arith.addf %86, %85 : vector<128x128xf32>
      %88 = arith.divf %86, %87 : vector<128x128xf32>
      %89 = arith.mulf %83, %88 : vector<128x128xf32>
      %c0_55 = arith.constant 0 : index
      %c0_56 = arith.constant 0 : index
      %90 = vector.load %arg8[%c0_55, %c0_56] : memref<128x128xbf16, #tpu.memory_space<vmem>>, vector<128x128xbf16>
      %c0_57 = arith.constant 0 : index
      %c0_58 = arith.constant 0 : index
      %91 = vector.load %arg9[%c0_57, %c0_58] : memref<1x128xf32, #tpu.memory_space<vmem>>, vector<1x128xf32>
      %92 = arith.truncf %89 : vector<128x128xf32> to vector<128x128xbf16>
      %cst_59 = arith.constant dense<0.000000e+00> : vector<128x128xf32>
      %93 = tpu.matmul %92, %90, %cst_59 {dimension_numbers = #tpu.dot_dimension_numbers<[1], [0], [0], [1], [0, 0, 1, 1], [], []>} : vector<128x128xbf16>, vector<128x128xbf16>, vector<128x128xf32> -> vector<128x128xf32>
      %94 = vector.broadcast %91 : vector<1x128xf32> to vector<128x128xf32>
      %95 = arith.addf %93, %94 : vector<128x128xf32>
      %c0_60 = arith.constant 0 : index
      %c0_61 = arith.constant 0 : index
      %96 = vector.load %arg5[%c0_60, %c0_61] : memref<128x32xbf16, #tpu.memory_space<vmem>>, vector<128x32xbf16>
      %c0_62 = arith.constant 0 : index
      %c0_63 = arith.constant 0 : index
      %97 = vector.load %arg10[%c0_62, %c0_63] : memref<32x128xbf16, #tpu.memory_space<vmem>>, vector<32x128xbf16>
      %c0_64 = arith.constant 0 : index
      %c0_65 = arith.constant 0 : index
      %98 = vector.load %arg11[%c0_64, %c0_65] : memref<1x128xf32, #tpu.memory_space<vmem>>, vector<1x128xf32>
      %cst_66 = arith.constant dense<0.000000e+00> : vector<128x128xf32>
      %99 = tpu.matmul %96, %97, %cst_66 {dimension_numbers = #tpu.dot_dimension_numbers<[1], [0], [0], [1], [0, 0, 1, 1], [], []>} : vector<128x32xbf16>, vector<32x128xbf16>, vector<128x128xf32> -> vector<128x128xf32>
      %100 = vector.broadcast %98 : vector<1x128xf32> to vector<128x128xf32>
      %101 = arith.addf %99, %100 : vector<128x128xf32>
      %102 = arith.addf %95, %101 : vector<128x128xf32>
      %103 = arith.negf %102 : vector<128x128xf32>
      %104 = math.exp %103 : vector<128x128xf32>
      %cst_67 = arith.constant 1.000000e+00 : f32
      %105 = vector.broadcast %cst_67 : f32 to vector<128x128xf32>
      %106 = arith.addf %105, %104 : vector<128x128xf32>
      %107 = arith.divf %105, %106 : vector<128x128xf32>
      %108 = arith.mulf %102, %107 : vector<128x128xf32>
      %109 = arith.truncf %108 : vector<128x128xf32> to vector<128x128xbf16>
      %c0_68 = arith.constant 0 : index
      %c0_69 = arith.constant 0 : index
      %110 = vector.load %arg26[%c0_68, %c0_69] : memref<128x128xbf16, #tpu.memory_space<vmem>>, vector<128x128xbf16>
      tpu.vector_store %arg26[%c0_68, %c0_69], %109 {strides = array<i32>} : memref<128x128xbf16, #tpu.memory_space<vmem>>, vector<128x128xbf16>,
      %c0_70 = arith.constant 0 : index
      %c0_71 = arith.constant 0 : index
      %111 = vector.load %arg2[%c0_70, %c0_71] : memref<128x32xbf16, #tpu.memory_space<vmem>>, vector<128x32xbf16>
      %c0_72 = arith.constant 0 : index
      %c0_73 = arith.constant 0 : index
      %112 = vector.load %arg12[%c0_72, %c0_73] : memref<32x128xbf16, #tpu.memory_space<vmem>>, vector<32x128xbf16>
      %c0_74 = arith.constant 0 : index
      %c0_75 = arith.constant 0 : index
      %113 = vector.load %arg13[%c0_74, %c0_75] : memref<1x128xf32, #tpu.memory_space<vmem>>, vector<1x128xf32>
      %cst_76 = arith.constant dense<0.000000e+00> : vector<128x128xf32>
      %114 = tpu.matmul %111, %112, %cst_76 {dimension_numbers = #tpu.dot_dimension_numbers<[1], [0], [0], [1], [0, 0, 1, 1], [], []>} : vector<128x32xbf16>, vector<32x128xbf16>, vector<128x128xf32> -> vector<128x128xf32>
      %115 = vector.broadcast %113 : vector<1x128xf32> to vector<128x128xf32>
      %116 = arith.addf %114, %115 : vector<128x128xf32>
      %c0_77 = arith.constant 0 : index
      %c0_78 = arith.constant 0 : index
      %117 = vector.load %arg25[%c0_77, %c0_78] : memref<128x128xf32, #tpu.memory_space<vmem>>, vector<128x128xf32>
      tpu.vector_store %arg25[%c0_77, %c0_78], %116 {strides = array<i32>} : memref<128x128xf32, #tpu.memory_space<vmem>>, vector<128x128xf32>,
    } else {
    }
    %c0 = arith.constant 0 : index
    %c0_1 = arith.constant 0 : index
    %3 = vector.load %arg26[%c0, %c0_1] : memref<128x128xbf16, #tpu.memory_space<vmem>>, vector<128x128xbf16>
    %c0_2 = arith.constant 0 : index
    %c0_3 = arith.constant 0 : index
    %4 = vector.load %arg25[%c0_2, %c0_3] : memref<128x128xf32, #tpu.memory_space<vmem>>, vector<128x128xf32>
    %c0_4 = arith.constant 0 : index
    %c0_5 = arith.constant 0 : index
    %c0_6 = arith.constant 0 : index
    %5 = vector.load %arg18[%c0_4, %c0_5, %c0_6] : memref<1x128x384xbf16, #tpu.memory_space<vmem>>, vector<1x128x128xbf16>
    %6 = vector.shape_cast %5 : vector<1x128x128xbf16> to vector<128x128xbf16>
    %c0_7 = arith.constant 0 : index
    %c0_8 = arith.constant 0 : index
    %c0_9 = arith.constant 0 : index
    %7 = vector.load %arg19[%c0_7, %c0_8, %c0_9] : memref<1x1x384xf32, #tpu.memory_space<vmem>>, vector<1x1x128xf32>
    %8 = vector.shape_cast %7 : vector<1x1x128xf32> to vector<1x128xf32>
    %cst = arith.constant dense<0.000000e+00> : vector<128x128xf32>
    %9 = tpu.matmul %3, %6, %cst {dimension_numbers = #tpu.dot_dimension_numbers<[1], [0], [0], [1], [0, 0, 1, 1], [], []>} : vector<128x128xbf16>, vector<128x128xbf16>, vector<128x128xf32> -> vector<128x128xf32>
    %10 = vector.broadcast %8 : vector<1x128xf32> to vector<128x128xf32>
    %11 = arith.addf %9, %10 : vector<128x128xf32>
    %c0_10 = arith.constant 0 : index
    %c0_11 = arith.constant 0 : index
    %c128 = arith.constant 128 : index
    %12 = vector.load %arg18[%c0_10, %c0_11, %c128] : memref<1x128x384xbf16, #tpu.memory_space<vmem>>, vector<1x128x128xbf16>
    %13 = vector.shape_cast %12 : vector<1x128x128xbf16> to vector<128x128xbf16>
    %c0_12 = arith.constant 0 : index
    %c0_13 = arith.constant 0 : index
    %c128_14 = arith.constant 128 : index
    %14 = vector.load %arg19[%c0_12, %c0_13, %c128_14] : memref<1x1x384xf32, #tpu.memory_space<vmem>>, vector<1x1x128xf32>
    %15 = vector.shape_cast %14 : vector<1x1x128xf32> to vector<1x128xf32>
    %cst_15 = arith.constant dense<0.000000e+00> : vector<128x128xf32>
    %16 = tpu.matmul %3, %13, %cst_15 {dimension_numbers = #tpu.dot_dimension_numbers<[1], [0], [0], [1], [0, 0, 1, 1], [], []>} : vector<128x128xbf16>, vector<128x128xbf16>, vector<128x128xf32> -> vector<128x128xf32>
    %17 = vector.broadcast %15 : vector<1x128xf32> to vector<128x128xf32>
    %18 = arith.addf %16, %17 : vector<128x128xf32>
    %cst_16 = arith.constant dense<0.000000e+00> : vector<128xf32>
    %19 = vector.multi_reduction <add>, %4, %cst_16 [1] : vector<128x128xf32> to vector<128xf32>
    %20 = vector.shape_cast %19 : vector<128xf32> to vector<128x1xf32>
    %cst_17 = arith.constant 1.280000e+02 : f32
    %21 = vector.broadcast %cst_17 : f32 to vector<128x1xf32>
    %22 = arith.divf %20, %21 : vector<128x1xf32>
    %23 = arith.mulf %4, %4 : vector<128x128xf32>
    %cst_18 = arith.constant dense<0.000000e+00> : vector<128xf32>
    %24 = vector.multi_reduction <add>, %23, %cst_18 [1] : vector<128x128xf32> to vector<128xf32>
    %25 = vector.shape_cast %24 : vector<128xf32> to vector<128x1xf32>
    %cst_19 = arith.constant 1.280000e+02 : f32
    %26 = vector.broadcast %cst_19 : f32 to vector<128x1xf32>
    %27 = arith.divf %25, %26 : vector<128x1xf32>
    %28 = arith.mulf %22, %22 : vector<128x1xf32>
    %29 = arith.subf %27, %28 : vector<128x1xf32>
    %cst_20 = arith.constant 0.000000e+00 : f32
    %30 = vector.broadcast %cst_20 : f32 to vector<128x1xf32>
    %31 = arith.maximumf %29, %30 : vector<128x1xf32>
    %32 = vector.broadcast %22 : vector<128x1xf32> to vector<128x128xf32>
    %33 = arith.subf %4, %32 : vector<128x128xf32>
    %cst_21 = arith.constant 9.99999997E-7 : f32
    %34 = vector.broadcast %cst_21 : f32 to vector<128x1xf32>
    %35 = arith.addf %31, %34 : vector<128x1xf32>
    %36 = math.rsqrt %35 : vector<128x1xf32>
    %37 = vector.broadcast %36 : vector<128x1xf32> to vector<128x128xf32>
    %38 = arith.mulf %33, %37 : vector<128x128xf32>
    %cst_22 = arith.constant 1.000000e+00 : f32
    %39 = vector.broadcast %cst_22 : f32 to vector<128x128xf32>
    %40 = arith.addf %39, %18 : vector<128x128xf32>
    %41 = arith.mulf %38, %40 : vector<128x128xf32>
    %42 = arith.addf %41, %11 : vector<128x128xf32>
    %c0_23 = arith.constant 0 : index
    %c0_24 = arith.constant 0 : index
    %c0_25 = arith.constant 0 : index
    %43 = vector.load %arg20[%c0_23, %c0_24, %c0_25] : memref<1x128x128xbf16, #tpu.memory_space<vmem>>, vector<1x128x128xbf16>
    %44 = vector.shape_cast %43 : vector<1x128x128xbf16> to vector<128x128xbf16>
    %c0_26 = arith.constant 0 : index
    %c0_27 = arith.constant 0 : index
    %c0_28 = arith.constant 0 : index
    %45 = vector.load %arg21[%c0_26, %c0_27, %c0_28] : memref<1x1x128xf32, #tpu.memory_space<vmem>>, vector<1x1x128xf32>
    %46 = vector.shape_cast %45 : vector<1x1x128xf32> to vector<1x128xf32>
    %47 = arith.truncf %42 : vector<128x128xf32> to vector<128x128xbf16>
    %cst_29 = arith.constant dense<0.000000e+00> : vector<128x128xf32>
    %48 = tpu.matmul %47, %44, %cst_29 {dimension_numbers = #tpu.dot_dimension_numbers<[1], [0], [0], [1], [0, 0, 1, 1], [], []>} : vector<128x128xbf16>, vector<128x128xbf16>, vector<128x128xf32> -> vector<128x128xf32>
    %49 = vector.broadcast %46 : vector<1x128xf32> to vector<128x128xf32>
    %50 = arith.addf %48, %49 : vector<128x128xf32>
    %51 = arith.negf %50 : vector<128x128xf32>
    %52 = math.exp %51 : vector<128x128xf32>
    %cst_30 = arith.constant 1.000000e+00 : f32
    %53 = vector.broadcast %cst_30 : f32 to vector<128x128xf32>
    %54 = arith.addf %53, %52 : vector<128x128xf32>
    %55 = arith.divf %53, %54 : vector<128x128xf32>
    %56 = arith.mulf %50, %55 : vector<128x128xf32>
    %c0_31 = arith.constant 0 : index
    %c0_32 = arith.constant 0 : index
    %c0_33 = arith.constant 0 : index
    %57 = vector.load %arg22[%c0_31, %c0_32, %c0_33] : memref<1x128x128xbf16, #tpu.memory_space<vmem>>, vector<1x128x128xbf16>
    %58 = vector.shape_cast %57 : vector<1x128x128xbf16> to vector<128x128xbf16>
    %c0_34 = arith.constant 0 : index
    %c0_35 = arith.constant 0 : index
    %c0_36 = arith.constant 0 : index
    %59 = vector.load %arg23[%c0_34, %c0_35, %c0_36] : memref<1x1x128xf32, #tpu.memory_space<vmem>>, vector<1x1x128xf32>
    %60 = vector.shape_cast %59 : vector<1x1x128xf32> to vector<1x128xf32>
    %61 = arith.truncf %56 : vector<128x128xf32> to vector<128x128xbf16>
    %cst_37 = arith.constant dense<0.000000e+00> : vector<128x128xf32>
    %62 = tpu.matmul %61, %58, %cst_37 {dimension_numbers = #tpu.dot_dimension_numbers<[1], [0], [0], [1], [0, 0, 1, 1], [], []>} : vector<128x128xbf16>, vector<128x128xbf16>, vector<128x128xf32> -> vector<128x128xf32>
    %63 = vector.broadcast %60 : vector<1x128xf32> to vector<128x128xf32>
    %64 = arith.addf %62, %63 : vector<128x128xf32>
    %c0_38 = arith.constant 0 : index
    %c0_39 = arith.constant 0 : index
    %c256 = arith.constant 256 : index
    %65 = vector.load %arg18[%c0_38, %c0_39, %c256] : memref<1x128x384xbf16, #tpu.memory_space<vmem>>, vector<1x128x128xbf16>
    %66 = vector.shape_cast %65 : vector<1x128x128xbf16> to vector<128x128xbf16>
    %c0_40 = arith.constant 0 : index
    %c0_41 = arith.constant 0 : index
    %c256_42 = arith.constant 256 : index
    %67 = vector.load %arg19[%c0_40, %c0_41, %c256_42] : memref<1x1x384xf32, #tpu.memory_space<vmem>>, vector<1x1x128xf32>
    %68 = vector.shape_cast %67 : vector<1x1x128xf32> to vector<1x128xf32>
    %cst_43 = arith.constant dense<0.000000e+00> : vector<128x128xf32>
    %69 = tpu.matmul %3, %66, %cst_43 {dimension_numbers = #tpu.dot_dimension_numbers<[1], [0], [0], [1], [0, 0, 1, 1], [], []>} : vector<128x128xbf16>, vector<128x128xbf16>, vector<128x128xf32> -> vector<128x128xf32>
    %70 = vector.broadcast %68 : vector<1x128xf32> to vector<128x128xf32>
    %71 = arith.addf %69, %70 : vector<128x128xf32>
    %72 = arith.mulf %71, %64 : vector<128x128xf32>
    %73 = arith.addf %4, %72 : vector<128x128xf32>
    %c0_44 = arith.constant 0 : index
    %c0_45 = arith.constant 0 : index
    %74 = vector.load %arg25[%c0_44, %c0_45] : memref<128x128xf32, #tpu.memory_space<vmem>>, vector<128x128xf32>
    tpu.vector_store %arg25[%c0_44, %c0_45], %73 {strides = array<i32>} : memref<128x128xf32, #tpu.memory_space<vmem>>, vector<128x128xf32>,
    %c1_i32 = arith.constant 1 : i32
    %75 = arith.cmpi eq, %arg1, %c1_i32 : i32
    %76 = arith.extui %75 : i1 to i32
    %c0_i32_46 = arith.constant 0 : i32
    %77 = arith.cmpi ne, %76, %c0_i32_46 : i32
    scf.if %77 {
      %c0_47 = arith.constant 0 : index
      %c0_48 = arith.constant 0 : index
      %78 = vector.load %arg14[%c0_47, %c0_48] : memref<128x256xbf16, #tpu.memory_space<vmem>>, vector<128x128xbf16>
      %c0_49 = arith.constant 0 : index
      %c0_50 = arith.constant 0 : index
      %79 = vector.load %arg15[%c0_49, %c0_50] : memref<1x256xf32, #tpu.memory_space<vmem>>, vector<1x128xf32>
      %cst_51 = arith.constant dense<0.000000e+00> : vector<128x128xf32>
      %80 = tpu.matmul %3, %78, %cst_51 {dimension_numbers = #tpu.dot_dimension_numbers<[1], [0], [0], [1], [0, 0, 1, 1], [], []>} : vector<128x128xbf16>, vector<128x128xbf16>, vector<128x128xf32> -> vector<128x128xf32>
      %81 = vector.broadcast %79 : vector<1x128xf32> to vector<128x128xf32>
      %82 = arith.addf %80, %81 : vector<128x128xf32>
      %c0_52 = arith.constant 0 : index
      %c128_53 = arith.constant 128 : index
      %83 = vector.load %arg14[%c0_52, %c128_53] : memref<128x256xbf16, #tpu.memory_space<vmem>>, vector<128x128xbf16>
      %c0_54 = arith.constant 0 : index
      %c128_55 = arith.constant 128 : index
      %84 = vector.load %arg15[%c0_54, %c128_55] : memref<1x256xf32, #tpu.memory_space<vmem>>, vector<1x128xf32>
      %cst_56 = arith.constant dense<0.000000e+00> : vector<128x128xf32>
      %85 = tpu.matmul %3, %83, %cst_56 {dimension_numbers = #tpu.dot_dimension_numbers<[1], [0], [0], [1], [0, 0, 1, 1], [], []>} : vector<128x128xbf16>, vector<128x128xbf16>, vector<128x128xf32> -> vector<128x128xf32>
      %86 = vector.broadcast %84 : vector<1x128xf32> to vector<128x128xf32>
      %87 = arith.addf %85, %86 : vector<128x128xf32>
      %cst_57 = arith.constant dense<0.000000e+00> : vector<128xf32>
      %88 = vector.multi_reduction <add>, %73, %cst_57 [1] : vector<128x128xf32> to vector<128xf32>
      %89 = vector.shape_cast %88 : vector<128xf32> to vector<128x1xf32>
      %cst_58 = arith.constant 1.280000e+02 : f32
      %90 = vector.broadcast %cst_58 : f32 to vector<128x1xf32>
      %91 = arith.divf %89, %90 : vector<128x1xf32>
      %92 = arith.mulf %73, %73 : vector<128x128xf32>
      %cst_59 = arith.constant dense<0.000000e+00> : vector<128xf32>
      %93 = vector.multi_reduction <add>, %92, %cst_59 [1] : vector<128x128xf32> to vector<128xf32>
      %94 = vector.shape_cast %93 : vector<128xf32> to vector<128x1xf32>
      %cst_60 = arith.constant 1.280000e+02 : f32
      %95 = vector.broadcast %cst_60 : f32 to vector<128x1xf32>
      %96 = arith.divf %94, %95 : vector<128x1xf32>
      %97 = arith.mulf %91, %91 : vector<128x1xf32>
      %98 = arith.subf %96, %97 : vector<128x1xf32>
      %cst_61 = arith.constant 0.000000e+00 : f32
      %99 = vector.broadcast %cst_61 : f32 to vector<128x1xf32>
      %100 = arith.maximumf %98, %99 : vector<128x1xf32>
      %101 = vector.broadcast %91 : vector<128x1xf32> to vector<128x128xf32>
      %102 = arith.subf %73, %101 : vector<128x128xf32>
      %cst_62 = arith.constant 9.99999997E-7 : f32
      %103 = vector.broadcast %cst_62 : f32 to vector<128x1xf32>
      %104 = arith.addf %100, %103 : vector<128x1xf32>
      %105 = math.rsqrt %104 : vector<128x1xf32>
      %106 = vector.broadcast %105 : vector<128x1xf32> to vector<128x128xf32>
      %107 = arith.mulf %102, %106 : vector<128x128xf32>
      %cst_63 = arith.constant 1.000000e+00 : f32
      %108 = vector.broadcast %cst_63 : f32 to vector<128x128xf32>
      %109 = arith.addf %108, %87 : vector<128x128xf32>
      %110 = arith.mulf %107, %109 : vector<128x128xf32>
      %111 = arith.addf %110, %82 : vector<128x128xf32>
      %c0_64 = arith.constant 0 : index
      %c0_65 = arith.constant 0 : index
      %112 = vector.load %arg16[%c0_64, %c0_65] : memref<128x32xbf16, #tpu.memory_space<vmem>>, vector<128x32xbf16>
      %c0_66 = arith.constant 0 : index
      %c0_67 = arith.constant 0 : index
      %113 = vector.load %arg17[%c0_66, %c0_67] : memref<1x32xf32, #tpu.memory_space<vmem>>, vector<1x32xf32>
      %114 = arith.truncf %111 : vector<128x128xf32> to vector<128x128xbf16>
      %cst_68 = arith.constant dense<0.000000e+00> : vector<128x32xf32>
      %115 = tpu.matmul %114, %112, %cst_68 {dimension_numbers = #tpu.dot_dimension_numbers<[1], [0], [0], [1], [0, 0, 1, 1], [], []>} : vector<128x128xbf16>, vector<128x32xbf16>, vector<128x32xf32> -> vector<128x32xf32>
      %116 = vector.broadcast %113 : vector<1x32xf32> to vector<128x32xf32>
      %117 = arith.addf %115, %116 : vector<128x32xf32>
      %c0_69 = arith.constant 0 : index
      %c0_70 = arith.constant 0 : index
      %118 = vector.load %arg4[%c0_69, %c0_70] : memref<128x32xf32, #tpu.memory_space<vmem>>, vector<128x32xf32>
      %119 = arith.subf %117, %118 : vector<128x32xf32>
      %120 = arith.mulf %119, %119 : vector<128x32xf32>
      %cst_71 = arith.constant dense<0.000000e+00> : vector<128xf32>
      %121 = vector.multi_reduction <add>, %120, %cst_71 [1] : vector<128x32xf32> to vector<128xf32>
      %122 = vector.shape_cast %121 : vector<128xf32> to vector<128x1xf32>
      %c0_i32_72 = arith.constant 0 : i32
      %123 = arith.cmpi eq, %arg0, %c0_i32_72 : i32
      %124 = arith.extui %123 : i1 to i32
      %c0_i32_73 = arith.constant 0 : i32
      %125 = arith.cmpi ne, %124, %c0_i32_73 : i32
      scf.if %125 {
        %c128_i32 = arith.constant 128 : i32
        %129 = arith.muli %arg0, %c128_i32 : i32
        %130 = tpu.iota {dimensions = array<i32: 0>} : vector<128x1xi32>
        %131 = vector.broadcast %129 : i32 to vector<128x1xi32>
        %132 = arith.addi %131, %130 : vector<128x1xi32>
        %c64_i32 = arith.constant 64 : i32
        %133 = vector.broadcast %c64_i32 : i32 to vector<128x1xi32>
        %134 = arith.cmpi slt, %132, %133 : vector<128x1xi32>
        %cst_76 = arith.constant 0.000000e+00 : f32
        %135 = vector.broadcast %cst_76 : f32 to vector<128x1xf32>
        %136 = arith.select %134, %122, %135 : vector<128x1xi1>, vector<128x1xf32>
        %c0_77 = arith.constant 0 : index
        %c0_78 = arith.constant 0 : index
        %137 = vector.load %arg24[%c0_77, %c0_78] : memref<128x1xf32, #tpu.memory_space<vmem>>, vector<128x1xf32>
        tpu.vector_store %arg24[%c0_77, %c0_78], %136 {strides = array<i32>} : memref<128x1xf32, #tpu.memory_space<vmem>>, vector<128x1xf32>,
      } else {
      }
      %c0_i32_74 = arith.constant 0 : i32
      %126 = arith.cmpi ne, %arg0, %c0_i32_74 : i32
      %127 = arith.extui %126 : i1 to i32
      %c0_i32_75 = arith.constant 0 : i32
      %128 = arith.cmpi ne, %127, %c0_i32_75 : i32
      scf.if %128 {
        %c0_76 = arith.constant 0 : index
        %c0_77 = arith.constant 0 : index
        %129 = vector.load %arg24[%c0_76, %c0_77] : memref<128x1xf32, #tpu.memory_space<vmem>>, vector<128x1xf32>
        tpu.vector_store %arg24[%c0_76, %c0_77], %122 {strides = array<i32>} : memref<128x1xf32, #tpu.memory_space<vmem>>, vector<128x1xf32>,
      } else {
      }
    } else {
    }
    return
  }
  func.func @transform_0(%arg0: i32, %arg1: i32) -> (i32, i32) {
    %c0_i32 = arith.constant 0 : i32
    %c0_i32_0 = arith.constant 0 : i32
    return %arg0, %c0_i32 : i32, i32
  }
  func.func @transform_1(%arg0: i32, %arg1: i32) -> (i32, i32) {
    %c0_i32 = arith.constant 0 : i32
    %c0_i32_0 = arith.constant 0 : i32
    return %arg0, %c0_i32 : i32, i32
  }
  func.func @transform_2(%arg0: i32, %arg1: i32) -> (i32, i32) {
    %c0_i32 = arith.constant 0 : i32
    %c0_i32_0 = arith.constant 0 : i32
    return %arg0, %c0_i32 : i32, i32
  }
  func.func @transform_3(%arg0: i32, %arg1: i32) -> (i32, i32) {
    %c0_i32 = arith.constant 0 : i32
    %c0_i32_0 = arith.constant 0 : i32
    return %arg0, %c0_i32 : i32, i32
  }
  func.func @transform_4(%arg0: i32, %arg1: i32) -> (i32, i32) {
    %c0_i32 = arith.constant 0 : i32
    %c0_i32_0 = arith.constant 0 : i32
    %c0_i32_1 = arith.constant 0 : i32
    return %c0_i32, %c0_i32_0 : i32, i32
  }
  func.func @transform_5(%arg0: i32, %arg1: i32) -> (i32, i32) {
    %c0_i32 = arith.constant 0 : i32
    %c0_i32_0 = arith.constant 0 : i32
    %c0_i32_1 = arith.constant 0 : i32
    return %c0_i32, %c0_i32_0 : i32, i32
  }
  func.func @transform_6(%arg0: i32, %arg1: i32) -> (i32, i32) {
    %c0_i32 = arith.constant 0 : i32
    %c0_i32_0 = arith.constant 0 : i32
    %c0_i32_1 = arith.constant 0 : i32
    return %c0_i32, %c0_i32_0 : i32, i32
  }
  func.func @transform_7(%arg0: i32, %arg1: i32) -> (i32, i32) {
    %c0_i32 = arith.constant 0 : i32
    %c0_i32_0 = arith.constant 0 : i32
    %c0_i32_1 = arith.constant 0 : i32
    return %c0_i32, %c0_i32_0 : i32, i32
  }
  func.func @transform_8(%arg0: i32, %arg1: i32) -> (i32, i32) {
    %c0_i32 = arith.constant 0 : i32
    %c0_i32_0 = arith.constant 0 : i32
    %c0_i32_1 = arith.constant 0 : i32
    return %c0_i32, %c0_i32_0 : i32, i32
  }
  func.func @transform_9(%arg0: i32, %arg1: i32) -> (i32, i32) {
    %c0_i32 = arith.constant 0 : i32
    %c0_i32_0 = arith.constant 0 : i32
    %c0_i32_1 = arith.constant 0 : i32
    return %c0_i32, %c0_i32_0 : i32, i32
  }
  func.func @transform_10(%arg0: i32, %arg1: i32) -> (i32, i32) {
    %c0_i32 = arith.constant 0 : i32
    %c0_i32_0 = arith.constant 0 : i32
    %c0_i32_1 = arith.constant 0 : i32
    return %c0_i32, %c0_i32_0 : i32, i32
  }
  func.func @transform_11(%arg0: i32, %arg1: i32) -> (i32, i32) {
    %c0_i32 = arith.constant 0 : i32
    %c0_i32_0 = arith.constant 0 : i32
    %c0_i32_1 = arith.constant 0 : i32
    return %c0_i32, %c0_i32_0 : i32, i32
  }
  func.func @transform_12(%arg0: i32, %arg1: i32) -> (i32, i32) {
    %c0_i32 = arith.constant 0 : i32
    %c0_i32_0 = arith.constant 0 : i32
    %c0_i32_1 = arith.constant 0 : i32
    return %c0_i32, %c0_i32_0 : i32, i32
  }
  func.func @transform_13(%arg0: i32, %arg1: i32) -> (i32, i32) {
    %c0_i32 = arith.constant 0 : i32
    %c0_i32_0 = arith.constant 0 : i32
    %c0_i32_1 = arith.constant 0 : i32
    return %c0_i32, %c0_i32_0 : i32, i32
  }
  func.func @transform_14(%arg0: i32, %arg1: i32) -> (i32, i32) {
    %c0_i32 = arith.constant 0 : i32
    %c0_i32_0 = arith.constant 0 : i32
    %c0_i32_1 = arith.constant 0 : i32
    return %c0_i32, %c0_i32_0 : i32, i32
  }
  func.func @transform_15(%arg0: i32, %arg1: i32) -> (i32, i32) {
    %c0_i32 = arith.constant 0 : i32
    %c0_i32_0 = arith.constant 0 : i32
    %c0_i32_1 = arith.constant 0 : i32
    return %c0_i32, %c0_i32_0 : i32, i32
  }
  func.func @transform_16(%arg0: i32, %arg1: i32) -> (i32, i32, i32) {
    %c0_i32 = arith.constant 0 : i32
    %c0_i32_0 = arith.constant 0 : i32
    %c0_i32_1 = arith.constant 0 : i32
    return %arg1, %c0_i32, %c0_i32_0 : i32, i32, i32
  }
  func.func @transform_17(%arg0: i32, %arg1: i32) -> (i32, i32, i32) {
    %c0_i32 = arith.constant 0 : i32
    %c0_i32_0 = arith.constant 0 : i32
    %c0_i32_1 = arith.constant 0 : i32
    return %arg1, %c0_i32, %c0_i32_0 : i32, i32, i32
  }
  func.func @transform_18(%arg0: i32, %arg1: i32) -> (i32, i32, i32) {
    %c0_i32 = arith.constant 0 : i32
    %c0_i32_0 = arith.constant 0 : i32
    %c0_i32_1 = arith.constant 0 : i32
    return %arg1, %c0_i32, %c0_i32_0 : i32, i32, i32
  }
  func.func @transform_19(%arg0: i32, %arg1: i32) -> (i32, i32, i32) {
    %c0_i32 = arith.constant 0 : i32
    %c0_i32_0 = arith.constant 0 : i32
    %c0_i32_1 = arith.constant 0 : i32
    return %arg1, %c0_i32, %c0_i32_0 : i32, i32, i32
  }
  func.func @transform_20(%arg0: i32, %arg1: i32) -> (i32, i32, i32) {
    %c0_i32 = arith.constant 0 : i32
    %c0_i32_0 = arith.constant 0 : i32
    %c0_i32_1 = arith.constant 0 : i32
    return %arg1, %c0_i32, %c0_i32_0 : i32, i32, i32
  }
  func.func @transform_21(%arg0: i32, %arg1: i32) -> (i32, i32, i32) {
    %c0_i32 = arith.constant 0 : i32
    %c0_i32_0 = arith.constant 0 : i32
    %c0_i32_1 = arith.constant 0 : i32
    return %arg1, %c0_i32, %c0_i32_0 : i32, i32, i32
  }
  func.func @transform_22(%arg0: i32, %arg1: i32) -> (i32, i32) {
    %c0_i32 = arith.constant 0 : i32
    %c0_i32_0 = arith.constant 0 : i32
    return %arg0, %c0_i32 : i32, i32
  }
}

</mosaic_0001>

<bundles_post_ra>
// kernel: tpu_custom_call.1
= control target key start
LH: loop header
LB: loop body
LE: loop exit
PB: predicated region body
PF: predicated region fallthrough
CT: control target
= control target key end

     0   :  { %s8264_s0 = inlined_call_operand.vmem [shape: bf16[128,32], index: 0, kind: input, shape index: {}]   ;;  %s8265_s1 = inlined_call_operand.hbm [shape: bf16[128,256], index: 1, kind: input, shape index: {}]   ;;  %s8266_s2 = inlined_call_operand.vmem [shape: f32[128,32], index: 2, kind: input, shape index: {}]   ;;  %s8267_s3 = inlined_call_operand.vmem [shape: bf16[128,32], index: 3, kind: input, shape index: {}]   ;;  %s8268_s4 = inlined_call_operand.hbm [shape: bf16[256,128], index: 4, kind: input, shape index: {}]   ;;  %s8269_s5 = inlined_call_operand.vmem [shape: f32[1,128], index: 5, kind: input, shape index: {}]   ;;  %s8270_s6 = inlined_call_operand.hbm [shape: bf16[128,128], index: 6, kind: input, shape index: {}]   ;;  %s8271_s7 = inlined_call_operand.hbm [shape: f32[1,128], index: 7, kind: input, shape index: {}]   ;;  %s8272_s8 = inlined_call_operand.vmem [shape: bf16[32,128], index: 8, kind: input, shape index: {}]   ;;  %s8273_s9 = inlined_call_operand.hbm [shape: f32[1,128], index: 9, kind: input, shape index: {}]   ;;  %s8274_s10 = inlined_call_operand.vmem [shape: bf16[32,128], index: 10, kind: input, shape index: {}]   ;;  %s8275_s11 = inlined_call_operand.hbm [shape: f32[1,128], index: 11, kind: input, shape index: {}]   ;;  %s8276_s12 = inlined_call_operand.hbm [shape: bf16[128,256], index: 12, kind: input, shape index: {}]   ;;  %s8277_s13 = inlined_call_operand.vmem [shape: f32[1,256], index: 13, kind: input, shape index: {}]   ;;  %s8278_s14 = inlined_call_operand.vmem [shape: bf16[128,32], index: 14, kind: input, shape index: {}]   ;;  %s8279_s15 = inlined_call_operand.hbm [shape: f32[1,32], index: 15, kind: input, shape index: {}]   ;;  %s8280_s16 = inlined_call_operand.vmem [shape: bf16[2,128,384], index: 16, kind: input, shape index: {}]   ;;  %s8281_s17 = inlined_call_operand.vmem [shape: f32[2,1,384], index: 17, kind: input, shape index: {}]   ;;  %s8282_s18 = inlined_call_operand.hbm [shape: bf16[2,128,128], index: 18, kind: input, shape index: {}]   ;;  %s8283_s19 = inlined_call_operand.vmem [shape: f32[2,1,128], index: 19, kind: input, shape index: {}]   ;;  %s8284_s20 = inlined_call_operand.hbm [shape: bf16[2,128,128], index: 20, kind: input, shape index: {}]   ;;  %s8285_s21 = inlined_call_operand.vmem [shape: f32[2,1,128], index: 21, kind: input, shape index: {}]   ;;  %s8286_s22 = inlined_call_operand.vmem [shape: f32[128,1], index: 22, kind: output, shape index: {}]  }
   0x1   :  { %8322 = sst [smem:[#allocation33_spill]] %s8264_s0 }
   0x2   :  { %8323 = sst [smem:[#allocation34_spill]] %s8265_s1 }
   0x3   :  { %8324 = sst [smem:[#allocation35_spill]] %s8266_s2 }
   0x4   :  { %8325 = sst [smem:[#allocation36_spill]] %s8267_s3 }
   0x5   :  { %8326 = sst [smem:[#allocation37_spill]] %s8268_s4 }
   0x6   :  { %8327 = sst [smem:[#allocation38_spill]] %s8269_s5 }
   0x7   :  { %8328 = sst [smem:[#allocation39_spill]] %s8270_s6 }
   0x8   :  { %8329 = sst [smem:[#allocation40_spill]] %s8271_s7 }
   0x9   :  { %8330 = sst [smem:[#allocation41_spill]] %s8272_s8 }
   0xa   :  { %8331 = sst [smem:[#allocation42_spill]] %s8273_s9 }
   0xb   :  { %8332 = sst [smem:[#allocation43_spill]] %s8274_s10 }
   0xc   :  { %8333 = sst [smem:[#allocation44_spill]] %s8275_s11 }
   0xd   :  { %8334 = sst [smem:[#allocation45_spill]] %s8277_s13 }
   0xe   :  { %8335 = sst [smem:[#allocation46_spill]] %s8278_s14 }
   0xf   :  { %8336 = sst [smem:[#allocation47_spill]] %s8280_s16 }
  0x10   :  { %8337 = sst [smem:[#allocation48_spill]] %s8281_s17 }
  0x11   :  { %8338 = sst [smem:[#allocation49_spill]] %s8282_s18 }
  0x12   :  { %8339 = sst [smem:[#allocation50_spill]] %s8285_s21 }
  0x13   :  { %8340 = sst [smem:[#allocation51_spill]] %s8286_s22 }
  0x14   :  { %27 = vsyncpa [#allocation5], 0 }
  0x15   :  { %28 = vsyncpa [#allocation7], 0 }
  0x16   :  { %29 = vsyncpa [#allocation10], 0 }
  0x17   :  { %30 = vsyncpa [#allocation13], 0 }
  0x18   :  { %31 = vsyncpa [#allocation16], 0  ;;  %s6817_s3 = smov 0   ;;  %s6819_s28 = smov 0  }
  0x19   :  { %s6821_s29 = smov 0   ;;  %s6823_s30 = smov 0  }
  0x1a   :  { %s6825_s4 = smov 0   ;;  %s6827_s0 = smov 0  }
  0x1b LB: > { %8341 = sst [smem:[#allocation25_spill]] %s6673_s29  ;;  %s8290_s23 = sadd.s32 4294967295, %s6685_s0   ;;  %s6685_s0 = sphi %s6827_s0, %s37_s0   ;;  %s6681_s4 = sphi %s6825_s4, %s8404_s4   ;;  %s6677_s30 = sphi %s6823_s30, %s8403_s30   ;;  %s6673_s29 = sphi %s6821_s29, %s8399_s29   ;;  %s6669_s28 = sphi %s6819_s28, %s8402_s28   ;;  %s6665_s3 = sphi %s6817_s3, %s8401_s3  }
  0x1c   : > { %p4869_p0 = scmp.ge.s32.totalorder %s6685_s0, 1  ;;  %p6851_p1 = scmp.eq.s32.totalorder %s8290_s23, 0 }
  0x1d   : > { %p592_p2 = scmp.lt.s32.totalorder %s6685_s0, 3  ;;  %s6687_s24 = smov [#allocation4]  }
  0x1e   : > { %s8342_s1 = scalar_select %p6851_p1, 1, 0 }
  0x1f   : > { %p6856_p3 = pnand %p4869_p0, %p592_p2  ;;  %s617_s6 = sshll.u32 %s6687_s24, 4  ;;  %s618_s6 = int_to_ptr.vmem [resolvable:$true] %s617_s6 }
  0x20   : > { %s6688_s26 = smov [#allocation6]   ;;  %s6362_s23 = scalar_lea.vmem %s618_s6, 2048 }
  0x21   : > { %s8343_s5 = scalar_select %p6856_p3, 1, 0 }
  0x22   : > { %p5825_p4 = pneg %p6856_p3  ;;  %s648_s2 = sshll.u32 %s6688_s26, 4  ;;  %s649_s2 = int_to_ptr.vmem [resolvable:$true] %s648_s2 }
  0x23   : > { %p6363_p7 = scmp.ne.s32.totalorder %s618_s6, %s6362_s23  ;;  %p6370_p10 = scmp.lt.s32.totalorder %s618_s6, %s618_s6 }
  0x24   : > { %p6864_p5 = pnand %p5825_p4, %p6851_p1  ;;  %p6371_p11 = scmp.lt.s32.totalorder %s6362_s23, %s6362_s23 }
  0x26   : > { %p6870_p6 = pneg %p6864_p5  ;;  %p6372_p12 = por %p6371_p11, %p6370_p10 }
  0x28   : > { %p6365_p8 = pnand %p6363_p7, %p6870_p6 }
  0x2a   : > { %p6366_p9 = pneg %p6365_p8 }
  0x2c   : > { %p6373_p13 = pnand %p6372_p12, %p6366_p9 }
  0x2e   : > { %6376 = shalt.err (!%p6373_p13)
}
  0x2f   : > { %s8296_s24 = smov 128   ;;  %s8297_s26 = smov 8  }
  0x30   : > { %s8346_s14 = sld [smem:[#allocation34_spill]]  ;;  %s6388_s10 = scalar_lea.vmem %s649_s2, 2048 }
  0x31   : > { %p6389_p0 = scmp.ne.s32.totalorder %s649_s2, %s6388_s10  ;;  %p6396_p7 = scmp.lt.s32.totalorder %s649_s2, %s649_s2 }
  0x32   : > { %p6397_p8 = scmp.lt.s32.totalorder %s6388_s10, %s6388_s10 }
  0x33   : > { %p6391_p2 = pnand %p6389_p0, %p6870_p6 }
  0x34   : > { %p6398_p9 = por %p6397_p8, %p6396_p7 }
  0x35   : > { %p6392_p4 = pneg %p6391_p2 }
  0x36   : > { %5828 = dma.hbm_to_vmem [thread:$0]  (!%p6864_p5), %s8346_s14, 2048, %s618_s6, [#allocation5], %s8296_s24, %s8296_s24, %s8297_s26  }
  0x37   : > { %p6399_p10 = pnand %p6398_p9, %p6392_p4 }
  0x39   : > { %6402 = shalt.err (!%p6399_p10)
}
  0x3a   : > { %s8301_s23 = smov 64   ;;  %s8303_s8 = smov 4  }
  0x3b   : > { %s8347_s22 = sld [smem:[#allocation37_spill]]  ;;  %s6693_s6 = smov [#allocation9]  }
  0x3c   : > { %s678_s24 = sshll.u32 %s6693_s6, 4  ;;  %s6694_s26 = smov [#allocation12]   ;;  %s679_s24 = int_to_ptr.vmem [resolvable:$true] %s678_s24 }
  0x3d   : > { %s706_s17 = sshll.u32 %s6694_s26, 4  ;;  %s6414_s10 = scalar_lea.vmem %s679_s24, 16  ;;  %s707_s17 = int_to_ptr.vmem [resolvable:$true] %s706_s17 }
  0x3e   : > { %p6415_p11 = scmp.ne.s32.totalorder %s679_s24, %s6414_s10  ;;  %s6421_s16 = scalar_lea.vmem %s679_s24, 32 }
  0x3f   : > { %p6422_p0 = scmp.lt.s32.totalorder %s679_s24, %s679_s24  ;;  %p6423_p2 = scmp.lt.s32.totalorder %s6421_s16, %s6414_s10 }
  0x40   : > { %p6417_p12 = pnand %p6415_p11, %p6870_p6 }
  0x41   : > { %5831 = dma.hbm_to_vmem [thread:$0]  (!%p6864_p5), %s8347_s22, 2048, %s649_s2, [#allocation7], %s8301_s23, %s8301_s23, %s8303_s8  }
  0x42   : > { %p6418_p13 = pneg %p6417_p12  ;;  %p6424_p4 = por %p6423_p2, %p6422_p0 }
  0x44   : > { %p6425_p7 = pnand %p6424_p4, %p6418_p13 }
  0x46   : > { %6428 = shalt.err (!%p6425_p7)
}
  0x47   : > { %s8348_s7 = sld [smem:[#allocation40_spill]]  ;;  %s6440_s26 = scalar_lea.vmem %s707_s17, 16 }
  0x48   : > { %p6441_p8 = scmp.ne.s32.totalorder %s707_s17, %s6440_s26  ;;  %s6447_s14 = scalar_lea.vmem %s707_s17, 32 }
  0x49   : > { %p6448_p11 = scmp.lt.s32.totalorder %s707_s17, %s707_s17  ;;  %p6449_p12 = scmp.lt.s32.totalorder %s6447_s14, %s6440_s26 }
  0x4a   : > { %p6443_p9 = pnand %p6441_p8, %p6870_p6 }
  0x4b   : > { %p6450_p3 = por %p6449_p12, %p6448_p11 }
  0x4c   : > { %p6444_p10 = pneg %p6443_p9 }
  0x4d   : > { %5837 = dma.hbm_to_vmem [thread:$0]  (!%p6864_p5), %s8348_s7, 16, %s679_s24, [#allocation10]  }
  0x4e   : > { %p6451_p1 = pnand %p6450_p3, %p6444_p10 }
  0x50   : > { %6454 = shalt.err (!%p6451_p1)
}
  0x51   : > { %s8349_s11 = sld [smem:[#allocation44_spill]]  ;;  %s46_s24 = sadd.s32 1, %s6681_s4 }
  0x52   : > { %s464_s6 = sadd.s32 1, %s6673_s29  ;;  %p47_p1 = scmp.ge.s32.totalorder %s46_s24, 2 }
  0x53   : > { %p471_p3 = scmp.ne.s32.totalorder %s6673_s29, %s6669_s28  ;;  %p472_p13 = scmp.eq.s32.totalorder %s6685_s0, 0 }
  0x54   : > { %p477_p0 = scmp.ne.s32.totalorder %s6669_s28, %s6665_s3  ;;  %s8406_s24 = smov (%p47_p1, %s46_s24), 0 }
  0x55   : > { %8350 = sst [smem:[#allocation26_spill]] %s8406_s24  ;;  %p6917_p2 = por %p472_p13, %p471_p3 }
  0x56   : > { %p8352_p4 = scmp.ne.s32.totalorder %s8342_s1, 0  ;;  %p5865_p8 = scmp.lt.s32.totalorder %s6685_s0, 2 }
  0x57   : > { %5843 = dma.hbm_to_vmem [thread:$0]  (!%p6864_p5), %s8349_s11, 16, %s707_s17, [#allocation13]  }
  0x58   : > { %p6923_p7 = por %p8352_p4, %p477_p0  ;;  %s461_s17 = ssub.s32 %s6681_s4, %s8406_s24 }
  0x59   : > { %p462_p9 = scmp.eq.s32.totalorder %s461_s17, 0  ;;  %s762_s13 = sand.u32 1, %s6685_s0  }
  0x5a   : > { %s8353_s2 = scalar_select %p6923_p7, 1, 0 }
  0x5b   : > { %s764_s26 = sand.u32 1, %s6673_s29   ;;  %s8308_s16 = sshll.u32 %s6681_s4, 10 }
  0x5c   : > { %s6933_s14 = scalar_select %p462_p9, %s6673_s29, %s464_s6  }
  0x5d   : > { %s6935_s3 = sshll.u32 %s764_s26, 6  ;;  %s8355_s18 = sld [smem:[#allocation49_spill]] }
  0x5e   : > { %8354 = sst [smem:[#allocation27_spill]] %s6933_s14  ;;  %s766_s7 = scalar_lea.vmem [#allocation17], %s6935_s3 }
  0x5f   : > { %s773_s11 = sshll.u32 %s766_s7, 4  ;;  %p6946_p10 = pnand %p5865_p8, %p6917_p2  ;;  %s774_s11 = int_to_ptr.vmem [resolvable:$true] %s773_s11 }
  0x60   : > { %s6695_s6 = smov [#allocation8]   ;;  %s6950_s26 = scalar_lea.sflag [#allocation5], %s762_s13 }
  0x61   : > { %s8356_s24 = scalar_select %p6946_p10, 1, 0 }
  0x62   : > { %s664_s17 = sshll.u32 %s6695_s6, 4  ;;  %p8306_p11 = pneg %p6946_p10  ;;  %s665_s17 = int_to_ptr.vmem [resolvable:$true] %s664_s17 }
  0x63   : > { %s772_s8 = scalar_lea.hbm %s8355_s18, %s8308_s16  ;;  %s6468_s14 = scalar_lea.vmem %s774_s11, 1024 }
  0x64   : > { %p6469_p12 = scmp.ne.s32.totalorder %s774_s11, %s6468_s14  ;;  %s6696_s7 = smov [#allocation17]  }
  0x65   : > { %s6473_s23 = sshll.u32 %s6696_s7, 4  ;;  %s6474_s23 = int_to_ptr.vmem [resolvable:$false] %s6473_s23 }
  0x66   : > { %p6471_p1 = pnand %p6469_p12, %p8306_p11  ;;  %s6475_s10 = scalar_lea.vmem %s6474_s23, 2048 }
  0x67   : > { %p6476_p13 = scmp.lt.s32.totalorder %s774_s11, %s6474_s23  ;;  %p6477_p0 = scmp.lt.s32.totalorder %s6475_s10, %s6468_s14 }
  0x68   : > { %p6472_p3 = pneg %p6471_p1 }
  0x69   : > { %p6478_p2 = por %p6477_p0, %p6476_p13 }
  0x6b   : > { %p6479_p4 = pnand %p6478_p2, %p6472_p3 }
  0x6d   : > { %6482 = shalt.err (!%p6479_p4)
}
  0x6e   : > { %s8357_s13 = smov 4   ;;  %s8358_s22 = smov 64  }
  0x6f   : > { %5853 = dma.hbm_to_vmem [thread:$0]  (!%p6946_p10), %s772_s8, 1024, %s774_s11, %s6950_s26, %s8358_s22, %s8358_s22, %s8357_s13  }
  0x70   : > { %s6494_s6 = scalar_lea.vmem %s665_s17, 1024  ;;  %p6502_p1 = scmp.lt.s32.totalorder %s665_s17, %s665_s17 }
  0x71   : > { %p6495_p8 = scmp.ne.s32.totalorder %s665_s17, %s6494_s6  ;;  %p6503_p11 = scmp.lt.s32.totalorder %s6494_s6, %s6494_s6 }
  0x73   : > { %p6497_p9 = pnand %p6495_p8, %p6870_p6  ;;  %p6504_p7 = por %p6503_p11, %p6502_p1 }
  0x75   : > { %p6498_p12 = pneg %p6497_p9 }
  0x77   : > { %p6505_p13 = pnand %p6504_p7, %p6498_p12 }
  0x79   : > { %6508 = shalt.err (!%p6505_p13)
}
  0x7a   : > { %s8359_s23 = sld [smem:[#allocation39_spill]]  ;;  %s6697_s8 = smov [#allocation11]  }
  0x7b   : > { %s692_s11 = sshll.u32 %s6697_s8, 4  ;;  %s6698_s10 = smov [#allocation14]   ;;  %s693_s11 = int_to_ptr.vmem [resolvable:$true] %s692_s11 }
  0x7c   : > { %s716_s16 = sshll.u32 %s6698_s10, 4  ;;  %s6520_s18 = scalar_lea.vmem %s693_s11, 16  ;;  %s717_s16 = int_to_ptr.vmem [resolvable:$true] %s716_s16 }
  0x7d   : > { %p6521_p3 = scmp.ne.s32.totalorder %s693_s11, %s6520_s18  ;;  %s6527_s6 = scalar_lea.vmem %s693_s11, 32 }
  0x7e   : > { %p6528_p0 = scmp.lt.s32.totalorder %s693_s11, %s693_s11  ;;  %p6529_p2 = scmp.lt.s32.totalorder %s6527_s6, %s6520_s18 }
  0x7f   : > { %p6523_p7 = pnand %p6521_p3, %p6870_p6 }
  0x80   : > { %5834 = dma.hbm_to_vmem [thread:$0]  (!%p6864_p5), %s8359_s23, 1024, %s665_s17, [#allocation7], %s8358_s22, %s8358_s22, %s8357_s13  }
  0x81   : > { %p6524_p11 = pneg %p6523_p7  ;;  %p6530_p4 = por %p6529_p2, %p6528_p0 }
  0x83   : > { %p6531_p8 = pnand %p6530_p4, %p6524_p11 }
  0x85   : > { %6534 = shalt.err (!%p6531_p8)
}
  0x86   : > { %s8360_s9 = sld [smem:[#allocation42_spill]]  ;;  %s6546_s7 = scalar_lea.vmem %s717_s16, 2048 }
  0x87   : > { %p6547_p9 = scmp.ne.s32.totalorder %s717_s16, %s6546_s7  ;;  %p6554_p13 = scmp.lt.s32.totalorder %s717_s16, %s717_s16 }
  0x88   : > { %p6555_p3 = scmp.lt.s32.totalorder %s6546_s7, %s6546_s7 }
  0x89   : > { %p6549_p12 = pnand %p6547_p9, %p6870_p6 }
  0x8a   : > { %p6556_p7 = por %p6555_p3, %p6554_p13 }
  0x8b   : > { %p6550_p1 = pneg %p6549_p12 }
  0x8c   : > { %5840 = dma.hbm_to_vmem [thread:$0]  (!%p6864_p5), %s8360_s9, 16, %s693_s11, [#allocation10]  }
  0x8d   : > { %p6557_p10 = pnand %p6556_p7, %p6550_p1 }
  0x8f   : > { %6560 = shalt.err (!%p6557_p10)
}
  0x90   : > { %s8361_s18 = smov 8   ;;  %s8362_s23 = smov 128  }
  0x91   : > { %5846 = dma.hbm_to_vmem [thread:$0]  (!%p6864_p5), %s8276_s12, 2048, %s717_s16, [#allocation13], %s8362_s23, %s8362_s23, %s8361_s18  }
  0x92   : > { %s6699_s11 = smov [#allocation15]   ;;  %s8363_s14 = sshll.u32 %s6681_s4, 10 }
  0x93   : > { %s736_s6 = sshll.u32 %s6699_s11, 4  ;;  %s6995_s9 = scalar_lea.hbm %s8284_s20, %s8363_s14  ;;  %s737_s6 = int_to_ptr.vmem [resolvable:$true] %s736_s6 }
  0x94   : > { %s6572_s29 = scalar_lea.vmem %s737_s6, 16  ;;  %s6579_s21 = scalar_lea.vmem %s737_s6, 32 }
  0x95   : > { %p6573_p10 = scmp.ne.s32.totalorder %s737_s6, %s6572_s29  ;;  %p6580_p2 = scmp.lt.s32.totalorder %s737_s6, %s737_s6 }
  0x96   : > { %p6581_p4 = scmp.lt.s32.totalorder %s6579_s21, %s6572_s29 }
  0x97   : > { %p6575_p11 = pnand %p6573_p10, %p6870_p6 }
  0x98   : > { %p6582_p8 = por %p6581_p4, %p6580_p2 }
  0x99   : > { %p6576_p0 = pneg %p6575_p11 }
  0x9b   : > { %p6583_p9 = pnand %p6582_p8, %p6576_p0 }
  0x9d   : > { %6586 = shalt.err (!%p6583_p9)
}
  0x9e   : > { %5849 = dma.hbm_to_vmem [thread:$0]  (!%p6864_p5), %s8279_s15, 16, %s737_s6, [#allocation16]  }
  0x9f   : > { %s793_s23 = scalar_lea.vmem [#allocation18], %s6935_s3  ;;  %p8364_p12 = scmp.ne.s32.totalorder %s8356_s24, 0 }
  0xa0   : > { %s800_s8 = sshll.u32 %s793_s23, 4  ;;  %s6700_s21 = smov [#allocation18]   ;;  %s801_s8 = int_to_ptr.vmem [resolvable:$true] %s800_s8 }
  0xa1   : > { %s6600_s27 = scalar_lea.vmem %s801_s8, 1024  ;;  %p8365_p1 = pneg %p8364_p12 }
  0xa2   : > { %p6601_p6 = scmp.ne.s32.totalorder %s801_s8, %s6600_s27  ;;  %s6605_s29 = sshll.u32 %s6700_s21, 4  ;;  %s6606_s29 = int_to_ptr.vmem [resolvable:$false] %s6605_s29 }
  0xa3   : > { %s6607_s10 = scalar_lea.vmem %s6606_s29, 2048  ;;  %p6608_p7 = scmp.lt.s32.totalorder %s801_s8, %s6606_s29 }
  0xa4   : > { %p6603_p13 = pnand %p6601_p6, %p8365_p1  ;;  %p6609_p10 = scmp.lt.s32.totalorder %s6607_s10, %s6600_s27 }
  0xa6   : > { %p6604_p3 = pneg %p6603_p13  ;;  %p6610_p11 = por %p6609_p10, %p6608_p7 }
  0xa8   : > { %p6611_p0 = pnand %p6610_p11, %p6604_p3 }
  0xaa   : > { %6614 = shalt.err (!%p6611_p0)
}
  0xab   : > { %5856 = dma.hbm_to_vmem [thread:$0]  (!%p8364_p12), %s6995_s9, 1024, %s801_s8, %s6950_s26, %s8358_s22, %s8358_s22, %s8357_s13  }
  0xac   : > { %p8366_p5 = scmp.ne.s32.totalorder %s8343_s5, 0 }
  0xae   : > { %818 = sbr.rel (%p8366_p5) target bundleno = 2138 (0x85a), region = 108 }
  0xb3   : > { %p8367_p2 = scmp.ne.s32.totalorder %s8342_s1, 0 }
  0xb5   : > { %6640 = dma.done.wait (%p8367_p2), [#allocation5], 2048  }
  0xb6   : > { %6642 = vsyncadd (%p8367_p2), [#allocation5], 4294965248 }
  0xb7   : > { %6644 = dma.done.wait (%p8367_p2), [#allocation7], 3072  }
  0xb8   : > { %6646 = vsyncadd (%p8367_p2), [#allocation7], 4294964224 }
  0xb9   : > { %6648 = dma.done.wait (%p8367_p2), [#allocation10], 32  }
  0xba   : > { %6650 = vsyncadd (%p8367_p2), [#allocation10], 4294967264 }
  0xbb   : > { %6652 = dma.done.wait (%p8367_p2), [#allocation13], 2064  }
  0xbc   : > { %6654 = vsyncadd (%p8367_p2), [#allocation13], 4294965232 }
  0xbd   : > { %6656 = dma.done.wait (%p8367_p2), [#allocation16], 16  }
  0xbe   : > { %6658 = vsyncadd (%p8367_p2), [#allocation16], 4294967280  ;;  %s8368_s9 = sadd.s32 4294967295, %s6685_s0   ;;  %s854_s25 = sand.u32 1, %s6669_s28  }
  0xbf   : > { %s852_s5 = sand.u32 1, %s8368_s9   ;;  %s4897_s24 = sshll.u32 %s854_s25, 6 }
  0xc0   : > { %s853_s3 = scalar_lea.sflag [#allocation5], %s852_s5  ;;  %s7040_s26 = scalar_lea.vmem [#allocation17], %s4897_s24 }
  0xc1   : > { %p8369_p4 = scmp.ne.s32.totalorder %s8353_s2, 0 }
  0xc3   : > { %6660 = dma.done.wait (%p8369_p4), %s853_s3, 2048  }
  0xc4   : > { %6662 = vsyncadd (%p8369_p4), %s853_s3, 4294965248  ;;  %p980_p8 = scmp.lt.s32.totalorder %s6677_s30, 1  ;;  %s8370_s16 = sld [smem:[#allocation50_spill]] }
  0xc5   : > { %s8371_s8 = sld [smem:[#allocation47_spill]]  ;;  %s7070_s5 = scalar_lea.vmem [#allocation18], %s4897_s24 }
  0xc6   : > { %s7048_s1 = scalar_select %p980_p8, %s6677_s30, 1 }
  0xc7   : > { %s8372_s10 = sld [smem:[#allocation48_spill]]  ;;  %p4900_p9 = scmp.ne.s32.totalorder %s6677_s30, 0 }
  0xc8   : > { %s5787_s13 = smul.u32 192, %s7048_s1  ;;  %s991_s6 = scalar_lea.vmem %s8283_s19, %s7048_s1 }
  0xc9   : > { %s5788_s14 = smul.u32 3, %s7048_s1  ;;  %s8373_s3 = sld [smem:[#allocation41_spill]] (!%p4900_p9) }
  0xca   : > { %s994_s2 = scalar_lea.vmem %s8370_s16, %s7048_s1  ;;  %1005 = sbr.rel (%p4900_p9) target bundleno = 809 (0x329), region = 152 }
  0xcb   : > { %s7063_s27 = scalar_lea.vmem %s8371_s8, %s5787_s13  ;;  %s8376_s23 = sld [smem:[#allocation38_spill]] (!%p4900_p9) }
  0xcc   : > { %s8377_s29 = sld [smem:[#allocation33_spill]] (!%p4900_p9) }
  0xcd   : > { %s7068_s9 = scalar_lea.vmem %s8372_s10, %s5788_s14  ;;  %s8375_s14 = sld [smem:[#allocation43_spill]] (!%p4900_p9) }
  0xce   : > { %s8379_s8 = sld [smem:[#allocation36_spill]] (!%p4900_p9) }
  0xcf   : > { %v5935_v0 = vld [vmem:[#allocation6 + $0x78] sm:$0xff]   ;;  %v5937_v2 = vld [vmem:[#allocation6 + $0x70] sm:$0xff]   ;;  %v5939_v4 = vld [vmem:[#allocation6 + $0x68] sm:$0xff]   ;;  %s8374_s13 = smov %s8373_s3  ;;  %vm1701_vm0 = vcmask 261120  }
  0xd0   : > { %v5936_v1 = vld [vmem:[#allocation6 + $0x38] sm:$0xff]   ;;  %5195 = vmatprep.subr.bf16.mxu0 %v5935_v0  ;;  %v5938_v3 = vld [vmem:[#allocation6 + $0x30] sm:$0xff]   ;;  %v5940_v5 = vld [vmem:[#allocation6 + $0x28] sm:$0xff]  }
  0xd1   : > { %5196 = vmatpush3.bf16.msra.mxu0 %v5936_v1  ;;  %v5941_v6 = vld [vmem:[#allocation6 + $0x60] sm:$0xff]   ;;  %v5943_v8 = vld [vmem:[#allocation6 + $0x58] sm:$0xff]   ;;  %v5945_v10 = vld [vmem:[#allocation6 + $0x50] sm:$0xff]  }
  0xd2   : > { %5197 = vmatprep.subr.bf16.mxu0 %v5937_v2  ;;  %v5942_v7 = vld [vmem:[#allocation6 + $0x20] sm:$0xff]   ;;  %v5944_v9 = vld [vmem:[#allocation6 + $0x18] sm:$0xff]   ;;  %v5946_v12 = vld [vmem:[#allocation6 + $0x10] sm:$0xff]   ;;  %s8378_s10 = smov %s8377_s29 }
  0xd3   : > { %v5953_v11 = vld [vmem:[#allocation4 + $0x4] ss:$8 sps:$4 sm:$0xff]   ;;  %v5951_v17 = vld [vmem:[#allocation4] ss:$8 sps:$4 sm:$0xff]   ;;  %v5954_v18 = vld [vmem:[#allocation4 + $0x14] ss:$8 sps:$4 sm:$0xff]  }
  0xd4   : > { %1269 = vmatprep.mubr.bf16.mxu0 %v5953_v11  ;;  %v5947_v13 = vld [vmem:[#allocation6 + $0x48] sm:$0xff]   ;;  %v5949_v15 = vld [vmem:[#allocation6 + $0x40] sm:$0xff]   ;;  %v5956_v19 = vld [vmem:[#allocation4 + $0x10] ss:$8 sps:$4 sm:$0xff]  }
  0xd5   : > { %5198 = vmatpush3.bf16.msra.mxu0 %v5938_v3  ;;  %v5948_v14 = vld [vmem:[#allocation6 + $0x8] sm:$0xff]   ;;  %v5950_v16 = vld [vmem:[#allocation6] sm:$0xff]   ;;  %v5960_v22 = vld [vmem:[#allocation4 + $0x34] ss:$8 sps:$4 sm:$0xff]  }
  0xd6   : > { %5199 = vmatprep.subr.bf16.mxu0 %v5939_v4  ;;  %v5957_v20 = vld [vmem:[#allocation4 + $0x24] ss:$8 sps:$4 sm:$0xff]   ;;  %v5959_v21 = vld [vmem:[#allocation4 + $0x20] ss:$8 sps:$4 sm:$0xff]   ;;  %v5962_v23 = vld [vmem:[#allocation4 + $0x30] ss:$8 sps:$4 sm:$0xff]  }
  0xd7   : > { %v5963_v24 = vld [vmem:[#allocation4 + $0x44] ss:$8 sps:$4 sm:$0xff]   ;;  %v5965_v25 = vld [vmem:[#allocation4 + $0x40] ss:$8 sps:$4 sm:$0xff]   ;;  %v5966_v26 = vld [vmem:[#allocation4 + $0x54] ss:$8 sps:$4 sm:$0xff]  }
  0xd8   : > { %v5968_v27 = vld [vmem:[#allocation4 + $0x50] ss:$8 sps:$4 sm:$0xff]   ;;  %v5969_v28 = vld [vmem:[#allocation4 + $0x64] ss:$8 sps:$4 sm:$0xff]   ;;  %v5971_v29 = vld [vmem:[#allocation4 + $0x60] ss:$8 sps:$4 sm:$0xff]  }
  0xd9   : > { %5200 = vmatpush3.bf16.msra.mxu0 %v5940_v5  ;;  %v5972_v30 = vld [vmem:[#allocation4 + $0x74] ss:$8 sps:$4 sm:$0xff]   ;;  %v5974_v31 = vld [vmem:[#allocation4 + $0x70] ss:$8 sps:$4 sm:$0xff]   ;;  %v5977_v34 = vld [vmem:[#allocation8 + $0x28] sm:$0xff]  }
  0xda   : > { %5201 = vmatprep.subr.bf16.mxu0 %v5941_v6  ;;  %v5975_v32 = vld [vmem:[#allocation8 + $0x38] sm:$0xff]   ;;  %v5976_v33 = vld [vmem:[#allocation8 + $0x30] sm:$0xff]   ;;  %v5978_v35 = vld [vmem:[#allocation8 + $0x20] sm:$0xff]  }
  0xdb   : > { %5423 = vmatprep.subr.bf16.mxu1 %v5975_v32  ;;  %v5979_v36 = vld [vmem:[#allocation8 + $0x18] sm:$0xff]   ;;  %v5980_v37 = vld [vmem:[#allocation8 + $0x10] sm:$0xff]   ;;  %v5981_v38 = vld [vmem:[#allocation8 + $0x8] sm:$0xff]  }
  0xdc   : > { %5424 = vmatpush3.bf16.msra.mxu1 %v5975_v32  ;;  %v5982_v39 = vld [vmem:[#allocation8] sm:$0xff]   ;;  %v7076_v40 = vld [vmem:[%s8373_s3 + $0x8] sm:$0xff]   ;;  %v5999_v1 = vld [vmem:[%s8378_s10 + $0x10] sm:$0xff]  }
  0xdd   : > { %5202 = vmatpush3.bf16.msra.mxu0 %v5942_v7  ;;  %5425 = vmatprep.subr.bf16.mxu1 %v5976_v33  ;;  %v7081_v41 = vld [vmem:[%s8375_s14 + $0x8] sm:$0xff]   ;;  %v7089_v43 = vld [vmem:[%s8375_s14] sm:$0xff]   ;;  %v6001_v3 = vld [vmem:[%s8378_s10 + $0x18] sm:$0xff]  }
  0xde   : > { %5203 = vmatprep.subr.bf16.mxu0 %v5943_v8  ;;  %v7094_v44 = vld [vmem:[%s8376_s23] ss:$0 sm:$0xff]  ;;  %v5997_v55 = vld [vmem:[%s8378_s10 + $0x8] sm:$0xff]  }
  0xdf   : > { %v5995_v53 = vld [vmem:[%s8377_s29] sm:$0xff]  }
  0xe0   : > { %5426 = vmatpush3.bf16.msra.mxu1 %v5976_v33 }
  0xe1   : > { %5204 = vmatpush3.bf16.msra.mxu0 %v5944_v9  ;;  %5427 = vmatprep.subr.bf16.mxu1 %v5977_v34 }
  0xe2   : > { %5205 = vmatprep.subr.bf16.mxu0 %v5945_v10 }
  0xe4   : > { %5428 = vmatpush3.bf16.msra.mxu1 %v5977_v34 }
  0xe5   : > { %5206 = vmatpush3.bf16.msra.mxu0 %v5946_v12  ;;  %5429 = vmatprep.subr.bf16.mxu1 %v5978_v35 }
  0xe6   : > { %5207 = vmatprep.subr.bf16.mxu0 %v5947_v13 }
  0xe8   : > { %5430 = vmatpush3.bf16.msra.mxu1 %v5978_v35 }
  0xe9   : > { %5208 = vmatpush3.bf16.msra.mxu0 %v5948_v14  ;;  %5431 = vmatprep.subr.bf16.mxu1 %v5979_v36 }
  0xea   : > { %5209 = vmatprep.subr.bf16.mxu0 %v5949_v15 }
  0xec   : > { %5432 = vmatpush3.bf16.msra.mxu1 %v5979_v36 }
  0xed   : > { %5210 = vmatpush3.bf16.msra.mxu0 %v5950_v16  ;;  %5433 = vmatprep.subr.bf16.mxu1 %v5980_v37 }
  0xee   : > { %5475 = vmatprep.subr.bf16.mxu0 %v7081_v41 }
  0xf0   : > { %1270 = vmatmul.mubr.bf16.vlgmr.msra.gmra.mxu0 %v5951_v17  ;;  %5434 = vmatpush3.bf16.msra.mxu1 %v5980_v37 }
  0xf1   : > { %1277 = vmatprep.mubr.bf16.mxu0 %v5954_v18  ;;  %5435 = vmatprep.subr.bf16.mxu1 %v5981_v38 }
  0xf2   : > { %5476 = vmatpush3.bf16.msra.mxu0 %v7081_v41 }
  0xf3   : > { %5477 = vmatprep.subr.bf16.mxu0 %v7089_v43 }
  0xf4   : > { %5436 = vmatpush3.bf16.msra.mxu1 %v5981_v38 }
  0xf5   : > { %5437 = vmatprep.subr.bf16.mxu1 %v5982_v39 }
  0xf6   : > { %5478 = vmatpush3.bf16.msra.mxu0 %v7089_v43 }
  0xf8   : > { %1278 = vmatmul.mubr.bf16.gmra.mxu0 %v5956_v19  ;;  %5438 = vmatpush3.bf16.msra.mxu1 %v5982_v39 }
  0xf9   : > { %1285 = vmatprep.mubr.bf16.mxu0 %v5957_v20  ;;  %5455 = vmatprep.subr.bf16.mxu1 %v7076_v40 }
 0x100   : > { %1286 = vmatmul.mubr.bf16.gmra.mxu0 %v5959_v21 }
 0x101   : > { %1293 = vmatprep.mubr.bf16.mxu0 %v5960_v22 }
 0x108   : > { %1294 = vmatmul.mubr.bf16.gmra.mxu0 %v5962_v23 }
 0x109   : > { %1301 = vmatprep.mubr.bf16.mxu0 %v5963_v24 }
 0x110   : > { %1302 = vmatmul.mubr.bf16.gmra.mxu0 %v5965_v25 }
 0x111   : > { %1309 = vmatprep.mubr.bf16.mxu0 %v5966_v26 }
 0x118   : > { %1310 = vmatmul.mubr.bf16.gmra.mxu0 %v5968_v27 }
 0x119   : > { %1317 = vmatprep.mubr.bf16.mxu0 %v5969_v28 }
 0x120   : > { %1318 = vmatmul.mubr.bf16.gmra.mxu0 %v5971_v29 }
 0x121   : > { %1325 = vmatprep.mubr.bf16.mxu0 %v5972_v30 }
 0x128   : > { %1326 = vmatmul.mubr.bf16.gmra.mxu0 %v5974_v31 }
 0x129   : > { %5479 = vmatprep.mubr.msk.bf16.mxu0 %vm1701_vm0, %v5995_v53 }
 0x130   : > { %5480 = vmatmul.mubr.msk.bf16.vlgmr.msra.gmra.mxu0 %vm1701_vm0, %v5997_v55 }
 0x131   : > { %5483 = vmatprep.mubr.msk.bf16.mxu0 %vm1701_vm0, %v5999_v1 }
 0x138   : > { %5484 = vmatmul.mubr.msk.bf16.gmra.mxu0 %vm1701_vm0, %v6001_v3 }
 0x1b0   : > { %v5211_v42 = vpop.f32.mrf.mxu0 }
 0x1b2   : > { %v5212_v45 = vpop.f32.mrf.mxu0 }
 0x1b3   : > { %v5213_v46 = vadd.f32 %v5212_v45, %v5211_v42 }
 0x1b4   : > { %v5214_v47 = vpop.f32.mrf.mxu0 }
 0x1b5   : > { %v7099_v48 = vadd.f32 %v5213_v46, %v7094_v44 }
 0x1b6   : > { %v5215_v49 = vpop.f32.mrf.mxu0 }
 0x1b7   : > { %v4934_v50 = vmul.f32 -1.442695, %v7099_v48  ;;  %v5216_v51 = vadd.f32 %v5215_v49, %v5214_v47 }
 0x1b8   : > { %v5217_v52 = vpop.f32.mrf.mxu0 }
 0x1b9   : > { %6003 = vpow2.f32 %v4934_v50  ;;  %v7106_v54 = vadd.f32 %v5216_v51, %v7094_v44 }
 0x1ba   : > { %v5218_v56 = vpop.f32.mrf.mxu0 }
 0x1bb   : > { %v4935_v57 = vmul.f32 -1.442695, %v7106_v54  ;;  %v5219_v58 = vadd.f32 %v5218_v56, %v5217_v52 }
 0x1bc   : > { %v5220_v59 = vpop.f32.mrf.mxu0 }
 0x1bd   : > { %6005 = vpow2.f32 %v4935_v57  ;;  %v7115_v60 = vadd.f32 %v5219_v58, %v7094_v44 }
 0x1be   : > { %v5221_v61 = vpop.f32.mrf.mxu0 }
 0x1bf   : > { %v4936_v62 = vmul.f32 -1.442695, %v7115_v60  ;;  %v5222_v63 = vadd.f32 %v5221_v61, %v5220_v59 }
 0x1c0   : > { %v5223_v0 = vpop.f32.mrf.mxu0 }
 0x1c1   : > { %6007 = vpow2.f32 %v4936_v62  ;;  %v7122_v2 = vadd.f32 %v5222_v63, %v7094_v44 }
 0x1c2   : > { %v5224_v4 = vpop.f32.mrf.mxu0 }
 0x1c3   : > { %v4937_v5 = vmul.f32 -1.442695, %v7122_v2  ;;  %v5225_v6 = vadd.f32 %v5224_v4, %v5223_v0 }
 0x1c4   : > { %v5226_v7 = vpop.f32.mrf.mxu0 }
 0x1c5   : > { %6009 = vpow2.f32 %v4937_v5  ;;  %v7131_v8 = vadd.f32 %v5225_v6, %v7094_v44 }
 0x1c6   : > { %v6004_v9 = vpop.eup %6003  ;;  %v5227_v10 = vpop.f32.mrf.mxu0 }
 0x1c7   : > { %v1382_v11 = vadd.f32 1.0, %v6004_v9  ;;  %v4938_v12 = vmul.f32 -1.442695, %v7131_v8  ;;  %v5228_v13 = vadd.f32 %v5227_v10, %v5226_v7 }
 0x1c8   : > { %v5229_v14 = vpop.f32.mrf.mxu0 }
 0x1c9   : > { %v7135_v15 = vadd.f32 %v5228_v13, %v7094_v44  ;;  %6011 = vpow2.f32 %v4938_v12 }
 0x1ca   : > { %v6006_v16 = vpop.eup %6005  ;;  %v5230_v17 = vpop.f32.mrf.mxu0  ;;  %6013 = vrcp.f32 %v1382_v11 }
 0x1cb   : > { %v1383_v18 = vadd.f32 1.0, %v6006_v16  ;;  %v4939_v19 = vmul.f32 -1.442695, %v7135_v15  ;;  %v5231_v20 = vadd.f32 %v5230_v17, %v5229_v14 }
 0x1cc   : > { %v5232_v21 = vpop.f32.mrf.mxu0 }
 0x1cd   : > { %6015 = vrcp.f32 %v1383_v18  ;;  %v7139_v22 = vadd.f32 %v5231_v20, %v7094_v44 }
 0x1ce   : > { %v6008_v23 = vpop.eup %6007  ;;  %6017 = vpow2.f32 %v4939_v19  ;;  %v5233_v24 = vpop.f32.mrf.mxu0  ;;  %v5984_v19 = vld [vmem:[%s8374_s13] sm:$0xff]  }
 0x1cf   : > { %v1384_v25 = vadd.f32 1.0, %v6008_v23  ;;  %v4940_v26 = vmul.f32 -1.442695, %v7139_v22  ;;  %v5234_v27 = vadd.f32 %v5233_v24, %v5232_v21 }
 0x1d0   : > { %v5235_v28 = vpop.f32.mrf.mxu0 }
 0x1d1   : > { %v7143_v29 = vadd.f32 %v5234_v27, %v7094_v44  ;;  %6019 = vpow2.f32 %v4940_v26 }
 0x1d2   : > { %v6010_v30 = vpop.eup %6009  ;;  %v5236_v31 = vpop.f32.mrf.mxu0  ;;  %6021 = vrcp.f32 %v1384_v25 }
 0x1d3   : > { %v1385_v32 = vadd.f32 1.0, %v6010_v30  ;;  %v4941_v33 = vmul.f32 -1.442695, %v7143_v29  ;;  %v5237_v34 = vadd.f32 %v5236_v31, %v5235_v28 }
 0x1d4   : > { %v5238_v35 = vpop.f32.mrf.mxu0 }
 0x1d5   : > { %6023 = vrcp.f32 %v1385_v32  ;;  %v7147_v36 = vadd.f32 %v5237_v34, %v7094_v44 }
 0x1d6   : > { %6025 = vpow2.f32 %v4941_v33  ;;  %v5239_v37 = vpop.f32.mrf.mxu0  ;;  %v6012_v38 = vpop.eup %6011 }
 0x1d7   : > { %v4942_v39 = vmul.f32 -1.442695, %v7147_v36  ;;  %v5240_v42 = vadd.f32 %v5239_v37, %v5238_v35  ;;  %v6014_v45 = vpop.eup %6013  ;;  %v1386_v46 = vadd.f32 1.0, %v6012_v38 }
 0x1d8   : > { %v5241_v47 = vpop.f32.mrf.mxu0  ;;  %v1430_v56 = vmul.f32 %v6014_v45, %v7099_v48 }
 0x1d9   : > { %6027 = vpow2.f32 %v4942_v39  ;;  %v7151_v49 = vadd.f32 %v5240_v42, %v7094_v44 }
 0x1da   : > { %v6016_v50 = vpop.eup %6015  ;;  %v5242_v51 = vpop.f32.mrf.mxu0  ;;  %6029 = vrcp.f32 %v1386_v46 }
 0x1db   : > { %v6018_v52 = vpop.eup %6017  ;;  %v4943_v53 = vmul.f32 -1.442695, %v7151_v49  ;;  %v5243_v55 = vadd.f32 %v5242_v51, %v5241_v47  ;;  %v1431_v57 = vmul.f32 %v6016_v50, %v7106_v54 }
 0x1dc   : > { %v1387_v58 = vadd.f32 1.0, %v6018_v52  ;;  %v5244_v59 = vpop.f32.mrf.mxu0 }
 0x1dd   : > { %6031 = vpow2.f32 %v4943_v53  ;;  %v7157_v61 = vadd.f32 %v5243_v55, %v7094_v44  ;;  %v1463_v62 = vpack.c.bf16 %v1431_v57, %v1430_v56 }
 0x1de   : > { %6033 = vrcp.f32 %v1387_v58  ;;  %v5245_v63 = vpop.f32.mrf.mxu0  ;;  %v6020_v0 = vpop.eup %6019 }
 0x1df   : > { %v4944_v1 = vmul.f32 -1.442695, %v7157_v61  ;;  %v5246_v3 = vadd.f32 %v5245_v63, %v5244_v59  ;;  %5439 = vmatprep.mubr.bf16.mxu1 %v1463_v62  ;;  %v6022_v4 = vpop.eup %6021  ;;  %v1388_v5 = vadd.f32 1.0, %v6020_v0 }
 0x1e0   : > { %v5247_v48 = vpop.f32.mrf.mxu0  ;;  %v1432_v10 = vmul.f32 %v6022_v4, %v7115_v60 }
 0x1e1   : > { %6035 = vpow2.f32 %v4944_v1  ;;  %v7161_v54 = vadd.f32 %v5246_v3, %v7094_v44 }
 0x1e2   : > { %v6024_v6 = vpop.eup %6023  ;;  %v5248_v7 = vpop.f32.mrf.mxu0  ;;  %6037 = vrcp.f32 %v1388_v5 }
 0x1e3   : > { %v6026_v9 = vpop.eup %6025  ;;  %v1433_v11 = vmul.f32 %v6024_v6, %v7122_v2  ;;  %v4945_v12 = vmul.f32 -1.442695, %v7161_v54  ;;  %v5249_v13 = vadd.f32 %v5248_v7, %v5247_v48 }
 0x1e4   : > { %v1389_v14 = vadd.f32 1.0, %v6026_v9  ;;  %v5250_v16 = vpop.f32.mrf.mxu0 }
 0x1e5   : > { %6039 = vpow2.f32 %v4945_v12  ;;  %v7167_v17 = vadd.f32 %v5249_v13, %v7094_v44  ;;  %v1464_v18 = vpack.c.bf16 %v1433_v11, %v1432_v10 }
 0x1e6   : > { %v6028_v20 = vpop.eup %6027  ;;  %6041 = vrcp.f32 %v1389_v14  ;;  %v5251_v60 = vpop.f32.mrf.mxu0 }
 0x1e7   : > { %v1390_v21 = vadd.f32 1.0, %v6028_v20  ;;  %v4946_v2 = vmul.f32 -1.442695, %v7167_v17  ;;  %v5252_v23 = vadd.f32 %v5251_v60, %v5250_v16  ;;  %5440 = vmatmul.mubr.bf16.vlgmr.msra.gmra.mxu1 %v1464_v18  ;;  %v6030_v25 = vpop.eup %6029  ;;  %v5988_v60 = vld [vmem:[%s8379_s8 + $0x10] sm:$0xff]  }
 0x1e8   : > { %v5253_v24 = vpop.f32.mrf.mxu0  ;;  %5456 = vmatpush3.bf16.msra.mxu1 %v7076_v40  ;;  %v1434_v34 = vmul.f32 %v6030_v25, %v7131_v8  ;;  %v5998_v25 = vld [vmem:[%s8378_s10 + $0x28] sm:$0xff]  }
 0x1e9   : > { %v7175_v26 = vadd.f32 %v5252_v23, %v7094_v44  ;;  %5457 = vmatprep.subr.bf16.mxu1 %v5984_v19  ;;  %6043 = vpow2.f32 %v4946_v2  ;;  %v5990_v2 = vld [vmem:[%s8379_s8 + $0x20] sm:$0xff]   ;;  %v5993_v23 = vld [vmem:[%s8379_s8 + $0x30] sm:$0xff]  }
 0x1ea   : > { %v6032_v27 = vpop.eup %6031  ;;  %v5254_v28 = vpop.f32.mrf.mxu0  ;;  %6045 = vrcp.f32 %v1390_v21  ;;  %v5989_v21 = vld [vmem:[%s8379_s8 + $0x18] sm:$0xff]  }
 0x1eb   : > { %v6034_v30 = vpop.eup %6033  ;;  %v1391_v31 = vadd.f32 1.0, %v6032_v27  ;;  %v4947_v32 = vmul.f32 -1.442695, %v7175_v26  ;;  %v5255_v33 = vadd.f32 %v5254_v28, %v5253_v24  ;;  %v5996_v24 = vld [vmem:[%s8378_s10 + $0x20] sm:$0xff]   ;;  %v6002_v27 = vld [vmem:[%s8378_s10 + $0x38] sm:$0xff]  }
 0x1ec   : > { %v1435_v35 = vmul.f32 %v6034_v30, %v7135_v15  ;;  %v5256_v37 = vpop.f32.mrf.mxu0  ;;  %5458 = vmatpush3.bf16.msra.mxu1 %v5984_v19 }
 0x1ed   : > { %6047 = vrcp.f32 %v1391_v31  ;;  %v1328_v40 = vadd.f32 %v5255_v33, %v7094_v44  ;;  %5751 = vmatprep.subr.bf16.mxu1 %v7081_v41 }
 0x1ee   : > { %v6036_v38 = vpop.eup %6035  ;;  %6049 = vpow2.f32 %v4947_v32  ;;  %v5257_v39 = vpop.f32.mrf.mxu0  ;;  %v1465_v42 = vpack.c.bf16 %v1435_v35, %v1434_v34  ;;  %v7242_v32 = vld [vmem:[#allocation12] ss:$0 sm:$0xff] }
 0x1ef   : > { %v1392_v45 = vadd.f32 1.0, %v6036_v38  ;;  %v4948_v46 = vmul.f32 -1.442695, %v1328_v40  ;;  %v5258_v47 = vadd.f32 %v5257_v39, %v5256_v37  ;;  %v6038_v50 = vpop.eup %6037 }
 0x1f0   : > { %5443 = vmatprep.mubr.bf16.mxu1 %v1465_v42  ;;  %v1436_v55 = vmul.f32 %v6038_v50, %v7139_v22  ;;  %v5481_v28 = vpop.f32.mrf.mxu0 }
 0x1f1   : > { %v1331_v8 = vadd.f32 %v5258_v47, %v7094_v44  ;;  %6051 = vpow2.f32 %v4948_v46  ;;  %v2177_v34 = vadd.f32 %v5481_v28, %v7242_v32 }
 0x1f2   : > { %v6040_v51 = vpop.eup %6039  ;;  %6053 = vrcp.f32 %v1392_v45  ;;  %v2168_v30 = vpop.f32.mrf.mxu0 }
 0x1f3   : > { %v6042_v15 = vpop.eup %6041  ;;  %v1393_v52 = vadd.f32 1.0, %v6040_v51  ;;  %v4949_v53 = vmul.f32 -1.442695, %v1331_v8  ;;  %v2169_v35 = vadd.f32 %v7242_v32, %v2168_v30  ;;  %2233 = vst [vmem:[#allocation2 + $0x58] sm:$0xff] %v2177_v34 }
 0x1f4   : > { %v1437_v56 = vmul.f32 %v6042_v15, %v7143_v29  ;;  %v5482_v31 = vpop.f32.mrf.mxu0 }
 0x1f5   : > { %6055 = vrcp.f32 %v1393_v52  ;;  %v2180_v37 = vadd.f32 %v5482_v31, %v7242_v32  ;;  %2231 = vst [vmem:[#allocation2 + $0x30] sm:$0xff] %v2169_v35 }
 0x1f6   : > { %6057 = vpow2.f32 %v4949_v53  ;;  %v1466_v57 = vpack.c.bf16 %v1437_v56, %v1436_v55  ;;  %v6044_v58 = vpop.eup %6043  ;;  %v2171_v33 = vpop.f32.mrf.mxu0 }
 0x1f7   : > { %v6046_v59 = vpop.eup %6045  ;;  %v1394_v62 = vadd.f32 1.0, %v6044_v58  ;;  %2234 = vst [vmem:[#allocation2 + $0x18] sm:$0xff] %v2180_v37 }
 0x1f8   : > { %5444 = vmatmul.mubr.bf16.gmra.mxu1 %v1466_v57  ;;  %v1438_v44 = vmul.f32 %v6046_v59, %v7147_v36  ;;  %v5485_v38 = vpop.f32.mrf.mxu0 }
 0x1f9   : > { %6059 = vrcp.f32 %v1394_v62  ;;  %v2193_v46 = vadd.f32 %v5485_v38, %v7242_v32 }
 0x1fa   : > { %v6048_v63 = vpop.eup %6047  ;;  %v2184_v39 = vpop.f32.mrf.mxu0 }
 0x1fb   : > { %v6050_v0 = vpop.eup %6049  ;;  %v1439_v1 = vmul.f32 %v6048_v63, %v7151_v49  ;;  %v2185_v47 = vadd.f32 %v7242_v32, %v2184_v39  ;;  %2237 = vst [vmem:[#allocation2 + $0x8] sm:$0xff] %v2193_v46 }
 0x1fc   : > { %v1395_v3 = vadd.f32 1.0, %v6050_v0  ;;  %v5486_v42 = vpop.f32.mrf.mxu0 }
 0x1fd   : > { %v1467_v4 = vpack.c.bf16 %v1439_v1, %v1438_v44  ;;  %v2196_v50 = vadd.f32 %v5486_v42, %v7242_v32  ;;  %2235 = vst [vmem:[#allocation2 + $0x50] sm:$0xff] %v2185_v47 }
 0x1fe   : > { %6061 = vrcp.f32 %v1395_v3  ;;  %v6052_v22 = vpop.eup %6051  ;;  %v2187_v45 = vpop.f32.mrf.mxu0 }
 0x1ff   : > { %5447 = vmatprep.mubr.bf16.mxu1 %v1467_v4  ;;  %v6054_v29 = vpop.eup %6053  ;;  %v1396_v5 = vadd.f32 1.0, %v6052_v22  ;;  %2238 = vst [vmem:[#allocation2 + $0x48] sm:$0xff] %v2196_v50  ;;  %v7262_v4 = vld [vmem:[#allocation9] ss:$0 sm:$0xff] }
 0x200   : > { %v1440_v7 = vmul.f32 %v6054_v29, %v7157_v61  ;;  %v5986_v61 = vld [vmem:[%s8379_s8] sm:$0xff]  }
 0x201   : > { %6063 = vrcp.f32 %v1396_v5  ;;  %v7266_v29 = vld [vmem:[#allocation11] ss:$0 sm:$0xff] }
 0x202   : > { %v6056_v48 = vpop.eup %6055 }
 0x203   : > { %v6058_v6 = vpop.eup %6057  ;;  %v1441_v9 = vmul.f32 %v6056_v48, %v7161_v54 }
 0x204   : > { %v1397_v10 = vadd.f32 1.0, %v6058_v6 }
 0x205   : > { %v1468_v11 = vpack.c.bf16 %v1441_v9, %v1440_v7 }
 0x206   : > { %6065 = vrcp.f32 %v1397_v10  ;;  %v6060_v36 = vpop.eup %6059 }
 0x207   : > { %5448 = vmatmul.mubr.bf16.gmra.mxu1 %v1468_v11  ;;  %v1442_v12 = vmul.f32 %v6060_v36, %v7167_v17  ;;  %v5987_v17 = vld [vmem:[%s8379_s8 + $0x8] sm:$0xff]  }
 0x20b   : > { %v6062_v49 = vpop.eup %6061 }
 0x20c   : > { %v1443_v13 = vmul.f32 %v6062_v49, %v7175_v26  ;;  %v6000_v26 = vld [vmem:[%s8378_s10 + $0x30] sm:$0xff]  }
 0x20e   : > { %v1469_v14 = vpack.c.bf16 %v1443_v13, %v1442_v12  ;;  %v6064_v16 = vpop.eup %6063 }
 0x20f   : > { %v1444_v19 = vmul.f32 %v6064_v16, %v1328_v40  ;;  %v2172_v40 = vadd.f32 %v7242_v32, %v2171_v33 }
 0x210   : > { %5451 = vmatprep.mubr.bf16.mxu1 %v1469_v14 }
 0x211   : > { %2232 = vst [vmem:[#allocation2] sm:$0xff] %v2172_v40 }
 0x213   : > { %v6066_v18 = vpop.eup %6065 }
 0x214   : > { %v1445_v20 = vmul.f32 %v6066_v18, %v1331_v8  ;;  %v2188_v8 = vadd.f32 %v7242_v32, %v2187_v45 }
 0x216   : > { %v1470_v54 = vpack.c.bf16 %v1445_v20, %v1444_v19  ;;  %2236 = vst [vmem:[#allocation2 + $0x68] sm:$0xff] %v2188_v8 }
 0x218   : > { %5452 = vmatmul.mubr.bf16.gmra.mxu1 %v1470_v54 }
 0x219   : > { %5459 = vmatprep.mubr.msk.bf16.mxu1 %vm1701_vm0, %v5986_v61 }
 0x220   : > { %5460 = vmatmul.mubr.msk.bf16.vlgmr.msra.gmra.mxu1 %vm1701_vm0, %v5987_v17 }
 0x221   : > { %5463 = vmatprep.mubr.msk.bf16.mxu1 %vm1701_vm0, %v5988_v60  ;;  %5753 = vmatpush3.bf16.msra.mxu1 %v7081_v41  ;;  %v5991_v41 = vld [vmem:[%s8379_s8 + $0x28] sm:$0xff]  }
 0x222   : > { %5752 = vmatprep.subr.bf16.mxu1 %v7089_v43 }
 0x225   : > { %5754 = vmatpush3.bf16.msra.mxu1 %v7089_v43  ;;  %v5994_v43 = vld [vmem:[%s8379_s8 + $0x38] sm:$0xff]  }
 0x228   : > { %5464 = vmatmul.mubr.msk.bf16.gmra.mxu1 %vm1701_vm0, %v5989_v21 }
 0x229   : > { %5467 = vmatprep.mubr.msk.bf16.mxu1 %vm1701_vm0, %v5990_v2 }
 0x230   : > { %5468 = vmatmul.mubr.msk.bf16.gmra.mxu1 %vm1701_vm0, %v5991_v41 }
 0x231   : > { %5471 = vmatprep.mubr.msk.bf16.mxu1 %vm1701_vm0, %v5993_v23 }
 0x238   : > { %5472 = vmatmul.mubr.msk.bf16.gmra.mxu1 %vm1701_vm0, %v5994_v43 }
 0x239   : > { %5487 = vmatprep.mubr.msk.bf16.mxu1 %vm1701_vm0, %v5996_v24 }
 0x240   : > { %5488 = vmatmul.mubr.msk.bf16.vlgmr.msra.gmra.mxu1 %vm1701_vm0, %v5998_v25 }
 0x241   : > { %5491 = vmatprep.mubr.msk.bf16.mxu1 %vm1701_vm0, %v6000_v26 }
 0x248   : > { %5492 = vmatmul.mubr.msk.bf16.gmra.mxu1 %vm1701_vm0, %v6002_v27 }
 0x2a7   : > { %v5441_v51 = vpop.f32.mrf.mxu1 }
 0x2a8   : > { %v1568_v48 = vadd.f32 %v5441_v51, %v7262_v4 }
 0x2a9   : > { %v1559_v15 = vpop.f32.mrf.mxu1 }
 0x2aa   : > { %v1560_v9 = vadd.f32 %v7262_v4, %v1559_v15 }
 0x2ab   : > { %v5442_v52 = vpop.f32.mrf.mxu1 }
 0x2ac   : > { %v1571_v49 = vadd.f32 %v5442_v52, %v7262_v4 }
 0x2ad   : > { %v1562_v53 = vpop.f32.mrf.mxu1 }
 0x2ae   : > { %v1563_v16 = vadd.f32 %v7262_v4, %v1562_v53 }
 0x2b8   : > { %v5445_v55 = vpop.f32.mrf.mxu1 }
 0x2b9   : > { %v1584_v54 = vadd.f32 %v5445_v55, %v7262_v4 }
 0x2ba   : > { %v1575_v56 = vpop.f32.mrf.mxu1 }
 0x2bb   : > { %v1576_v41 = vadd.f32 %v7262_v4, %v1575_v56 }
 0x2bc   : > { %v5446_v57 = vpop.f32.mrf.mxu1 }
 0x2bd   : > { %v1587_v26 = vadd.f32 %v5446_v57, %v7262_v4 }
 0x2be   : > { %v1578_v58 = vpop.f32.mrf.mxu1 }
 0x2bf   : > { %v1579_v33 = vadd.f32 %v7262_v4, %v1578_v58 }
 0x2c7   : > { %v5449_v59 = vpop.f32.mrf.mxu1 }
 0x2c8   : > { %v1600_v38 = vadd.f32 %v5449_v59, %v7262_v4 }
 0x2c9   : > { %v1591_v62 = vpop.f32.mrf.mxu1 }
 0x2ca   : > { %v1592_v47 = vadd.f32 %v7262_v4, %v1591_v62 }
 0x2cb   : > { %v7252_v63 = vpop.f32.mrf.mxu1 }
 0x2cc   : > { %v1603_v59 = vadd.f32 %v7252_v63, %v7262_v4 }
 0x2cd   : > { %v7254_v0 = vpop.f32.mrf.mxu1 }
 0x2ce   : > { %v1595_v62 = vadd.f32 %v7262_v4, %v7254_v0 }
 0x2d8   : > { %v7256_v44 = vpop.f32.mrf.mxu1 }
 0x2da   : > { %v7258_v1 = vpop.f32.mrf.mxu1 }
 0x2dc   : > { %v7260_v3 = vpop.f32.mrf.mxu1 }
 0x2de   : > { %v7264_v22 = vpop.f32.mrf.mxu1 }
 0x2e0   : > { %v5461_v5 = vpop.f32.mrf.mxu1 }
 0x2e1   : > { %v1769_v6 = vadd.f32 %v5461_v5, %v7266_v29 }
 0x2e2   : > { %v1760_v7 = vpop.f32.mrf.mxu1 }
 0x2e3   : > { %v7271_v10 = vadd.f32 %v1769_v6, %v1568_v48  ;;  %v1761_v11 = vadd.f32 %v7266_v29, %v1760_v7 }
 0x2e4   : > { %v5462_v36 = vpop.f32.mrf.mxu1 }
 0x2e5   : > { %v4980_v12 = vmul.f32 -1.442695, %v7271_v10  ;;  %v7276_v13 = vadd.f32 %v1761_v11, %v1560_v9  ;;  %v1772_v14 = vadd.f32 %v5462_v36, %v7266_v29  ;;  %v1616_v36 = vadd.f32 %v7256_v44, %v7262_v4 }
 0x2e6   : > { %v1763_v18 = vpop.f32.mrf.mxu1 }
 0x2e7   : > { %6067 = vpow2.f32 %v4980_v12  ;;  %v4978_v19 = vmul.f32 -1.442695, %v7276_v13  ;;  %v7281_v20 = vadd.f32 %v1772_v14, %v1571_v49  ;;  %v1764_v61 = vadd.f32 %v7266_v29, %v1763_v18 }
 0x2e8   : > { %v5465_v17 = vpop.f32.mrf.mxu1 }
 0x2e9   : > { %6069 = vpow2.f32 %v4978_v19  ;;  %v4981_v60 = vmul.f32 -1.442695, %v7281_v20  ;;  %v7286_v21 = vadd.f32 %v1764_v61, %v1563_v16  ;;  %v1785_v2 = vadd.f32 %v5465_v17, %v7266_v29 }
 0x2ea   : > { %v1776_v23 = vpop.f32.mrf.mxu1 }
 0x2eb   : > { %6071 = vpow2.f32 %v4981_v60  ;;  %v4979_v43 = vmul.f32 -1.442695, %v7286_v21  ;;  %v7291_v24 = vadd.f32 %v1785_v2, %v1584_v54  ;;  %v1777_v25 = vadd.f32 %v7266_v29, %v1776_v23 }
 0x2ec   : > { %v5466_v27 = vpop.f32.mrf.mxu1  ;;  %v1608_v60 = vadd.f32 %v7262_v4, %v7258_v1  ;;  %v1619_v2 = vadd.f32 %v7260_v3, %v7262_v4 }
 0x2ed   : > { %6073 = vpow2.f32 %v4979_v43  ;;  %v4984_v28 = vmul.f32 -1.442695, %v7291_v24  ;;  %v7296_v30 = vadd.f32 %v1777_v25, %v1576_v41  ;;  %v1788_v31 = vadd.f32 %v5466_v27, %v7266_v29 }
 0x2ee   : > { %v1779_v34 = vpop.f32.mrf.mxu1 }
 0x2ef   : > { %6075 = vpow2.f32 %v4984_v28  ;;  %v4982_v35 = vmul.f32 -1.442695, %v7296_v30  ;;  %v7301_v37 = vadd.f32 %v1788_v31, %v1587_v26  ;;  %v1780_v40 = vadd.f32 %v7266_v29, %v1779_v34 }
 0x2f0   : > { %v5469_v39 = vpop.f32.mrf.mxu1  ;;  %v1611_v28 = vadd.f32 %v7262_v4, %v7264_v22 }
 0x2f1   : > { %6077 = vpow2.f32 %v4982_v35  ;;  %v4985_v42 = vmul.f32 -1.442695, %v7301_v37  ;;  %v7306_v45 = vadd.f32 %v1780_v40, %v1579_v33  ;;  %v1801_v46 = vadd.f32 %v5469_v39, %v7266_v29 }
 0x2f2   : > { %v1792_v50 = vpop.f32.mrf.mxu1 }
 0x2f3   : > { %6079 = vpow2.f32 %v4985_v42  ;;  %v4983_v8 = vmul.f32 -1.442695, %v7306_v45  ;;  %v7311_v51 = vadd.f32 %v1801_v46, %v1600_v38  ;;  %v1793_v15 = vadd.f32 %v7266_v29, %v1792_v50 }
 0x2f4   : > { %v6068_v52 = vpop.eup %6067  ;;  %v5470_v53 = vpop.f32.mrf.mxu1 }
 0x2f5   : > { %v1889_v55 = vadd.f32 1.0, %v6068_v52  ;;  %6081 = vpow2.f32 %v4983_v8  ;;  %v4988_v56 = vmul.f32 -1.442695, %v7311_v51  ;;  %v7315_v57 = vadd.f32 %v1793_v15, %v1592_v47 }
 0x2f6   : > { %v6070_v58 = vpop.eup %6069  ;;  %v1804_v5 = vadd.f32 %v5470_v53, %v7266_v29  ;;  %v1795_v48 = vpop.f32.mrf.mxu1 }
 0x2f7   : > { %6083 = vrcp.f32 %v1889_v55  ;;  %v1887_v6 = vadd.f32 1.0, %v6070_v58  ;;  %v4986_v7 = vmul.f32 -1.442695, %v7315_v57  ;;  %v1796_v9 = vadd.f32 %v7266_v29, %v1795_v48 }
 0x2f8   : > { %v6072_v11 = vpop.eup %6071  ;;  %6085 = vpow2.f32 %v4988_v56  ;;  %v7326_v49 = vadd.f32 %v1804_v5, %v1603_v59  ;;  %v5473_v63 = vpop.f32.mrf.mxu1 }
 0x2f9   : > { %6087 = vrcp.f32 %v1887_v6  ;;  %v1890_v12 = vadd.f32 1.0, %v6072_v11  ;;  %v7328_v0 = vadd.f32 %v1796_v9, %v1595_v62  ;;  %v1817_v14 = vadd.f32 %v5473_v63, %v7266_v29 }
 0x2fa   : > { %v6074_v16 = vpop.eup %6073  ;;  %6089 = vpow2.f32 %v4986_v7  ;;  %v4989_v18 = vmul.f32 -1.442695, %v7326_v49  ;;  %v1808_v19 = vpop.f32.mrf.mxu1 }
 0x2fb   : > { %6091 = vrcp.f32 %v1890_v12  ;;  %v1888_v61 = vadd.f32 1.0, %v6074_v16  ;;  %v4987_v54 = vmul.f32 -1.442695, %v7328_v0  ;;  %v7333_v44 = vadd.f32 %v1817_v14, %v1616_v36 }
 0x2fc   : > { %v6076_v17 = vpop.eup %6075  ;;  %6093 = vpow2.f32 %v4989_v18  ;;  %v1809_v41 = vadd.f32 %v7266_v29, %v1808_v19  ;;  %v5474_v23 = vpop.f32.mrf.mxu1 }
 0x2fd   : > { %6095 = vrcp.f32 %v1888_v61  ;;  %v1893_v43 = vadd.f32 1.0, %v6076_v17  ;;  %v4992_v25 = vmul.f32 -1.442695, %v7333_v44  ;;  %v1820_v26 = vadd.f32 %v5474_v23, %v7266_v29 }
 0x2fe   : > { %v6078_v27 = vpop.eup %6077  ;;  %6097 = vpow2.f32 %v4987_v54  ;;  %v7344_v31 = vadd.f32 %v1809_v41, %v1608_v60  ;;  %v1811_v1 = vpop.f32.mrf.mxu1 }
 0x2ff   : > { %6099 = vrcp.f32 %v1893_v43  ;;  %v1891_v3 = vadd.f32 1.0, %v6078_v27  ;;  %v7346_v33 = vadd.f32 %v1820_v26, %v1619_v2  ;;  %v1812_v34 = vadd.f32 %v7266_v29, %v1811_v1 }
 0x300   : > { %v6080_v35 = vpop.eup %6079  ;;  %6101 = vpow2.f32 %v4992_v25  ;;  %v4990_v40 = vmul.f32 -1.442695, %v7344_v31  ;;  %v5489_v38 = vpop.f32.mrf.mxu1 }
 0x301   : > { %6103 = vrcp.f32 %v1891_v3  ;;  %v1894_v39 = vadd.f32 1.0, %v6080_v35  ;;  %v4993_v42 = vmul.f32 -1.442695, %v7346_v33  ;;  %v7351_v4 = vadd.f32 %v1812_v34, %v1611_v28 }
 0x302   : > { %v6082_v22 = vpop.eup %6081  ;;  %6105 = vpow2.f32 %v4990_v40  ;;  %v2209_v46 = vadd.f32 %v5489_v38, %v7242_v32  ;;  %v2200_v47 = vpop.f32.mrf.mxu1 }
 0x303   : > { %6107 = vrcp.f32 %v1894_v39  ;;  %v1892_v50 = vadd.f32 1.0, %v6082_v22  ;;  %v4991_v29 = vmul.f32 -1.442695, %v7351_v4  ;;  %v2201_v8 = vadd.f32 %v7242_v32, %v2200_v47 }
 0x304   : > { %v6084_v15 = vpop.eup %6083  ;;  %6109 = vpow2.f32 %v4993_v42  ;;  %2241 = vst [vmem:[#allocation2 + $0x10] sm:$0xff] %v2209_v46  ;;  %v5490_v52 = vpop.f32.mrf.mxu1 }
 0x305   : > { %v6086_v53 = vpop.eup %6085  ;;  %6111 = vrcp.f32 %v1892_v50  ;;  %2239 = vst [vmem:[#allocation2 + $0x40] sm:$0xff] %v2201_v8  ;;  %v2212_v55 = vadd.f32 %v5490_v52, %v7242_v32  ;;  %v1937_v11 = vmul.f32 %v6084_v15, %v7271_v10 }
 0x306   : > { %v6088_v56 = vpop.eup %6087  ;;  %v1897_v58 = vadd.f32 1.0, %v6086_v53  ;;  %6113 = vpow2.f32 %v4991_v29  ;;  %v2203_v59 = vpop.f32.mrf.mxu1 }
 0x307   : > { %v6090_v62 = vpop.eup %6089  ;;  %2242 = vst [vmem:[#allocation2 + $0x38] sm:$0xff] %v2212_v55  ;;  %v2204_v5 = vadd.f32 %v7242_v32, %v2203_v59  ;;  %v1935_v14 = vmul.f32 %v6088_v56, %v7276_v13 }
 0x308   : > { %v6092_v48 = vpop.eup %6091  ;;  %v1895_v6 = vadd.f32 1.0, %v6090_v62  ;;  %v5493_v7 = vpop.f32.mrf.mxu1  ;;  %6115 = vrcp.f32 %v1897_v58 }
 0x309   : > { %v6094_v9 = vpop.eup %6093  ;;  %v1938_v36 = vmul.f32 %v6092_v48, %v7281_v20  ;;  %2240 = vst [vmem:[#allocation2 + $0x20] sm:$0xff] %v2204_v5  ;;  %v2225_v63 = vadd.f32 %v5493_v7, %v7242_v32 }
 0x30a   : > { %v6096_v12 = vpop.eup %6095  ;;  %v1898_v16 = vadd.f32 1.0, %v6094_v9  ;;  %v2216_v18 = vpop.f32.mrf.mxu1  ;;  %6117 = vrcp.f32 %v1895_v6 }
 0x30b   : > { %v6098_v19 = vpop.eup %6097  ;;  %v5156_v61 = vpack.c.bf16 %v1938_v36, %v1937_v11  ;;  %v1936_v54 = vmul.f32 %v6096_v12, %v7286_v21  ;;  %2245 = vst [vmem:[#allocation2 + $0x78] sm:$0xff] %v2225_v63  ;;  %v2217_v17 = vadd.f32 %v7242_v32, %v2216_v18 }
 0x30c   : > { %v6100_v10 = vpop.eup %6099  ;;  %6119 = vrcp.f32 %v1898_v16  ;;  %v1896_v20 = vadd.f32 1.0, %v6098_v19  ;;  %v5494_v60 = vpop.f32.mrf.mxu1 }
 0x30d   : > { %v6102_v2 = vpop.eup %6101  ;;  %5188 = vst [vmem:[#allocation3 + $0x8] sm:$0xff] %v5156_v61   ;;  %v5151_v41 = vpack.c.bf16 %v1936_v54, %v1935_v14  ;;  %2243 = vst [vmem:[#allocation2 + $0x60] sm:$0xff] %v2217_v17  ;;  %v2228_v13 = vadd.f32 %v5494_v60, %v7242_v32  ;;  %v1941_v3 = vmul.f32 %v6100_v10, %v7291_v24 }
 0x30e   : > { %v6104_v23 = vpop.eup %6103  ;;  %6121 = vrcp.f32 %v1896_v20  ;;  %v1901_v43 = vadd.f32 1.0, %v6102_v2  ;;  %v2219_v25 = vpop.f32.mrf.mxu1 }
 0x30f   : > { %v6106_v26 = vpop.eup %6105  ;;  %5152 = vst [vmem:[#allocation3] sm:$0xff] %v5151_v41   ;;  %2246 = vst [vmem:[#allocation2 + $0x28] sm:$0xff] %v2228_v13  ;;  %v2220_v21 = vadd.f32 %v7242_v32, %v2219_v25  ;;  %v1939_v39 = vmul.f32 %v6104_v23, %v7296_v30 }
 0x310   : > { %v6108_v27 = vpop.eup %6107  ;;  %v1899_v28 = vadd.f32 1.0, %v6106_v26  ;;  %6123 = vrcp.f32 %v1901_v43 }
 0x311   : > { %v6110_v1 = vpop.eup %6109  ;;  %v1942_v34 = vmul.f32 %v6108_v27, %v7301_v37  ;;  %2244 = vst [vmem:[#allocation2 + $0x70] sm:$0xff] %v2220_v21 }
 0x312   : > { %v6112_v35 = vpop.eup %6111  ;;  %v1902_v40 = vadd.f32 1.0, %v6110_v1  ;;  %6125 = vrcp.f32 %v1899_v28 }
 0x313   : > { %v6114_v38 = vpop.eup %6113  ;;  %v5166_v42 = vpack.c.bf16 %v1942_v34, %v1941_v3  ;;  %v1940_v22 = vmul.f32 %v6112_v35, %v7306_v45 }
 0x314   : > { %6127 = vrcp.f32 %v1902_v40  ;;  %v1900_v32 = vadd.f32 1.0, %v6114_v38 }
 0x315   : > { %5190 = vst [vmem:[#allocation3 + $0x18] sm:$0xff] %v5166_v42   ;;  %v5161_v46 = vpack.c.bf16 %v1940_v22, %v1939_v39  ;;  %v6116_v47 = vpop.eup %6115 }
 0x316   : > { %6129 = vrcp.f32 %v1900_v32  ;;  %v1945_v50 = vmul.f32 %v6116_v47, %v7311_v51 }
 0x317   : > { %5189 = vst [vmem:[#allocation3 + $0x10] sm:$0xff] %v5161_v46   ;;  %v6118_v24 = vpop.eup %6117 }
 0x318   : > { %v1943_v30 = vmul.f32 %v6118_v24, %v7315_v57 }
 0x319   : > { %v6120_v37 = vpop.eup %6119 }
 0x31a   : > { %v1946_v29 = vmul.f32 %v6120_v37, %v7326_v49 }
 0x31b   : > { %v6122_v8 = vpop.eup %6121 }
 0x31c   : > { %v5176_v15 = vpack.c.bf16 %v1946_v29, %v1945_v50  ;;  %v1944_v45 = vmul.f32 %v6122_v8, %v7328_v0 }
 0x31d   : > { %v6124_v53 = vpop.eup %6123 }
 0x31e   : > { %5192 = vst [vmem:[#allocation3 + $0x28] sm:$0xff] %v5176_v15   ;;  %v5171_v52 = vpack.c.bf16 %v1944_v45, %v1943_v30  ;;  %v1949_v58 = vmul.f32 %v6124_v53, %v7333_v44 }
 0x31f   : > { %v6126_v55 = vpop.eup %6125 }
 0x320   : > { %5191 = vst [vmem:[#allocation3 + $0x20] sm:$0xff] %v5171_v52   ;;  %v1947_v51 = vmul.f32 %v6126_v55, %v7344_v31 }
 0x321   : > { %v6128_v56 = vpop.eup %6127 }
 0x322   : > { %v1950_v59 = vmul.f32 %v6128_v56, %v7346_v33 }
 0x323   : > { %v6130_v62 = vpop.eup %6129 }
 0x324   : > { %v5186_v49 = vpack.c.bf16 %v1950_v59, %v1949_v58  ;;  %v1948_v5 = vmul.f32 %v6130_v62, %v7351_v4 }
 0x326   : > { %5194 = vst [vmem:[#allocation3 + $0x38] sm:$0xff] %v5186_v49   ;;  %v5181_v57 = vpack.c.bf16 %v1948_v5, %v1947_v51 }
 0x328   : > { %5193 = vst [vmem:[#allocation3 + $0x30] sm:$0xff] %v5181_v57  }
 0x329 PF: > { %v6131_v0 = vld [vmem:[%s7063_s27 + $0xa8] ss:$12 sps:$4 sm:$0xff]   ;;  %v6132_v44 = vld [vmem:[%s7063_s27 + $0xac] ss:$12 sps:$4 sm:$0xff]   ;;  %v6133_v33 = vld [vmem:[%s7063_s27 + $0x90] ss:$12 sps:$4 sm:$0xff]  }
 0x32a   : > { %5495 = vmatprep.subr.bf16.mxu0 %v6131_v0  ;;  %5527 = vmatprep.subr.bf16.mxu1 %v6132_v44  ;;  %v6134_v31 = vld [vmem:[%s7063_s27 + $0x94] ss:$12 sps:$4 sm:$0xff]   ;;  %v6135_v4 = vld [vmem:[%s7063_s27 + $0x78] ss:$12 sps:$4 sm:$0xff]   ;;  %v6136_v48 = vld [vmem:[%s7063_s27 + $0x7c] ss:$12 sps:$4 sm:$0xff]  }
 0x32b   : > { %5496 = vmatpush3.bf16.msra.mxu0 %v6131_v0  ;;  %5528 = vmatpush3.bf16.msra.mxu1 %v6132_v44  ;;  %v7384_v6 = vld [vmem:[#allocation2 + $0x30] sm:$0xff]  ;;  %v6137_v7 = vld [vmem:[%s7063_s27 + $0x60] ss:$12 sps:$4 sm:$0xff]   ;;  %v7388_v9 = vld [vmem:[#allocation2 + $0x58] sm:$0xff]  ;;  %p5098_p6 = scmp.ne.s32.totalorder %s6677_s30, 1 }
 0x32c   : > { %5497 = vmatprep.subr.bf16.mxu0 %v6133_v33  ;;  %5529 = vmatprep.subr.bf16.mxu1 %v6134_v31  ;;  %v7390_v11 = vld [vmem:[#allocation2] sm:$0xff]  ;;  %v7395_v63 = vld [vmem:[#allocation2 + $0x18] sm:$0xff]  ;;  %v2712_v12 = vmul.f32 %v7384_v6, %v7384_v6  ;;  %v6139_v14 = vld [vmem:[%s7063_s27 + $0x48] ss:$12 sps:$4 sm:$0xff]   ;;  %v2714_v19 = vmul.f32 %v7388_v9, %v7388_v9  ;;  %s8396_s21 = sld [smem:[#allocation51_spill]] (!%p5098_p6) }
 0x32d   : > { %2663 = vadd.xlane.f32.xlu0 %v7384_v6  ;;  %v6138_v36 = vld [vmem:[%s7063_s27 + $0x64] ss:$12 sps:$4 sm:$0xff]   ;;  %2667 = vadd.xlane.f32.xlu1 %v7388_v9  ;;  %v6140_v16 = vld [vmem:[%s7063_s27 + $0x4c] ss:$12 sps:$4 sm:$0xff]   ;;  %v2713_v18 = vmul.f32 %v7390_v11, %v7390_v11  ;;  %v6142_v54 = vld [vmem:[%s7063_s27 + $0x34] ss:$12 sps:$4 sm:$0xff]   ;;  %v2715_v17 = vmul.f32 %v7395_v63, %v7395_v63 }
 0x32e   : > { %v6141_v61 = vld [vmem:[%s7063_s27 + $0x30] ss:$12 sps:$4 sm:$0xff]   ;;  %v7410_v10 = vld [vmem:[#allocation3] sm:$0xff]   ;;  %v7416_v41 = vld [vmem:[#allocation2 + $0x68] sm:$0xff]  ;;  %s8397_s23 = sld [smem:[#allocation35_spill]] (!%p5098_p6) }
 0x32f   : > { %5498 = vmatpush3.bf16.msra.mxu0 %v6133_v33  ;;  %5530 = vmatpush3.bf16.msra.mxu1 %v6134_v31  ;;  %v6143_v20 = vld [vmem:[%s7063_s27 + $0x18] ss:$12 sps:$4 sm:$0xff]   ;;  %v7413_v60 = vld [vmem:[#allocation2 + $0x50] sm:$0xff]  ;;  %v6144_v2 = vld [vmem:[%s7063_s27 + $0x1c] ss:$12 sps:$4 sm:$0xff]   ;;  %v2717_v27 = vmul.f32 %v7416_v41, %v7416_v41 }
 0x330   : > { %5499 = vmatprep.subr.bf16.mxu0 %v6135_v4  ;;  %5531 = vmatprep.subr.bf16.mxu1 %v6136_v48  ;;  %v6145_v13 = vld [vmem:[%s7063_s27] ss:$12 sps:$4 sm:$0xff]   ;;  %v6146_v43 = vld [vmem:[%s7063_s27 + $0x4] ss:$12 sps:$4 sm:$0xff]   ;;  %v2716_v26 = vmul.f32 %v7413_v60, %v7413_v60  ;;  %v7448_v35 = vld [vmem:[#allocation3 + $0x18] sm:$0xff]  }
 0x331   : > { %2665 = vadd.xlane.f32.xlu0 %v7390_v11  ;;  %2669 = vadd.xlane.f32.xlu1 %v7395_v63  ;;  %v7422_v23 = vld [vmem:[#allocation2 + $0x8] sm:$0xff]  ;;  %v7436_v28 = vld [vmem:[#allocation3 + $0x10] sm:$0xff]   ;;  %v7445_v34 = vld [vmem:[#allocation2 + $0x40] sm:$0xff]  ;;  %8380 = vst [vmem:[#allocation28_spill] sm:$0xff] %v7448_v35 }
 0x332   : > { %5511 = vmatprep.mubr.bf16.mxu0 %v7410_v10  ;;  %5543 = vmatprep.mubr.bf16.mxu1 %v7410_v10  ;;  %v7426_v25 = vld [vmem:[#allocation2 + $0x48] sm:$0xff]  ;;  %v2718_v1 = vmul.f32 %v7422_v23, %v7422_v23  ;;  %v7450_v40 = vld [vmem:[#allocation2 + $0x20] sm:$0xff]  ;;  %v7454_v39 = vld [vmem:[#allocation2 + $0x10] sm:$0xff]  ;;  %v2720_v22 = vmul.f32 %v7445_v34, %v7445_v34 }
 0x333   : > { %5500 = vmatpush3.bf16.msra.mxu0 %v6135_v4  ;;  %5532 = vmatpush3.bf16.msra.mxu1 %v6136_v48  ;;  %v7431_v21 = vld [vmem:[#allocation3 + $0x8] sm:$0xff]   ;;  %v2719_v3 = vmul.f32 %v7426_v25, %v7426_v25  ;;  %v7452_v38 = vld [vmem:[#allocation3 + $0x20] sm:$0xff]   ;;  %v7457_v42 = vld [vmem:[#allocation2 + $0x38] sm:$0xff]  ;;  %v2721_v32 = vmul.f32 %v7450_v40, %v7450_v40  ;;  %v2722_v24 = vmul.f32 %v7454_v39, %v7454_v39 }
 0x334   : > { %5501 = vmatprep.subr.bf16.mxu0 %v6137_v7  ;;  %5533 = vmatprep.subr.bf16.mxu1 %v6138_v36  ;;  %8381 = vst [vmem:[#allocation29_spill] sm:$0xff] %v7452_v38  ;;  %v7470_v46 = vld [vmem:[#allocation3 + $0x28] sm:$0xff]   ;;  %v7472_v47 = vld [vmem:[#allocation3 + $0x30] sm:$0xff]   ;;  %v2723_v37 = vmul.f32 %v7457_v42, %v7457_v42  ;;  %v7482_v50 = vld [vmem:[#allocation2 + $0x60] sm:$0xff] }
 0x335   : > { %2728 = vadd.xlane.f32.xlu0 %v2712_v12  ;;  %2730 = vadd.xlane.f32.xlu1 %v2713_v18  ;;  %8382 = vst [vmem:[#allocation30_spill] sm:$0xff] %v7470_v46  ;;  %8383 = vst [vmem:[#allocation31_spill] sm:$0xff] %v7472_v47  ;;  %v7484_v29 = vld [vmem:[#allocation3 + $0x38] sm:$0xff]   ;;  %v7486_v8 = vld [vmem:[#allocation2 + $0x70] sm:$0xff]  ;;  %v2724_v45 = vmul.f32 %v7482_v50, %v7482_v50 }
 0x336   : > { %8384 = vst [vmem:[#allocation32_spill] sm:$0xff] %v7484_v29  ;;  %v7490_v30 = vld [vmem:[#allocation2 + $0x78] sm:$0xff]  ;;  %v7493_v15 = vld [vmem:[#allocation2 + $0x28] sm:$0xff]  ;;  %v2725_v52 = vmul.f32 %v7486_v8, %v7486_v8  ;;  %v6155_v56 = vld [vmem:[%s7040_s26 + $0x38] sm:$0xff]  }
 0x337   : > { %5502 = vmatpush3.bf16.msra.mxu0 %v6137_v7  ;;  %5534 = vmatpush3.bf16.msra.mxu1 %v6138_v36  ;;  %v2726_v53 = vmul.f32 %v7490_v30, %v7490_v30  ;;  %v2727_v55 = vmul.f32 %v7493_v15, %v7493_v15  ;;  %v6156_v58 = vld [vmem:[%s7040_s26 + $0x30] sm:$0xff]   ;;  %v6157_v59 = vld [vmem:[%s7040_s26 + $0x28] sm:$0xff]   ;;  %v6158_v62 = vld [vmem:[%s7040_s26 + $0x20] sm:$0xff]  }
 0x338   : > { %5503 = vmatprep.subr.bf16.mxu0 %v6139_v14  ;;  %5535 = vmatprep.subr.bf16.mxu1 %v6140_v16  ;;  %v6159_v51 = vld [vmem:[%s7040_s26 + $0x18] sm:$0xff]   ;;  %v6160_v49 = vld [vmem:[%s7040_s26 + $0x10] sm:$0xff]   ;;  %v6161_v5 = vld [vmem:[%s7040_s26 + $0x8] sm:$0xff]  }
 0x339   : > { %2732 = vadd.xlane.f32.xlu0 %v2714_v19  ;;  %2734 = vadd.xlane.f32.xlu1 %v2715_v17  ;;  %v6162_v57 = vld [vmem:[%s7040_s26] sm:$0xff]  }
 0x33b   : > { %5504 = vmatpush3.bf16.msra.mxu0 %v6139_v14  ;;  %5536 = vmatpush3.bf16.msra.mxu1 %v6140_v16 }
 0x33c   : > { %5505 = vmatprep.subr.bf16.mxu0 %v6141_v61  ;;  %5537 = vmatprep.subr.bf16.mxu1 %v6142_v54 }
 0x33d   : > { %2671 = vadd.xlane.f32.xlu0 %v7413_v60  ;;  %2673 = vadd.xlane.f32.xlu1 %v7416_v41 }
 0x33f   : > { %5506 = vmatpush3.bf16.msra.mxu0 %v6141_v61  ;;  %5538 = vmatpush3.bf16.msra.mxu1 %v6142_v54 }
 0x340   : > { %5507 = vmatprep.subr.bf16.mxu0 %v6143_v20  ;;  %5539 = vmatprep.subr.bf16.mxu1 %v6144_v2 }
 0x341   : > { %2675 = vadd.xlane.f32.xlu0 %v7422_v23  ;;  %2677 = vadd.xlane.f32.xlu1 %v7426_v25 }
 0x343   : > { %5508 = vmatpush3.bf16.msra.mxu0 %v6143_v20  ;;  %5540 = vmatpush3.bf16.msra.mxu1 %v6144_v2 }
 0x344   : > { %5509 = vmatprep.subr.bf16.mxu0 %v6145_v13  ;;  %5541 = vmatprep.subr.bf16.mxu1 %v6146_v43 }
 0x345   : > { %2736 = vadd.xlane.f32.xlu0 %v2716_v26  ;;  %2738 = vadd.xlane.f32.xlu1 %v2717_v27 }
 0x347   : > { %5510 = vmatpush3.bf16.msra.mxu0 %v6145_v13  ;;  %5542 = vmatpush3.bf16.msra.mxu1 %v6146_v43 }
 0x348   : > { %5559 = vmatprep.subr.bf16.mxu0 %v6155_v56 }
 0x349   : > { %2740 = vadd.xlane.f32.xlu0 %v2718_v1  ;;  %2742 = vadd.xlane.f32.xlu1 %v2719_v3 }
 0x34a   : > { %5512 = vmatmul.mubr.bf16.vlgmr.msra.gmra.mxu0 %v7431_v21  ;;  %5544 = vmatmul.mubr.bf16.vlgmr.msra.gmra.mxu1 %v7431_v21 }
 0x34b   : > { %5515 = vmatprep.mubr.bf16.mxu0 %v7436_v28  ;;  %5547 = vmatprep.mubr.bf16.mxu1 %v7436_v28 }
 0x34c   : > { %5560 = vmatpush3.bf16.msra.mxu0 %v6155_v56 }
 0x34d   : > { %2679 = vadd.xlane.f32.xlu0 %v7445_v34  ;;  %2681 = vadd.xlane.f32.xlu1 %v7450_v40 }
 0x34e   : > { %5561 = vmatprep.subr.bf16.mxu0 %v6156_v58 }
 0x350   : > { %5562 = vmatpush3.bf16.msra.mxu0 %v6156_v58 }
 0x351   : > { %2683 = vadd.xlane.f32.xlu0 %v7454_v39  ;;  %2685 = vadd.xlane.f32.xlu1 %v7457_v42 }
 0x352   : > { %5516 = vmatmul.mubr.bf16.gmra.mxu0 %v7448_v35  ;;  %5548 = vmatmul.mubr.bf16.gmra.mxu1 %v7448_v35 }
 0x353   : > { %5519 = vmatprep.mubr.bf16.mxu0 %v7452_v38  ;;  %5551 = vmatprep.mubr.bf16.mxu1 %v7452_v38 }
 0x354   : > { %5563 = vmatprep.subr.bf16.mxu0 %v6157_v59 }
 0x355   : > { %2744 = vadd.xlane.f32.xlu0 %v2720_v22  ;;  %2746 = vadd.xlane.f32.xlu1 %v2721_v32 }
 0x356   : > { %5564 = vmatpush3.bf16.msra.mxu0 %v6157_v59 }
 0x357   : > { %5565 = vmatprep.subr.bf16.mxu0 %v6158_v62 }
 0x359   : > { %2748 = vadd.xlane.f32.xlu0 %v2722_v24  ;;  %2750 = vadd.xlane.f32.xlu1 %v2723_v37 }
 0x35a   : > { %5520 = vmatmul.mubr.bf16.gmra.mxu0 %v7470_v46  ;;  %5552 = vmatmul.mubr.bf16.gmra.mxu1 %v7470_v46 }
 0x35b   : > { %5523 = vmatprep.mubr.bf16.mxu0 %v7472_v47  ;;  %5555 = vmatprep.mubr.bf16.mxu1 %v7472_v47 }
 0x35c   : > { %5566 = vmatpush3.bf16.msra.mxu0 %v6158_v62 }
 0x35d   : > { %2687 = vadd.xlane.f32.xlu0 %v7482_v50  ;;  %2689 = vadd.xlane.f32.xlu1 %v7486_v8 }
 0x35e   : > { %5567 = vmatprep.subr.bf16.mxu0 %v6159_v51 }
 0x360   : > { %5568 = vmatpush3.bf16.msra.mxu0 %v6159_v51 }
 0x361   : > { %2691 = vadd.xlane.f32.xlu0 %v7490_v30  ;;  %2693 = vadd.xlane.f32.xlu1 %v7493_v15 }
 0x362   : > { %5524 = vmatmul.mubr.bf16.gmra.mxu0 %v7484_v29  ;;  %5556 = vmatmul.mubr.bf16.gmra.mxu1 %v7484_v29 }
 0x363   : > { %5569 = vmatprep.subr.bf16.mxu0 %v6160_v49 }
 0x364   : > { %5570 = vmatpush3.bf16.msra.mxu0 %v6160_v49 }
 0x365   : > { %2752 = vadd.xlane.f32.xlu0 %v2724_v45  ;;  %2754 = vadd.xlane.f32.xlu1 %v2725_v52 }
 0x366   : > { %5571 = vmatprep.subr.bf16.mxu0 %v6161_v5 }
 0x368   : > { %5572 = vmatpush3.bf16.msra.mxu0 %v6161_v5 }
 0x369   : > { %2756 = vadd.xlane.f32.xlu0 %v2726_v53  ;;  %2758 = vadd.xlane.f32.xlu1 %v2727_v55 }
 0x36a   : > { %5573 = vmatprep.subr.bf16.mxu0 %v6162_v57 }
 0x36c   : > { %5574 = vmatpush3.bf16.msra.mxu0 %v6162_v57 }
 0x3b6   : > { %v2664_v0 = vpop.xlane.xlu0 %2663  ;;  %v2668_v44 = vpop.xlane.xlu1 %2667 }
 0x3b7   : > { %v7514_v26 = vmul.f32 0.0078125, %v2664_v0  ;;  %v7520_v3 = vmul.f32 0.0078125, %v2668_v44 }
 0x3b9   : > { %v2776_v32 = vmul.f32 %v7514_v26, %v7514_v26  ;;  %v2778_v55 = vmul.f32 %v7520_v3, %v7520_v3 }
 0x3ba   : > { %v2666_v33 = vpop.xlane.xlu0 %2665  ;;  %v2670_v31 = vpop.xlane.xlu1 %2669 }
 0x3bb   : > { %v7518_v1 = vmul.f32 0.0078125, %v2666_v33  ;;  %v7524_v24 = vmul.f32 0.0078125, %v2670_v31 }
 0x3bd   : > { %v2777_v45 = vmul.f32 %v7518_v1, %v7518_v1  ;;  %v2779_v58 = vmul.f32 %v7524_v24, %v7524_v24 }
 0x3be   : > { %v2729_v4 = vpop.xlane.xlu0 %2728  ;;  %v2731_v48 = vpop.xlane.xlu1 %2730 }
 0x3bf   : > { %v2760_v37 = vmul.f32 0.0078125, %v2729_v4  ;;  %v2761_v52 = vmul.f32 0.0078125, %v2731_v48 }
 0x3c1   : > { %v2792_v59 = vsub.f32 %v2760_v37, %v2776_v32  ;;  %v2793_v5 = vsub.f32 %v2761_v52, %v2777_v45 }
 0x3c2   : > { %v2733_v7 = vpop.xlane.xlu0 %2732  ;;  %v2735_v36 = vpop.xlane.xlu1 %2734 }
 0x3c3   : > { %v2762_v56 = vmul.f32 0.0078125, %v2733_v7  ;;  %v2763_v62 = vmul.f32 0.0078125, %v2735_v36  ;;  %v2808_v0 = vmax.f32 %v2792_v59, 0.0  ;;  %v2809_v7 = vmax.f32 %v2793_v5, 0.0 }
 0x3c5   : > { %v2794_v57 = vsub.f32 %v2762_v56, %v2778_v55  ;;  %v2795_v44 = vsub.f32 %v2763_v62, %v2779_v58  ;;  %v2840_v36 = vadd.f32 1e-06, %v2808_v0  ;;  %v2841_v55 = vadd.f32 1e-06, %v2809_v7 }
 0x3c6   : > { %v2672_v12 = vpop.xlane.xlu0 %2671  ;;  %v2674_v14 = vpop.xlane.xlu1 %2673 }
 0x3c7   : > { %v7532_v51 = vmul.f32 0.0078125, %v2672_v12  ;;  %v7534_v33 = vmul.f32 0.0078125, %v2674_v14  ;;  %v2810_v47 = vmax.f32 %v2794_v57, 0.0  ;;  %v2811_v12 = vmax.f32 %v2795_v44, 0.0 }
 0x3c8   : > { %6179 = vrsqrt.f32 %v2840_v36 }
 0x3c9   : > { %v2780_v4 = vmul.f32 %v7532_v51, %v7532_v51  ;;  %v2781_v37 = vmul.f32 %v7534_v33, %v7534_v33  ;;  %v2842_v59 = vadd.f32 1e-06, %v2810_v47  ;;  %6181 = vrsqrt.f32 %v2841_v55 }
 0x3ca   : > { %v2676_v16 = vpop.xlane.xlu0 %2675  ;;  %v2678_v18 = vpop.xlane.xlu1 %2677 }
 0x3cb   : > { %v7538_v29 = vmul.f32 0.0078125, %v2678_v18  ;;  %v7542_v52 = vmul.f32 0.0078125, %v2676_v16  ;;  %v2843_v18 = vadd.f32 1e-06, %v2811_v12  ;;  %6183 = vrsqrt.f32 %v2842_v59 }
 0x3cd   : > { %v2783_v56 = vmul.f32 %v7538_v29, %v7538_v29  ;;  %v2782_v5 = vmul.f32 %v7542_v52, %v7542_v52  ;;  %6185 = vrsqrt.f32 %v2843_v18 }
 0x3ce   : > { %v2739_v19 = vpop.xlane.xlu1 %2738  ;;  %v2737_v61 = vpop.xlane.xlu0 %2736 }
 0x3cf   : > { %v2764_v48 = vmul.f32 0.0078125, %v2737_v61  ;;  %v2765_v45 = vmul.f32 0.0078125, %v2739_v19 }
 0x3d1   : > { %v2796_v14 = vsub.f32 %v2764_v48, %v2780_v4  ;;  %v2797_v62 = vsub.f32 %v2765_v45, %v2781_v37 }
 0x3d2   : > { %v2743_v54 = vpop.xlane.xlu1 %2742  ;;  %v2741_v17 = vpop.xlane.xlu0 %2740 }
 0x3d3   : > { %v2767_v58 = vmul.f32 0.0078125, %v2743_v54  ;;  %v2812_v57 = vmax.f32 %v2796_v14, 0.0  ;;  %v2766_v0 = vmul.f32 0.0078125, %v2741_v17  ;;  %v2813_v47 = vmax.f32 %v2797_v62, 0.0 }
 0x3d5   : > { %v2799_v19 = vsub.f32 %v2767_v58, %v2783_v56  ;;  %v2844_v36 = vadd.f32 1e-06, %v2812_v57  ;;  %v2798_v12 = vsub.f32 %v2766_v0, %v2782_v5  ;;  %v2845_v5 = vadd.f32 1e-06, %v2813_v47 }
 0x3d6   : > { %v2682_v20 = vpop.xlane.xlu1 %2681  ;;  %v2680_v2 = vpop.xlane.xlu0 %2679 }
 0x3d7   : > { %v7548_v44 = vmul.f32 0.0078125, %v2680_v2  ;;  %v7550_v4 = vmul.f32 0.0078125, %v2682_v20  ;;  %v2815_v37 = vmax.f32 %v2799_v19, 0.0  ;;  %6187 = vrsqrt.f32 %v2844_v36 }
 0x3d8   : > { %6189 = vrsqrt.f32 %v2845_v5  ;;  %v2827_v5 = vsub.f32 %v7395_v63, %v7524_v24 }
 0x3d9   : > { %v2784_v17 = vmul.f32 %v7548_v44, %v7548_v44  ;;  %v2785_v45 = vmul.f32 %v7550_v4, %v7550_v4  ;;  %v2847_v19 = vadd.f32 1e-06, %v2815_v37 }
 0x3da   : > { %v2686_v13 = vpop.xlane.xlu1 %2685  ;;  %v2684_v43 = vpop.xlane.xlu0 %2683 }
 0x3db   : > { %v7552_v48 = vmul.f32 0.0078125, %v2684_v43  ;;  %v7554_v54 = vmul.f32 0.0078125, %v2686_v13  ;;  %6191 = vrsqrt.f32 %v2847_v19  ;;  %v2828_v19 = vsub.f32 %v7413_v60, %v7532_v51 }
 0x3dd   : > { %v2786_v20 = vmul.f32 %v7552_v48, %v7552_v48  ;;  %v2787_v13 = vmul.f32 %v7554_v54, %v7554_v54 }
 0x3de   : > { %v7516_v27 = vpop.xlane.xlu1 %2746  ;;  %v2745_v22 = vpop.xlane.xlu0 %2744 }
 0x3df   : > { %v2768_v2 = vmul.f32 0.0078125, %v2745_v22  ;;  %v2769_v43 = vmul.f32 0.0078125, %v7516_v27  ;;  %v2814_v22 = vmax.f32 %v2798_v12, 0.0 }
 0x3e1   : > { %v2800_v18 = vsub.f32 %v2768_v2, %v2784_v17  ;;  %v2801_v57 = vsub.f32 %v2769_v43, %v2785_v45  ;;  %v6180_v17 = vpop.eup %6179  ;;  %v2824_v45 = vsub.f32 %v7384_v6, %v7514_v26 }
 0x3e2   : > { %v2751_v53 = vpop.xlane.xlu1 %2750  ;;  %v2749_v49 = vpop.xlane.xlu0 %2748 }
 0x3e3   : > { %v2771_v14 = vmul.f32 0.0078125, %v2751_v53  ;;  %v2770_v55 = vmul.f32 0.0078125, %v2749_v49  ;;  %v2816_v47 = vmax.f32 %v2800_v18, 0.0  ;;  %v6182_v43 = vpop.eup %6181  ;;  %v2872_v24 = vmul.f32 %v6180_v17, %v2824_v45  ;;  %v7602_v17 = vld [vmem:[%s7068_s9] ss:$0 sm:$0xff] }
 0x3e5   : > { %v2803_v27 = vsub.f32 %v2771_v14, %v2787_v13  ;;  %v2802_v46 = vsub.f32 %v2770_v55, %v2786_v20  ;;  %v2826_v20 = vsub.f32 %v7388_v9, %v7520_v3 }
 0x3e6   : > { %v2690_v31 = vpop.xlane.xlu1 %2689  ;;  %v2688_v32 = vpop.xlane.xlu0 %2687 }
 0x3e7   : > { %v7565_v56 = vmul.f32 0.0078125, %v2688_v32  ;;  %v7567_v59 = vmul.f32 0.0078125, %v2690_v31  ;;  %v2819_v13 = vmax.f32 %v2803_v27, 0.0  ;;  %v2818_v14 = vmax.f32 %v2802_v46, 0.0 }
 0x3e9   : > { %v2788_v53 = vmul.f32 %v7565_v56, %v7565_v56  ;;  %v2789_v49 = vmul.f32 %v7567_v59, %v7567_v59 }
 0x3ea   : > { %v2694_v61 = vpop.xlane.xlu1 %2693  ;;  %v2692_v16 = vpop.xlane.xlu0 %2691 }
 0x3eb   : > { %v7569_v62 = vmul.f32 0.0078125, %v2694_v61  ;;  %v7575_v32 = vmul.f32 0.0078125, %v2692_v16  ;;  %v2846_v61 = vadd.f32 1e-06, %v2814_v22  ;;  %v2817_v16 = vmax.f32 %v2801_v57, 0.0  ;;  %v6184_v22 = vpop.eup %6183 }
 0x3ec   : > { %v6186_v3 = vpop.eup %6185  ;;  %v2874_v38 = vmul.f32 %v6184_v22, %v2826_v20 }
 0x3ed   : > { %v2791_v36 = vmul.f32 %v7569_v62, %v7569_v62  ;;  %v2790_v18 = vmul.f32 %v7575_v32, %v7575_v32  ;;  %6193 = vrsqrt.f32 %v2846_v61  ;;  %v2849_v27 = vadd.f32 1e-06, %v2817_v16 }
 0x3ee   : > { %v2755_v7 = vpop.xlane.xlu1 %2754  ;;  %v2753_v58 = vpop.xlane.xlu0 %2752  ;;  %v2875_v45 = vmul.f32 %v6186_v3, %v2827_v5 }
 0x3ef   : > { %v2773_v31 = vmul.f32 0.0078125, %v2755_v7  ;;  %v2772_v12 = vmul.f32 0.0078125, %v2753_v58  ;;  %v2825_v7 = vsub.f32 %v7390_v11, %v7518_v1  ;;  %v7586_v58 = vld [vmem:[%s7068_s9 + $0x1] ss:$0 sm:$0xff]  ;;  %v2848_v11 = vadd.f32 1e-06, %v2816_v47 }
 0x3f0   : > { %v2850_v47 = vadd.f32 1e-06, %v2818_v14 }
 0x3f1   : > { %v2805_v6 = vsub.f32 %v2773_v31, %v2789_v49  ;;  %v2804_v26 = vsub.f32 %v2772_v12, %v2788_v53  ;;  %v2851_v12 = vadd.f32 1e-06, %v2819_v13  ;;  %6195 = vrsqrt.f32 %v2848_v11 }
 0x3f2   : > { %v2759_v0 = vpop.xlane.xlu1 %2758  ;;  %v2757_v37 = vpop.xlane.xlu0 %2756  ;;  %6197 = vrsqrt.f32 %v2849_v27  ;;  %v2873_v35 = vmul.f32 %v6182_v43, %v2825_v7 }
 0x3f3   : > { %v2775_v2 = vmul.f32 0.0078125, %v2759_v0  ;;  %v2774_v0 = vmul.f32 0.0078125, %v2757_v37  ;;  %6199 = vrsqrt.f32 %v2851_v12 }
 0x3f4   : > { %6201 = vrsqrt.f32 %v2850_v47 }
 0x3f5   : > { %v2807_v1 = vsub.f32 %v2775_v2, %v2791_v36  ;;  %v2821_v36 = vmax.f32 %v2805_v6, 0.0  ;;  %v2820_v2 = vmax.f32 %v2804_v26, 0.0  ;;  %v2806_v37 = vsub.f32 %v2774_v0, %v2790_v18 }
 0x3f7   : > { %v2823_v60 = vmax.f32 %v2807_v1, 0.0  ;;  %v2853_v26 = vadd.f32 1e-06, %v2821_v36  ;;  %v2852_v0 = vadd.f32 1e-06, %v2820_v2  ;;  %v2822_v11 = vmax.f32 %v2806_v37, 0.0 }
 0x3f9   : > { %6203 = vrsqrt.f32 %v2852_v0 }
 0x40a   : > { %v5513_v55 = vpop.f32.mrf.mxu0  ;;  %v5545_v9 = vpop.f32.mrf.mxu1 }
 0x40b   : > { %v2609_v49 = vadd.f32 %v5545_v9, %v7586_v58  ;;  %v2441_v43 = vadd.f32 %v5513_v55, %v7602_v17  ;;  %v2854_v55 = vadd.f32 1e-06, %v2822_v11 }
 0x40c   : > { %v2432_v57 = vpop.f32.mrf.mxu0  ;;  %v2600_v53 = vpop.f32.mrf.mxu1 }
 0x40d   : > { %v2601_v63 = vadd.f32 %v7586_v58, %v2600_v53  ;;  %v2890_v31 = vadd.f32 1.0, %v2609_v49  ;;  %v6188_v53 = vpop.eup %6187  ;;  %v2433_v12 = vadd.f32 %v7602_v17, %v2432_v57 }
 0x40e   : > { %v5514_v61 = vpop.f32.mrf.mxu0  ;;  %v5546_v46 = vpop.f32.mrf.mxu1 }
 0x40f   : > { %v2888_v51 = vadd.f32 1.0, %v2601_v63  ;;  %v2612_v16 = vadd.f32 %v5546_v46, %v7586_v58  ;;  %v2855_v46 = vadd.f32 1e-06, %v2823_v60  ;;  %v2906_v7 = vmul.f32 %v2890_v31, %v2874_v38  ;;  %v6190_v63 = vpop.eup %6189 }
 0x410   : > { %v2435_v9 = vpop.f32.mrf.mxu0  ;;  %v2603_v13 = vpop.f32.mrf.mxu1  ;;  %v2444_v3 = vadd.f32 %v5514_v61, %v7602_v17  ;;  %v2835_v38 = vsub.f32 %v7457_v42, %v7554_v54 }
 0x411   : > { %v2891_v14 = vadd.f32 1.0, %v2612_v16  ;;  %v2604_v18 = vadd.f32 %v7586_v58, %v2603_v13  ;;  %v2904_v27 = vmul.f32 %v2888_v51, %v2872_v24  ;;  %v2436_v47 = vadd.f32 %v7602_v17, %v2435_v9  ;;  %v6192_v60 = vpop.eup %6191 }
 0x412   : > { %v5517_v6 = vpop.f32.mrf.mxu0  ;;  %v5549_v1 = vpop.f32.mrf.mxu1  ;;  %v2831_v51 = vsub.f32 %v7426_v25, %v7538_v29  ;;  %v2876_v9 = vmul.f32 %v6188_v53, %v2828_v19  ;;  %6205 = vrsqrt.f32 %v2855_v46  ;;  %v8385_v53 = vsub.f32 %v7422_v23, %v7542_v52 }
 0x413   : > { %v2907_v20 = vmul.f32 %v2891_v14, %v2875_v45  ;;  %v2889_v22 = vadd.f32 1.0, %v2604_v18  ;;  %v2625_v2 = vadd.f32 %v5549_v1, %v7586_v58  ;;  %v2920_v61 = vadd.f32 %v2904_v27, %v2433_v12  ;;  %v6194_v13 = vpop.eup %6193 }
 0x414   : > { %v2448_v49 = vpop.f32.mrf.mxu0  ;;  %v2616_v5 = vpop.f32.mrf.mxu1  ;;  %v2922_v45 = vadd.f32 %v2906_v7, %v2441_v43  ;;  %6207 = vrsqrt.f32 %v2853_v26  ;;  %v2879_v0 = vmul.f32 %v6192_v60, %v2831_v51  ;;  %v2457_v19 = vadd.f32 %v5517_v6, %v7602_v17 }
 0x415   : > { %v2905_v36 = vmul.f32 %v2889_v22, %v2873_v35  ;;  %v2617_v37 = vadd.f32 %v7586_v58, %v2616_v5  ;;  %v2923_v57 = vadd.f32 %v2907_v20, %v2444_v3  ;;  %v2894_v25 = vadd.f32 1.0, %v2625_v2  ;;  %v6196_v12 = vpop.eup %6195 }
 0x416   : > { %v5518_v24 = vpop.f32.mrf.mxu0  ;;  %v5550_v31 = vpop.f32.mrf.mxu1  ;;  %6209 = vrsqrt.f32 %v2854_v55  ;;  %v2878_v46 = vmul.f32 %v6194_v13, %v8385_v53  ;;  %v8386_v22 = vsub.f32 %v7416_v41, %v7534_v33  ;;  %v2832_v60 = vsub.f32 %v7445_v34, %v7548_v44 }
 0x417   : > { %v2921_v16 = vadd.f32 %v2905_v36, %v2436_v47  ;;  %v2892_v14 = vadd.f32 1.0, %v2617_v37  ;;  %v2628_v18 = vadd.f32 %v5550_v31, %v7586_v58  ;;  %v2954_v11 = vpack.c.bf16 %v2923_v57, %v2922_v45  ;;  %v6198_v6 = vpop.eup %6197 }
 0x418   : > { %v2451_v35 = vpop.f32.mrf.mxu0  ;;  %v2619_v1 = vpop.f32.mrf.mxu1  ;;  %v2877_v26 = vmul.f32 %v6190_v63, %v8386_v22  ;;  %v2460_v5 = vadd.f32 %v5518_v24, %v7602_v17  ;;  %v2910_v37 = vmul.f32 %v2894_v25, %v2878_v46  ;;  %v2834_v24 = vsub.f32 %v7454_v39, %v7552_v48 }
 0x419   : > { %v2620_v29 = vadd.f32 %v7586_v58, %v2619_v1  ;;  %v2953_v54 = vpack.c.bf16 %v2921_v16, %v2920_v61  ;;  %v2895_v27 = vadd.f32 1.0, %v2628_v18  ;;  %v2908_v3 = vmul.f32 %v2892_v14, %v2876_v9  ;;  %v6200_v63 = vpop.eup %6199 }
 0x41a   : > { %v5521_v42 = vpop.f32.mrf.mxu0  ;;  %v5553_v20 = vpop.f32.mrf.mxu1  ;;  %v2452_v23 = vadd.f32 %v7602_v17, %v2451_v35  ;;  %v2449_v51 = vadd.f32 %v7602_v17, %v2448_v49  ;;  %v2833_v31 = vsub.f32 %v7450_v40, %v7550_v4  ;;  %v2836_v13 = vsub.f32 %v7482_v50, %v7565_v56 }
 0x41b   : > { %v2893_v43 = vadd.f32 1.0, %v2620_v29  ;;  %5575 = vmatprep.mubr.bf16.mxu0 %v2953_v54  ;;  %v2911_v47 = vmul.f32 %v2895_v27, %v2879_v0  ;;  %v2641_v36 = vadd.f32 %v5553_v20, %v7586_v58  ;;  %v6202_v57 = vpop.eup %6201  ;;  %v2926_v39 = vadd.f32 %v2910_v37, %v2457_v19 }
 0x41c   : > { %v2464_v7 = vpop.f32.mrf.mxu0  ;;  %v2632_v2 = vpop.f32.mrf.mxu1  ;;  %5576 = vmatmul.mubr.bf16.vlgmr.msra.gmra.mxu0 %v2954_v11  ;;  %v2924_v45 = vadd.f32 %v2908_v3, %v2449_v51  ;;  %v2883_v48 = vmul.f32 %v6200_v63, %v2835_v38  ;;  %v2839_v40 = vsub.f32 %v7493_v15, %v7569_v62  ;;  %v2882_v4 = vmul.f32 %v6202_v57, %v2834_v24 }
 0x41d   : > { %v2909_v52 = vmul.f32 %v2893_v43, %v2877_v26  ;;  %v2633_v41 = vadd.f32 %v7586_v58, %v2632_v2  ;;  %v2927_v61 = vadd.f32 %v2911_v47, %v2460_v5  ;;  %v2898_v34 = vadd.f32 1.0, %v2641_v36  ;;  %v6204_v20 = vpop.eup %6203 }
 0x41e   : > { %v5522_v33 = vpop.f32.mrf.mxu0  ;;  %v5554_v55 = vpop.f32.mrf.mxu1  ;;  %v2880_v25 = vmul.f32 %v6196_v12, %v2832_v60  ;;  %v2881_v0 = vmul.f32 %v6198_v6, %v2833_v31  ;;  %v2473_v19 = vadd.f32 %v5521_v42, %v7602_v17  ;;  %v2837_v5 = vsub.f32 %v7486_v8, %v7567_v59 }
 0x41f   : > { %v2925_v16 = vadd.f32 %v2909_v52, %v2452_v23  ;;  %v2644_v9 = vadd.f32 %v5554_v55, %v7586_v58  ;;  %v2896_v44 = vadd.f32 1.0, %v2633_v41  ;;  %v2956_v27 = vpack.c.bf16 %v2927_v61, %v2926_v39  ;;  %v6206_v26 = vpop.eup %6205 }
 0x420   : > { %v2467_v35 = vpop.f32.mrf.mxu0  ;;  %v2635_v14 = vpop.f32.mrf.mxu1  ;;  %v2914_v38 = vmul.f32 %v2898_v34, %v2882_v4  ;;  %v2476_v46 = vadd.f32 %v5522_v33, %v7602_v17  ;;  %v2838_v42 = vsub.f32 %v7490_v30, %v7575_v32  ;;  %v2465_v47 = vadd.f32 %v7602_v17, %v2464_v7  ;;  %v7660_v4 = vld [vmem:[%s7063_s27 + $0xb0] ss:$12 sps:$4 sm:$0xff]  }
 0x421   : > { %v2899_v49 = vadd.f32 1.0, %v2644_v9  ;;  %v2636_v18 = vadd.f32 %v7586_v58, %v2635_v14  ;;  %v2955_v54 = vpack.c.bf16 %v2925_v16, %v2924_v45  ;;  %v2912_v53 = vmul.f32 %v2896_v44, %v2880_v25  ;;  %v6208_v3 = vpop.eup %6207  ;;  %5623 = vmatprep.subr.bf16.mxu0 %v7660_v4  ;;  %v7666_v25 = vld [vmem:[%s7063_s27 + $0x98] ss:$12 sps:$4 sm:$0xff]  }
 0x422   : > { %v5525_v1 = vpop.f32.mrf.mxu0  ;;  %v5557_v29 = vpop.f32.mrf.mxu1  ;;  %v2468_v15 = vadd.f32 %v7602_v17, %v2467_v35  ;;  %v2884_v63 = vmul.f32 %v6204_v20, %v2836_v13  ;;  %v2887_v60 = vmul.f32 %v6206_v26, %v2839_v40  ;;  %v2930_v51 = vadd.f32 %v2914_v38, %v2473_v19  ;;  %v6163_v40 = vld [vmem:[%s7070_s5 + $0x38] sm:$0xff]   ;;  %5624 = vmatpush3.bf16.msra.mxu0 %v7660_v4  ;;  %v6175_v19 = vld [vmem:[%s7070_s5 + $0x8] sm:$0xff]  }
 0x423   : > { %v2915_v11 = vmul.f32 %v2899_v49, %v2883_v48  ;;  %v2897_v50 = vadd.f32 1.0, %v2636_v18  ;;  %5579 = vmatprep.mubr.bf16.mxu0 %v2955_v54  ;;  %v2657_v43 = vadd.f32 %v5557_v29, %v7586_v58  ;;  %v6210_v6 = vpop.eup %6209  ;;  %v2928_v33 = vadd.f32 %v2912_v53, %v2465_v47  ;;  %5591 = vmatprep.subr.bf16.mxu1 %v6163_v40  ;;  %v6167_v29 = vld [vmem:[%s7070_s5 + $0x28] sm:$0xff]   ;;  %v7672_v54 = vld [vmem:[%s7063_s27 + $0x80] ss:$12 sps:$4 sm:$0xff]   ;;  %v7690_v20 = vld [vmem:[%s7063_s27 + $0x38] ss:$12 sps:$4 sm:$0xff]  }
 0x424   : > { %v2480_v56 = vpop.f32.mrf.mxu0  ;;  %v2648_v22 = vpop.f32.mrf.mxu1  ;;  %5580 = vmatmul.mubr.bf16.gmra.mxu0 %v2956_v27  ;;  %v2886_v30 = vmul.f32 %v6210_v6, %v2838_v42  ;;  %v2885_v7 = vmul.f32 %v6208_v3, %v2837_v5  ;;  %v2489_v35 = vadd.f32 %v5525_v1, %v7602_v17  ;;  %5592 = vmatpush3.bf16.msra.mxu1 %v6163_v40  ;;  %v6173_v27 = vld [vmem:[%s7070_s5 + $0x10] sm:$0xff]   ;;  %v7696_v38 = vld [vmem:[%s7063_s27 + $0x20] ss:$12 sps:$4 sm:$0xff]  }
 0x425   : > { %v2913_v62 = vmul.f32 %v2897_v50, %v2881_v0  ;;  %v2649_v12 = vadd.f32 %v7586_v58, %v2648_v22  ;;  %v2931_v37 = vadd.f32 %v2915_v11, %v2476_v46  ;;  %v2902_v55 = vadd.f32 1.0, %v2657_v43  ;;  %5625 = vmatprep.subr.bf16.mxu0 %v7666_v25  ;;  %v6169_v11 = vld [vmem:[%s7070_s5 + $0x20] sm:$0xff]   ;;  %v6171_v50 = vld [vmem:[%s7070_s5 + $0x18] sm:$0xff]  }
 0x426   : > { %v5526_v36 = vpop.f32.mrf.mxu0  ;;  %v5558_v2 = vpop.f32.mrf.mxu1  ;;  %v2481_v45 = vadd.f32 %v7602_v17, %v2480_v56  ;;  %5626 = vmatpush3.bf16.msra.mxu0 %v7666_v25  ;;  %v7678_v0 = vld [vmem:[%s7063_s27 + $0x68] ss:$12 sps:$4 sm:$0xff]   ;;  %v7684_v56 = vld [vmem:[%s7063_s27 + $0x50] ss:$12 sps:$4 sm:$0xff]   ;;  %v7715_v26 = vld [vmem:[%s991_s6] ss:$0 sm:$0xff] }
 0x427   : > { %v2929_v23 = vadd.f32 %v2913_v62, %v2468_v15  ;;  %v2900_v52 = vadd.f32 1.0, %v2649_v12  ;;  %v2660_v41 = vadd.f32 %v5558_v2, %v7586_v58  ;;  %v2958_v9 = vpack.c.bf16 %v2931_v37, %v2930_v51  ;;  %5627 = vmatprep.subr.bf16.mxu0 %v7672_v54  ;;  %v6177_v53 = vld [vmem:[%s7070_s5] sm:$0xff]  }
 0x428   : > { %v2651_v24 = vpop.f32.mrf.mxu1  ;;  %v2483_v32 = vpop.f32.mrf.mxu0  ;;  %v2918_v13 = vmul.f32 %v2902_v55, %v2886_v30  ;;  %v2492_v34 = vadd.f32 %v5526_v36, %v7602_v17  ;;  %v7702_v46 = vld [vmem:[%s7063_s27 + $0x8] ss:$12 sps:$4 sm:$0xff]  }
 0x429   : > { %v2903_v8 = vadd.f32 1.0, %v2660_v41  ;;  %v2652_v59 = vadd.f32 %v7586_v58, %v2651_v24  ;;  %v2957_v57 = vpack.c.bf16 %v2929_v23, %v2928_v33  ;;  %v2916_v31 = vmul.f32 %v2900_v52, %v2884_v63  ;;  %v8387_v22 = vld [vmem:[#allocation28_spill] sm:$0xff] }
 0x42a   : > { %v2484_v58 = vadd.f32 %v7602_v17, %v2483_v32  ;;  %v2934_v49 = vadd.f32 %v2918_v13, %v2489_v35  ;;  %v6165_v17 = vld [vmem:[%s7070_s5 + $0x30] sm:$0xff]   ;;  %5628 = vmatpush3.bf16.msra.mxu0 %v7672_v54  ;;  %s8395_s5 = sld [smem:[#allocation45_spill]] (!%p5098_p6) }
 0x42b   : > { %v2919_v61 = vmul.f32 %v2903_v8, %v2887_v60  ;;  %v2901_v16 = vadd.f32 1.0, %v2652_v59  ;;  %5583 = vmatprep.mubr.bf16.mxu0 %v2957_v57  ;;  %v2932_v14 = vadd.f32 %v2916_v31, %v2481_v45  ;;  %5593 = vmatprep.subr.bf16.mxu1 %v6165_v17 }
 0x42c   : > { %5584 = vmatmul.mubr.bf16.gmra.mxu0 %v2958_v9  ;;  %5594 = vmatpush3.bf16.msra.mxu1 %v6165_v17 }
 0x42d   : > { %v2917_v44 = vmul.f32 %v2901_v16, %v2885_v7  ;;  %v2935_v39 = vadd.f32 %v2919_v61, %v2492_v34  ;;  %5595 = vmatprep.subr.bf16.mxu1 %v6167_v29  ;;  %5629 = vmatprep.subr.bf16.mxu0 %v7678_v0 }
 0x42e   : > { %5630 = vmatpush3.bf16.msra.mxu0 %v7678_v0 }
 0x42f   : > { %v2933_v48 = vadd.f32 %v2917_v44, %v2484_v58  ;;  %v2960_v1 = vpack.c.bf16 %v2935_v39, %v2934_v49  ;;  %5631 = vmatprep.subr.bf16.mxu0 %v7684_v56 }
 0x430   : > { %5596 = vmatpush3.bf16.msra.mxu1 %v6167_v29 }
 0x431   : > { %v2959_v18 = vpack.c.bf16 %v2933_v48, %v2932_v14  ;;  %5597 = vmatprep.subr.bf16.mxu1 %v6169_v11 }
 0x432   : > { %5632 = vmatpush3.bf16.msra.mxu0 %v7684_v56 }
 0x433   : > { %5587 = vmatprep.mubr.bf16.mxu0 %v2959_v18  ;;  %5633 = vmatprep.subr.bf16.mxu0 %v7690_v20 }
 0x434   : > { %5588 = vmatmul.mubr.bf16.gmra.mxu0 %v2960_v1  ;;  %5598 = vmatpush3.bf16.msra.mxu1 %v6169_v11 }
 0x435   : > { %5639 = vmatprep.mubr.bf16.mxu0 %v7410_v10  ;;  %5599 = vmatprep.subr.bf16.mxu1 %v6171_v50 }
 0x436   : > { %5634 = vmatpush3.bf16.msra.mxu0 %v7690_v20 }
 0x437   : > { %5635 = vmatprep.subr.bf16.mxu0 %v7696_v38 }
 0x438   : > { %5600 = vmatpush3.bf16.msra.mxu1 %v6171_v50 }
 0x439   : > { %5601 = vmatprep.subr.bf16.mxu1 %v6173_v27 }
 0x43a   : > { %5636 = vmatpush3.bf16.msra.mxu0 %v7696_v38 }
 0x43b   : > { %5637 = vmatprep.subr.bf16.mxu0 %v7702_v46 }
 0x43c   : > { %5602 = vmatpush3.bf16.msra.mxu1 %v6173_v27 }
 0x43d   : > { %5603 = vmatprep.subr.bf16.mxu1 %v6175_v19 }
 0x43e   : > { %5638 = vmatpush3.bf16.msra.mxu0 %v7702_v46 }
 0x440   : > { %5604 = vmatpush3.bf16.msra.mxu1 %v6175_v19 }
 0x441   : > { %5605 = vmatprep.subr.bf16.mxu1 %v6177_v53  ;;  %5640 = vmatmul.mubr.bf16.vlgmr.msra.gmra.mxu0 %v7431_v21 }
 0x442   : > { %5643 = vmatprep.mubr.bf16.mxu0 %v7436_v28 }
 0x444   : > { %5606 = vmatpush3.bf16.msra.mxu1 %v6177_v53 }
 0x445   : > { %5755 = vmatprep.subr.bf16.mxu1 %v7660_v4 }
 0x449   : > { %5644 = vmatmul.mubr.bf16.gmra.mxu0 %v8387_v22 }
 0x4dc   : > { %v5577_v15 = vpop.f32.mrf.mxu0 }
 0x4dd   : > { %v7718_v62 = vadd.f32 %v5577_v15, %v7715_v26 }
 0x4de   : > { %v3049_v43 = vpop.f32.mrf.mxu0 }
 0x4df   : > { %v5066_v12 = vmul.f32 -1.442695, %v7718_v62  ;;  %v7722_v3 = vadd.f32 %v7715_v26, %v3049_v43 }
 0x4e0   : > { %v5578_v5 = vpop.f32.mrf.mxu0 }
 0x4e1   : > { %6211 = vpow2.f32 %v5066_v12  ;;  %v5064_v42 = vmul.f32 -1.442695, %v7722_v3  ;;  %v7726_v47 = vadd.f32 %v5578_v5, %v7715_v26 }
 0x4e2   : > { %v3052_v36 = vpop.f32.mrf.mxu0 }
 0x4e3   : > { %6213 = vpow2.f32 %v5064_v42  ;;  %v5067_v2 = vmul.f32 -1.442695, %v7726_v47  ;;  %v7730_v6 = vadd.f32 %v7715_v26, %v3052_v36 }
 0x4e4   : > { %v5581_v23 = vpop.f32.mrf.mxu0 }
 0x4e5   : > { %6215 = vpow2.f32 %v5067_v2  ;;  %v5065_v37 = vmul.f32 -1.442695, %v7730_v6  ;;  %v7734_v52 = vadd.f32 %v5581_v23, %v7715_v26 }
 0x4e6   : > { %v3065_v41 = vpop.f32.mrf.mxu0 }
 0x4e7   : > { %6217 = vpow2.f32 %v5065_v37  ;;  %v5070_v33 = vmul.f32 -1.442695, %v7734_v52  ;;  %v7738_v63 = vadd.f32 %v7715_v26, %v3065_v41 }
 0x4e8   : > { %v5582_v60 = vpop.f32.mrf.mxu0 }
 0x4e9   : > { %6219 = vpow2.f32 %v5070_v33  ;;  %v5068_v24 = vmul.f32 -1.442695, %v7738_v63  ;;  %v7742_v51 = vadd.f32 %v5582_v60, %v7715_v26 }
 0x4ea   : > { %v3068_v55 = vpop.f32.mrf.mxu0 }
 0x4eb   : > { %6221 = vpow2.f32 %v5068_v24  ;;  %v5071_v8 = vmul.f32 -1.442695, %v7742_v51  ;;  %v7746_v59 = vadd.f32 %v7715_v26, %v3068_v55 }
 0x4ec   : > { %v5585_v30 = vpop.f32.mrf.mxu0 }
 0x4ed   : > { %6223 = vpow2.f32 %v5071_v8  ;;  %v5069_v7 = vmul.f32 -1.442695, %v7746_v59  ;;  %v7750_v57 = vadd.f32 %v5585_v30, %v7715_v26 }
 0x4ee   : > { %v6212_v32 = vpop.eup %6211  ;;  %v3081_v61 = vpop.f32.mrf.mxu0 }
 0x4ef   : > { %v3162_v31 = vadd.f32 1.0, %v6212_v32  ;;  %6225 = vpow2.f32 %v5069_v7  ;;  %v5074_v9 = vmul.f32 -1.442695, %v7750_v57  ;;  %v7754_v35 = vadd.f32 %v7715_v26, %v3081_v61 }
 0x4f0   : > { %v6214_v16 = vpop.eup %6213  ;;  %v5586_v13 = vpop.f32.mrf.mxu0 }
 0x4f1   : > { %6227 = vrcp.f32 %v3162_v31  ;;  %v3160_v45 = vadd.f32 1.0, %v6214_v16  ;;  %v5072_v58 = vmul.f32 -1.442695, %v7754_v35  ;;  %v7758_v44 = vadd.f32 %v5586_v13, %v7715_v26 }
 0x4f2   : > { %v6216_v34 = vpop.eup %6215  ;;  %6229 = vpow2.f32 %v5074_v9  ;;  %v3084_v39 = vpop.f32.mrf.mxu0 }
 0x4f3   : > { %6231 = vrcp.f32 %v3160_v45  ;;  %v3163_v14 = vadd.f32 1.0, %v6216_v34  ;;  %v5075_v49 = vmul.f32 -1.442695, %v7758_v44  ;;  %v7762_v18 = vadd.f32 %v7715_v26, %v3084_v39 }
 0x4f4   : > { %v6218_v48 = vpop.eup %6217  ;;  %6233 = vpow2.f32 %v5072_v58  ;;  %v5589_v40 = vpop.f32.mrf.mxu0 }
 0x4f5   : > { %6235 = vrcp.f32 %v3163_v14  ;;  %v3161_v1 = vadd.f32 1.0, %v6218_v48  ;;  %v5073_v17 = vmul.f32 -1.442695, %v7762_v18  ;;  %v7766_v29 = vadd.f32 %v5589_v40, %v7715_v26 }
 0x4f6   : > { %6237 = vpow2.f32 %v5075_v49  ;;  %v6220_v11 = vpop.eup %6219  ;;  %v3097_v50 = vpop.f32.mrf.mxu0 }
 0x4f7   : > { %6239 = vrcp.f32 %v3161_v1  ;;  %v3166_v27 = vadd.f32 1.0, %v6220_v11  ;;  %v5078_v19 = vmul.f32 -1.442695, %v7766_v29  ;;  %v7770_v53 = vadd.f32 %v7715_v26, %v3097_v50 }
 0x4f8   : > { %6241 = vpow2.f32 %v5073_v17  ;;  %v6222_v22 = vpop.eup %6221  ;;  %v5590_v15 = vpop.f32.mrf.mxu0 }
 0x4f9   : > { %6243 = vrcp.f32 %v3166_v27  ;;  %v3164_v43 = vadd.f32 1.0, %v6222_v22  ;;  %v5076_v12 = vmul.f32 -1.442695, %v7770_v53  ;;  %v7774_v5 = vadd.f32 %v5590_v15, %v7715_v26 }
 0x4fa   : > { %v6224_v42 = vpop.eup %6223  ;;  %6245 = vpow2.f32 %v5078_v19  ;;  %v3100_v36 = vpop.f32.mrf.mxu0 }
 0x4fb   : > { %6247 = vrcp.f32 %v3164_v43  ;;  %v3167_v2 = vadd.f32 1.0, %v6224_v42  ;;  %v5079_v37 = vmul.f32 -1.442695, %v7774_v5  ;;  %v7778_v23 = vadd.f32 %v7715_v26, %v3100_v36 }
 0x4fc   : > { %v6226_v41 = vpop.eup %6225  ;;  %6249 = vpow2.f32 %v5076_v12 }
 0x4fd   : > { %6251 = vrcp.f32 %v3167_v2  ;;  %v3165_v60 = vadd.f32 1.0, %v6226_v41  ;;  %v5077_v24 = vmul.f32 -1.442695, %v7778_v23 }
 0x4fe   : > { %v6228_v33 = vpop.eup %6227  ;;  %6253 = vpow2.f32 %v5079_v37 }
 0x4ff   : > { %v6230_v55 = vpop.eup %6229  ;;  %6255 = vrcp.f32 %v3165_v60  ;;  %v3210_v58 = vmul.f32 %v6228_v33, %v7718_v62 }
 0x500   : > { %v6232_v8 = vpop.eup %6231  ;;  %6257 = vpow2.f32 %v5077_v24  ;;  %v3170_v61 = vadd.f32 1.0, %v6230_v55 }
 0x501   : > { %v6234_v30 = vpop.eup %6233  ;;  %v3208_v13 = vmul.f32 %v6232_v8, %v7722_v3 }
 0x502   : > { %v6236_v32 = vpop.eup %6235  ;;  %v3168_v7 = vadd.f32 1.0, %v6234_v30 }
 0x503   : > { %v6238_v31 = vpop.eup %6237  ;;  %v3211_v26 = vmul.f32 %v6236_v32, %v7726_v47 }
 0x504   : > { %v6240_v16 = vpop.eup %6239  ;;  %v3171_v9 = vadd.f32 1.0, %v6238_v31  ;;  %6259 = vrcp.f32 %v3168_v7  ;;  %v7813_v7 = vld [vmem:[%s7068_s9 + $0x2] ss:$0 sm:$0xff] }
 0x505   : > { %v6242_v45 = vpop.eup %6241  ;;  %v3209_v34 = vmul.f32 %v6240_v16, %v7730_v6  ;;  %v3242_v1 = vpack.c.bf16 %v3211_v26, %v3210_v58 }
 0x506   : > { %6261 = vrcp.f32 %v3171_v9  ;;  %v3169_v14 = vadd.f32 1.0, %v6242_v45  ;;  %v6244_v39 = vpop.eup %6243 }
 0x507   : > { %6263 = vrcp.f32 %v3170_v61  ;;  %v3241_v48 = vpack.c.bf16 %v3209_v34, %v3208_v13  ;;  %v6246_v49 = vpop.eup %6245  ;;  %v3214_v43 = vmul.f32 %v6244_v39, %v7734_v52  ;;  %v6279_v39 = vld [vmem:[#allocation2 + $0x58] sm:$0xff] }
 0x508   : > { %6265 = vrcp.f32 %v3169_v14  ;;  %v6248_v40 = vpop.eup %6247  ;;  %v3174_v6 = vadd.f32 1.0, %v6246_v49 }
 0x509   : > { %5607 = vmatprep.mubr.bf16.mxu1 %v3241_v48  ;;  %v6250_v47 = vpop.eup %6249  ;;  %v3212_v22 = vmul.f32 %v6248_v40, %v7738_v63 }
 0x50a   : > { %5608 = vmatmul.mubr.bf16.vlgmr.msra.gmra.mxu1 %v3242_v1  ;;  %v6252_v17 = vpop.eup %6251  ;;  %v3172_v11 = vadd.f32 1.0, %v6250_v47 }
 0x50b   : > { %5763 = vmatpush3.bf16.msra.mxu1 %v7660_v4  ;;  %v6254_v3 = vpop.eup %6253  ;;  %v3215_v50 = vmul.f32 %v6252_v17, %v7742_v51  ;;  %v6280_v17 = vld [vmem:[#allocation2 + $0x30] sm:$0xff] }
 0x50c   : > { %5756 = vmatprep.subr.bf16.mxu1 %v7666_v25  ;;  %v6256_v62 = vpop.eup %6255  ;;  %v3175_v27 = vadd.f32 1.0, %v6254_v3  ;;  %6267 = vrcp.f32 %v3172_v11 }
 0x50d   : > { %v6258_v19 = vpop.eup %6257  ;;  %v3213_v15 = vmul.f32 %v6256_v62, %v7746_v59  ;;  %v3244_v42 = vpack.c.bf16 %v3215_v50, %v3214_v43 }
 0x50e   : > { %6269 = vrcp.f32 %v3175_v27  ;;  %v3173_v12 = vadd.f32 1.0, %v6258_v19  ;;  %v6281_v27 = vld [vmem:[#allocation2 + $0x18] sm:$0xff] }
 0x50f   : > { %5764 = vmatpush3.bf16.msra.mxu1 %v7666_v25  ;;  %6271 = vrcp.f32 %v3174_v6  ;;  %v3243_v4 = vpack.c.bf16 %v3213_v15, %v3212_v22 }
 0x510   : > { %5757 = vmatprep.subr.bf16.mxu1 %v7672_v54  ;;  %6273 = vrcp.f32 %v3173_v12 }
 0x511   : > { %v6260_v51 = vpop.eup %6259  ;;  %5611 = vmatprep.mubr.bf16.mxu1 %v3243_v4  ;;  %v6282_v4 = vld [vmem:[#allocation2] sm:$0xff] }
 0x512   : > { %5612 = vmatmul.mubr.bf16.gmra.mxu1 %v3244_v42  ;;  %v3216_v25 = vmul.f32 %v6260_v51, %v7754_v35 }
 0x513   : > { %v6262_v36 = vpop.eup %6261  ;;  %5765 = vmatpush3.bf16.msra.mxu1 %v7672_v54 }
 0x514   : > { %v6264_v63 = vpop.eup %6263  ;;  %v3219_v52 = vmul.f32 %v6262_v36, %v7758_v44  ;;  %5758 = vmatprep.subr.bf16.mxu1 %v7678_v0 }
 0x515   : > { %v6266_v59 = vpop.eup %6265  ;;  %v3218_v37 = vmul.f32 %v6264_v63, %v7750_v57 }
 0x516   : > { %v3217_v2 = vmul.f32 %v6266_v59, %v7762_v18 }
 0x517   : > { %5766 = vmatpush3.bf16.msra.mxu1 %v7678_v0  ;;  %v3246_v33 = vpack.c.bf16 %v3219_v52, %v3218_v37 }
 0x518   : > { %v3245_v41 = vpack.c.bf16 %v3217_v2, %v3216_v25  ;;  %5759 = vmatprep.subr.bf16.mxu1 %v7684_v56  ;;  %v6283_v2 = vld [vmem:[#allocation2 + $0x8] sm:$0xff] }
 0x519   : > { %v6268_v60 = vpop.eup %6267 }
 0x51a   : > { %5615 = vmatprep.mubr.bf16.mxu1 %v3245_v41  ;;  %v3220_v57 = vmul.f32 %v6268_v60, %v7770_v53  ;;  %v6276_v53 = vld [vmem:[#allocation3 + $0x28] sm:$0xff]  }
 0x51b   : > { %5616 = vmatmul.mubr.bf16.gmra.mxu1 %v3246_v33  ;;  %v6270_v54 = vpop.eup %6269 }
 0x51c   : > { %5767 = vmatpush3.bf16.msra.mxu1 %v7684_v56  ;;  %v6272_v44 = vpop.eup %6271  ;;  %v3223_v18 = vmul.f32 %v6270_v54, %v7774_v5  ;;  %v6275_v56 = vld [vmem:[#allocation3 + $0x20] sm:$0xff]   ;;  %v5641_v5 = vpop.f32.mrf.mxu0 }
 0x51d   : > { %5760 = vmatprep.subr.bf16.mxu1 %v7690_v20  ;;  %v6274_v35 = vpop.eup %6273  ;;  %v3222_v24 = vmul.f32 %v6272_v44, %v7766_v29  ;;  %v6277_v29 = vld [vmem:[#allocation3 + $0x30] sm:$0xff]  }
 0x51e   : > { %v3221_v0 = vmul.f32 %v6274_v35, %v7778_v23  ;;  %v3505_v23 = vpop.f32.mrf.mxu0  ;;  %v6284_v44 = vld [vmem:[#allocation2 + $0x50] sm:$0xff] }
 0x51f   : > { %v3248_v8 = vpack.c.bf16 %v3223_v18, %v3222_v24  ;;  %v3506_v26 = vadd.f32 %v7813_v7, %v3505_v23  ;;  %v6285_v24 = vld [vmem:[#allocation2 + $0x48] sm:$0xff] }
 0x520   : > { %5768 = vmatpush3.bf16.msra.mxu1 %v7690_v20  ;;  %v3247_v55 = vpack.c.bf16 %v3221_v0, %v3220_v57  ;;  %v6278_v20 = vld [vmem:[#allocation3 + $0x38] sm:$0xff]   ;;  %v5642_v30 = vpop.f32.mrf.mxu0 }
 0x521   : > { %5761 = vmatprep.subr.bf16.mxu1 %v7696_v38  ;;  %v3517_v34 = vadd.f32 %v5642_v30, %v7813_v7 }
 0x522   : > { %5619 = vmatprep.mubr.bf16.mxu1 %v3247_v55  ;;  %v3508_v32 = vpop.f32.mrf.mxu0 }
 0x523   : > { %5620 = vmatmul.mubr.bf16.gmra.mxu1 %v3248_v8  ;;  %v3509_v40 = vadd.f32 %v7813_v7, %v3508_v32 }
 0x524   : > { %5769 = vmatpush3.bf16.msra.mxu1 %v7696_v38  ;;  %5647 = vmatprep.mubr.bf16.mxu1 %v6275_v56  ;;  %v7820_v38 = vld [vmem:[%s994_s2] ss:$0 sm:$0xff]  ;;  %v5645_v31 = vpop.f32.mrf.mxu0  ;;  %s8391_s2 = sld [smem:[#allocation46_spill]] (!%p5098_p6) }
 0x525   : > { %5762 = vmatprep.subr.bf16.mxu1 %v7702_v46  ;;  %v3530_v50 = vadd.f32 %v5645_v31, %v7813_v7 }
 0x526   : > { %v3521_v58 = vpop.f32.mrf.mxu0 }
 0x527   : > { %v3522_v12 = vadd.f32 %v7813_v7, %v3521_v58 }
 0x528   : > { %5770 = vmatpush3.bf16.msra.mxu1 %v7702_v46  ;;  %v3514_v46 = vadd.f32 %v5641_v5, %v7813_v7  ;;  %v5646_v62 = vpop.f32.mrf.mxu0 }
 0x529   : > { %v3533_v52 = vadd.f32 %v5646_v62, %v7813_v7 }
 0x52a   : > { %v3524_v36 = vpop.f32.mrf.mxu0 }
 0x52b   : > { %5648 = vmatmul.mubr.bf16.vlgmr.msra.gmra.mxu1 %v6276_v53  ;;  %v3525_v60 = vadd.f32 %v7813_v7, %v3524_v36  ;;  %v6286_v53 = vld [vmem:[#allocation2 + $0x68] sm:$0xff]  ;;  %v6290_v36 = vld [vmem:[#allocation2 + $0x20] sm:$0xff] }
 0x52c   : > { %5651 = vmatprep.mubr.bf16.mxu1 %v6277_v29 }
 0x533   : > { %5652 = vmatmul.mubr.bf16.gmra.mxu1 %v6278_v20 }
 0x5ca   : > { %v5609_v61 = vpop.f32.mrf.mxu1 }
 0x5cb   : > { %v3346_v16 = vadd.f32 %v5609_v61, %v7820_v38 }
 0x5cc   : > { %v3337_v9 = vpop.f32.mrf.mxu1 }
 0x5cd   : > { %v3570_v45 = vmul.f32 %v3514_v46, %v3346_v16  ;;  %v3338_v13 = vadd.f32 %v7820_v38, %v3337_v9 }
 0x5ce   : > { %v5610_v14 = vpop.f32.mrf.mxu1 }
 0x5cf   : > { %v7827_v48 = vadd.f32 %v6279_v39, %v3570_v45  ;;  %v3568_v49 = vmul.f32 %v3506_v26, %v3338_v13  ;;  %v3349_v1 = vadd.f32 %v5610_v14, %v7820_v38  ;;  %v6287_v14 = vld [vmem:[#allocation2 + $0x10] sm:$0xff] }
 0x5d0   : > { %v3340_v47 = vpop.f32.mrf.mxu1 }
 0x5d1   : > { %3602 = vst [vmem:[#allocation2 + $0x58] sm:$0xff] %v7827_v48  ;;  %v7832_v11 = vadd.f32 %v6280_v17, %v3568_v49  ;;  %v3571_v3 = vmul.f32 %v3517_v34, %v3349_v1  ;;  %v3341_v6 = vadd.f32 %v7820_v38, %v3340_v47  ;;  %v6288_v17 = vld [vmem:[#allocation2 + $0x40] sm:$0xff] }
 0x5d2   : > { %v5613_v15 = vpop.f32.mrf.mxu1 }
 0x5d3   : > { %3600 = vst [vmem:[#allocation2 + $0x30] sm:$0xff] %v7832_v11  ;;  %v7837_v19 = vadd.f32 %v6281_v27, %v3571_v3  ;;  %v3569_v22 = vmul.f32 %v3509_v40, %v3341_v6  ;;  %v3362_v43 = vadd.f32 %v5613_v15, %v7820_v38 }
 0x5d4   : > { %v3353_v51 = vpop.f32.mrf.mxu1 }
 0x5d5   : > { %3603 = vst [vmem:[#allocation2 + $0x18] sm:$0xff] %v7837_v19  ;;  %v7842_v42 = vadd.f32 %v6282_v4, %v3569_v22  ;;  %v3574_v63 = vmul.f32 %v3530_v50, %v3362_v43  ;;  %v3354_v59 = vadd.f32 %v7820_v38, %v3353_v51  ;;  %v6289_v22 = vld [vmem:[#allocation2 + $0x38] sm:$0xff] }
 0x5d6   : > { %v5614_v25 = vpop.f32.mrf.mxu1 }
 0x5d7   : > { %3601 = vst [vmem:[#allocation2] sm:$0xff] %v7842_v42  ;;  %v7847_v37 = vadd.f32 %v6283_v2, %v3574_v63  ;;  %v3572_v41 = vmul.f32 %v3522_v12, %v3354_v59  ;;  %v3365_v33 = vadd.f32 %v5614_v25, %v7820_v38 }
 0x5d8   : > { %v3356_v54 = vpop.f32.mrf.mxu1 }
 0x5d9   : > { %3606 = vst [vmem:[#allocation2 + $0x8] sm:$0xff] %v7847_v37  ;;  %v7852_v35 = vadd.f32 %v6284_v44, %v3572_v41  ;;  %v3575_v18 = vmul.f32 %v3533_v52, %v3365_v33  ;;  %v3357_v57 = vadd.f32 %v7820_v38, %v3356_v54  ;;  %v6291_v41 = vld [vmem:[#allocation2 + $0x78] sm:$0xff] }
 0x5db   : > { %v5617_v0 = vpop.f32.mrf.mxu1  ;;  %3604 = vst [vmem:[#allocation2 + $0x50] sm:$0xff] %v7852_v35  ;;  %v7856_v55 = vadd.f32 %v6285_v24, %v3575_v18  ;;  %v3573_v8 = vmul.f32 %v3525_v60, %v3357_v57  ;;  %v6292_v57 = vld [vmem:[#allocation2 + $0x60] sm:$0xff] }
 0x5dc   : > { %v3378_v61 = vadd.f32 %v5617_v0, %v7820_v38 }
 0x5dd   : > { %v3369_v56 = vpop.f32.mrf.mxu1  ;;  %3607 = vst [vmem:[#allocation2 + $0x48] sm:$0xff] %v7856_v55  ;;  %v7859_v29 = vadd.f32 %v6286_v53, %v3573_v8 }
 0x5de   : > { %v3370_v9 = vadd.f32 %v7820_v38, %v3369_v56  ;;  %v6293_v56 = vld [vmem:[#allocation2 + $0x28] sm:$0xff] }
 0x5df   : > { %v5618_v20 = vpop.f32.mrf.mxu1  ;;  %3605 = vst [vmem:[#allocation2 + $0x68] sm:$0xff] %v7859_v29 }
 0x5e0   : > { %v3381_v58 = vadd.f32 %v5618_v20, %v7820_v38 }
 0x5e1   : > { %v3372_v5 = vpop.f32.mrf.mxu1 }
 0x5e2   : > { %v3373_v47 = vadd.f32 %v7820_v38, %v3372_v5  ;;  %v6294_v5 = vld [vmem:[#allocation2 + $0x70] sm:$0xff] }
 0x5e3   : > { %v5621_v23 = vpop.f32.mrf.mxu1 }
 0x5e4   : > { %v3394_v27 = vadd.f32 %v5621_v23, %v7820_v38 }
 0x5e5   : > { %v3385_v30 = vpop.f32.mrf.mxu1 }
 0x5e6   : > { %v3386_v51 = vadd.f32 %v7820_v38, %v3385_v30 }
 0x5e7   : > { %v5622_v32 = vpop.f32.mrf.mxu1 }
 0x5e8   : > { %v3397_v2 = vadd.f32 %v5622_v32, %v7820_v38 }
 0x5e9   : > { %v3388_v46 = vpop.f32.mrf.mxu1 }
 0x5ea   : > { %v3389_v18 = vadd.f32 %v7820_v38, %v3388_v46 }
 0x5eb   : > { %v5649_v31 = vpop.f32.mrf.mxu1 }
 0x5ec   : > { %v3546_v16 = vadd.f32 %v5649_v31, %v7813_v7 }
 0x5ed   : > { %v3537_v26 = vpop.f32.mrf.mxu1 }
 0x5ee   : > { %v3578_v45 = vmul.f32 %v3546_v16, %v3378_v61  ;;  %v3538_v13 = vadd.f32 %v7813_v7, %v3537_v26 }
 0x5ef   : > { %v5650_v34 = vpop.f32.mrf.mxu1 }
 0x5f0   : > { %v7867_v39 = vadd.f32 %v6287_v14, %v3578_v45  ;;  %v3576_v49 = vmul.f32 %v3538_v13, %v3370_v9  ;;  %v3549_v1 = vadd.f32 %v5650_v34, %v7813_v7 }
 0x5f1   : > { %v3540_v40 = vpop.f32.mrf.mxu1 }
 0x5f2   : > { %3610 = vst [vmem:[#allocation2 + $0x10] sm:$0xff] %v7867_v39  ;;  %v7872_v3 = vadd.f32 %v6288_v17, %v3576_v49  ;;  %v3579_v6 = vmul.f32 %v3549_v1, %v3381_v58  ;;  %v3541_v62 = vadd.f32 %v7813_v7, %v3540_v40 }
 0x5f3   : > { %v5653_v50 = vpop.f32.mrf.mxu1 }
 0x5f4   : > { %3608 = vst [vmem:[#allocation2 + $0x40] sm:$0xff] %v7872_v3  ;;  %v7877_v15 = vadd.f32 %v6289_v22, %v3579_v6  ;;  %v3577_v43 = vmul.f32 %v3541_v62, %v3373_v47  ;;  %v3562_v12 = vadd.f32 %v5653_v50, %v7813_v7 }
 0x5f5   : > { %v3553_v4 = vpop.f32.mrf.mxu1 }
 0x5f6   : > { %3611 = vst [vmem:[#allocation2 + $0x38] sm:$0xff] %v7877_v15  ;;  %v7882_v63 = vadd.f32 %v6290_v36, %v3577_v43  ;;  %v3582_v59 = vmul.f32 %v3562_v12, %v3394_v27  ;;  %v3554_v52 = vadd.f32 %v7813_v7, %v3553_v4 }
 0x5f7   : > { %v5654_v25 = vpop.f32.mrf.mxu1 }
 0x5f8   : > { %3609 = vst [vmem:[#allocation2 + $0x20] sm:$0xff] %v7882_v63  ;;  %v7887_v33 = vadd.f32 %v6291_v41, %v3582_v59  ;;  %v3580_v60 = vmul.f32 %v3554_v52, %v3386_v51  ;;  %v3565_v54 = vadd.f32 %v5654_v25, %v7813_v7 }
 0x5f9   : > { %v3556_v44 = vpop.f32.mrf.mxu1 }
 0x5fa   : > { %3614 = vst [vmem:[#allocation2 + $0x78] sm:$0xff] %v7887_v33  ;;  %v7892_v0 = vadd.f32 %v6292_v57, %v3580_v60  ;;  %v3583_v24 = vmul.f32 %v3565_v54, %v3397_v2  ;;  %v3557_v8 = vadd.f32 %v7813_v7, %v3556_v44 }
 0x5fc   : > { %3612 = vst [vmem:[#allocation2 + $0x60] sm:$0xff] %v7892_v0  ;;  %v7896_v53 = vadd.f32 %v6293_v56, %v3583_v24  ;;  %v3581_v20 = vmul.f32 %v3557_v8, %v3389_v18  ;;  %3619 = sbr.rel (%p5098_p6) target bundleno = 2138 (0x85a), region = 156 }
 0x5fe   : > { %3615 = vst [vmem:[#allocation2 + $0x28] sm:$0xff] %v7896_v53  ;;  %v7899_v23 = vadd.f32 %v6294_v5, %v3581_v20 }
 0x600   : > { %3613 = vst [vmem:[#allocation2 + $0x70] sm:$0xff] %v7899_v23 }
 0x601   : > { %v6295_v38 = vld [vmem:[#allocation14 + $0x70] ss:$8 sps:$4 sm:$0xff]   ;;  %3956 = vadd.xlane.f32.xlu0 %v7832_v11  ;;  %3960 = vadd.xlane.f32.xlu1 %v7827_v48  ;;  %v6296_v7 = vld [vmem:[#allocation14 + $0x74] ss:$8 sps:$4 sm:$0xff]   ;;  %v6297_v30 = vld [vmem:[#allocation14 + $0x60] ss:$8 sps:$4 sm:$0xff]   ;;  %v4004_v61 = vmul.f32 %v7832_v11, %v7832_v11  ;;  %v4006_v9 = vmul.f32 %v7827_v48, %v7827_v48  ;;  %v4007_v45 = vmul.f32 %v7837_v19, %v7837_v19 }
 0x602   : > { %5671 = vmatprep.mubr.bf16.mxu0 %v7410_v10  ;;  %5703 = vmatprep.mubr.bf16.mxu1 %v7410_v10  ;;  %v6298_v32 = vld [vmem:[#allocation14 + $0x64] ss:$8 sps:$4 sm:$0xff]   ;;  %v6299_v46 = vld [vmem:[#allocation14 + $0x50] ss:$8 sps:$4 sm:$0xff]   ;;  %v6300_v31 = vld [vmem:[#allocation14 + $0x54] ss:$8 sps:$4 sm:$0xff]   ;;  %v4005_v10 = vmul.f32 %v7842_v42, %v7842_v42  ;;  %v4008_v40 = vmul.f32 %v7852_v35, %v7852_v35  ;;  %v4009_v47 = vmul.f32 %v7859_v29, %v7859_v29 }
 0x603   : > { %5655 = vmatprep.subr.bf16.mxu0 %v6295_v38  ;;  %5687 = vmatprep.subr.bf16.mxu1 %v6296_v7  ;;  %v6301_v16 = vld [vmem:[#allocation14 + $0x40] ss:$8 sps:$4 sm:$0xff]   ;;  %v6302_v26 = vld [vmem:[#allocation14 + $0x44] ss:$8 sps:$4 sm:$0xff]   ;;  %v6303_v13 = vld [vmem:[#allocation14 + $0x30] ss:$8 sps:$4 sm:$0xff]   ;;  %v4010_v62 = vmul.f32 %v7847_v37, %v7847_v37  ;;  %v4011_v50 = vmul.f32 %v7856_v55, %v7856_v55  ;;  %v4012_v27 = vmul.f32 %v7872_v3, %v7872_v3 }
 0x604   : > { %5656 = vmatpush3.bf16.msra.mxu0 %v6295_v38  ;;  %5688 = vmatpush3.bf16.msra.mxu1 %v6296_v7  ;;  %v6304_v34 = vld [vmem:[#allocation14 + $0x34] ss:$8 sps:$4 sm:$0xff]   ;;  %v6305_v58 = vld [vmem:[#allocation14 + $0x20] ss:$8 sps:$4 sm:$0xff]   ;;  %v6306_v14 = vld [vmem:[#allocation14 + $0x24] ss:$8 sps:$4 sm:$0xff]   ;;  %v4013_v22 = vmul.f32 %v7882_v63, %v7882_v63  ;;  %v4014_v43 = vmul.f32 %v7867_v39, %v7867_v39  ;;  %v4016_v52 = vmul.f32 %v7892_v0, %v7892_v0 }
 0x605   : > { %5657 = vmatprep.subr.bf16.mxu0 %v6297_v30  ;;  %5689 = vmatprep.subr.bf16.mxu1 %v6298_v32  ;;  %v6307_v49 = vld [vmem:[#allocation14 + $0x10] ss:$8 sps:$4 sm:$0xff]   ;;  %v6308_v1 = vld [vmem:[#allocation14 + $0x14] ss:$8 sps:$4 sm:$0xff]   ;;  %v6309_v17 = vld [vmem:[#allocation14] ss:$8 sps:$4 sm:$0xff]   ;;  %v4017_v25 = vmul.f32 %v7899_v23, %v7899_v23  ;;  %v4018_v41 = vmul.f32 %v7887_v33, %v7887_v33  ;;  %v4019_v54 = vmul.f32 %v7896_v53, %v7896_v53 }
 0x606   : > { %3958 = vadd.xlane.f32.xlu0 %v7842_v42  ;;  %3962 = vadd.xlane.f32.xlu1 %v7837_v19  ;;  %v6310_v6 = vld [vmem:[#allocation14 + $0x4] ss:$8 sps:$4 sm:$0xff]   ;;  %v6311_v4 = vld [vmem:[%s8391_s2 + $0x38] sm:$0xff]   ;;  %v8393_v59 = vld [vmem:[#allocation31_spill] sm:$0xff]  ;;  %vm4572_vm1 = vcmask 7168   ;;  %vm4452_vm2 = vcmask 261120  }
 0x607   : > { %v8389_v12 = vld [vmem:[#allocation28_spill] sm:$0xff]  ;;  %v8392_v51 = vld [vmem:[#allocation30_spill] sm:$0xff]  ;;  %v6312_v36 = vld [vmem:[%s8391_s2 + $0x30] sm:$0xff]  }
 0x608   : > { %5658 = vmatpush3.bf16.msra.mxu0 %v6297_v30  ;;  %5690 = vmatpush3.bf16.msra.mxu1 %v6298_v32  ;;  %v6313_v2 = vld [vmem:[%s8391_s2 + $0x28] sm:$0xff]   ;;  %v6314_v44 = vld [vmem:[%s8391_s2 + $0x20] sm:$0xff]   ;;  %v6315_v18 = vld [vmem:[%s8391_s2 + $0x18] sm:$0xff]  }
 0x609   : > { %5659 = vmatprep.subr.bf16.mxu0 %v6299_v46  ;;  %5691 = vmatprep.subr.bf16.mxu1 %v6300_v31  ;;  %v8394_v60 = vld [vmem:[#allocation32_spill] sm:$0xff]  ;;  %v6316_v57 = vld [vmem:[%s8391_s2 + $0x10] sm:$0xff]   ;;  %v6318_v8 = vld [vmem:[%s8391_s2] sm:$0xff]  }
 0x60a   : > { %4020 = vadd.xlane.f32.xlu0 %v4004_v61  ;;  %4022 = vadd.xlane.f32.xlu1 %v4005_v10  ;;  %v6317_v24 = vld [vmem:[%s8391_s2 + $0x8] sm:$0xff]  }
 0x60c   : > { %5660 = vmatpush3.bf16.msra.mxu0 %v6299_v46  ;;  %5692 = vmatpush3.bf16.msra.mxu1 %v6300_v31 }
 0x60d   : > { %5661 = vmatprep.subr.bf16.mxu0 %v6301_v16  ;;  %5693 = vmatprep.subr.bf16.mxu1 %v6302_v26 }
 0x60e   : > { %4024 = vadd.xlane.f32.xlu0 %v4006_v9  ;;  %4026 = vadd.xlane.f32.xlu1 %v4007_v45 }
 0x610   : > { %5662 = vmatpush3.bf16.msra.mxu0 %v6301_v16  ;;  %5694 = vmatpush3.bf16.msra.mxu1 %v6302_v26 }
 0x611   : > { %5663 = vmatprep.subr.bf16.mxu0 %v6303_v13  ;;  %5695 = vmatprep.subr.bf16.mxu1 %v6304_v34 }
 0x612   : > { %3964 = vadd.xlane.f32.xlu0 %v7852_v35  ;;  %3966 = vadd.xlane.f32.xlu1 %v7859_v29 }
 0x614   : > { %5664 = vmatpush3.bf16.msra.mxu0 %v6303_v13  ;;  %5696 = vmatpush3.bf16.msra.mxu1 %v6304_v34 }
 0x615   : > { %5665 = vmatprep.subr.bf16.mxu0 %v6305_v58  ;;  %5697 = vmatprep.subr.bf16.mxu1 %v6306_v14 }
 0x616   : > { %3968 = vadd.xlane.f32.xlu0 %v7847_v37  ;;  %3970 = vadd.xlane.f32.xlu1 %v7856_v55 }
 0x618   : > { %5666 = vmatpush3.bf16.msra.mxu0 %v6305_v58  ;;  %5698 = vmatpush3.bf16.msra.mxu1 %v6306_v14 }
 0x619   : > { %5667 = vmatprep.subr.bf16.mxu0 %v6307_v49  ;;  %5699 = vmatprep.subr.bf16.mxu1 %v6308_v1 }
 0x61a   : > { %4028 = vadd.xlane.f32.xlu0 %v4008_v40  ;;  %4030 = vadd.xlane.f32.xlu1 %v4009_v47 }
 0x61c   : > { %5668 = vmatpush3.bf16.msra.mxu0 %v6307_v49  ;;  %5700 = vmatpush3.bf16.msra.mxu1 %v6308_v1 }
 0x61d   : > { %5669 = vmatprep.subr.bf16.mxu0 %v6309_v17  ;;  %5701 = vmatprep.subr.bf16.mxu1 %v6310_v6 }
 0x61e   : > { %4032 = vadd.xlane.f32.xlu0 %v4010_v62  ;;  %4034 = vadd.xlane.f32.xlu1 %v4011_v50 }
 0x620   : > { %5670 = vmatpush3.bf16.msra.mxu0 %v6309_v17  ;;  %5702 = vmatpush3.bf16.msra.mxu1 %v6310_v6 }
 0x621   : > { %5719 = vmatprep.subr.bf16.mxu0 %v6311_v4  ;;  %5771 = vmatprep.subr.bf16.mxu1 %v6311_v4 }
 0x622   : > { %3972 = vadd.xlane.f32.xlu0 %v7872_v3  ;;  %3974 = vadd.xlane.f32.xlu1 %v7882_v63 }
 0x623   : > { %5672 = vmatmul.mubr.bf16.vlgmr.msra.gmra.mxu0 %v7431_v21  ;;  %5704 = vmatmul.mubr.bf16.vlgmr.msra.gmra.mxu1 %v7431_v21  ;;  %v4015_v21 = vmul.f32 %v7877_v15, %v7877_v15 }
 0x624   : > { %5675 = vmatprep.mubr.bf16.mxu0 %v7436_v28  ;;  %5707 = vmatprep.mubr.bf16.mxu1 %v7436_v28  ;;  %v8390_v28 = vld [vmem:[#allocation29_spill] sm:$0xff] }
 0x625   : > { %5720 = vmatpush3.bf16.msra.mxu0 %v6311_v4  ;;  %5779 = vmatpush3.bf16.msra.mxu1 %v6311_v4 }
 0x626   : > { %3976 = vadd.xlane.f32.xlu0 %v7867_v39  ;;  %3978 = vadd.xlane.f32.xlu1 %v7877_v15 }
 0x627   : > { %5721 = vmatprep.subr.bf16.mxu0 %v6312_v36  ;;  %5772 = vmatprep.subr.bf16.mxu1 %v6312_v36 }
 0x629   : > { %5722 = vmatpush3.bf16.msra.mxu0 %v6312_v36  ;;  %5780 = vmatpush3.bf16.msra.mxu1 %v6312_v36 }
 0x62a   : > { %4036 = vadd.xlane.f32.xlu0 %v4012_v27  ;;  %4038 = vadd.xlane.f32.xlu1 %v4013_v22 }
 0x62b   : > { %5676 = vmatmul.mubr.bf16.gmra.mxu0 %v8389_v12  ;;  %5708 = vmatmul.mubr.bf16.gmra.mxu1 %v8389_v12 }
 0x62c   : > { %5679 = vmatprep.mubr.bf16.mxu0 %v8390_v28  ;;  %5711 = vmatprep.mubr.bf16.mxu1 %v8390_v28 }
 0x62d   : > { %5723 = vmatprep.subr.bf16.mxu0 %v6313_v2  ;;  %5773 = vmatprep.subr.bf16.mxu1 %v6313_v2 }
 0x62e   : > { %4040 = vadd.xlane.f32.xlu0 %v4014_v43  ;;  %4042 = vadd.xlane.f32.xlu1 %v4015_v21 }
 0x62f   : > { %5724 = vmatpush3.bf16.msra.mxu0 %v6313_v2  ;;  %5781 = vmatpush3.bf16.msra.mxu1 %v6313_v2 }
 0x630   : > { %5725 = vmatprep.subr.bf16.mxu0 %v6314_v44  ;;  %5774 = vmatprep.subr.bf16.mxu1 %v6314_v44 }
 0x632   : > { %3980 = vadd.xlane.f32.xlu0 %v7892_v0  ;;  %3982 = vadd.xlane.f32.xlu1 %v7899_v23 }
 0x633   : > { %5680 = vmatmul.mubr.bf16.gmra.mxu0 %v8392_v51  ;;  %5712 = vmatmul.mubr.bf16.gmra.mxu1 %v8392_v51 }
 0x634   : > { %5683 = vmatprep.mubr.bf16.mxu0 %v8393_v59  ;;  %5715 = vmatprep.mubr.bf16.mxu1 %v8393_v59 }
 0x635   : > { %5726 = vmatpush3.bf16.msra.mxu0 %v6314_v44  ;;  %5782 = vmatpush3.bf16.msra.mxu1 %v6314_v44 }
 0x636   : > { %3984 = vadd.xlane.f32.xlu0 %v7887_v33  ;;  %3986 = vadd.xlane.f32.xlu1 %v7896_v53 }
 0x637   : > { %5727 = vmatprep.subr.bf16.mxu0 %v6315_v18  ;;  %5775 = vmatprep.subr.bf16.mxu1 %v6315_v18 }
 0x639   : > { %5728 = vmatpush3.bf16.msra.mxu0 %v6315_v18  ;;  %5783 = vmatpush3.bf16.msra.mxu1 %v6315_v18 }
 0x63a   : > { %4044 = vadd.xlane.f32.xlu0 %v4016_v52  ;;  %4046 = vadd.xlane.f32.xlu1 %v4017_v25 }
 0x63b   : > { %5684 = vmatmul.mubr.bf16.gmra.mxu0 %v8394_v60  ;;  %5716 = vmatmul.mubr.bf16.gmra.mxu1 %v8394_v60 }
 0x63c   : > { %5729 = vmatprep.subr.bf16.mxu0 %v6316_v57  ;;  %5776 = vmatprep.subr.bf16.mxu1 %v6316_v57 }
 0x63d   : > { %5730 = vmatpush3.bf16.msra.mxu0 %v6316_v57  ;;  %5784 = vmatpush3.bf16.msra.mxu1 %v6316_v57 }
 0x63e   : > { %4048 = vadd.xlane.f32.xlu0 %v4018_v41  ;;  %4050 = vadd.xlane.f32.xlu1 %v4019_v54 }
 0x63f   : > { %5731 = vmatprep.subr.bf16.mxu0 %v6317_v24  ;;  %5777 = vmatprep.subr.bf16.mxu1 %v6317_v24 }
 0x641   : > { %5732 = vmatpush3.bf16.msra.mxu0 %v6317_v24  ;;  %5785 = vmatpush3.bf16.msra.mxu1 %v6317_v24 }
 0x642   : > { %5733 = vmatprep.subr.bf16.mxu0 %v6318_v8  ;;  %5778 = vmatprep.subr.bf16.mxu1 %v6318_v8 }
 0x645   : > { %5734 = vmatpush3.bf16.msra.mxu0 %v6318_v8  ;;  %5786 = vmatpush3.bf16.msra.mxu1 %v6318_v8 }
 0x68a   : > { %v3957_v56 = vpop.xlane.xlu0 %3956  ;;  %v3961_v20 = vpop.xlane.xlu1 %3960 }
 0x68b   : > { %v7993_v47 = vmul.f32 0.0078125, %v3957_v56  ;;  %v7997_v62 = vmul.f32 0.0078125, %v3961_v20 }
 0x68d   : > { %v4068_v27 = vmul.f32 %v7993_v47, %v7993_v47  ;;  %v4070_v28 = vmul.f32 %v7997_v62, %v7997_v62 }
 0x68f   : > { %v3959_v5 = vpop.xlane.xlu0 %3958  ;;  %v3963_v38 = vpop.xlane.xlu1 %3962 }
 0x690   : > { %v7995_v17 = vmul.f32 0.0078125, %v3959_v5  ;;  %v7999_v50 = vmul.f32 0.0078125, %v3963_v38 }
 0x692   : > { %v4069_v22 = vmul.f32 %v7995_v17, %v7995_v17  ;;  %v4071_v4 = vmul.f32 %v7999_v50, %v7999_v50 }
 0x693   : > { %v4021_v7 = vpop.xlane.xlu0 %4020  ;;  %v4023_v30 = vpop.xlane.xlu1 %4022 }
 0x694   : > { %v4052_v43 = vmul.f32 0.0078125, %v4021_v7  ;;  %v4053_v12 = vmul.f32 0.0078125, %v4023_v30 }
 0x696   : > { %v4084_v51 = vsub.f32 %v4052_v43, %v4068_v27  ;;  %v4085_v36 = vsub.f32 %v4053_v12, %v4069_v22 }
 0x697   : > { %v4025_v32 = vpop.xlane.xlu0 %4024  ;;  %v4027_v46 = vpop.xlane.xlu1 %4026 }
 0x698   : > { %v4054_v59 = vmul.f32 0.0078125, %v4025_v32  ;;  %v4055_v52 = vmul.f32 0.0078125, %v4027_v46  ;;  %v4100_v60 = vmax.f32 %v4084_v51, 0.0  ;;  %v4101_v54 = vmax.f32 %v4085_v36, 0.0 }
 0x69a   : > { %v4086_v44 = vsub.f32 %v4054_v59, %v4070_v28  ;;  %v4087_v18 = vsub.f32 %v4055_v52, %v4071_v4  ;;  %v4132_v7 = vadd.f32 1e-06, %v4100_v60  ;;  %v4133_v30 = vadd.f32 1e-06, %v4101_v54 }
 0x69b   : > { %v3965_v31 = vpop.xlane.xlu0 %3964  ;;  %v3967_v61 = vpop.xlane.xlu1 %3966 }
 0x69c   : > { %v8009_v2 = vmul.f32 0.0078125, %v3965_v31  ;;  %v8011_v57 = vmul.f32 0.0078125, %v3967_v61  ;;  %v4102_v32 = vmax.f32 %v4086_v44, 0.0  ;;  %v4103_v46 = vmax.f32 %v4087_v18, 0.0 }
 0x69d   : > { %6319 = vrsqrt.f32 %v4132_v7 }
 0x69e   : > { %v4072_v24 = vmul.f32 %v8009_v2, %v8009_v2  ;;  %v4073_v31 = vmul.f32 %v8011_v57, %v8011_v57  ;;  %v4134_v51 = vadd.f32 1e-06, %v4102_v32  ;;  %6321 = vrsqrt.f32 %v4133_v30 }
 0x69f   : > { %v3969_v10 = vpop.xlane.xlu0 %3968  ;;  %v3971_v16 = vpop.xlane.xlu1 %3970 }
 0x6a0   : > { %v8015_v8 = vmul.f32 0.0078125, %v3969_v10  ;;  %v8017_v20 = vmul.f32 0.0078125, %v3971_v16  ;;  %6323 = vrsqrt.f32 %v4134_v51 }
 0x6a2   : > { %v4074_v61 = vmul.f32 %v8015_v8, %v8015_v8  ;;  %v4075_v16 = vmul.f32 %v8017_v20, %v8017_v20 }
 0x6a3   : > { %v4029_v26 = vpop.xlane.xlu0 %4028  ;;  %v4031_v9 = vpop.xlane.xlu1 %4030 }
 0x6a4   : > { %v4056_v56 = vmul.f32 0.0078125, %v4029_v26  ;;  %v4057_v27 = vmul.f32 0.0078125, %v4031_v9  ;;  %v4135_v9 = vadd.f32 1e-06, %v4103_v46 }
 0x6a6   : > { %v4088_v22 = vsub.f32 %v4056_v56, %v4072_v24  ;;  %v4089_v59 = vsub.f32 %v4057_v27, %v4073_v31  ;;  %6325 = vrsqrt.f32 %v4135_v9 }
 0x6a7   : > { %v4033_v45 = vpop.xlane.xlu0 %4032  ;;  %v4035_v13 = vpop.xlane.xlu1 %4034 }
 0x6a8   : > { %v4059_v26 = vmul.f32 0.0078125, %v4035_v13  ;;  %v4058_v43 = vmul.f32 0.0078125, %v4033_v45  ;;  %v4104_v52 = vmax.f32 %v4088_v22, 0.0  ;;  %v4105_v56 = vmax.f32 %v4089_v59, 0.0 }
 0x6aa   : > { %v4091_v60 = vsub.f32 %v4059_v26, %v4075_v16  ;;  %v4090_v54 = vsub.f32 %v4058_v43, %v4074_v61  ;;  %v4136_v7 = vadd.f32 1e-06, %v4104_v52  ;;  %v4137_v26 = vadd.f32 1e-06, %v4105_v56 }
 0x6ab   : > { %v3973_v34 = vpop.xlane.xlu0 %3972  ;;  %v3975_v58 = vpop.xlane.xlu1 %3974  ;;  %v4118_v56 = vsub.f32 %v7827_v48, %v7997_v62  ;;  %v4117_v48 = vsub.f32 %v7842_v42, %v7995_v17  ;;  %v4120_v62 = vsub.f32 %v7852_v35, %v8009_v2 }
 0x6ac   : > { %v8033_v44 = vmul.f32 0.0078125, %v3975_v58  ;;  %v4107_v58 = vmax.f32 %v4091_v60, 0.0  ;;  %v4106_v32 = vmax.f32 %v4090_v54, 0.0  ;;  %6327 = vrsqrt.f32 %v4136_v7  ;;  %v8065_v7 = vld [vmem:[%s8395_s5 + $0x1] ss:$0 sm:$0xff] }
 0x6ad   : > { %6329 = vrsqrt.f32 %v4137_v26  ;;  %v4121_v26 = vsub.f32 %v7859_v29, %v8011_v57 }
 0x6ae   : > { %v4077_v46 = vmul.f32 %v8033_v44, %v8033_v44  ;;  %v4138_v51 = vadd.f32 1e-06, %v4106_v32 }
 0x6af   : > { %v3977_v14 = vpop.xlane.xlu0 %3976  ;;  %v3979_v49 = vpop.xlane.xlu1 %3978 }
 0x6b0   : > { %v8019_v38 = vmul.f32 0.0078125, %v3977_v14  ;;  %v8027_v14 = vmul.f32 0.0078125, %v3973_v34  ;;  %v8029_v12 = vmul.f32 0.0078125, %v3979_v49  ;;  %6331 = vrsqrt.f32 %v4138_v51 }
 0x6b2   : > { %v4078_v28 = vmul.f32 %v8019_v38, %v8019_v38  ;;  %v4076_v45 = vmul.f32 %v8027_v14, %v8027_v14  ;;  %v4079_v13 = vmul.f32 %v8029_v12, %v8029_v12 }
 0x6b3   : > { %v4037_v1 = vpop.xlane.xlu0 %4036  ;;  %v7991_v40 = vpop.xlane.xlu1 %4038 }
 0x6b4   : > { %v4060_v34 = vmul.f32 0.0078125, %v4037_v1  ;;  %v4061_v31 = vmul.f32 0.0078125, %v7991_v40  ;;  %v4139_v40 = vadd.f32 1e-06, %v4107_v58 }
 0x6b6   : > { %v4092_v1 = vsub.f32 %v4060_v34, %v4076_v45  ;;  %v4093_v9 = vsub.f32 %v4061_v31, %v4077_v46  ;;  %6333 = vrsqrt.f32 %v4139_v40 }
 0x6b7   : > { %v4041_v6 = vpop.xlane.xlu0 %4040  ;;  %v4043_v21 = vpop.xlane.xlu1 %4042 }
 0x6b8   : > { %v4062_v4 = vmul.f32 0.0078125, %v4041_v6  ;;  %v4063_v49 = vmul.f32 0.0078125, %v4043_v21  ;;  %v4108_v59 = vmax.f32 %v4092_v1, 0.0  ;;  %v4109_v58 = vmax.f32 %v4093_v9, 0.0 }
 0x6ba   : > { %v4094_v6 = vsub.f32 %v4062_v4, %v4078_v28  ;;  %v4095_v21 = vsub.f32 %v4063_v49, %v4079_v13  ;;  %v6320_v13 = vpop.eup %6319  ;;  %v4140_v32 = vadd.f32 1e-06, %v4108_v59  ;;  %v4141_v35 = vadd.f32 1e-06, %v4109_v58  ;;  %v8087_v58 = vld [vmem:[%s8395_s5] ss:$0 sm:$0xff] }
 0x6bb   : > { %v3981_v25 = vpop.xlane.xlu0 %3980  ;;  %v3983_v41 = vpop.xlane.xlu1 %3982 }
 0x6bc   : > { %v8039_v24 = vmul.f32 0.0078125, %v3981_v25  ;;  %v4110_v27 = vmax.f32 %v4094_v6, 0.0  ;;  %v8046_v22 = vmul.f32 0.0078125, %v3983_v41  ;;  %v4111_v52 = vmax.f32 %v4095_v21, 0.0  ;;  %v6322_v49 = vpop.eup %6321 }
 0x6bd   : > { %v4116_v6 = vsub.f32 %v7832_v11, %v7993_v47  ;;  %v6324_v11 = vpop.eup %6323  ;;  %v4119_v47 = vsub.f32 %v7837_v19, %v7999_v50 }
 0x6be   : > { %v4080_v25 = vmul.f32 %v8039_v24, %v8039_v24  ;;  %v4142_v41 = vadd.f32 1e-06, %v4110_v27  ;;  %v4081_v60 = vmul.f32 %v8046_v22, %v8046_v22  ;;  %v4143_v46 = vadd.f32 1e-06, %v4111_v52 }
 0x6bf   : > { %v3985_v5 = vpop.xlane.xlu0 %3984  ;;  %v3987_v10 = vpop.xlane.xlu1 %3986  ;;  %v4164_v50 = vmul.f32 %v6320_v13, %v4116_v6  ;;  %v4124_v13 = vsub.f32 %v7872_v3, %v8027_v14 }
 0x6c0   : > { %v8041_v30 = vmul.f32 0.0078125, %v3985_v5  ;;  %v8050_v16 = vmul.f32 0.0078125, %v3987_v10  ;;  %6335 = vrsqrt.f32 %v4142_v41 }
 0x6c1   : > { %6337 = vrsqrt.f32 %v4140_v32 }
 0x6c2   : > { %v4082_v43 = vmul.f32 %v8041_v30, %v8041_v30  ;;  %v4083_v10 = vmul.f32 %v8050_v16, %v8050_v16  ;;  %6339 = vrsqrt.f32 %v4143_v46 }
 0x6c3   : > { %v4045_v36 = vpop.xlane.xlu0 %4044  ;;  %v4047_v18 = vpop.xlane.xlu1 %4046  ;;  %6341 = vrsqrt.f32 %v4141_v35 }
 0x6c4   : > { %v4064_v5 = vmul.f32 0.0078125, %v4045_v36  ;;  %v4065_v36 = vmul.f32 0.0078125, %v4047_v18 }
 0x6c6   : > { %v4096_v54 = vsub.f32 %v4064_v5, %v4080_v25  ;;  %v6326_v5 = vpop.eup %6325 }
 0x6c7   : > { %v4049_v61 = vpop.xlane.xlu0 %4048  ;;  %v4051_v28 = vpop.xlane.xlu1 %4050 }
 0x6c8   : > { %v4066_v4 = vmul.f32 0.0078125, %v4049_v61  ;;  %v4067_v45 = vmul.f32 0.0078125, %v4051_v28  ;;  %v4097_v61 = vsub.f32 %v4065_v36, %v4081_v60  ;;  %v4112_v1 = vmax.f32 %v4096_v54, 0.0  ;;  %v6328_v6 = vpop.eup %6327 }
 0x6c9   : > { %v4122_v28 = vsub.f32 %v7847_v37, %v8015_v8  ;;  %v4165_v60 = vmul.f32 %v6322_v49, %v4117_v48  ;;  %v4166_v36 = vmul.f32 %v6324_v11, %v4118_v56  ;;  %v4125_v49 = vsub.f32 %v7882_v63, %v8033_v44 }
 0x6ca   : > { %v4098_v34 = vsub.f32 %v4066_v4, %v4082_v43  ;;  %v4099_v21 = vsub.f32 %v4067_v45, %v4083_v10  ;;  %v4123_v43 = vsub.f32 %v7856_v55, %v8017_v20  ;;  %v4113_v40 = vmax.f32 %v4097_v61, 0.0 }
 0x6cb   : > { %v4144_v51 = vadd.f32 1e-06, %v4112_v1  ;;  %v4167_v45 = vmul.f32 %v6326_v5, %v4119_v47  ;;  %v4126_v61 = vsub.f32 %v7867_v39, %v8019_v38  ;;  %v6330_v5 = vpop.eup %6329 }
 0x6cc   : > { %v4114_v25 = vmax.f32 %v4098_v34, 0.0  ;;  %v4115_v9 = vmax.f32 %v4099_v21, 0.0  ;;  %v4145_v1 = vadd.f32 1e-06, %v4113_v40 }
 0x6cd   : > { %6343 = vrsqrt.f32 %v4144_v51 }
 0x6ce   : > { %v4146_v10 = vadd.f32 1e-06, %v4114_v25  ;;  %v4147_v21 = vadd.f32 1e-06, %v4115_v9 }
 0x6d0   : > { %6345 = vrsqrt.f32 %v4146_v10  ;;  %v4168_v10 = vmul.f32 %v6328_v6, %v4120_v62  ;;  %v4169_v62 = vmul.f32 %v6330_v5, %v4121_v26 }
 0x6d1   : > { %6347 = vrsqrt.f32 %v4145_v1 }
 0x6d2   : > { %6349 = vrsqrt.f32 %v4147_v21 }
 0x6e3   : > { %v5673_v18 = vpop.f32.mrf.mxu0  ;;  %v5705_v31 = vpop.f32.mrf.mxu1 }
 0x6e4   : > { %v3902_v42 = vadd.f32 %v5705_v31, %v8065_v7 }
 0x6e5   : > { %v3725_v27 = vpop.f32.mrf.mxu0  ;;  %v3893_v17 = vpop.f32.mrf.mxu1 }
 0x6e6   : > { %v3894_v19 = vadd.f32 %v8065_v7, %v3893_v17  ;;  %v4182_v54 = vadd.f32 1.0, %v3902_v42  ;;  %v3734_v42 = vadd.f32 %v5673_v18, %v8087_v58  ;;  %v3726_v39 = vadd.f32 %v8087_v58, %v3725_v27 }
 0x6e7   : > { %v5674_v4 = vpop.f32.mrf.mxu0  ;;  %v5706_v2 = vpop.f32.mrf.mxu1  ;;  %v4127_v18 = vsub.f32 %v7877_v15, %v8029_v12 }
 0x6e8   : > { %v4180_v59 = vadd.f32 1.0, %v3894_v19  ;;  %v3905_v52 = vadd.f32 %v5706_v2, %v8065_v7  ;;  %v4198_v17 = vmul.f32 %v4182_v54, %v4166_v36  ;;  %v3737_v19 = vadd.f32 %v5674_v4, %v8087_v58 }
 0x6e9   : > { %v3728_v41 = vpop.f32.mrf.mxu0  ;;  %v3896_v34 = vpop.f32.mrf.mxu1 }
 0x6ea   : > { %v4183_v32 = vadd.f32 1.0, %v3905_v52  ;;  %v3897_v46 = vadd.f32 %v8065_v7, %v3896_v34  ;;  %v4196_v11 = vmul.f32 %v4180_v59, %v4164_v50  ;;  %v6332_v52 = vpop.eup %6331  ;;  %v3729_v38 = vadd.f32 %v8087_v58, %v3728_v41 }
 0x6eb   : > { %v5677_v31 = vpop.f32.mrf.mxu0  ;;  %v5709_v56 = vpop.f32.mrf.mxu1  ;;  %v4214_v27 = vadd.f32 %v4198_v17, %v3734_v42  ;;  %v4170_v15 = vmul.f32 %v6332_v52, %v4122_v28 }
 0x6ec   : > { %v4199_v48 = vmul.f32 %v4183_v32, %v4167_v45  ;;  %v4181_v47 = vadd.f32 1.0, %v3897_v46  ;;  %v3918_v35 = vadd.f32 %v5709_v56, %v8065_v7  ;;  %v6334_v9 = vpop.eup %6333  ;;  %v4212_v36 = vadd.f32 %v4196_v11, %v3726_v39 }
 0x6ed   : > { %v3741_v25 = vpop.f32.mrf.mxu0  ;;  %v3909_v2 = vpop.f32.mrf.mxu1  ;;  %v4128_v56 = vsub.f32 %v7892_v0, %v8039_v24  ;;  %v3750_v37 = vadd.f32 %v5677_v31, %v8087_v58 }
 0x6ee   : > { %v4197_v40 = vmul.f32 %v4181_v47, %v4165_v60  ;;  %v3910_v50 = vadd.f32 %v8065_v7, %v3909_v2  ;;  %v4215_v59 = vadd.f32 %v4199_v48, %v3737_v19  ;;  %v6336_v4 = vpop.eup %6335  ;;  %v4186_v41 = vadd.f32 1.0, %v3918_v35 }
 0x6ef   : > { %v5678_v51 = vpop.f32.mrf.mxu0  ;;  %v5710_v45 = vpop.f32.mrf.mxu1  ;;  %v4171_v48 = vmul.f32 %v6334_v9, %v4123_v43  ;;  %v4174_v57 = vmul.f32 %v6336_v4, %v4126_v61  ;;  %v3742_v19 = vadd.f32 %v8087_v58, %v3741_v25 }
 0x6f0   : > { %v4213_v54 = vadd.f32 %v4197_v40, %v3729_v38  ;;  %v4184_v34 = vadd.f32 1.0, %v3910_v50  ;;  %v3921_v60 = vadd.f32 %v5710_v45, %v8065_v7  ;;  %v6338_v21 = vpop.eup %6337  ;;  %v4246_v11 = vpack.c.bf16 %v4215_v59, %v4214_v27 }
 0x6f1   : > { %v3744_v32 = vpop.f32.mrf.mxu0  ;;  %v3912_v46 = vpop.f32.mrf.mxu1  ;;  %v4202_v17 = vmul.f32 %v4186_v41, %v4170_v15  ;;  %v3753_v35 = vadd.f32 %v5678_v51, %v8087_v58  ;;  %v4129_v40 = vsub.f32 %v7899_v23, %v8046_v22  ;;  %v4172_v25 = vmul.f32 %v6338_v21, %v4124_v13 }
 0x6f2   : > { %v3913_v12 = vadd.f32 %v8065_v7, %v3912_v46  ;;  %v4245_v6 = vpack.c.bf16 %v4213_v54, %v4212_v36  ;;  %v4187_v47 = vadd.f32 1.0, %v3921_v60  ;;  %v6340_v26 = vpop.eup %6339  ;;  %v4200_v8 = vmul.f32 %v4184_v34, %v4168_v10 }
 0x6f3   : > { %v5681_v1 = vpop.f32.mrf.mxu0  ;;  %v5713_v29 = vpop.f32.mrf.mxu1  ;;  %v3745_v20 = vadd.f32 %v8087_v58, %v3744_v32  ;;  %v4175_v51 = vmul.f32 %v6340_v26, %v4127_v18  ;;  %v4218_v34 = vadd.f32 %v4202_v17, %v3750_v37  ;;  %v4130_v32 = vsub.f32 %v7887_v33, %v8041_v30 }
 0x6f4   : > { %v4185_v28 = vadd.f32 1.0, %v3913_v12  ;;  %5735 = vmatprep.mubr.bf16.mxu0 %v4245_v6  ;;  %v3934_v5 = vadd.f32 %v5713_v29, %v8065_v7  ;;  %v4203_v2 = vmul.f32 %v4187_v47, %v4171_v48  ;;  %v6342_v39 = vpop.eup %6341  ;;  %v4216_v59 = vadd.f32 %v4200_v8, %v3742_v19 }
 0x6f5   : > { %v3757_v42 = vpop.f32.mrf.mxu0  ;;  %5736 = vmatmul.mubr.bf16.vlgmr.msra.gmra.mxu0 %v4246_v11  ;;  %v3925_v55 = vpop.f32.mrf.mxu1  ;;  %v3766_v23 = vadd.f32 %v5681_v1, %v8087_v58  ;;  %v4173_v13 = vmul.f32 %v6342_v39, %v4125_v49  ;;  %v4131_v12 = vsub.f32 %v7896_v53, %v8050_v16 }
 0x6f6   : > { %v4201_v43 = vmul.f32 %v4185_v28, %v4169_v62  ;;  %v4190_v61 = vadd.f32 1.0, %v3934_v5  ;;  %v3926_v31 = vadd.f32 %v8065_v7, %v3925_v55  ;;  %v4219_v38 = vadd.f32 %v4203_v2, %v3753_v35  ;;  %v6344_v9 = vpop.eup %6343 }
 0x6f7   : > { %v5682_v52 = vpop.f32.mrf.mxu0  ;;  %v5714_v50 = vpop.f32.mrf.mxu1  ;;  %v3758_v62 = vadd.f32 %v8087_v58, %v3757_v42  ;;  %v4176_v47 = vmul.f32 %v6344_v9, %v4128_v56 }
 0x6f8   : > { %v4217_v10 = vadd.f32 %v4201_v43, %v3745_v20  ;;  %v4188_v45 = vadd.f32 1.0, %v3926_v31  ;;  %v3937_v4 = vadd.f32 %v5714_v50, %v8065_v7  ;;  %v6346_v54 = vpop.eup %6345  ;;  %v4206_v27 = vmul.f32 %v4190_v61, %v4174_v57 }
 0x6f9   : > { %v3760_v36 = vpop.f32.mrf.mxu0  ;;  %v3928_v22 = vpop.f32.mrf.mxu1  ;;  %v3769_v18 = vadd.f32 %v5682_v52, %v8087_v58  ;;  %v4248_v60 = vpack.c.bf16 %v4219_v38, %v4218_v34  ;;  %v4178_v57 = vmul.f32 %v6346_v54, %v4130_v32  ;;  %v4406_v54 = vld [vmem:[%s8397_s23 + $0x10] sm:$0xff] }
 0x6fa   : > { %v4247_v3 = vpack.c.bf16 %v4217_v10, %v4216_v59  ;;  %v4191_v14 = vadd.f32 1.0, %v3937_v4  ;;  %v4204_v46 = vmul.f32 %v4188_v45, %v4172_v25  ;;  %v3929_v15 = vadd.f32 %v8065_v7, %v3928_v22  ;;  %v6348_v30 = vpop.eup %6347 }
 0x6fb   : > { %v5685_v41 = vpop.f32.mrf.mxu0  ;;  %v5717_v33 = vpop.f32.mrf.mxu1  ;;  %v4222_v49 = vadd.f32 %v4206_v27, %v3766_v23  ;;  %v3761_v11 = vadd.f32 %v8087_v58, %v3760_v36  ;;  %v4177_v5 = vmul.f32 %v6348_v30, %v4129_v40  ;;  %v6701_v36 = vmov 0.0   ;;  %v4404_v27 = vld [vmem:[%s8397_s23] sm:$0xff] }
 0x6fc   : > { %5739 = vmatprep.mubr.bf16.mxu0 %v4247_v3  ;;  %v4207_v6 = vmul.f32 %v4191_v14, %v4175_v51  ;;  %v3950_v1 = vadd.f32 %v5717_v33, %v8065_v7  ;;  %v6350_v44 = vpop.eup %6349  ;;  %v4189_v21 = vadd.f32 1.0, %v3929_v15  ;;  %v4220_v37 = vadd.f32 %v4204_v46, %v3758_v62  ;;  %4581 = vst.msk [vmem:[%s8396_s21 + $0x40] sm:$0xff] %vm4572_vm1, %v6701_v36  ;;  %v4407_v14 = vld [vmem:[%s8397_s23 + $0x18] sm:$0xff]  ;;  %v4405_v46 = vld [vmem:[%s8397_s23 + $0x8] sm:$0xff] }
 0x6fd   : > { %v3773_v63 = vpop.f32.mrf.mxu0  ;;  %5740 = vmatmul.mubr.bf16.gmra.mxu0 %v4248_v60  ;;  %v3941_v48 = vpop.f32.mrf.mxu1  ;;  %v3782_v17 = vadd.f32 %v5685_v41, %v8087_v58  ;;  %v4179_v35 = vmul.f32 %v6350_v44, %v4131_v12  ;;  %4582 = vst.msk [vmem:[%s8396_s21 + $0x48] sm:$0xff] %vm4572_vm1, %v6701_v36  ;;  %4583 = vst.msk [vmem:[%s8396_s21 + $0x50] sm:$0xff] %vm4572_vm1, %v6701_v36  ;;  %v4410_v44 = vld [vmem:[%s8397_s23 + $0x30] sm:$0xff] }
 0x6fe   : > { %v4223_v29 = vadd.f32 %v4207_v6, %v3769_v18  ;;  %v4194_v26 = vadd.f32 1.0, %v3950_v1  ;;  %v3942_v53 = vadd.f32 %v8065_v7, %v3941_v48  ;;  %v4205_v8 = vmul.f32 %v4189_v21, %v4173_v13  ;;  %4584 = vst.msk [vmem:[%s8396_s21 + $0x58] sm:$0xff] %vm4572_vm1, %v6701_v36  ;;  %4585 = vst.msk [vmem:[%s8396_s21 + $0x60] sm:$0xff] %vm4572_vm1, %v6701_v36  ;;  %v4408_v21 = vld [vmem:[%s8397_s23 + $0x20] sm:$0xff] }
 0x6ff   : > { %v5686_v16 = vpop.f32.mrf.mxu0  ;;  %v5718_v28 = vpop.f32.mrf.mxu1  ;;  %v3774_v0 = vadd.f32 %v8087_v58, %v3773_v63  ;;  %4586 = vst.msk [vmem:[%s8396_s21 + $0x68] sm:$0xff] %vm4572_vm1, %v6701_v36  ;;  %4587 = vst.msk [vmem:[%s8396_s21 + $0x70] sm:$0xff] %vm4572_vm1, %v6701_v36 }
 0x700   : > { %v4192_v42 = vadd.f32 1.0, %v3942_v53  ;;  %v3953_v19 = vadd.f32 %v5718_v28, %v8065_v7  ;;  %v4250_v2 = vpack.c.bf16 %v4223_v29, %v4222_v49  ;;  %v4221_v55 = vadd.f32 %v4205_v8, %v3761_v11  ;;  %4588 = vst.msk [vmem:[%s8396_s21 + $0x78] sm:$0xff] %vm4572_vm1, %v6701_v36  ;;  %v4409_v28 = vld [vmem:[%s8397_s23 + $0x28] sm:$0xff] }
 0x701   : > { %v3944_v24 = vpop.f32.mrf.mxu1  ;;  %v3785_v56 = vadd.f32 %v5686_v16, %v8087_v58  ;;  %v3776_v20 = vpop.f32.mrf.mxu0  ;;  %v4210_v43 = vmul.f32 %v4194_v26, %v4178_v57 }
 0x702   : > { %v4208_v61 = vmul.f32 %v4192_v42, %v4176_v47  ;;  %v4195_v31 = vadd.f32 1.0, %v3953_v19  ;;  %v3945_v52 = vadd.f32 %v8065_v7, %v3944_v24  ;;  %v4249_v39 = vpack.c.bf16 %v4221_v55, %v4220_v37  ;;  %v5117_v7 = vld [vmem:[#allocation15] ss:$0 sm:$0xff]  ;;  %v4411_v37 = vld [vmem:[%s8397_s23 + $0x38] sm:$0xff] }
 0x703   : > { %v3777_v25 = vadd.f32 %v8087_v58, %v3776_v20  ;;  %v4226_v50 = vadd.f32 %v4210_v43, %v3782_v17 }
 0x704   : > { %v4211_v38 = vmul.f32 %v4195_v31, %v4179_v35  ;;  %v4193_v40 = vadd.f32 1.0, %v3945_v52  ;;  %5743 = vmatprep.mubr.bf16.mxu1 %v4249_v39  ;;  %v4224_v51 = vadd.f32 %v4208_v61, %v3774_v0 }
 0x705   : > { %5744 = vmatmul.mubr.bf16.vlgmr.msra.gmra.mxu1 %v4250_v2 }
 0x706   : > { %v4209_v9 = vmul.f32 %v4193_v40, %v4177_v5  ;;  %v4227_v59 = vadd.f32 %v4211_v38, %v3785_v56 }
 0x708   : > { %v4225_v10 = vadd.f32 %v4209_v9, %v3777_v25  ;;  %v4252_v4 = vpack.c.bf16 %v4227_v59, %v4226_v50 }
 0x70a   : > { %v4251_v45 = vpack.c.bf16 %v4225_v10, %v4224_v51 }
 0x70c   : > { %5747 = vmatprep.mubr.bf16.mxu1 %v4251_v45 }
 0x70d   : > { %5748 = vmatmul.mubr.bf16.gmra.mxu1 %v4252_v4 }
 0x7b5   : > { %v5737_v58 = vpop.f32.mrf.mxu0 }
 0x7b6   : > { %v4350_v34 = vadd.f32 %v5737_v58, %v5117_v7 }
 0x7b7   : > { %v4341_v32 = vpop.f32.mrf.mxu0 }
 0x7b8   : > { %v4422_v23 = vsub.f32 %v4350_v34, %v4406_v54  ;;  %v4342_v22 = vadd.f32 %v5117_v7, %v4341_v32 }
 0x7b9   : > { %v5738_v3 = vpop.f32.mrf.mxu0 }
 0x7ba   : > { %v4420_v13 = vsub.f32 %v4342_v22, %v4404_v27  ;;  %v4353_v18 = vadd.f32 %v5738_v3, %v5117_v7  ;;  %v4438_v41 = vmul.f32 %v4422_v23, %v4422_v23 }
 0x7bb   : > { %v4344_v60 = vpop.f32.mrf.mxu0 }
 0x7bc   : > { %v4423_v62 = vsub.f32 %v4353_v18, %v4407_v14  ;;  %v4345_v15 = vadd.f32 %v5117_v7, %v4344_v60  ;;  %v4459_v33 = vsel %vm4452_vm2, %v4438_v41, 0.0  ;;  %v4436_v30 = vmul.f32 %v4420_v13, %v4420_v13 }
 0x7bd   : > { %4460 = vadd.xlane.f32.xlu0 %v4459_v33  ;;  %v5741_v12 = vpop.f32.mrf.mxu0 }
 0x7be   : > { %v4421_v6 = vsub.f32 %v4345_v15, %v4405_v46  ;;  %v4366_v1 = vadd.f32 %v5741_v12, %v5117_v7  ;;  %v4439_v63 = vmul.f32 %v4423_v62, %v4423_v62  ;;  %v4453_v47 = vsel %vm4452_vm2, %v4436_v30, 0.0 }
 0x7bf   : > { %v4357_v49 = vpop.f32.mrf.mxu0 }
 0x7c0   : > { %v4358_v11 = vadd.f32 %v5117_v7, %v4357_v49  ;;  %v4462_v48 = vsel %vm4452_vm2, %v4439_v63, 0.0  ;;  %v4437_v29 = vmul.f32 %v4421_v6, %v4421_v6  ;;  %v4426_v26 = vsub.f32 %v4366_v1, %v4410_v44 }
 0x7c1   : > { %4463 = vadd.xlane.f32.xlu1 %v4462_v48  ;;  %v5742_v57 = vpop.f32.mrf.mxu0  ;;  %4454 = vadd.xlane.f32.xlu0 %v4453_v47 }
 0x7c2   : > { %v4424_v53 = vsub.f32 %v4358_v11, %v4408_v21  ;;  %v4369_v16 = vadd.f32 %v5742_v57, %v5117_v7  ;;  %v4456_v42 = vsel %vm4452_vm2, %v4437_v29, 0.0  ;;  %v4442_v55 = vmul.f32 %v4426_v26, %v4426_v26 }
 0x7c3   : > { %v4360_v8 = vpop.f32.mrf.mxu0 }
 0x7c4   : > { %v4361_v5 = vadd.f32 %v5117_v7, %v4360_v8  ;;  %v4440_v17 = vmul.f32 %v4424_v53, %v4424_v53  ;;  %v4427_v19 = vsub.f32 %v4369_v16, %v4411_v37  ;;  %v4471_v43 = vsel %vm4452_vm2, %v4442_v55, 0.0 }
 0x7c5   : > { %4457 = vadd.xlane.f32.xlu1 %v4456_v42  ;;  %v5745_v0 = vpop.f32.mrf.mxu1 }
 0x7c6   : > { %v4425_v35 = vsub.f32 %v4361_v5, %v4409_v28  ;;  %v4465_v2 = vsel %vm4452_vm2, %v4440_v17, 0.0  ;;  %v4443_v61 = vmul.f32 %v4427_v19, %v4427_v19 }
 0x7c7   : > { %4466 = vadd.xlane.f32.xlu0 %v4465_v2  ;;  %v4373_v56 = vpop.f32.mrf.mxu1 }
 0x7c8   : > { %v4441_v24 = vmul.f32 %v4425_v35, %v4425_v35  ;;  %v4474_v39 = vsel %vm4452_vm2, %v4443_v61, 0.0 }
 0x7c9   : > { %v5746_v31 = vpop.f32.mrf.mxu1 }
 0x7ca   : > { %v4468_v20 = vsel %vm4452_vm2, %v4441_v24, 0.0 }
 0x7cb   : > { %4469 = vadd.xlane.f32.xlu1 %v4468_v20  ;;  %4472 = vadd.xlane.f32.xlu0 %v4471_v43  ;;  %v4376_v52 = vpop.f32.mrf.mxu1 }
 0x7cd   : > { %v5749_v38 = vpop.f32.mrf.mxu1 }
 0x7cf   : > { %4475 = vadd.xlane.f32.xlu1 %v4474_v39  ;;  %v4389_v40 = vpop.f32.mrf.mxu1 }
 0x7d1   : > { %v5750_v25 = vpop.f32.mrf.mxu1 }
 0x7d3   : > { %v4392_v50 = vpop.f32.mrf.mxu1 }
 0x846   : > { %v4461_v51 = vpop.xlane.xlu0 %4460 }
 0x847   : > { %4575 = vst.msk [vmem:[%s8396_s21 + $0x10] sm:$0xff] %vm4572_vm1, %v4461_v51 }
 0x84a   : > { %v4464_v9 = vpop.xlane.xlu1 %4463  ;;  %v4455_v59 = vpop.xlane.xlu0 %4454 }
 0x84b   : > { %4576 = vst.msk [vmem:[%s8396_s21 + $0x18] sm:$0xff] %vm4572_vm1, %v4464_v9  ;;  %4573 = vst.msk [vmem:[%s8396_s21] sm:$0xff] %vm4572_vm1, %v4455_v59 }
 0x84e   : > { %v4458_v10 = vpop.xlane.xlu1 %4457 }
 0x84f   : > { %4574 = vst.msk [vmem:[%s8396_s21 + $0x8] sm:$0xff] %vm4572_vm1, %v4458_v10 }
 0x850   : > { %v4467_v45 = vpop.xlane.xlu0 %4466 }
 0x851   : > { %4577 = vst.msk [vmem:[%s8396_s21 + $0x20] sm:$0xff] %vm4572_vm1, %v4467_v45 }
 0x854   : > { %v4470_v4 = vpop.xlane.xlu1 %4469  ;;  %v4473_v36 = vpop.xlane.xlu0 %4472 }
 0x855   : > { %4578 = vst.msk [vmem:[%s8396_s21 + $0x28] sm:$0xff] %vm4572_vm1, %v4470_v4  ;;  %4579 = vst.msk [vmem:[%s8396_s21 + $0x30] sm:$0xff] %vm4572_vm1, %v4473_v36 }
 0x858   : > { %v4476_v7 = vpop.xlane.xlu1 %4475 }
 0x859   : > { %4580 = vst.msk [vmem:[%s8396_s21 + $0x38] sm:$0xff] %vm4572_vm1, %v4476_v7 }
 0x85a PF: > { %s37_s0 = sadd.s32 1, %s6685_s0   ;;  %s8398_s1 = sld [smem:[#allocation25_spill]] }
 0x85b   : > { %p34_p12 = scmp.ge.s32.totalorder %s37_s0, 4   ;;  %s8399_s29 = sld [smem:[#allocation27_spill]] }
 0x85c   : > { %s8400_s9 = sld [smem:[#allocation26_spill]]  ;;  %s8401_s3 = smov %s6669_s28 }
 0x85d   : > { %s8403_s30 = smov %s6681_s4 }
 0x85e   :  { %36 = sbr.rel (!%p34_p12) target bundleno = 27 (0x1b), region = 228 }
 0x860   : > { %s8402_s28 = smov %s8398_s1 }
 0x862   : > { %s8404_s4 = smov %s8400_s9 }
 0x863   :  { %4632 = vsyncpa [#allocation5], 1 }
 0x864   :  { %4634 = vsyncpa [#allocation5 + $0x1], 1 }
 0x865   :  { %4635 = vsyncpa [#allocation7], 1 }
 0x866   :  { %4636 = vsyncpa [#allocation10], 1 }
 0x867   :  { %4637 = vsyncpa [#allocation13], 1 }
 0x868   :  { %4638 = vsyncpa [#allocation16], 1 }

// kernel: tpu_custom_call.1
= control target key start
LH: loop header
LB: loop body
LE: loop exit
PB: predicated region body
PF: predicated region fallthrough
CT: control target
= control target key end

     0   :  { %s8264_s0 = inlined_call_operand.vmem [shape: bf16[128,32], index: 0, kind: input, shape index: {}]   ;;  %s8265_s1 = inlined_call_operand.hbm [shape: bf16[128,256], index: 1, kind: input, shape index: {}]   ;;  %s8266_s2 = inlined_call_operand.vmem [shape: f32[128,32], index: 2, kind: input, shape index: {}]   ;;  %s8267_s3 = inlined_call_operand.vmem [shape: bf16[128,32], index: 3, kind: input, shape index: {}]   ;;  %s8268_s4 = inlined_call_operand.hbm [shape: bf16[256,128], index: 4, kind: input, shape index: {}]   ;;  %s8269_s5 = inlined_call_operand.vmem [shape: f32[1,128], index: 5, kind: input, shape index: {}]   ;;  %s8270_s6 = inlined_call_operand.hbm [shape: bf16[128,128], index: 6, kind: input, shape index: {}]   ;;  %s8271_s7 = inlined_call_operand.hbm [shape: f32[1,128], index: 7, kind: input, shape index: {}]   ;;  %s8272_s8 = inlined_call_operand.vmem [shape: bf16[32,128], index: 8, kind: input, shape index: {}]   ;;  %s8273_s9 = inlined_call_operand.hbm [shape: f32[1,128], index: 9, kind: input, shape index: {}]   ;;  %s8274_s10 = inlined_call_operand.vmem [shape: bf16[32,128], index: 10, kind: input, shape index: {}]   ;;  %s8275_s11 = inlined_call_operand.hbm [shape: f32[1,128], index: 11, kind: input, shape index: {}]   ;;  %s8276_s12 = inlined_call_operand.hbm [shape: bf16[128,256], index: 12, kind: input, shape index: {}]   ;;  %s8277_s13 = inlined_call_operand.vmem [shape: f32[1,256], index: 13, kind: input, shape index: {}]   ;;  %s8278_s14 = inlined_call_operand.vmem [shape: bf16[128,32], index: 14, kind: input, shape index: {}]   ;;  %s8279_s15 = inlined_call_operand.hbm [shape: f32[1,32], index: 15, kind: input, shape index: {}]   ;;  %s8280_s16 = inlined_call_operand.vmem [shape: bf16[2,128,384], index: 16, kind: input, shape index: {}]   ;;  %s8281_s17 = inlined_call_operand.vmem [shape: f32[2,1,384], index: 17, kind: input, shape index: {}]   ;;  %s8282_s18 = inlined_call_operand.hbm [shape: bf16[2,128,128], index: 18, kind: input, shape index: {}]   ;;  %s8283_s19 = inlined_call_operand.vmem [shape: f32[2,1,128], index: 19, kind: input, shape index: {}]   ;;  %s8284_s20 = inlined_call_operand.hbm [shape: bf16[2,128,128], index: 20, kind: input, shape index: {}]   ;;  %s8285_s21 = inlined_call_operand.vmem [shape: f32[2,1,128], index: 21, kind: input, shape index: {}]   ;;  %s8286_s22 = inlined_call_operand.vmem [shape: f32[128,1], index: 22, kind: output, shape index: {}]  }
   0x1   :  { %8322 = sst [smem:[#allocation33_spill]] %s8264_s0 }
   0x2   :  { %8323 = sst [smem:[#allocation34_spill]] %s8265_s1 }
   0x3   :  { %8324 = sst [smem:[#allocation35_spill]] %s8266_s2 }
   0x4   :  { %8325 = sst [smem:[#allocation36_spill]] %s8267_s3 }
   0x5   :  { %8326 = sst [smem:[#allocation37_spill]] %s8268_s4 }
   0x6   :  { %8327 = sst [smem:[#allocation38_spill]] %s8269_s5 }
   0x7   :  { %8328 = sst [smem:[#allocation39_spill]] %s8270_s6 }
   0x8   :  { %8329 = sst [smem:[#allocation40_spill]] %s8271_s7 }
   0x9   :  { %8330 = sst [smem:[#allocation41_spill]] %s8272_s8 }
   0xa   :  { %8331 = sst [smem:[#allocation42_spill]] %s8273_s9 }
   0xb   :  { %8332 = sst [smem:[#allocation43_spill]] %s8274_s10 }
   0xc   :  { %8333 = sst [smem:[#allocation44_spill]] %s8275_s11 }
   0xd   :  { %8334 = sst [smem:[#allocation45_spill]] %s8277_s13 }
   0xe   :  { %8335 = sst [smem:[#allocation46_spill]] %s8278_s14 }
   0xf   :  { %8336 = sst [smem:[#allocation47_spill]] %s8280_s16 }
  0x10   :  { %8337 = sst [smem:[#allocation48_spill]] %s8281_s17 }
  0x11   :  { %8338 = sst [smem:[#allocation49_spill]] %s8282_s18 }
  0x12   :  { %8339 = sst [smem:[#allocation50_spill]] %s8285_s21 }
  0x13   :  { %8340 = sst [smem:[#allocation51_spill]] %s8286_s22 }
  0x14   :  { %27 = vsyncpa [#allocation5], 0 }
  0x15   :  { %28 = vsyncpa [#allocation7], 0 }
  0x16   :  { %29 = vsyncpa [#allocation10], 0 }
  0x17   :  { %30 = vsyncpa [#allocation13], 0 }
  0x18   :  { %31 = vsyncpa [#allocation16], 0  ;;  %s6817_s3 = smov 0   ;;  %s6819_s28 = smov 0  }
  0x19   :  { %s6821_s29 = smov 0   ;;  %s6823_s30 = smov 0  }
  0x1a   :  { %s6825_s4 = smov 0   ;;  %s6827_s0 = smov 0  }
  0x1b LB: > { %8341 = sst [smem:[#allocation25_spill]] %s6673_s29  ;;  %s8290_s23 = sadd.s32 4294967295, %s6685_s0   ;;  %s6685_s0 = sphi %s6827_s0, %s37_s0   ;;  %s6681_s4 = sphi %s6825_s4, %s8404_s4   ;;  %s6677_s30 = sphi %s6823_s30, %s8403_s30   ;;  %s6673_s29 = sphi %s6821_s29, %s8399_s29   ;;  %s6669_s28 = sphi %s6819_s28, %s8402_s28   ;;  %s6665_s3 = sphi %s6817_s3, %s8401_s3  }
  0x1c   : > { %p4869_p0 = scmp.ge.s32.totalorder %s6685_s0, 1  ;;  %p6851_p1 = scmp.eq.s32.totalorder %s8290_s23, 0 }
  0x1d   : > { %p592_p2 = scmp.lt.s32.totalorder %s6685_s0, 3  ;;  %s6687_s24 = smov [#allocation4]  }
  0x1e   : > { %s8342_s1 = scalar_select %p6851_p1, 1, 0 }
  0x1f   : > { %p6856_p3 = pnand %p4869_p0, %p592_p2  ;;  %s617_s6 = sshll.u32 %s6687_s24, 4  ;;  %s618_s6 = int_to_ptr.vmem [resolvable:$true] %s617_s6 }
  0x20   : > { %s6688_s26 = smov [#allocation6]   ;;  %s6362_s23 = scalar_lea.vmem %s618_s6, 2048 }
  0x21   : > { %s8343_s5 = scalar_select %p6856_p3, 1, 0 }
  0x22   : > { %p5825_p4 = pneg %p6856_p3  ;;  %s648_s2 = sshll.u32 %s6688_s26, 4  ;;  %s649_s2 = int_to_ptr.vmem [resolvable:$true] %s648_s2 }
  0x23   : > { %p6363_p7 = scmp.ne.s32.totalorder %s618_s6, %s6362_s23  ;;  %p6370_p10 = scmp.lt.s32.totalorder %s618_s6, %s618_s6 }
  0x24   : > { %p6864_p5 = pnand %p5825_p4, %p6851_p1  ;;  %p6371_p11 = scmp.lt.s32.totalorder %s6362_s23, %s6362_s23 }
  0x26   : > { %p6870_p6 = pneg %p6864_p5  ;;  %p6372_p12 = por %p6371_p11, %p6370_p10 }
  0x28   : > { %p6365_p8 = pnand %p6363_p7, %p6870_p6 }
  0x2a   : > { %p6366_p9 = pneg %p6365_p8 }
  0x2c   : > { %p6373_p13 = pnand %p6372_p12, %p6366_p9 }
  0x2e   : > { %6376 = shalt.err (!%p6373_p13)
}
  0x2f   : > { %s8296_s24 = smov 128   ;;  %s8297_s26 = smov 8  }
  0x30   : > { %s8346_s14 = sld [smem:[#allocation34_spill]]  ;;  %s6388_s10 = scalar_lea.vmem %s649_s2, 2048 }
  0x31   : > { %p6389_p0 = scmp.ne.s32.totalorder %s649_s2, %s6388_s10  ;;  %p6396_p7 = scmp.lt.s32.totalorder %s649_s2, %s649_s2 }
  0x32   : > { %p6397_p8 = scmp.lt.s32.totalorder %s6388_s10, %s6388_s10 }
  0x33   : > { %p6391_p2 = pnand %p6389_p0, %p6870_p6 }
  0x34   : > { %p6398_p9 = por %p6397_p8, %p6396_p7 }
  0x35   : > { %p6392_p4 = pneg %p6391_p2 }
  0x36   : > { %5828 = dma.hbm_to_vmem [thread:$0]  (!%p6864_p5), %s8346_s14, 2048, %s618_s6, [#allocation5], %s8296_s24, %s8296_s24, %s8297_s26  }
  0x37   : > { %p6399_p10 = pnand %p6398_p9, %p6392_p4 }
  0x39   : > { %6402 = shalt.err (!%p6399_p10)
}
  0x3a   : > { %s8301_s23 = smov 64   ;;  %s8303_s8 = smov 4  }
  0x3b   : > { %s8347_s22 = sld [smem:[#allocation37_spill]]  ;;  %s6693_s6 = smov [#allocation9]  }
  0x3c   : > { %s678_s24 = sshll.u32 %s6693_s6, 4  ;;  %s6694_s26 = smov [#allocation12]   ;;  %s679_s24 = int_to_ptr.vmem [resolvable:$true] %s678_s24 }
  0x3d   : > { %s706_s17 = sshll.u32 %s6694_s26, 4  ;;  %s6414_s10 = scalar_lea.vmem %s679_s24, 16  ;;  %s707_s17 = int_to_ptr.vmem [resolvable:$true] %s706_s17 }
  0x3e   : > { %p6415_p11 = scmp.ne.s32.totalorder %s679_s24, %s6414_s10  ;;  %s6421_s16 = scalar_lea.vmem %s679_s24, 32 }
  0x3f   : > { %p6422_p0 = scmp.lt.s32.totalorder %s679_s24, %s679_s24  ;;  %p6423_p2 = scmp.lt.s32.totalorder %s6421_s16, %s6414_s10 }
  0x40   : > { %p6417_p12 = pnand %p6415_p11, %p6870_p6 }
  0x41   : > { %5831 = dma.hbm_to_vmem [thread:$0]  (!%p6864_p5), %s8347_s22, 2048, %s649_s2, [#allocation7], %s8301_s23, %s8301_s23, %s8303_s8  }
  0x42   : > { %p6418_p13 = pneg %p6417_p12  ;;  %p6424_p4 = por %p6423_p2, %p6422_p0 }
  0x44   : > { %p6425_p7 = pnand %p6424_p4, %p6418_p13 }
  0x46   : > { %6428 = shalt.err (!%p6425_p7)
}
  0x47   : > { %s8348_s7 = sld [smem:[#allocation40_spill]]  ;;  %s6440_s26 = scalar_lea.vmem %s707_s17, 16 }
  0x48   : > { %p6441_p8 = scmp.ne.s32.totalorder %s707_s17, %s6440_s26  ;;  %s6447_s14 = scalar_lea.vmem %s707_s17, 32 }
  0x49   : > { %p6448_p11 = scmp.lt.s32.totalorder %s707_s17, %s707_s17  ;;  %p6449_p12 = scmp.lt.s32.totalorder %s6447_s14, %s6440_s26 }
  0x4a   : > { %p6443_p9 = pnand %p6441_p8, %p6870_p6 }
  0x4b   : > { %p6450_p3 = por %p6449_p12, %p6448_p11 }
  0x4c   : > { %p6444_p10 = pneg %p6443_p9 }
  0x4d   : > { %5837 = dma.hbm_to_vmem [thread:$0]  (!%p6864_p5), %s8348_s7, 16, %s679_s24, [#allocation10]  }
  0x4e   : > { %p6451_p1 = pnand %p6450_p3, %p6444_p10 }
  0x50   : > { %6454 = shalt.err (!%p6451_p1)
}
  0x51   : > { %s8349_s11 = sld [smem:[#allocation44_spill]]  ;;  %s46_s24 = sadd.s32 1, %s6681_s4 }
  0x52   : > { %s464_s6 = sadd.s32 1, %s6673_s29  ;;  %p47_p1 = scmp.ge.s32.totalorder %s46_s24, 2 }
  0x53   : > { %p471_p3 = scmp.ne.s32.totalorder %s6673_s29, %s6669_s28  ;;  %p472_p13 = scmp.eq.s32.totalorder %s6685_s0, 0 }
  0x54   : > { %p477_p0 = scmp.ne.s32.totalorder %s6669_s28, %s6665_s3  ;;  %s8406_s24 = smov (%p47_p1, %s46_s24), 0 }
  0x55   : > { %8350 = sst [smem:[#allocation26_spill]] %s8406_s24  ;;  %p6917_p2 = por %p472_p13, %p471_p3 }
  0x56   : > { %p8352_p4 = scmp.ne.s32.totalorder %s8342_s1, 0  ;;  %p5865_p8 = scmp.lt.s32.totalorder %s6685_s0, 2 }
  0x57   : > { %5843 = dma.hbm_to_vmem [thread:$0]  (!%p6864_p5), %s8349_s11, 16, %s707_s17, [#allocation13]  }
  0x58   : > { %p6923_p7 = por %p8352_p4, %p477_p0  ;;  %s461_s17 = ssub.s32 %s6681_s4, %s8406_s24 }
  0x59   : > { %p462_p9 = scmp.eq.s32.totalorder %s461_s17, 0  ;;  %s762_s13 = sand.u32 1, %s6685_s0  }
  0x5a   : > { %s8353_s2 = scalar_select %p6923_p7, 1, 0 }
  0x5b   : > { %s764_s26 = sand.u32 1, %s6673_s29   ;;  %s8308_s16 = sshll.u32 %s6681_s4, 10 }
  0x5c   : > { %s6933_s14 = scalar_select %p462_p9, %s6673_s29, %s464_s6  }
  0x5d   : > { %s6935_s3 = sshll.u32 %s764_s26, 6  ;;  %s8355_s18 = sld [smem:[#allocation49_spill]] }
  0x5e   : > { %8354 = sst [smem:[#allocation27_spill]] %s6933_s14  ;;  %s766_s7 = scalar_lea.vmem [#allocation17], %s6935_s3 }
  0x5f   : > { %s773_s11 = sshll.u32 %s766_s7, 4  ;;  %p6946_p10 = pnand %p5865_p8, %p6917_p2  ;;  %s774_s11 = int_to_ptr.vmem [resolvable:$true] %s773_s11 }
  0x60   : > { %s6695_s6 = smov [#allocation8]   ;;  %s6950_s26 = scalar_lea.sflag [#allocation5], %s762_s13 }
  0x61   : > { %s8356_s24 = scalar_select %p6946_p10, 1, 0 }
  0x62   : > { %s664_s17 = sshll.u32 %s6695_s6, 4  ;;  %p8306_p11 = pneg %p6946_p10  ;;  %s665_s17 = int_to_ptr.vmem [resolvable:$true] %s664_s17 }
  0x63   : > { %s772_s8 = scalar_lea.hbm %s8355_s18, %s8308_s16  ;;  %s6468_s14 = scalar_lea.vmem %s774_s11, 1024 }
  0x64   : > { %p6469_p12 = scmp.ne.s32.totalorder %s774_s11, %s6468_s14  ;;  %s6696_s7 = smov [#allocation17]  }
  0x65   : > { %s6473_s23 = sshll.u32 %s6696_s7, 4  ;;  %s6474_s23 = int_to_ptr.vmem [resolvable:$false] %s6473_s23 }
  0x66   : > { %p6471_p1 = pnand %p6469_p12, %p8306_p11  ;;  %s6475_s10 = scalar_lea.vmem %s6474_s23, 2048 }
  0x67   : > { %p6476_p13 = scmp.lt.s32.totalorder %s774_s11, %s6474_s23  ;;  %p6477_p0 = scmp.lt.s32.totalorder %s6475_s10, %s6468_s14 }
  0x68   : > { %p6472_p3 = pneg %p6471_p1 }
  0x69   : > { %p6478_p2 = por %p6477_p0, %p6476_p13 }
  0x6b   : > { %p6479_p4 = pnand %p6478_p2, %p6472_p3 }
  0x6d   : > { %6482 = shalt.err (!%p6479_p4)
}
  0x6e   : > { %s8357_s13 = smov 4   ;;  %s8358_s22 = smov 64  }
  0x6f   : > { %5853 = dma.hbm_to_vmem [thread:$0]  (!%p6946_p10), %s772_s8, 1024, %s774_s11, %s6950_s26, %s8358_s22, %s8358_s22, %s8357_s13  }
  0x70   : > { %s6494_s6 = scalar_lea.vmem %s665_s17, 1024  ;;  %p6502_p1 = scmp.lt.s32.totalorder %s665_s17, %s665_s17 }
  0x71   : > { %p6495_p8 = scmp.ne.s32.totalorder %s665_s17, %s6494_s6  ;;  %p6503_p11 = scmp.lt.s32.totalorder %s6494_s6, %s6494_s6 }
  0x73   : > { %p6497_p9 = pnand %p6495_p8, %p6870_p6  ;;  %p6504_p7 = por %p6503_p11, %p6502_p1 }
  0x75   : > { %p6498_p12 = pneg %p6497_p9 }
  0x77   : > { %p6505_p13 = pnand %p6504_p7, %p6498_p12 }
  0x79   : > { %6508 = shalt.err (!%p6505_p13)
}
  0x7a   : > { %s8359_s23 = sld [smem:[#allocation39_spill]]  ;;  %s6697_s8 = smov [#allocation11]  }
  0x7b   : > { %s692_s11 = sshll.u32 %s6697_s8, 4  ;;  %s6698_s10 = smov [#allocation14]   ;;  %s693_s11 = int_to_ptr.vmem [resolvable:$true] %s692_s11 }
  0x7c   : > { %s716_s16 = sshll.u32 %s6698_s10, 4  ;;  %s6520_s18 = scalar_lea.vmem %s693_s11, 16  ;;  %s717_s16 = int_to_ptr.vmem [resolvable:$true] %s716_s16 }
  0x7d   : > { %p6521_p3 = scmp.ne.s32.totalorder %s693_s11, %s6520_s18  ;;  %s6527_s6 = scalar_lea.vmem %s693_s11, 32 }
  0x7e   : > { %p6528_p0 = scmp.lt.s32.totalorder %s693_s11, %s693_s11  ;;  %p6529_p2 = scmp.lt.s32.totalorder %s6527_s6, %s6520_s18 }
  0x7f   : > { %p6523_p7 = pnand %p6521_p3, %p6870_p6 }
  0x80   : > { %5834 = dma.hbm_to_vmem [thread:$0]  (!%p6864_p5), %s8359_s23, 1024, %s665_s17, [#allocation7], %s8358_s22, %s8358_s22, %s8357_s13  }
  0x81   : > { %p6524_p11 = pneg %p6523_p7  ;;  %p6530_p4 = por %p6529_p2, %p6528_p0 }
  0x83   : > { %p6531_p8 = pnand %p6530_p4, %p6524_p11 }
  0x85   : > { %6534 = shalt.err (!%p6531_p8)
}
  0x86   : > { %s8360_s9 = sld [smem:[#allocation42_spill]]  ;;  %s6546_s7 = scalar_lea.vmem %s717_s16, 2048 }
  0x87   : > { %p6547_p9 = scmp.ne.s32.totalorder %s717_s16, %s6546_s7  ;;  %p6554_p13 = scmp.lt.s32.totalorder %s717_s16, %s717_s16 }
  0x88   : > { %p6555_p3 = scmp.lt.s32.totalorder %s6546_s7, %s6546_s7 }
  0x89   : > { %p6549_p12 = pnand %p6547_p9, %p6870_p6 }
  0x8a   : > { %p6556_p7 = por %p6555_p3, %p6554_p13 }
  0x8b   : > { %p6550_p1 = pneg %p6549_p12 }
  0x8c   : > { %5840 = dma.hbm_to_vmem [thread:$0]  (!%p6864_p5), %s8360_s9, 16, %s693_s11, [#allocation10]  }
  0x8d   : > { %p6557_p10 = pnand %p6556_p7, %p6550_p1 }
  0x8f   : > { %6560 = shalt.err (!%p6557_p10)
}
  0x90   : > { %s8361_s18 = smov 8   ;;  %s8362_s23 = smov 128  }
  0x91   : > { %5846 = dma.hbm_to_vmem [thread:$0]  (!%p6864_p5), %s8276_s12, 2048, %s717_s16, [#allocation13], %s8362_s23, %s8362_s23, %s8361_s18  }
  0x92   : > { %s6699_s11 = smov [#allocation15]   ;;  %s8363_s14 = sshll.u32 %s6681_s4, 10 }
  0x93   : > { %s736_s6 = sshll.u32 %s6699_s11, 4  ;;  %s6995_s9 = scalar_lea.hbm %s8284_s20, %s8363_s14  ;;  %s737_s6 = int_to_ptr.vmem [resolvable:$true] %s736_s6 }
  0x94   : > { %s6572_s29 = scalar_lea.vmem %s737_s6, 16  ;;  %s6579_s21 = scalar_lea.vmem %s737_s6, 32 }
  0x95   : > { %p6573_p10 = scmp.ne.s32.totalorder %s737_s6, %s6572_s29  ;;  %p6580_p2 = scmp.lt.s32.totalorder %s737_s6, %s737_s6 }
  0x96   : > { %p6581_p4 = scmp.lt.s32.totalorder %s6579_s21, %s6572_s29 }
  0x97   : > { %p6575_p11 = pnand %p6573_p10, %p6870_p6 }
  0x98   : > { %p6582_p8 = por %p6581_p4, %p6580_p2 }
  0x99   : > { %p6576_p0 = pneg %p6575_p11 }
  0x9b   : > { %p6583_p9 = pnand %p6582_p8, %p6576_p0 }
  0x9d   : > { %6586 = shalt.err (!%p6583_p9)
}
  0x9e   : > { %5849 = dma.hbm_to_vmem [thread:$0]  (!%p6864_p5), %s8279_s15, 16, %s737_s6, [#allocation16]  }
  0x9f   : > { %s793_s23 = scalar_lea.vmem [#allocation18], %s6935_s3  ;;  %p8364_p12 = scmp.ne.s32.totalorder %s8356_s24, 0 }
  0xa0   : > { %s800_s8 = sshll.u32 %s793_s23, 4  ;;  %s6700_s21 = smov [#allocation18]   ;;  %s801_s8 = int_to_ptr.vmem [resolvable:$true] %s800_s8 }
  0xa1   : > { %s6600_s27 = scalar_lea.vmem %s801_s8, 1024  ;;  %p8365_p1 = pneg %p8364_p12 }
  0xa2   : > { %p6601_p6 = scmp.ne.s32.totalorder %s801_s8, %s6600_s27  ;;  %s6605_s29 = sshll.u32 %s6700_s21, 4  ;;  %s6606_s29 = int_to_ptr.vmem [resolvable:$false] %s6605_s29 }
  0xa3   : > { %s6607_s10 = scalar_lea.vmem %s6606_s29, 2048  ;;  %p6608_p7 = scmp.lt.s32.totalorder %s801_s8, %s6606_s29 }
  0xa4   : > { %p6603_p13 = pnand %p6601_p6, %p8365_p1  ;;  %p6609_p10 = scmp.lt.s32.totalorder %s6607_s10, %s6600_s27 }
  0xa6   : > { %p6604_p3 = pneg %p6603_p13  ;;  %p6610_p11 = por %p6609_p10, %p6608_p7 }
  0xa8   : > { %p6611_p0 = pnand %p6610_p11, %p6604_p3 }
  0xaa   : > { %6614 = shalt.err (!%p6611_p0)
}
  0xab   : > { %5856 = dma.hbm_to_vmem [thread:$0]  (!%p8364_p12), %s6995_s9, 1024, %s801_s8, %s6950_s26, %s8358_s22, %s8358_s22, %s8357_s13  }
  0xac   : > { %p8366_p5 = scmp.ne.s32.totalorder %s8343_s5, 0 }
  0xae   : > { %818 = sbr.rel (%p8366_p5) target bundleno = 2138 (0x85a), region = 108 }
  0xb3   : > { %p8367_p2 = scmp.ne.s32.totalorder %s8342_s1, 0 }
  0xb5   : > { %6640 = dma.done.wait (%p8367_p2), [#allocation5], 2048  }
  0xb6   : > { %6642 = vsyncadd (%p8367_p2), [#allocation5], 4294965248 }
  0xb7   : > { %6644 = dma.done.wait (%p8367_p2), [#allocation7], 3072  }
  0xb8   : > { %6646 = vsyncadd (%p8367_p2), [#allocation7], 4294964224 }
  0xb9   : > { %6648 = dma.done.wait (%p8367_p2), [#allocation10], 32  }
  0xba   : > { %6650 = vsyncadd (%p8367_p2), [#allocation10], 4294967264 }
  0xbb   : > { %6652 = dma.done.wait (%p8367_p2), [#allocation13], 2064  }
  0xbc   : > { %6654 = vsyncadd (%p8367_p2), [#allocation13], 4294965232 }
  0xbd   : > { %6656 = dma.done.wait (%p8367_p2), [#allocation16], 16  }
  0xbe   : > { %6658 = vsyncadd (%p8367_p2), [#allocation16], 4294967280  ;;  %s8368_s9 = sadd.s32 4294967295, %s6685_s0   ;;  %s854_s25 = sand.u32 1, %s6669_s28  }
  0xbf   : > { %s852_s5 = sand.u32 1, %s8368_s9   ;;  %s4897_s24 = sshll.u32 %s854_s25, 6 }
  0xc0   : > { %s853_s3 = scalar_lea.sflag [#allocation5], %s852_s5  ;;  %s7040_s26 = scalar_lea.vmem [#allocation17], %s4897_s24 }
  0xc1   : > { %p8369_p4 = scmp.ne.s32.totalorder %s8353_s2, 0 }
  0xc3   : > { %6660 = dma.done.wait (%p8369_p4), %s853_s3, 2048  }
  0xc4   : > { %6662 = vsyncadd (%p8369_p4), %s853_s3, 4294965248  ;;  %p980_p8 = scmp.lt.s32.totalorder %s6677_s30, 1  ;;  %s8370_s16 = sld [smem:[#allocation50_spill]] }
  0xc5   : > { %s8371_s8 = sld [smem:[#allocation47_spill]]  ;;  %s7070_s5 = scalar_lea.vmem [#allocation18], %s4897_s24 }
  0xc6   : > { %s7048_s1 = scalar_select %p980_p8, %s6677_s30, 1 }
  0xc7   : > { %s8372_s10 = sld [smem:[#allocation48_spill]]  ;;  %p4900_p9 = scmp.ne.s32.totalorder %s6677_s30, 0 }
  0xc8   : > { %s5787_s13 = smul.u32 192, %s7048_s1  ;;  %s991_s6 = scalar_lea.vmem %s8283_s19, %s7048_s1 }
  0xc9   : > { %s5788_s14 = smul.u32 3, %s7048_s1  ;;  %s8373_s3 = sld [smem:[#allocation41_spill]] (!%p4900_p9) }
  0xca   : > { %s994_s2 = scalar_lea.vmem %s8370_s16, %s7048_s1  ;;  %1005 = sbr.rel (%p4900_p9) target bundleno = 809 (0x329), region = 152 }
  0xcb   : > { %s7063_s27 = scalar_lea.vmem %s8371_s8, %s5787_s13  ;;  %s8376_s23 = sld [smem:[#allocation38_spill]] (!%p4900_p9) }
  0xcc   : > { %s8377_s29 = sld [smem:[#allocation33_spill]] (!%p4900_p9) }
  0xcd   : > { %s7068_s9 = scalar_lea.vmem %s8372_s10, %s5788_s14  ;;  %s8375_s14 = sld [smem:[#allocation43_spill]] (!%p4900_p9) }
  0xce   : > { %s8379_s8 = sld [smem:[#allocation36_spill]] (!%p4900_p9) }
  0xcf   : > { %v5935_v0 = vld [vmem:[#allocation6 + $0x78] sm:$0xff]   ;;  %v5937_v2 = vld [vmem:[#allocation6 + $0x70] sm:$0xff]   ;;  %v5939_v4 = vld [vmem:[#allocation6 + $0x68] sm:$0xff]   ;;  %s8374_s13 = smov %s8373_s3  ;;  %vm1701_vm0 = vcmask 261120  }
  0xd0   : > { %v5936_v1 = vld [vmem:[#allocation6 + $0x38] sm:$0xff]   ;;  %5195 = vmatprep.subr.bf16.mxu0 %v5935_v0  ;;  %v5938_v3 = vld [vmem:[#allocation6 + $0x30] sm:$0xff]   ;;  %v5940_v5 = vld [vmem:[#allocation6 + $0x28] sm:$0xff]  }
  0xd1   : > { %5196 = vmatpush3.bf16.msra.mxu0 %v5936_v1  ;;  %v5941_v6 = vld [vmem:[#allocation6 + $0x60] sm:$0xff]   ;;  %v5943_v8 = vld [vmem:[#allocation6 + $0x58] sm:$0xff]   ;;  %v5945_v10 = vld [vmem:[#allocation6 + $0x50] sm:$0xff]  }
  0xd2   : > { %5197 = vmatprep.subr.bf16.mxu0 %v5937_v2  ;;  %v5942_v7 = vld [vmem:[#allocation6 + $0x20] sm:$0xff]   ;;  %v5944_v9 = vld [vmem:[#allocation6 + $0x18] sm:$0xff]   ;;  %v5946_v12 = vld [vmem:[#allocation6 + $0x10] sm:$0xff]   ;;  %s8378_s10 = smov %s8377_s29 }
  0xd3   : > { %v5953_v11 = vld [vmem:[#allocation4 + $0x4] ss:$8 sps:$4 sm:$0xff]   ;;  %v5951_v17 = vld [vmem:[#allocation4] ss:$8 sps:$4 sm:$0xff]   ;;  %v5954_v18 = vld [vmem:[#allocation4 + $0x14] ss:$8 sps:$4 sm:$0xff]  }
  0xd4   : > { %1269 = vmatprep.mubr.bf16.mxu0 %v5953_v11  ;;  %v5947_v13 = vld [vmem:[#allocation6 + $0x48] sm:$0xff]   ;;  %v5949_v15 = vld [vmem:[#allocation6 + $0x40] sm:$0xff]   ;;  %v5956_v19 = vld [vmem:[#allocation4 + $0x10] ss:$8 sps:$4 sm:$0xff]  }
  0xd5   : > { %5198 = vmatpush3.bf16.msra.mxu0 %v5938_v3  ;;  %v5948_v14 = vld [vmem:[#allocation6 + $0x8] sm:$0xff]   ;;  %v5950_v16 = vld [vmem:[#allocation6] sm:$0xff]   ;;  %v5960_v22 = vld [vmem:[#allocation4 + $0x34] ss:$8 sps:$4 sm:$0xff]  }
  0xd6   : > { %5199 = vmatprep.subr.bf16.mxu0 %v5939_v4  ;;  %v5957_v20 = vld [vmem:[#allocation4 + $0x24] ss:$8 sps:$4 sm:$0xff]   ;;  %v5959_v21 = vld [vmem:[#allocation4 + $0x20] ss:$8 sps:$4 sm:$0xff]   ;;  %v5962_v23 = vld [vmem:[#allocation4 + $0x30] ss:$8 sps:$4 sm:$0xff]  }
  0xd7   : > { %v5963_v24 = vld [vmem:[#allocation4 + $0x44] ss:$8 sps:$4 sm:$0xff]   ;;  %v5965_v25 = vld [vmem:[#allocation4 + $0x40] ss:$8 sps:$4 sm:$0xff]   ;;  %v5966_v26 = vld [vmem:[#allocation4 + $0x54] ss:$8 sps:$4 sm:$0xff]  }
  0xd8   : > { %v5968_v27 = vld [vmem:[#allocation4 + $0x50] ss:$8 sps:$4 sm:$0xff]   ;;  %v5969_v28 = vld [vmem:[#allocation4 + $0x64] ss:$8 sps:$4 sm:$0xff]   ;;  %v5971_v29 = vld [vmem:[#allocation4 + $0x60] ss:$8 sps:$4 sm:$0xff]  }
  0xd9   : > { %5200 = vmatpush3.bf16.msra.mxu0 %v5940_v5  ;;  %v5972_v30 = vld [vmem:[#allocation4 + $0x74] ss:$8 sps:$4 sm:$0xff]   ;;  %v5974_v31 = vld [vmem:[#allocation4 + $0x70] ss:$8 sps:$4 sm:$0xff]   ;;  %v5977_v34 = vld [vmem:[#allocation8 + $0x28] sm:$0xff]  }
  0xda   : > { %5201 = vmatprep.subr.bf16.mxu0 %v5941_v6  ;;  %v5975_v32 = vld [vmem:[#allocation8 + $0x38] sm:$0xff]   ;;  %v5976_v33 = vld [vmem:[#allocation8 + $0x30] sm:$0xff]   ;;  %v5978_v35 = vld [vmem:[#allocation8 + $0x20] sm:$0xff]  }
  0xdb   : > { %5423 = vmatprep.subr.bf16.mxu1 %v5975_v32  ;;  %v5979_v36 = vld [vmem:[#allocation8 + $0x18] sm:$0xff]   ;;  %v5980_v37 = vld [vmem:[#allocation8 + $0x10] sm:$0xff]   ;;  %v5981_v38 = vld [vmem:[#allocation8 + $0x8] sm:$0xff]  }
  0xdc   : > { %5424 = vmatpush3.bf16.msra.mxu1 %v5975_v32  ;;  %v5982_v39 = vld [vmem:[#allocation8] sm:$0xff]   ;;  %v7076_v40 = vld [vmem:[%s8373_s3 + $0x8] sm:$0xff]   ;;  %v5999_v1 = vld [vmem:[%s8378_s10 + $0x10] sm:$0xff]  }
  0xdd   : > { %5202 = vmatpush3.bf16.msra.mxu0 %v5942_v7  ;;  %5425 = vmatprep.subr.bf16.mxu1 %v5976_v33  ;;  %v7081_v41 = vld [vmem:[%s8375_s14 + $0x8] sm:$0xff]   ;;  %v7089_v43 = vld [vmem:[%s8375_s14] sm:$0xff]   ;;  %v6001_v3 = vld [vmem:[%s8378_s10 + $0x18] sm:$0xff]  }
  0xde   : > { %5203 = vmatprep.subr.bf16.mxu0 %v5943_v8  ;;  %v7094_v44 = vld [vmem:[%s8376_s23] ss:$0 sm:$0xff]  ;;  %v5997_v55 = vld [vmem:[%s8378_s10 + $0x8] sm:$0xff]  }
  0xdf   : > { %v5995_v53 = vld [vmem:[%s8377_s29] sm:$0xff]  }
  0xe0   : > { %5426 = vmatpush3.bf16.msra.mxu1 %v5976_v33 }
  0xe1   : > { %5204 = vmatpush3.bf16.msra.mxu0 %v5944_v9  ;;  %5427 = vmatprep.subr.bf16.mxu1 %v5977_v34 }
  0xe2   : > { %5205 = vmatprep.subr.bf16.mxu0 %v5945_v10 }
  0xe4   : > { %5428 = vmatpush3.bf16.msra.mxu1 %v5977_v34 }
  0xe5   : > { %5206 = vmatpush3.bf16.msra.mxu0 %v5946_v12  ;;  %5429 = vmatprep.subr.bf16.mxu1 %v5978_v35 }
  0xe6   : > { %5207 = vmatprep.subr.bf16.mxu0 %v5947_v13 }
  0xe8   : > { %5430 = vmatpush3.bf16.msra.mxu1 %v5978_v35 }
  0xe9   : > { %5208 = vmatpush3.bf16.msra.mxu0 %v5948_v14  ;;  %5431 = vmatprep.subr.bf16.mxu1 %v5979_v36 }
  0xea   : > { %5209 = vmatprep.subr.bf16.mxu0 %v5949_v15 }
  0xec   : > { %5432 = vmatpush3.bf16.msra.mxu1 %v5979_v36 }
  0xed   : > { %5210 = vmatpush3.bf16.msra.mxu0 %v5950_v16  ;;  %5433 = vmatprep.subr.bf16.mxu1 %v5980_v37 }
  0xee   : > { %5475 = vmatprep.subr.bf16.mxu0 %v7081_v41 }
  0xf0   : > { %1270 = vmatmul.mubr.bf16.vlgmr.msra.gmra.mxu0 %v5951_v17  ;;  %5434 = vmatpush3.bf16.msra.mxu1 %v5980_v37 }
  0xf1   : > { %1277 = vmatprep.mubr.bf16.mxu0 %v5954_v18  ;;  %5435 = vmatprep.subr.bf16.mxu1 %v5981_v38 }
  0xf2   : > { %5476 = vmatpush3.bf16.msra.mxu0 %v7081_v41 }
  0xf3   : > { %5477 = vmatprep.subr.bf16.mxu0 %v7089_v43 }
  0xf4   : > { %5436 = vmatpush3.bf16.msra.mxu1 %v5981_v38 }
  0xf5   : > { %5437 = vmatprep.subr.bf16.mxu1 %v5982_v39 }
  0xf6   : > { %5478 = vmatpush3.bf16.msra.mxu0 %v7089_v43 }
  0xf8   : > { %1278 = vmatmul.mubr.bf16.gmra.mxu0 %v5956_v19  ;;  %5438 = vmatpush3.bf16.msra.mxu1 %v5982_v39 }
  0xf9   : > { %1285 = vmatprep.mubr.bf16.mxu0 %v5957_v20  ;;  %5455 = vmatprep.subr.bf16.mxu1 %v7076_v40 }
 0x100   : > { %1286 = vmatmul.mubr.bf16.gmra.mxu0 %v5959_v21 }
 0x101   : > { %1293 = vmatprep.mubr.bf16.mxu0 %v5960_v22 }
 0x108   : > { %1294 = vmatmul.mubr.bf16.gmra.mxu0 %v5962_v23 }
 0x109   : > { %1301 = vmatprep.mubr.bf16.mxu0 %v5963_v24 }
 0x110   : > { %1302 = vmatmul.mubr.bf16.gmra.mxu0 %v5965_v25 }
 0x111   : > { %1309 = vmatprep.mubr.bf16.mxu0 %v5966_v26 }
 0x118   : > { %1310 = vmatmul.mubr.bf16.gmra.mxu0 %v5968_v27 }
 0x119   : > { %1317 = vmatprep.mubr.bf16.mxu0 %v5969_v28 }
 0x120   : > { %1318 = vmatmul.mubr.bf16.gmra.mxu0 %v5971_v29 }
 0x121   : > { %1325 = vmatprep.mubr.bf16.mxu0 %v5972_v30 }
 0x128   : > { %1326 = vmatmul.mubr.bf16.gmra.mxu0 %v5974_v31 }
 0x129   : > { %5479 = vmatprep.mubr.msk.bf16.mxu0 %vm1701_vm0, %v5995_v53 }
 0x130   : > { %5480 = vmatmul.mubr.msk.bf16.vlgmr.msra.gmra.mxu0 %vm1701_vm0, %v5997_v55 }
 0x131   : > { %5483 = vmatprep.mubr.msk.bf16.mxu0 %vm1701_vm0, %v5999_v1 }
 0x138   : > { %5484 = vmatmul.mubr.msk.bf16.gmra.mxu0 %vm1701_vm0, %v6001_v3 }
 0x1b0   : > { %v5211_v42 = vpop.f32.mrf.mxu0 }
 0x1b2   : > { %v5212_v45 = vpop.f32.mrf.mxu0 }
 0x1b3   : > { %v5213_v46 = vadd.f32 %v5212_v45, %v5211_v42 }
 0x1b4   : > { %v5214_v47 = vpop.f32.mrf.mxu0 }
 0x1b5   : > { %v7099_v48 = vadd.f32 %v5213_v46, %v7094_v44 }
 0x1b6   : > { %v5215_v49 = vpop.f32.mrf.mxu0 }
 0x1b7   : > { %v4934_v50 = vmul.f32 -1.442695, %v7099_v48  ;;  %v5216_v51 = vadd.f32 %v5215_v49, %v5214_v47 }
 0x1b8   : > { %v5217_v52 = vpop.f32.mrf.mxu0 }
 0x1b9   : > { %6003 = vpow2.f32 %v4934_v50  ;;  %v7106_v54 = vadd.f32 %v5216_v51, %v7094_v44 }
 0x1ba   : > { %v5218_v56 = vpop.f32.mrf.mxu0 }
 0x1bb   : > { %v4935_v57 = vmul.f32 -1.442695, %v7106_v54  ;;  %v5219_v58 = vadd.f32 %v5218_v56, %v5217_v52 }
 0x1bc   : > { %v5220_v59 = vpop.f32.mrf.mxu0 }
 0x1bd   : > { %6005 = vpow2.f32 %v4935_v57  ;;  %v7115_v60 = vadd.f32 %v5219_v58, %v7094_v44 }
 0x1be   : > { %v5221_v61 = vpop.f32.mrf.mxu0 }
 0x1bf   : > { %v4936_v62 = vmul.f32 -1.442695, %v7115_v60  ;;  %v5222_v63 = vadd.f32 %v5221_v61, %v5220_v59 }
 0x1c0   : > { %v5223_v0 = vpop.f32.mrf.mxu0 }
 0x1c1   : > { %6007 = vpow2.f32 %v4936_v62  ;;  %v7122_v2 = vadd.f32 %v5222_v63, %v7094_v44 }
 0x1c2   : > { %v5224_v4 = vpop.f32.mrf.mxu0 }
 0x1c3   : > { %v4937_v5 = vmul.f32 -1.442695, %v7122_v2  ;;  %v5225_v6 = vadd.f32 %v5224_v4, %v5223_v0 }
 0x1c4   : > { %v5226_v7 = vpop.f32.mrf.mxu0 }
 0x1c5   : > { %6009 = vpow2.f32 %v4937_v5  ;;  %v7131_v8 = vadd.f32 %v5225_v6, %v7094_v44 }
 0x1c6   : > { %v6004_v9 = vpop.eup %6003  ;;  %v5227_v10 = vpop.f32.mrf.mxu0 }
 0x1c7   : > { %v1382_v11 = vadd.f32 1.0, %v6004_v9  ;;  %v4938_v12 = vmul.f32 -1.442695, %v7131_v8  ;;  %v5228_v13 = vadd.f32 %v5227_v10, %v5226_v7 }
 0x1c8   : > { %v5229_v14 = vpop.f32.mrf.mxu0 }
 0x1c9   : > { %v7135_v15 = vadd.f32 %v5228_v13, %v7094_v44  ;;  %6011 = vpow2.f32 %v4938_v12 }
 0x1ca   : > { %v6006_v16 = vpop.eup %6005  ;;  %v5230_v17 = vpop.f32.mrf.mxu0  ;;  %6013 = vrcp.f32 %v1382_v11 }
 0x1cb   : > { %v1383_v18 = vadd.f32 1.0, %v6006_v16  ;;  %v4939_v19 = vmul.f32 -1.442695, %v7135_v15  ;;  %v5231_v20 = vadd.f32 %v5230_v17, %v5229_v14 }
 0x1cc   : > { %v5232_v21 = vpop.f32.mrf.mxu0 }
 0x1cd   : > { %6015 = vrcp.f32 %v1383_v18  ;;  %v7139_v22 = vadd.f32 %v5231_v20, %v7094_v44 }
 0x1ce   : > { %v6008_v23 = vpop.eup %6007  ;;  %6017 = vpow2.f32 %v4939_v19  ;;  %v5233_v24 = vpop.f32.mrf.mxu0  ;;  %v5984_v19 = vld [vmem:[%s8374_s13] sm:$0xff]  }
 0x1cf   : > { %v1384_v25 = vadd.f32 1.0, %v6008_v23  ;;  %v4940_v26 = vmul.f32 -1.442695, %v7139_v22  ;;  %v5234_v27 = vadd.f32 %v5233_v24, %v5232_v21 }
 0x1d0   : > { %v5235_v28 = vpop.f32.mrf.mxu0 }
 0x1d1   : > { %v7143_v29 = vadd.f32 %v5234_v27, %v7094_v44  ;;  %6019 = vpow2.f32 %v4940_v26 }
 0x1d2   : > { %v6010_v30 = vpop.eup %6009  ;;  %v5236_v31 = vpop.f32.mrf.mxu0  ;;  %6021 = vrcp.f32 %v1384_v25 }
 0x1d3   : > { %v1385_v32 = vadd.f32 1.0, %v6010_v30  ;;  %v4941_v33 = vmul.f32 -1.442695, %v7143_v29  ;;  %v5237_v34 = vadd.f32 %v5236_v31, %v5235_v28 }
 0x1d4   : > { %v5238_v35 = vpop.f32.mrf.mxu0 }
 0x1d5   : > { %6023 = vrcp.f32 %v1385_v32  ;;  %v7147_v36 = vadd.f32 %v5237_v34, %v7094_v44 }
 0x1d6   : > { %6025 = vpow2.f32 %v4941_v33  ;;  %v5239_v37 = vpop.f32.mrf.mxu0  ;;  %v6012_v38 = vpop.eup %6011 }
 0x1d7   : > { %v4942_v39 = vmul.f32 -1.442695, %v7147_v36  ;;  %v5240_v42 = vadd.f32 %v5239_v37, %v5238_v35  ;;  %v6014_v45 = vpop.eup %6013  ;;  %v1386_v46 = vadd.f32 1.0, %v6012_v38 }
 0x1d8   : > { %v5241_v47 = vpop.f32.mrf.mxu0  ;;  %v1430_v56 = vmul.f32 %v6014_v45, %v7099_v48 }
 0x1d9   : > { %6027 = vpow2.f32 %v4942_v39  ;;  %v7151_v49 = vadd.f32 %v5240_v42, %v7094_v44 }
 0x1da   : > { %v6016_v50 = vpop.eup %6015  ;;  %v5242_v51 = vpop.f32.mrf.mxu0  ;;  %6029 = vrcp.f32 %v1386_v46 }
 0x1db   : > { %v6018_v52 = vpop.eup %6017  ;;  %v4943_v53 = vmul.f32 -1.442695, %v7151_v49  ;;  %v5243_v55 = vadd.f32 %v5242_v51, %v5241_v47  ;;  %v1431_v57 = vmul.f32 %v6016_v50, %v7106_v54 }
 0x1dc   : > { %v1387_v58 = vadd.f32 1.0, %v6018_v52  ;;  %v5244_v59 = vpop.f32.mrf.mxu0 }
 0x1dd   : > { %6031 = vpow2.f32 %v4943_v53  ;;  %v7157_v61 = vadd.f32 %v5243_v55, %v7094_v44  ;;  %v1463_v62 = vpack.c.bf16 %v1431_v57, %v1430_v56 }
 0x1de   : > { %6033 = vrcp.f32 %v1387_v58  ;;  %v5245_v63 = vpop.f32.mrf.mxu0  ;;  %v6020_v0 = vpop.eup %6019 }
 0x1df   : > { %v4944_v1 = vmul.f32 -1.442695, %v7157_v61  ;;  %v5246_v3 = vadd.f32 %v5245_v63, %v5244_v59  ;;  %5439 = vmatprep.mubr.bf16.mxu1 %v1463_v62  ;;  %v6022_v4 = vpop.eup %6021  ;;  %v1388_v5 = vadd.f32 1.0, %v6020_v0 }
 0x1e0   : > { %v5247_v48 = vpop.f32.mrf.mxu0  ;;  %v1432_v10 = vmul.f32 %v6022_v4, %v7115_v60 }
 0x1e1   : > { %6035 = vpow2.f32 %v4944_v1  ;;  %v7161_v54 = vadd.f32 %v5246_v3, %v7094_v44 }
 0x1e2   : > { %v6024_v6 = vpop.eup %6023  ;;  %v5248_v7 = vpop.f32.mrf.mxu0  ;;  %6037 = vrcp.f32 %v1388_v5 }
 0x1e3   : > { %v6026_v9 = vpop.eup %6025  ;;  %v1433_v11 = vmul.f32 %v6024_v6, %v7122_v2  ;;  %v4945_v12 = vmul.f32 -1.442695, %v7161_v54  ;;  %v5249_v13 = vadd.f32 %v5248_v7, %v5247_v48 }
 0x1e4   : > { %v1389_v14 = vadd.f32 1.0, %v6026_v9  ;;  %v5250_v16 = vpop.f32.mrf.mxu0 }
 0x1e5   : > { %6039 = vpow2.f32 %v4945_v12  ;;  %v7167_v17 = vadd.f32 %v5249_v13, %v7094_v44  ;;  %v1464_v18 = vpack.c.bf16 %v1433_v11, %v1432_v10 }
 0x1e6   : > { %v6028_v20 = vpop.eup %6027  ;;  %6041 = vrcp.f32 %v1389_v14  ;;  %v5251_v60 = vpop.f32.mrf.mxu0 }
 0x1e7   : > { %v1390_v21 = vadd.f32 1.0, %v6028_v20  ;;  %v4946_v2 = vmul.f32 -1.442695, %v7167_v17  ;;  %v5252_v23 = vadd.f32 %v5251_v60, %v5250_v16  ;;  %5440 = vmatmul.mubr.bf16.vlgmr.msra.gmra.mxu1 %v1464_v18  ;;  %v6030_v25 = vpop.eup %6029  ;;  %v5988_v60 = vld [vmem:[%s8379_s8 + $0x10] sm:$0xff]  }
 0x1e8   : > { %v5253_v24 = vpop.f32.mrf.mxu0  ;;  %5456 = vmatpush3.bf16.msra.mxu1 %v7076_v40  ;;  %v1434_v34 = vmul.f32 %v6030_v25, %v7131_v8  ;;  %v5998_v25 = vld [vmem:[%s8378_s10 + $0x28] sm:$0xff]  }
 0x1e9   : > { %v7175_v26 = vadd.f32 %v5252_v23, %v7094_v44  ;;  %5457 = vmatprep.subr.bf16.mxu1 %v5984_v19  ;;  %6043 = vpow2.f32 %v4946_v2  ;;  %v5990_v2 = vld [vmem:[%s8379_s8 + $0x20] sm:$0xff]   ;;  %v5993_v23 = vld [vmem:[%s8379_s8 + $0x30] sm:$0xff]  }
 0x1ea   : > { %v6032_v27 = vpop.eup %6031  ;;  %v5254_v28 = vpop.f32.mrf.mxu0  ;;  %6045 = vrcp.f32 %v1390_v21  ;;  %v5989_v21 = vld [vmem:[%s8379_s8 + $0x18] sm:$0xff]  }
 0x1eb   : > { %v6034_v30 = vpop.eup %6033  ;;  %v1391_v31 = vadd.f32 1.0, %v6032_v27  ;;  %v4947_v32 = vmul.f32 -1.442695, %v7175_v26  ;;  %v5255_v33 = vadd.f32 %v5254_v28, %v5253_v24  ;;  %v5996_v24 = vld [vmem:[%s8378_s10 + $0x20] sm:$0xff]   ;;  %v6002_v27 = vld [vmem:[%s8378_s10 + $0x38] sm:$0xff]  }
 0x1ec   : > { %v1435_v35 = vmul.f32 %v6034_v30, %v7135_v15  ;;  %v5256_v37 = vpop.f32.mrf.mxu0  ;;  %5458 = vmatpush3.bf16.msra.mxu1 %v5984_v19 }
 0x1ed   : > { %6047 = vrcp.f32 %v1391_v31  ;;  %v1328_v40 = vadd.f32 %v5255_v33, %v7094_v44  ;;  %5751 = vmatprep.subr.bf16.mxu1 %v7081_v41 }
 0x1ee   : > { %v6036_v38 = vpop.eup %6035  ;;  %6049 = vpow2.f32 %v4947_v32  ;;  %v5257_v39 = vpop.f32.mrf.mxu0  ;;  %v1465_v42 = vpack.c.bf16 %v1435_v35, %v1434_v34  ;;  %v7242_v32 = vld [vmem:[#allocation12] ss:$0 sm:$0xff] }
 0x1ef   : > { %v1392_v45 = vadd.f32 1.0, %v6036_v38  ;;  %v4948_v46 = vmul.f32 -1.442695, %v1328_v40  ;;  %v5258_v47 = vadd.f32 %v5257_v39, %v5256_v37  ;;  %v6038_v50 = vpop.eup %6037 }
 0x1f0   : > { %5443 = vmatprep.mubr.bf16.mxu1 %v1465_v42  ;;  %v1436_v55 = vmul.f32 %v6038_v50, %v7139_v22  ;;  %v5481_v28 = vpop.f32.mrf.mxu0 }
 0x1f1   : > { %v1331_v8 = vadd.f32 %v5258_v47, %v7094_v44  ;;  %6051 = vpow2.f32 %v4948_v46  ;;  %v2177_v34 = vadd.f32 %v5481_v28, %v7242_v32 }
 0x1f2   : > { %v6040_v51 = vpop.eup %6039  ;;  %6053 = vrcp.f32 %v1392_v45  ;;  %v2168_v30 = vpop.f32.mrf.mxu0 }
 0x1f3   : > { %v6042_v15 = vpop.eup %6041  ;;  %v1393_v52 = vadd.f32 1.0, %v6040_v51  ;;  %v4949_v53 = vmul.f32 -1.442695, %v1331_v8  ;;  %v2169_v35 = vadd.f32 %v7242_v32, %v2168_v30  ;;  %2233 = vst [vmem:[#allocation2 + $0x58] sm:$0xff] %v2177_v34 }
 0x1f4   : > { %v1437_v56 = vmul.f32 %v6042_v15, %v7143_v29  ;;  %v5482_v31 = vpop.f32.mrf.mxu0 }
 0x1f5   : > { %6055 = vrcp.f32 %v1393_v52  ;;  %v2180_v37 = vadd.f32 %v5482_v31, %v7242_v32  ;;  %2231 = vst [vmem:[#allocation2 + $0x30] sm:$0xff] %v2169_v35 }
 0x1f6   : > { %6057 = vpow2.f32 %v4949_v53  ;;  %v1466_v57 = vpack.c.bf16 %v1437_v56, %v1436_v55  ;;  %v6044_v58 = vpop.eup %6043  ;;  %v2171_v33 = vpop.f32.mrf.mxu0 }
 0x1f7   : > { %v6046_v59 = vpop.eup %6045  ;;  %v1394_v62 = vadd.f32 1.0, %v6044_v58  ;;  %2234 = vst [vmem:[#allocation2 + $0x18] sm:$0xff] %v2180_v37 }
 0x1f8   : > { %5444 = vmatmul.mubr.bf16.gmra.mxu1 %v1466_v57  ;;  %v1438_v44 = vmul.f32 %v6046_v59, %v7147_v36  ;;  %v5485_v38 = vpop.f32.mrf.mxu0 }
 0x1f9   : > { %6059 = vrcp.f32 %v1394_v62  ;;  %v2193_v46 = vadd.f32 %v5485_v38, %v7242_v32 }
 0x1fa   : > { %v6048_v63 = vpop.eup %6047  ;;  %v2184_v39 = vpop.f32.mrf.mxu0 }
 0x1fb   : > { %v6050_v0 = vpop.eup %6049  ;;  %v1439_v1 = vmul.f32 %v6048_v63, %v7151_v49  ;;  %v2185_v47 = vadd.f32 %v7242_v32, %v2184_v39  ;;  %2237 = vst [vmem:[#allocation2 + $0x8] sm:$0xff] %v2193_v46 }
 0x1fc   : > { %v1395_v3 = vadd.f32 1.0, %v6050_v0  ;;  %v5486_v42 = vpop.f32.mrf.mxu0 }
 0x1fd   : > { %v1467_v4 = vpack.c.bf16 %v1439_v1, %v1438_v44  ;;  %v2196_v50 = vadd.f32 %v5486_v42, %v7242_v32  ;;  %2235 = vst [vmem:[#allocation2 + $0x50] sm:$0xff] %v2185_v47 }
 0x1fe   : > { %6061 = vrcp.f32 %v1395_v3  ;;  %v6052_v22 = vpop.eup %6051  ;;  %v2187_v45 = vpop.f32.mrf.mxu0 }
 0x1ff   : > { %5447 = vmatprep.mubr.bf16.mxu1 %v1467_v4  ;;  %v6054_v29 = vpop.eup %6053  ;;  %v1396_v5 = vadd.f32 1.0, %v6052_v22  ;;  %2238 = vst [vmem:[#allocation2 + $0x48] sm:$0xff] %v2196_v50  ;;  %v7262_v4 = vld [vmem:[#allocation9] ss:$0 sm:$0xff] }
 0x200   : > { %v1440_v7 = vmul.f32 %v6054_v29, %v7157_v61  ;;  %v5986_v61 = vld [vmem:[%s8379_s8] sm:$0xff]  }
 0x201   : > { %6063 = vrcp.f32 %v1396_v5  ;;  %v7266_v29 = vld [vmem:[#allocation11] ss:$0 sm:$0xff] }
 0x202   : > { %v6056_v48 = vpop.eup %6055 }
 0x203   : > { %v6058_v6 = vpop.eup %6057  ;;  %v1441_v9 = vmul.f32 %v6056_v48, %v7161_v54 }
 0x204   : > { %v1397_v10 = vadd.f32 1.0, %v6058_v6 }
 0x205   : > { %v1468_v11 = vpack.c.bf16 %v1441_v9, %v1440_v7 }
 0x206   : > { %6065 = vrcp.f32 %v1397_v10  ;;  %v6060_v36 = vpop.eup %6059 }
 0x207   : > { %5448 = vmatmul.mubr.bf16.gmra.mxu1 %v1468_v11  ;;  %v1442_v12 = vmul.f32 %v6060_v36, %v7167_v17  ;;  %v5987_v17 = vld [vmem:[%s8379_s8 + $0x8] sm:$0xff]  }
 0x20b   : > { %v6062_v49 = vpop.eup %6061 }
 0x20c   : > { %v1443_v13 = vmul.f32 %v6062_v49, %v7175_v26  ;;  %v6000_v26 = vld [vmem:[%s8378_s10 + $0x30] sm:$0xff]  }
 0x20e   : > { %v1469_v14 = vpack.c.bf16 %v1443_v13, %v1442_v12  ;;  %v6064_v16 = vpop.eup %6063 }
 0x20f   : > { %v1444_v19 = vmul.f32 %v6064_v16, %v1328_v40  ;;  %v2172_v40 = vadd.f32 %v7242_v32, %v2171_v33 }
 0x210   : > { %5451 = vmatprep.mubr.bf16.mxu1 %v1469_v14 }
 0x211   : > { %2232 = vst [vmem:[#allocation2] sm:$0xff] %v2172_v40 }
 0x213   : > { %v6066_v18 = vpop.eup %6065 }
 0x214   : > { %v1445_v20 = vmul.f32 %v6066_v18, %v1331_v8  ;;  %v2188_v8 = vadd.f32 %v7242_v32, %v2187_v45 }
 0x216   : > { %v1470_v54 = vpack.c.bf16 %v1445_v20, %v1444_v19  ;;  %2236 = vst [vmem:[#allocation2 + $0x68] sm:$0xff] %v2188_v8 }
 0x218   : > { %5452 = vmatmul.mubr.bf16.gmra.mxu1 %v1470_v54 }
 0x219   : > { %5459 = vmatprep.mubr.msk.bf16.mxu1 %vm1701_vm0, %v5986_v61 }
 0x220   : > { %5460 = vmatmul.mubr.msk.bf16.vlgmr.msra.gmra.mxu1 %vm1701_vm0, %v5987_v17 }
 0x221   : > { %5463 = vmatprep.mubr.msk.bf16.mxu1 %vm1701_vm0, %v5988_v60  ;;  %5753 = vmatpush3.bf16.msra.mxu1 %v7081_v41  ;;  %v5991_v41 = vld [vmem:[%s8379_s8 + $0x28] sm:$0xff]  }
 0x222   : > { %5752 = vmatprep.subr.bf16.mxu1 %v7089_v43 }
 0x225   : > { %5754 = vmatpush3.bf16.msra.mxu1 %v7089_v43  ;;  %v5994_v43 = vld [vmem:[%s8379_s8 + $0x38] sm:$0xff]  }
 0x228   : > { %5464 = vmatmul.mubr.msk.bf16.gmra.mxu1 %vm1701_vm0, %v5989_v21 }
 0x229   : > { %5467 = vmatprep.mubr.msk.bf16.mxu1 %vm1701_vm0, %v5990_v2 }
 0x230   : > { %5468 = vmatmul.mubr.msk.bf16.gmra.mxu1 %vm1701_vm0, %v5991_v41 }
 0x231   : > { %5471 = vmatprep.mubr.msk.bf16.mxu1 %vm1701_vm0, %v5993_v23 }
 0x238   : > { %5472 = vmatmul.mubr.msk.bf16.gmra.mxu1 %vm1701_vm0, %v5994_v43 }
 0x239   : > { %5487 = vmatprep.mubr.msk.bf16.mxu1 %vm1701_vm0, %v5996_v24 }
 0x240   : > { %5488 = vmatmul.mubr.msk.bf16.vlgmr.msra.gmra.mxu1 %vm1701_vm0, %v5998_v25 }
 0x241   : > { %5491 = vmatprep.mubr.msk.bf16.mxu1 %vm1701_vm0, %v6000_v26 }
 0x248   : > { %5492 = vmatmul.mubr.msk.bf16.gmra.mxu1 %vm1701_vm0, %v6002_v27 }
 0x2a7   : > { %v5441_v51 = vpop.f32.mrf.mxu1 }
 0x2a8   : > { %v1568_v48 = vadd.f32 %v5441_v51, %v7262_v4 }
 0x2a9   : > { %v1559_v15 = vpop.f32.mrf.mxu1 }
 0x2aa   : > { %v1560_v9 = vadd.f32 %v7262_v4, %v1559_v15 }
 0x2ab   : > { %v5442_v52 = vpop.f32.mrf.mxu1 }
 0x2ac   : > { %v1571_v49 = vadd.f32 %v5442_v52, %v7262_v4 }
 0x2ad   : > { %v1562_v53 = vpop.f32.mrf.mxu1 }
 0x2ae   : > { %v1563_v16 = vadd.f32 %v7262_v4, %v1562_v53 }
 0x2b8   : > { %v5445_v55 = vpop.f32.mrf.mxu1 }
 0x2b9   : > { %v1584_v54 = vadd.f32 %v5445_v55, %v7262_v4 }
 0x2ba   : > { %v1575_v56 = vpop.f32.mrf.mxu1 }
 0x2bb   : > { %v1576_v41 = vadd.f32 %v7262_v4, %v1575_v56 }
 0x2bc   : > { %v5446_v57 = vpop.f32.mrf.mxu1 }
 0x2bd   : > { %v1587_v26 = vadd.f32 %v5446_v57, %v7262_v4 }
 0x2be   : > { %v1578_v58 = vpop.f32.mrf.mxu1 }
 0x2bf   : > { %v1579_v33 = vadd.f32 %v7262_v4, %v1578_v58 }
 0x2c7   : > { %v5449_v59 = vpop.f32.mrf.mxu1 }
 0x2c8   : > { %v1600_v38 = vadd.f32 %v5449_v59, %v7262_v4 }
 0x2c9   : > { %v1591_v62 = vpop.f32.mrf.mxu1 }
 0x2ca   : > { %v1592_v47 = vadd.f32 %v7262_v4, %v1591_v62 }
 0x2cb   : > { %v7252_v63 = vpop.f32.mrf.mxu1 }
 0x2cc   : > { %v1603_v59 = vadd.f32 %v7252_v63, %v7262_v4 }
 0x2cd   : > { %v7254_v0 = vpop.f32.mrf.mxu1 }
 0x2ce   : > { %v1595_v62 = vadd.f32 %v7262_v4, %v7254_v0 }
 0x2d8   : > { %v7256_v44 = vpop.f32.mrf.mxu1 }
 0x2da   : > { %v7258_v1 = vpop.f32.mrf.mxu1 }
 0x2dc   : > { %v7260_v3 = vpop.f32.mrf.mxu1 }
 0x2de   : > { %v7264_v22 = vpop.f32.mrf.mxu1 }
 0x2e0   : > { %v5461_v5 = vpop.f32.mrf.mxu1 }
 0x2e1   : > { %v1769_v6 = vadd.f32 %v5461_v5, %v7266_v29 }
 0x2e2   : > { %v1760_v7 = vpop.f32.mrf.mxu1 }
 0x2e3   : > { %v7271_v10 = vadd.f32 %v1769_v6, %v1568_v48  ;;  %v1761_v11 = vadd.f32 %v7266_v29, %v1760_v7 }
 0x2e4   : > { %v5462_v36 = vpop.f32.mrf.mxu1 }
 0x2e5   : > { %v4980_v12 = vmul.f32 -1.442695, %v7271_v10  ;;  %v7276_v13 = vadd.f32 %v1761_v11, %v1560_v9  ;;  %v1772_v14 = vadd.f32 %v5462_v36, %v7266_v29  ;;  %v1616_v36 = vadd.f32 %v7256_v44, %v7262_v4 }
 0x2e6   : > { %v1763_v18 = vpop.f32.mrf.mxu1 }
 0x2e7   : > { %6067 = vpow2.f32 %v4980_v12  ;;  %v4978_v19 = vmul.f32 -1.442695, %v7276_v13  ;;  %v7281_v20 = vadd.f32 %v1772_v14, %v1571_v49  ;;  %v1764_v61 = vadd.f32 %v7266_v29, %v1763_v18 }
 0x2e8   : > { %v5465_v17 = vpop.f32.mrf.mxu1 }
 0x2e9   : > { %6069 = vpow2.f32 %v4978_v19  ;;  %v4981_v60 = vmul.f32 -1.442695, %v7281_v20  ;;  %v7286_v21 = vadd.f32 %v1764_v61, %v1563_v16  ;;  %v1785_v2 = vadd.f32 %v5465_v17, %v7266_v29 }
 0x2ea   : > { %v1776_v23 = vpop.f32.mrf.mxu1 }
 0x2eb   : > { %6071 = vpow2.f32 %v4981_v60  ;;  %v4979_v43 = vmul.f32 -1.442695, %v7286_v21  ;;  %v7291_v24 = vadd.f32 %v1785_v2, %v1584_v54  ;;  %v1777_v25 = vadd.f32 %v7266_v29, %v1776_v23 }
 0x2ec   : > { %v5466_v27 = vpop.f32.mrf.mxu1  ;;  %v1608_v60 = vadd.f32 %v7262_v4, %v7258_v1  ;;  %v1619_v2 = vadd.f32 %v7260_v3, %v7262_v4 }
 0x2ed   : > { %6073 = vpow2.f32 %v4979_v43  ;;  %v4984_v28 = vmul.f32 -1.442695, %v7291_v24  ;;  %v7296_v30 = vadd.f32 %v1777_v25, %v1576_v41  ;;  %v1788_v31 = vadd.f32 %v5466_v27, %v7266_v29 }
 0x2ee   : > { %v1779_v34 = vpop.f32.mrf.mxu1 }
 0x2ef   : > { %6075 = vpow2.f32 %v4984_v28  ;;  %v4982_v35 = vmul.f32 -1.442695, %v7296_v30  ;;  %v7301_v37 = vadd.f32 %v1788_v31, %v1587_v26  ;;  %v1780_v40 = vadd.f32 %v7266_v29, %v1779_v34 }
 0x2f0   : > { %v5469_v39 = vpop.f32.mrf.mxu1  ;;  %v1611_v28 = vadd.f32 %v7262_v4, %v7264_v22 }
 0x2f1   : > { %6077 = vpow2.f32 %v4982_v35  ;;  %v4985_v42 = vmul.f32 -1.442695, %v7301_v37  ;;  %v7306_v45 = vadd.f32 %v1780_v40, %v1579_v33  ;;  %v1801_v46 = vadd.f32 %v5469_v39, %v7266_v29 }
 0x2f2   : > { %v1792_v50 = vpop.f32.mrf.mxu1 }
 0x2f3   : > { %6079 = vpow2.f32 %v4985_v42  ;;  %v4983_v8 = vmul.f32 -1.442695, %v7306_v45  ;;  %v7311_v51 = vadd.f32 %v1801_v46, %v1600_v38  ;;  %v1793_v15 = vadd.f32 %v7266_v29, %v1792_v50 }
 0x2f4   : > { %v6068_v52 = vpop.eup %6067  ;;  %v5470_v53 = vpop.f32.mrf.mxu1 }
 0x2f5   : > { %v1889_v55 = vadd.f32 1.0, %v6068_v52  ;;  %6081 = vpow2.f32 %v4983_v8  ;;  %v4988_v56 = vmul.f32 -1.442695, %v7311_v51  ;;  %v7315_v57 = vadd.f32 %v1793_v15, %v1592_v47 }
 0x2f6   : > { %v6070_v58 = vpop.eup %6069  ;;  %v1804_v5 = vadd.f32 %v5470_v53, %v7266_v29  ;;  %v1795_v48 = vpop.f32.mrf.mxu1 }
 0x2f7   : > { %6083 = vrcp.f32 %v1889_v55  ;;  %v1887_v6 = vadd.f32 1.0, %v6070_v58  ;;  %v4986_v7 = vmul.f32 -1.442695, %v7315_v57  ;;  %v1796_v9 = vadd.f32 %v7266_v29, %v1795_v48 }
 0x2f8   : > { %v6072_v11 = vpop.eup %6071  ;;  %6085 = vpow2.f32 %v4988_v56  ;;  %v7326_v49 = vadd.f32 %v1804_v5, %v1603_v59  ;;  %v5473_v63 = vpop.f32.mrf.mxu1 }
 0x2f9   : > { %6087 = vrcp.f32 %v1887_v6  ;;  %v1890_v12 = vadd.f32 1.0, %v6072_v11  ;;  %v7328_v0 = vadd.f32 %v1796_v9, %v1595_v62  ;;  %v1817_v14 = vadd.f32 %v5473_v63, %v7266_v29 }
 0x2fa   : > { %v6074_v16 = vpop.eup %6073  ;;  %6089 = vpow2.f32 %v4986_v7  ;;  %v4989_v18 = vmul.f32 -1.442695, %v7326_v49  ;;  %v1808_v19 = vpop.f32.mrf.mxu1 }
 0x2fb   : > { %6091 = vrcp.f32 %v1890_v12  ;;  %v1888_v61 = vadd.f32 1.0, %v6074_v16  ;;  %v4987_v54 = vmul.f32 -1.442695, %v7328_v0  ;;  %v7333_v44 = vadd.f32 %v1817_v14, %v1616_v36 }
 0x2fc   : > { %v6076_v17 = vpop.eup %6075  ;;  %6093 = vpow2.f32 %v4989_v18  ;;  %v1809_v41 = vadd.f32 %v7266_v29, %v1808_v19  ;;  %v5474_v23 = vpop.f32.mrf.mxu1 }
 0x2fd   : > { %6095 = vrcp.f32 %v1888_v61  ;;  %v1893_v43 = vadd.f32 1.0, %v6076_v17  ;;  %v4992_v25 = vmul.f32 -1.442695, %v7333_v44  ;;  %v1820_v26 = vadd.f32 %v5474_v23, %v7266_v29 }
 0x2fe   : > { %v6078_v27 = vpop.eup %6077  ;;  %6097 = vpow2.f32 %v4987_v54  ;;  %v7344_v31 = vadd.f32 %v1809_v41, %v1608_v60  ;;  %v1811_v1 = vpop.f32.mrf.mxu1 }
 0x2ff   : > { %6099 = vrcp.f32 %v1893_v43  ;;  %v1891_v3 = vadd.f32 1.0, %v6078_v27  ;;  %v7346_v33 = vadd.f32 %v1820_v26, %v1619_v2  ;;  %v1812_v34 = vadd.f32 %v7266_v29, %v1811_v1 }
 0x300   : > { %v6080_v35 = vpop.eup %6079  ;;  %6101 = vpow2.f32 %v4992_v25  ;;  %v4990_v40 = vmul.f32 -1.442695, %v7344_v31  ;;  %v5489_v38 = vpop.f32.mrf.mxu1 }
 0x301   : > { %6103 = vrcp.f32 %v1891_v3  ;;  %v1894_v39 = vadd.f32 1.0, %v6080_v35  ;;  %v4993_v42 = vmul.f32 -1.442695, %v7346_v33  ;;  %v7351_v4 = vadd.f32 %v1812_v34, %v1611_v28 }
 0x302   : > { %v6082_v22 = vpop.eup %6081  ;;  %6105 = vpow2.f32 %v4990_v40  ;;  %v2209_v46 = vadd.f32 %v5489_v38, %v7242_v32  ;;  %v2200_v47 = vpop.f32.mrf.mxu1 }
 0x303   : > { %6107 = vrcp.f32 %v1894_v39  ;;  %v1892_v50 = vadd.f32 1.0, %v6082_v22  ;;  %v4991_v29 = vmul.f32 -1.442695, %v7351_v4  ;;  %v2201_v8 = vadd.f32 %v7242_v32, %v2200_v47 }
 0x304   : > { %v6084_v15 = vpop.eup %6083  ;;  %6109 = vpow2.f32 %v4993_v42  ;;  %2241 = vst [vmem:[#allocation2 + $0x10] sm:$0xff] %v2209_v46  ;;  %v5490_v52 = vpop.f32.mrf.mxu1 }
 0x305   : > { %v6086_v53 = vpop.eup %6085  ;;  %6111 = vrcp.f32 %v1892_v50  ;;  %2239 = vst [vmem:[#allocation2 + $0x40] sm:$0xff] %v2201_v8  ;;  %v2212_v55 = vadd.f32 %v5490_v52, %v7242_v32  ;;  %v1937_v11 = vmul.f32 %v6084_v15, %v7271_v10 }
 0x306   : > { %v6088_v56 = vpop.eup %6087  ;;  %v1897_v58 = vadd.f32 1.0, %v6086_v53  ;;  %6113 = vpow2.f32 %v4991_v29  ;;  %v2203_v59 = vpop.f32.mrf.mxu1 }
 0x307   : > { %v6090_v62 = vpop.eup %6089  ;;  %2242 = vst [vmem:[#allocation2 + $0x38] sm:$0xff] %v2212_v55  ;;  %v2204_v5 = vadd.f32 %v7242_v32, %v2203_v59  ;;  %v1935_v14 = vmul.f32 %v6088_v56, %v7276_v13 }
 0x308   : > { %v6092_v48 = vpop.eup %6091  ;;  %v1895_v6 = vadd.f32 1.0, %v6090_v62  ;;  %v5493_v7 = vpop.f32.mrf.mxu1  ;;  %6115 = vrcp.f32 %v1897_v58 }
 0x309   : > { %v6094_v9 = vpop.eup %6093  ;;  %v1938_v36 = vmul.f32 %v6092_v48, %v7281_v20  ;;  %2240 = vst [vmem:[#allocation2 + $0x20] sm:$0xff] %v2204_v5  ;;  %v2225_v63 = vadd.f32 %v5493_v7, %v7242_v32 }
 0x30a   : > { %v6096_v12 = vpop.eup %6095  ;;  %v1898_v16 = vadd.f32 1.0, %v6094_v9  ;;  %v2216_v18 = vpop.f32.mrf.mxu1  ;;  %6117 = vrcp.f32 %v1895_v6 }
 0x30b   : > { %v6098_v19 = vpop.eup %6097  ;;  %v5156_v61 = vpack.c.bf16 %v1938_v36, %v1937_v11  ;;  %v1936_v54 = vmul.f32 %v6096_v12, %v7286_v21  ;;  %2245 = vst [vmem:[#allocation2 + $0x78] sm:$0xff] %v2225_v63  ;;  %v2217_v17 = vadd.f32 %v7242_v32, %v2216_v18 }
 0x30c   : > { %v6100_v10 = vpop.eup %6099  ;;  %6119 = vrcp.f32 %v1898_v16  ;;  %v1896_v20 = vadd.f32 1.0, %v6098_v19  ;;  %v5494_v60 = vpop.f32.mrf.mxu1 }
 0x30d   : > { %v6102_v2 = vpop.eup %6101  ;;  %5188 = vst [vmem:[#allocation3 + $0x8] sm:$0xff] %v5156_v61   ;;  %v5151_v41 = vpack.c.bf16 %v1936_v54, %v1935_v14  ;;  %2243 = vst [vmem:[#allocation2 + $0x60] sm:$0xff] %v2217_v17  ;;  %v2228_v13 = vadd.f32 %v5494_v60, %v7242_v32  ;;  %v1941_v3 = vmul.f32 %v6100_v10, %v7291_v24 }
 0x30e   : > { %v6104_v23 = vpop.eup %6103  ;;  %6121 = vrcp.f32 %v1896_v20  ;;  %v1901_v43 = vadd.f32 1.0, %v6102_v2  ;;  %v2219_v25 = vpop.f32.mrf.mxu1 }
 0x30f   : > { %v6106_v26 = vpop.eup %6105  ;;  %5152 = vst [vmem:[#allocation3] sm:$0xff] %v5151_v41   ;;  %2246 = vst [vmem:[#allocation2 + $0x28] sm:$0xff] %v2228_v13  ;;  %v2220_v21 = vadd.f32 %v7242_v32, %v2219_v25  ;;  %v1939_v39 = vmul.f32 %v6104_v23, %v7296_v30 }
 0x310   : > { %v6108_v27 = vpop.eup %6107  ;;  %v1899_v28 = vadd.f32 1.0, %v6106_v26  ;;  %6123 = vrcp.f32 %v1901_v43 }
 0x311   : > { %v6110_v1 = vpop.eup %6109  ;;  %v1942_v34 = vmul.f32 %v6108_v27, %v7301_v37  ;;  %2244 = vst [vmem:[#allocation2 + $0x70] sm:$0xff] %v2220_v21 }
 0x312   : > { %v6112_v35 = vpop.eup %6111  ;;  %v1902_v40 = vadd.f32 1.0, %v6110_v1  ;;  %6125 = vrcp.f32 %v1899_v28 }
 0x313   : > { %v6114_v38 = vpop.eup %6113  ;;  %v5166_v42 = vpack.c.bf16 %v1942_v34, %v1941_v3  ;;  %v1940_v22 = vmul.f32 %v6112_v35, %v7306_v45 }
 0x314   : > { %6127 = vrcp.f32 %v1902_v40  ;;  %v1900_v32 = vadd.f32 1.0, %v6114_v38 }
 0x315   : > { %5190 = vst [vmem:[#allocation3 + $0x18] sm:$0xff] %v5166_v42   ;;  %v5161_v46 = vpack.c.bf16 %v1940_v22, %v1939_v39  ;;  %v6116_v47 = vpop.eup %6115 }
 0x316   : > { %6129 = vrcp.f32 %v1900_v32  ;;  %v1945_v50 = vmul.f32 %v6116_v47, %v7311_v51 }
 0x317   : > { %5189 = vst [vmem:[#allocation3 + $0x10] sm:$0xff] %v5161_v46   ;;  %v6118_v24 = vpop.eup %6117 }
 0x318   : > { %v1943_v30 = vmul.f32 %v6118_v24, %v7315_v57 }
 0x319   : > { %v6120_v37 = vpop.eup %6119 }
 0x31a   : > { %v1946_v29 = vmul.f32 %v6120_v37, %v7326_v49 }
 0x31b   : > { %v6122_v8 = vpop.eup %6121 }
 0x31c   : > { %v5176_v15 = vpack.c.bf16 %v1946_v29, %v1945_v50  ;;  %v1944_v45 = vmul.f32 %v6122_v8, %v7328_v0 }
 0x31d   : > { %v6124_v53 = vpop.eup %6123 }
 0x31e   : > { %5192 = vst [vmem:[#allocation3 + $0x28] sm:$0xff] %v5176_v15   ;;  %v5171_v52 = vpack.c.bf16 %v1944_v45, %v1943_v30  ;;  %v1949_v58 = vmul.f32 %v6124_v53, %v7333_v44 }
 0x31f   : > { %v6126_v55 = vpop.eup %6125 }
 0x320   : > { %5191 = vst [vmem:[#allocation3 + $0x20] sm:$0xff] %v5171_v52   ;;  %v1947_v51 = vmul.f32 %v6126_v55, %v7344_v31 }
 0x321   : > { %v6128_v56 = vpop.eup %6127 }
 0x322   : > { %v1950_v59 = vmul.f32 %v6128_v56, %v7346_v33 }
 0x323   : > { %v6130_v62 = vpop.eup %6129 }
 0x324   : > { %v5186_v49 = vpack.c.bf16 %v1950_v59, %v1949_v58  ;;  %v1948_v5 = vmul.f32 %v6130_v62, %v7351_v4 }
 0x326   : > { %5194 = vst [vmem:[#allocation3 + $0x38] sm:$0xff] %v5186_v49   ;;  %v5181_v57 = vpack.c.bf16 %v1948_v5, %v1947_v51 }
 0x328   : > { %5193 = vst [vmem:[#allocation3 + $0x30] sm:$0xff] %v5181_v57  }
 0x329 PF: > { %v6131_v0 = vld [vmem:[%s7063_s27 + $0xa8] ss:$12 sps:$4 sm:$0xff]   ;;  %v6132_v44 = vld [vmem:[%s7063_s27 + $0xac] ss:$12 sps:$4 sm:$0xff]   ;;  %v6133_v33 = vld [vmem:[%s7063_s27 + $0x90] ss:$12 sps:$4 sm:$0xff]  }
 0x32a   : > { %5495 = vmatprep.subr.bf16.mxu0 %v6131_v0  ;;  %5527 = vmatprep.subr.bf16.mxu1 %v6132_v44  ;;  %v6134_v31 = vld [vmem:[%s7063_s27 + $0x94] ss:$12 sps:$4 sm:$0xff]   ;;  %v6135_v4 = vld [vmem:[%s7063_s27 + $0x78] ss:$12 sps:$4 sm:$0xff]   ;;  %v6136_v48 = vld [vmem:[%s7063_s27 + $0x7c] ss:$12 sps:$4 sm:$0xff]  }
 0x32b   : > { %5496 = vmatpush3.bf16.msra.mxu0 %v6131_v0  ;;  %5528 = vmatpush3.bf16.msra.mxu1 %v6132_v44  ;;  %v7384_v6 = vld [vmem:[#allocation2 + $0x30] sm:$0xff]  ;;  %v6137_v7 = vld [vmem:[%s7063_s27 + $0x60] ss:$12 sps:$4 sm:$0xff]   ;;  %v7388_v9 = vld [vmem:[#allocation2 + $0x58] sm:$0xff]  ;;  %p5098_p6 = scmp.ne.s32.totalorder %s6677_s30, 1 }
 0x32c   : > { %5497 = vmatprep.subr.bf16.mxu0 %v6133_v33  ;;  %5529 = vmatprep.subr.bf16.mxu1 %v6134_v31  ;;  %v7390_v11 = vld [vmem:[#allocation2] sm:$0xff]  ;;  %v7395_v63 = vld [vmem:[#allocation2 + $0x18] sm:$0xff]  ;;  %v2712_v12 = vmul.f32 %v7384_v6, %v7384_v6  ;;  %v6139_v14 = vld [vmem:[%s7063_s27 + $0x48] ss:$12 sps:$4 sm:$0xff]   ;;  %v2714_v19 = vmul.f32 %v7388_v9, %v7388_v9  ;;  %s8396_s21 = sld [smem:[#allocation51_spill]] (!%p5098_p6) }
 0x32d   : > { %2663 = vadd.xlane.f32.xlu0 %v7384_v6  ;;  %v6138_v36 = vld [vmem:[%s7063_s27 + $0x64] ss:$12 sps:$4 sm:$0xff]   ;;  %2667 = vadd.xlane.f32.xlu1 %v7388_v9  ;;  %v6140_v16 = vld [vmem:[%s7063_s27 + $0x4c] ss:$12 sps:$4 sm:$0xff]   ;;  %v2713_v18 = vmul.f32 %v7390_v11, %v7390_v11  ;;  %v6142_v54 = vld [vmem:[%s7063_s27 + $0x34] ss:$12 sps:$4 sm:$0xff]   ;;  %v2715_v17 = vmul.f32 %v7395_v63, %v7395_v63 }
 0x32e   : > { %v6141_v61 = vld [vmem:[%s7063_s27 + $0x30] ss:$12 sps:$4 sm:$0xff]   ;;  %v7410_v10 = vld [vmem:[#allocation3] sm:$0xff]   ;;  %v7416_v41 = vld [vmem:[#allocation2 + $0x68] sm:$0xff]  ;;  %s8397_s23 = sld [smem:[#allocation35_spill]] (!%p5098_p6) }
 0x32f   : > { %5498 = vmatpush3.bf16.msra.mxu0 %v6133_v33  ;;  %5530 = vmatpush3.bf16.msra.mxu1 %v6134_v31  ;;  %v6143_v20 = vld [vmem:[%s7063_s27 + $0x18] ss:$12 sps:$4 sm:$0xff]   ;;  %v7413_v60 = vld [vmem:[#allocation2 + $0x50] sm:$0xff]  ;;  %v6144_v2 = vld [vmem:[%s7063_s27 + $0x1c] ss:$12 sps:$4 sm:$0xff]   ;;  %v2717_v27 = vmul.f32 %v7416_v41, %v7416_v41 }
 0x330   : > { %5499 = vmatprep.subr.bf16.mxu0 %v6135_v4  ;;  %5531 = vmatprep.subr.bf16.mxu1 %v6136_v48  ;;  %v6145_v13 = vld [vmem:[%s7063_s27] ss:$12 sps:$4 sm:$0xff]   ;;  %v6146_v43 = vld [vmem:[%s7063_s27 + $0x4] ss:$12 sps:$4 sm:$0xff]   ;;  %v2716_v26 = vmul.f32 %v7413_v60, %v7413_v60  ;;  %v7448_v35 = vld [vmem:[#allocation3 + $0x18] sm:$0xff]  }
 0x331   : > { %2665 = vadd.xlane.f32.xlu0 %v7390_v11  ;;  %2669 = vadd.xlane.f32.xlu1 %v7395_v63  ;;  %v7422_v23 = vld [vmem:[#allocation2 + $0x8] sm:$0xff]  ;;  %v7436_v28 = vld [vmem:[#allocation3 + $0x10] sm:$0xff]   ;;  %v7445_v34 = vld [vmem:[#allocation2 + $0x40] sm:$0xff]  ;;  %8380 = vst [vmem:[#allocation28_spill] sm:$0xff] %v7448_v35 }
 0x332   : > { %5511 = vmatprep.mubr.bf16.mxu0 %v7410_v10  ;;  %5543 = vmatprep.mubr.bf16.mxu1 %v7410_v10  ;;  %v7426_v25 = vld [vmem:[#allocation2 + $0x48] sm:$0xff]  ;;  %v2718_v1 = vmul.f32 %v7422_v23, %v7422_v23  ;;  %v7450_v40 = vld [vmem:[#allocation2 + $0x20] sm:$0xff]  ;;  %v7454_v39 = vld [vmem:[#allocation2 + $0x10] sm:$0xff]  ;;  %v2720_v22 = vmul.f32 %v7445_v34, %v7445_v34 }
 0x333   : > { %5500 = vmatpush3.bf16.msra.mxu0 %v6135_v4  ;;  %5532 = vmatpush3.bf16.msra.mxu1 %v6136_v48  ;;  %v7431_v21 = vld [vmem:[#allocation3 + $0x8] sm:$0xff]   ;;  %v2719_v3 = vmul.f32 %v7426_v25, %v7426_v25  ;;  %v7452_v38 = vld [vmem:[#allocation3 + $0x20] sm:$0xff]   ;;  %v7457_v42 = vld [vmem:[#allocation2 + $0x38] sm:$0xff]  ;;  %v2721_v32 = vmul.f32 %v7450_v40, %v7450_v40  ;;  %v2722_v24 = vmul.f32 %v7454_v39, %v7454_v39 }
 0x334   : > { %5501 = vmatprep.subr.bf16.mxu0 %v6137_v7  ;;  %5533 = vmatprep.subr.bf16.mxu1 %v6138_v36  ;;  %8381 = vst [vmem:[#allocation29_spill] sm:$0xff] %v7452_v38  ;;  %v7470_v46 = vld [vmem:[#allocation3 + $0x28] sm:$0xff]   ;;  %v7472_v47 = vld [vmem:[#allocation3 + $0x30] sm:$0xff]   ;;  %v2723_v37 = vmul.f32 %v7457_v42, %v7457_v42  ;;  %v7482_v50 = vld [vmem:[#allocation2 + $0x60] sm:$0xff] }
 0x335   : > { %2728 = vadd.xlane.f32.xlu0 %v2712_v12  ;;  %2730 = vadd.xlane.f32.xlu1 %v2713_v18  ;;  %8382 = vst [vmem:[#allocation30_spill] sm:$0xff] %v7470_v46  ;;  %8383 = vst [vmem:[#allocation31_spill] sm:$0xff] %v7472_v47  ;;  %v7484_v29 = vld [vmem:[#allocation3 + $0x38] sm:$0xff]   ;;  %v7486_v8 = vld [vmem:[#allocation2 + $0x70] sm:$0xff]  ;;  %v2724_v45 = vmul.f32 %v7482_v50, %v7482_v50 }
 0x336   : > { %8384 = vst [vmem:[#allocation32_spill] sm:$0xff] %v7484_v29  ;;  %v7490_v30 = vld [vmem:[#allocation2 + $0x78] sm:$0xff]  ;;  %v7493_v15 = vld [vmem:[#allocation2 + $0x28] sm:$0xff]  ;;  %v2725_v52 = vmul.f32 %v7486_v8, %v7486_v8  ;;  %v6155_v56 = vld [vmem:[%s7040_s26 + $0x38] sm:$0xff]  }
 0x337   : > { %5502 = vmatpush3.bf16.msra.mxu0 %v6137_v7  ;;  %5534 = vmatpush3.bf16.msra.mxu1 %v6138_v36  ;;  %v2726_v53 = vmul.f32 %v7490_v30, %v7490_v30  ;;  %v2727_v55 = vmul.f32 %v7493_v15, %v7493_v15  ;;  %v6156_v58 = vld [vmem:[%s7040_s26 + $0x30] sm:$0xff]   ;;  %v6157_v59 = vld [vmem:[%s7040_s26 + $0x28] sm:$0xff]   ;;  %v6158_v62 = vld [vmem:[%s7040_s26 + $0x20] sm:$0xff]  }
 0x338   : > { %5503 = vmatprep.subr.bf16.mxu0 %v6139_v14  ;;  %5535 = vmatprep.subr.bf16.mxu1 %v6140_v16  ;;  %v6159_v51 = vld [vmem:[%s7040_s26 + $0x18] sm:$0xff]   ;;  %v6160_v49 = vld [vmem:[%s7040_s26 + $0x10] sm:$0xff]   ;;  %v6161_v5 = vld [vmem:[%s7040_s26 + $0x8] sm:$0xff]  }
 0x339   : > { %2732 = vadd.xlane.f32.xlu0 %v2714_v19  ;;  %2734 = vadd.xlane.f32.xlu1 %v2715_v17  ;;  %v6162_v57 = vld [vmem:[%s7040_s26] sm:$0xff]  }
 0x33b   : > { %5504 = vmatpush3.bf16.msra.mxu0 %v6139_v14  ;;  %5536 = vmatpush3.bf16.msra.mxu1 %v6140_v16 }
 0x33c   : > { %5505 = vmatprep.subr.bf16.mxu0 %v6141_v61  ;;  %5537 = vmatprep.subr.bf16.mxu1 %v6142_v54 }
 0x33d   : > { %2671 = vadd.xlane.f32.xlu0 %v7413_v60  ;;  %2673 = vadd.xlane.f32.xlu1 %v7416_v41 }
 0x33f   : > { %5506 = vmatpush3.bf16.msra.mxu0 %v6141_v61  ;;  %5538 = vmatpush3.bf16.msra.mxu1 %v6142_v54 }
 0x340   : > { %5507 = vmatprep.subr.bf16.mxu0 %v6143_v20  ;;  %5539 = vmatprep.subr.bf16.mxu1 %v6144_v2 }
 0x341   : > { %2675 = vadd.xlane.f32.xlu0 %v7422_v23  ;;  %2677 = vadd.xlane.f32.xlu1 %v7426_v25 }
 0x343   : > { %5508 = vmatpush3.bf16.msra.mxu0 %v6143_v20  ;;  %5540 = vmatpush3.bf16.msra.mxu1 %v6144_v2 }
 0x344   : > { %5509 = vmatprep.subr.bf16.mxu0 %v6145_v13  ;;  %5541 = vmatprep.subr.bf16.mxu1 %v6146_v43 }
 0x345   : > { %2736 = vadd.xlane.f32.xlu0 %v2716_v26  ;;  %2738 = vadd.xlane.f32.xlu1 %v2717_v27 }
 0x347   : > { %5510 = vmatpush3.bf16.msra.mxu0 %v6145_v13  ;;  %5542 = vmatpush3.bf16.msra.mxu1 %v6146_v43 }
 0x348   : > { %5559 = vmatprep.subr.bf16.mxu0 %v6155_v56 }
 0x349   : > { %2740 = vadd.xlane.f32.xlu0 %v2718_v1  ;;  %2742 = vadd.xlane.f32.xlu1 %v2719_v3 }
 0x34a   : > { %5512 = vmatmul.mubr.bf16.vlgmr.msra.gmra.mxu0 %v7431_v21  ;;  %5544 = vmatmul.mubr.bf16.vlgmr.msra.gmra.mxu1 %v7431_v21 }
 0x34b   : > { %5515 = vmatprep.mubr.bf16.mxu0 %v7436_v28  ;;  %5547 = vmatprep.mubr.bf16.mxu1 %v7436_v28 }
 0x34c   : > { %5560 = vmatpush3.bf16.msra.mxu0 %v6155_v56 }
 0x34d   : > { %2679 = vadd.xlane.f32.xlu0 %v7445_v34  ;;  %2681 = vadd.xlane.f32.xlu1 %v7450_v40 }
 0x34e   : > { %5561 = vmatprep.subr.bf16.mxu0 %v6156_v58 }
 0x350   : > { %5562 = vmatpush3.bf16.msra.mxu0 %v6156_v58 }
 0x351   : > { %2683 = vadd.xlane.f32.xlu0 %v7454_v39  ;;  %2685 = vadd.xlane.f32.xlu1 %v7457_v42 }
 0x352   : > { %5516 = vmatmul.mubr.bf16.gmra.mxu0 %v7448_v35  ;;  %5548 = vmatmul.mubr.bf16.gmra.mxu1 %v7448_v35 }
 0x353   : > { %5519 = vmatprep.mubr.bf16.mxu0 %v7452_v38  ;;  %5551 = vmatprep.mubr.bf16.mxu1 %v7452_v38 }
 0x354   : > { %5563 = vmatprep.subr.bf16.mxu0 %v6157_v59 }
 0x355   : > { %2744 = vadd.xlane.f32.xlu0 %v2720_v22  ;;  %2746 = vadd.xlane.f32.xlu1 %v2721_v32 }
 0x356   : > { %5564 = vmatpush3.bf16.msra.mxu0 %v6157_v59 }
 0x357   : > { %5565 = vmatprep.subr.bf16.mxu0 %v6158_v62 }
 0x359   : > { %2748 = vadd.xlane.f32.xlu0 %v2722_v24  ;;  %2750 = vadd.xlane.f32.xlu1 %v2723_v37 }
 0x35a   : > { %5520 = vmatmul.mubr.bf16.gmra.mxu0 %v7470_v46  ;;  %5552 = vmatmul.mubr.bf16.gmra.mxu1 %v7470_v46 }
 0x35b   : > { %5523 = vmatprep.mubr.bf16.mxu0 %v7472_v47  ;;  %5555 = vmatprep.mubr.bf16.mxu1 %v7472_v47 }
 0x35c   : > { %5566 = vmatpush3.bf16.msra.mxu0 %v6158_v62 }
 0x35d   : > { %2687 = vadd.xlane.f32.xlu0 %v7482_v50  ;;  %2689 = vadd.xlane.f32.xlu1 %v7486_v8 }
 0x35e   : > { %5567 = vmatprep.subr.bf16.mxu0 %v6159_v51 }
 0x360   : > { %5568 = vmatpush3.bf16.msra.mxu0 %v6159_v51 }
 0x361   : > { %2691 = vadd.xlane.f32.xlu0 %v7490_v30  ;;  %2693 = vadd.xlane.f32.xlu1 %v7493_v15 }
 0x362   : > { %5524 = vmatmul.mubr.bf16.gmra.mxu0 %v7484_v29  ;;  %5556 = vmatmul.mubr.bf16.gmra.mxu1 %v7484_v29 }
 0x363   : > { %5569 = vmatprep.subr.bf16.mxu0 %v6160_v49 }
 0x364   : > { %5570 = vmatpush3.bf16.msra.mxu0 %v6160_v49 }
 0x365   : > { %2752 = vadd.xlane.f32.xlu0 %v2724_v45  ;;  %2754 = vadd.xlane.f32.xlu1 %v2725_v52 }
 0x366   : > { %5571 = vmatprep.subr.bf16.mxu0 %v6161_v5 }
 0x368   : > { %5572 = vmatpush3.bf16.msra.mxu0 %v6161_v5 }
 0x369   : > { %2756 = vadd.xlane.f32.xlu0 %v2726_v53  ;;  %2758 = vadd.xlane.f32.xlu1 %v2727_v55 }
 0x36a   : > { %5573 = vmatprep.subr.bf16.mxu0 %v6162_v57 }
 0x36c   : > { %5574 = vmatpush3.bf16.msra.mxu0 %v6162_v57 }
 0x3b6   : > { %v2664_v0 = vpop.xlane.xlu0 %2663  ;;  %v2668_v44 = vpop.xlane.xlu1 %2667 }
 0x3b7   : > { %v7514_v26 = vmul.f32 0.0078125, %v2664_v0  ;;  %v7520_v3 = vmul.f32 0.0078125, %v2668_v44 }
 0x3b9   : > { %v2776_v32 = vmul.f32 %v7514_v26, %v7514_v26  ;;  %v2778_v55 = vmul.f32 %v7520_v3, %v7520_v3 }
 0x3ba   : > { %v2666_v33 = vpop.xlane.xlu0 %2665  ;;  %v2670_v31 = vpop.xlane.xlu1 %2669 }
 0x3bb   : > { %v7518_v1 = vmul.f32 0.0078125, %v2666_v33  ;;  %v7524_v24 = vmul.f32 0.0078125, %v2670_v31 }
 0x3bd   : > { %v2777_v45 = vmul.f32 %v7518_v1, %v7518_v1  ;;  %v2779_v58 = vmul.f32 %v7524_v24, %v7524_v24 }
 0x3be   : > { %v2729_v4 = vpop.xlane.xlu0 %2728  ;;  %v2731_v48 = vpop.xlane.xlu1 %2730 }
 0x3bf   : > { %v2760_v37 = vmul.f32 0.0078125, %v2729_v4  ;;  %v2761_v52 = vmul.f32 0.0078125, %v2731_v48 }
 0x3c1   : > { %v2792_v59 = vsub.f32 %v2760_v37, %v2776_v32  ;;  %v2793_v5 = vsub.f32 %v2761_v52, %v2777_v45 }
 0x3c2   : > { %v2733_v7 = vpop.xlane.xlu0 %2732  ;;  %v2735_v36 = vpop.xlane.xlu1 %2734 }
 0x3c3   : > { %v2762_v56 = vmul.f32 0.0078125, %v2733_v7  ;;  %v2763_v62 = vmul.f32 0.0078125, %v2735_v36  ;;  %v2808_v0 = vmax.f32 %v2792_v59, 0.0  ;;  %v2809_v7 = vmax.f32 %v2793_v5, 0.0 }
 0x3c5   : > { %v2794_v57 = vsub.f32 %v2762_v56, %v2778_v55  ;;  %v2795_v44 = vsub.f32 %v2763_v62, %v2779_v58  ;;  %v2840_v36 = vadd.f32 1e-06, %v2808_v0  ;;  %v2841_v55 = vadd.f32 1e-06, %v2809_v7 }
 0x3c6   : > { %v2672_v12 = vpop.xlane.xlu0 %2671  ;;  %v2674_v14 = vpop.xlane.xlu1 %2673 }
 0x3c7   : > { %v7532_v51 = vmul.f32 0.0078125, %v2672_v12  ;;  %v7534_v33 = vmul.f32 0.0078125, %v2674_v14  ;;  %v2810_v47 = vmax.f32 %v2794_v57, 0.0  ;;  %v2811_v12 = vmax.f32 %v2795_v44, 0.0 }
 0x3c8   : > { %6179 = vrsqrt.f32 %v2840_v36 }
 0x3c9   : > { %v2780_v4 = vmul.f32 %v7532_v51, %v7532_v51  ;;  %v2781_v37 = vmul.f32 %v7534_v33, %v7534_v33  ;;  %v2842_v59 = vadd.f32 1e-06, %v2810_v47  ;;  %6181 = vrsqrt.f32 %v2841_v55 }
 0x3ca   : > { %v2676_v16 = vpop.xlane.xlu0 %2675  ;;  %v2678_v18 = vpop.xlane.xlu1 %2677 }
 0x3cb   : > { %v7538_v29 = vmul.f32 0.0078125, %v2678_v18  ;;  %v7542_v52 = vmul.f32 0.0078125, %v2676_v16  ;;  %v2843_v18 = vadd.f32 1e-06, %v2811_v12  ;;  %6183 = vrsqrt.f32 %v2842_v59 }
 0x3cd   : > { %v2783_v56 = vmul.f32 %v7538_v29, %v7538_v29  ;;  %v2782_v5 = vmul.f32 %v7542_v52, %v7542_v52  ;;  %6185 = vrsqrt.f32 %v2843_v18 }
 0x3ce   : > { %v2739_v19 = vpop.xlane.xlu1 %2738  ;;  %v2737_v61 = vpop.xlane.xlu0 %2736 }
 0x3cf   : > { %v2764_v48 = vmul.f32 0.0078125, %v2737_v61  ;;  %v2765_v45 = vmul.f32 0.0078125, %v2739_v19 }
 0x3d1   : > { %v2796_v14 = vsub.f32 %v2764_v48, %v2780_v4  ;;  %v2797_v62 = vsub.f32 %v2765_v45, %v2781_v37 }
 0x3d2   : > { %v2743_v54 = vpop.xlane.xlu1 %2742  ;;  %v2741_v17 = vpop.xlane.xlu0 %2740 }
 0x3d3   : > { %v2767_v58 = vmul.f32 0.0078125, %v2743_v54  ;;  %v2812_v57 = vmax.f32 %v2796_v14, 0.0  ;;  %v2766_v0 = vmul.f32 0.0078125, %v2741_v17  ;;  %v2813_v47 = vmax.f32 %v2797_v62, 0.0 }
 0x3d5   : > { %v2799_v19 = vsub.f32 %v2767_v58, %v2783_v56  ;;  %v2844_v36 = vadd.f32 1e-06, %v2812_v57  ;;  %v2798_v12 = vsub.f32 %v2766_v0, %v2782_v5  ;;  %v2845_v5 = vadd.f32 1e-06, %v2813_v47 }
 0x3d6   : > { %v2682_v20 = vpop.xlane.xlu1 %2681  ;;  %v2680_v2 = vpop.xlane.xlu0 %2679 }
 0x3d7   : > { %v7548_v44 = vmul.f32 0.0078125, %v2680_v2  ;;  %v7550_v4 = vmul.f32 0.0078125, %v2682_v20  ;;  %v2815_v37 = vmax.f32 %v2799_v19, 0.0  ;;  %6187 = vrsqrt.f32 %v2844_v36 }
 0x3d8   : > { %6189 = vrsqrt.f32 %v2845_v5  ;;  %v2827_v5 = vsub.f32 %v7395_v63, %v7524_v24 }
 0x3d9   : > { %v2784_v17 = vmul.f32 %v7548_v44, %v7548_v44  ;;  %v2785_v45 = vmul.f32 %v7550_v4, %v7550_v4  ;;  %v2847_v19 = vadd.f32 1e-06, %v2815_v37 }
 0x3da   : > { %v2686_v13 = vpop.xlane.xlu1 %2685  ;;  %v2684_v43 = vpop.xlane.xlu0 %2683 }
 0x3db   : > { %v7552_v48 = vmul.f32 0.0078125, %v2684_v43  ;;  %v7554_v54 = vmul.f32 0.0078125, %v2686_v13  ;;  %6191 = vrsqrt.f32 %v2847_v19  ;;  %v2828_v19 = vsub.f32 %v7413_v60, %v7532_v51 }
 0x3dd   : > { %v2786_v20 = vmul.f32 %v7552_v48, %v7552_v48  ;;  %v2787_v13 = vmul.f32 %v7554_v54, %v7554_v54 }
 0x3de   : > { %v7516_v27 = vpop.xlane.xlu1 %2746  ;;  %v2745_v22 = vpop.xlane.xlu0 %2744 }
 0x3df   : > { %v2768_v2 = vmul.f32 0.0078125, %v2745_v22  ;;  %v2769_v43 = vmul.f32 0.0078125, %v7516_v27  ;;  %v2814_v22 = vmax.f32 %v2798_v12, 0.0 }
 0x3e1   : > { %v2800_v18 = vsub.f32 %v2768_v2, %v2784_v17  ;;  %v2801_v57 = vsub.f32 %v2769_v43, %v2785_v45  ;;  %v6180_v17 = vpop.eup %6179  ;;  %v2824_v45 = vsub.f32 %v7384_v6, %v7514_v26 }
 0x3e2   : > { %v2751_v53 = vpop.xlane.xlu1 %2750  ;;  %v2749_v49 = vpop.xlane.xlu0 %2748 }
 0x3e3   : > { %v2771_v14 = vmul.f32 0.0078125, %v2751_v53  ;;  %v2770_v55 = vmul.f32 0.0078125, %v2749_v49  ;;  %v2816_v47 = vmax.f32 %v2800_v18, 0.0  ;;  %v6182_v43 = vpop.eup %6181  ;;  %v2872_v24 = vmul.f32 %v6180_v17, %v2824_v45  ;;  %v7602_v17 = vld [vmem:[%s7068_s9] ss:$0 sm:$0xff] }
 0x3e5   : > { %v2803_v27 = vsub.f32 %v2771_v14, %v2787_v13  ;;  %v2802_v46 = vsub.f32 %v2770_v55, %v2786_v20  ;;  %v2826_v20 = vsub.f32 %v7388_v9, %v7520_v3 }
 0x3e6   : > { %v2690_v31 = vpop.xlane.xlu1 %2689  ;;  %v2688_v32 = vpop.xlane.xlu0 %2687 }
 0x3e7   : > { %v7565_v56 = vmul.f32 0.0078125, %v2688_v32  ;;  %v7567_v59 = vmul.f32 0.0078125, %v2690_v31  ;;  %v2819_v13 = vmax.f32 %v2803_v27, 0.0  ;;  %v2818_v14 = vmax.f32 %v2802_v46, 0.0 }
 0x3e9   : > { %v2788_v53 = vmul.f32 %v7565_v56, %v7565_v56  ;;  %v2789_v49 = vmul.f32 %v7567_v59, %v7567_v59 }
 0x3ea   : > { %v2694_v61 = vpop.xlane.xlu1 %2693  ;;  %v2692_v16 = vpop.xlane.xlu0 %2691 }
 0x3eb   : > { %v7569_v62 = vmul.f32 0.0078125, %v2694_v61  ;;  %v7575_v32 = vmul.f32 0.0078125, %v2692_v16  ;;  %v2846_v61 = vadd.f32 1e-06, %v2814_v22  ;;  %v2817_v16 = vmax.f32 %v2801_v57, 0.0  ;;  %v6184_v22 = vpop.eup %6183 }
 0x3ec   : > { %v6186_v3 = vpop.eup %6185  ;;  %v2874_v38 = vmul.f32 %v6184_v22, %v2826_v20 }
 0x3ed   : > { %v2791_v36 = vmul.f32 %v7569_v62, %v7569_v62  ;;  %v2790_v18 = vmul.f32 %v7575_v32, %v7575_v32  ;;  %6193 = vrsqrt.f32 %v2846_v61  ;;  %v2849_v27 = vadd.f32 1e-06, %v2817_v16 }
 0x3ee   : > { %v2755_v7 = vpop.xlane.xlu1 %2754  ;;  %v2753_v58 = vpop.xlane.xlu0 %2752  ;;  %v2875_v45 = vmul.f32 %v6186_v3, %v2827_v5 }
 0x3ef   : > { %v2773_v31 = vmul.f32 0.0078125, %v2755_v7  ;;  %v2772_v12 = vmul.f32 0.0078125, %v2753_v58  ;;  %v2825_v7 = vsub.f32 %v7390_v11, %v7518_v1  ;;  %v7586_v58 = vld [vmem:[%s7068_s9 + $0x1] ss:$0 sm:$0xff]  ;;  %v2848_v11 = vadd.f32 1e-06, %v2816_v47 }
 0x3f0   : > { %v2850_v47 = vadd.f32 1e-06, %v2818_v14 }
 0x3f1   : > { %v2805_v6 = vsub.f32 %v2773_v31, %v2789_v49  ;;  %v2804_v26 = vsub.f32 %v2772_v12, %v2788_v53  ;;  %v2851_v12 = vadd.f32 1e-06, %v2819_v13  ;;  %6195 = vrsqrt.f32 %v2848_v11 }
 0x3f2   : > { %v2759_v0 = vpop.xlane.xlu1 %2758  ;;  %v2757_v37 = vpop.xlane.xlu0 %2756  ;;  %6197 = vrsqrt.f32 %v2849_v27  ;;  %v2873_v35 = vmul.f32 %v6182_v43, %v2825_v7 }
 0x3f3   : > { %v2775_v2 = vmul.f32 0.0078125, %v2759_v0  ;;  %v2774_v0 = vmul.f32 0.0078125, %v2757_v37  ;;  %6199 = vrsqrt.f32 %v2851_v12 }
 0x3f4   : > { %6201 = vrsqrt.f32 %v2850_v47 }
 0x3f5   : > { %v2807_v1 = vsub.f32 %v2775_v2, %v2791_v36  ;;  %v2821_v36 = vmax.f32 %v2805_v6, 0.0  ;;  %v2820_v2 = vmax.f32 %v2804_v26, 0.0  ;;  %v2806_v37 = vsub.f32 %v2774_v0, %v2790_v18 }
 0x3f7   : > { %v2823_v60 = vmax.f32 %v2807_v1, 0.0  ;;  %v2853_v26 = vadd.f32 1e-06, %v2821_v36  ;;  %v2852_v0 = vadd.f32 1e-06, %v2820_v2  ;;  %v2822_v11 = vmax.f32 %v2806_v37, 0.0 }
 0x3f9   : > { %6203 = vrsqrt.f32 %v2852_v0 }
 0x40a   : > { %v5513_v55 = vpop.f32.mrf.mxu0  ;;  %v5545_v9 = vpop.f32.mrf.mxu1 }
 0x40b   : > { %v2609_v49 = vadd.f32 %v5545_v9, %v7586_v58  ;;  %v2441_v43 = vadd.f32 %v5513_v55, %v7602_v17  ;;  %v2854_v55 = vadd.f32 1e-06, %v2822_v11 }
 0x40c   : > { %v2432_v57 = vpop.f32.mrf.mxu0  ;;  %v2600_v53 = vpop.f32.mrf.mxu1 }
 0x40d   : > { %v2601_v63 = vadd.f32 %v7586_v58, %v2600_v53  ;;  %v2890_v31 = vadd.f32 1.0, %v2609_v49  ;;  %v6188_v53 = vpop.eup %6187  ;;  %v2433_v12 = vadd.f32 %v7602_v17, %v2432_v57 }
 0x40e   : > { %v5514_v61 = vpop.f32.mrf.mxu0  ;;  %v5546_v46 = vpop.f32.mrf.mxu1 }
 0x40f   : > { %v2888_v51 = vadd.f32 1.0, %v2601_v63  ;;  %v2612_v16 = vadd.f32 %v5546_v46, %v7586_v58  ;;  %v2855_v46 = vadd.f32 1e-06, %v2823_v60  ;;  %v2906_v7 = vmul.f32 %v2890_v31, %v2874_v38  ;;  %v6190_v63 = vpop.eup %6189 }
 0x410   : > { %v2435_v9 = vpop.f32.mrf.mxu0  ;;  %v2603_v13 = vpop.f32.mrf.mxu1  ;;  %v2444_v3 = vadd.f32 %v5514_v61, %v7602_v17  ;;  %v2835_v38 = vsub.f32 %v7457_v42, %v7554_v54 }
 0x411   : > { %v2891_v14 = vadd.f32 1.0, %v2612_v16  ;;  %v2604_v18 = vadd.f32 %v7586_v58, %v2603_v13  ;;  %v2904_v27 = vmul.f32 %v2888_v51, %v2872_v24  ;;  %v2436_v47 = vadd.f32 %v7602_v17, %v2435_v9  ;;  %v6192_v60 = vpop.eup %6191 }
 0x412   : > { %v5517_v6 = vpop.f32.mrf.mxu0  ;;  %v5549_v1 = vpop.f32.mrf.mxu1  ;;  %v2831_v51 = vsub.f32 %v7426_v25, %v7538_v29  ;;  %v2876_v9 = vmul.f32 %v6188_v53, %v2828_v19  ;;  %6205 = vrsqrt.f32 %v2855_v46  ;;  %v8385_v53 = vsub.f32 %v7422_v23, %v7542_v52 }
 0x413   : > { %v2907_v20 = vmul.f32 %v2891_v14, %v2875_v45  ;;  %v2889_v22 = vadd.f32 1.0, %v2604_v18  ;;  %v2625_v2 = vadd.f32 %v5549_v1, %v7586_v58  ;;  %v2920_v61 = vadd.f32 %v2904_v27, %v2433_v12  ;;  %v6194_v13 = vpop.eup %6193 }
 0x414   : > { %v2448_v49 = vpop.f32.mrf.mxu0  ;;  %v2616_v5 = vpop.f32.mrf.mxu1  ;;  %v2922_v45 = vadd.f32 %v2906_v7, %v2441_v43  ;;  %6207 = vrsqrt.f32 %v2853_v26  ;;  %v2879_v0 = vmul.f32 %v6192_v60, %v2831_v51  ;;  %v2457_v19 = vadd.f32 %v5517_v6, %v7602_v17 }
 0x415   : > { %v2905_v36 = vmul.f32 %v2889_v22, %v2873_v35  ;;  %v2617_v37 = vadd.f32 %v7586_v58, %v2616_v5  ;;  %v2923_v57 = vadd.f32 %v2907_v20, %v2444_v3  ;;  %v2894_v25 = vadd.f32 1.0, %v2625_v2  ;;  %v6196_v12 = vpop.eup %6195 }
 0x416   : > { %v5518_v24 = vpop.f32.mrf.mxu0  ;;  %v5550_v31 = vpop.f32.mrf.mxu1  ;;  %6209 = vrsqrt.f32 %v2854_v55  ;;  %v2878_v46 = vmul.f32 %v6194_v13, %v8385_v53  ;;  %v8386_v22 = vsub.f32 %v7416_v41, %v7534_v33  ;;  %v2832_v60 = vsub.f32 %v7445_v34, %v7548_v44 }
 0x417   : > { %v2921_v16 = vadd.f32 %v2905_v36, %v2436_v47  ;;  %v2892_v14 = vadd.f32 1.0, %v2617_v37  ;;  %v2628_v18 = vadd.f32 %v5550_v31, %v7586_v58  ;;  %v2954_v11 = vpack.c.bf16 %v2923_v57, %v2922_v45  ;;  %v6198_v6 = vpop.eup %6197 }
 0x418   : > { %v2451_v35 = vpop.f32.mrf.mxu0  ;;  %v2619_v1 = vpop.f32.mrf.mxu1  ;;  %v2877_v26 = vmul.f32 %v6190_v63, %v8386_v22  ;;  %v2460_v5 = vadd.f32 %v5518_v24, %v7602_v17  ;;  %v2910_v37 = vmul.f32 %v2894_v25, %v2878_v46  ;;  %v2834_v24 = vsub.f32 %v7454_v39, %v7552_v48 }
 0x419   : > { %v2620_v29 = vadd.f32 %v7586_v58, %v2619_v1  ;;  %v2953_v54 = vpack.c.bf16 %v2921_v16, %v2920_v61  ;;  %v2895_v27 = vadd.f32 1.0, %v2628_v18  ;;  %v2908_v3 = vmul.f32 %v2892_v14, %v2876_v9  ;;  %v6200_v63 = vpop.eup %6199 }
 0x41a   : > { %v5521_v42 = vpop.f32.mrf.mxu0  ;;  %v5553_v20 = vpop.f32.mrf.mxu1  ;;  %v2452_v23 = vadd.f32 %v7602_v17, %v2451_v35  ;;  %v2449_v51 = vadd.f32 %v7602_v17, %v2448_v49  ;;  %v2833_v31 = vsub.f32 %v7450_v40, %v7550_v4  ;;  %v2836_v13 = vsub.f32 %v7482_v50, %v7565_v56 }
 0x41b   : > { %v2893_v43 = vadd.f32 1.0, %v2620_v29  ;;  %5575 = vmatprep.mubr.bf16.mxu0 %v2953_v54  ;;  %v2911_v47 = vmul.f32 %v2895_v27, %v2879_v0  ;;  %v2641_v36 = vadd.f32 %v5553_v20, %v7586_v58  ;;  %v6202_v57 = vpop.eup %6201  ;;  %v2926_v39 = vadd.f32 %v2910_v37, %v2457_v19 }
 0x41c   : > { %v2464_v7 = vpop.f32.mrf.mxu0  ;;  %v2632_v2 = vpop.f32.mrf.mxu1  ;;  %5576 = vmatmul.mubr.bf16.vlgmr.msra.gmra.mxu0 %v2954_v11  ;;  %v2924_v45 = vadd.f32 %v2908_v3, %v2449_v51  ;;  %v2883_v48 = vmul.f32 %v6200_v63, %v2835_v38  ;;  %v2839_v40 = vsub.f32 %v7493_v15, %v7569_v62  ;;  %v2882_v4 = vmul.f32 %v6202_v57, %v2834_v24 }
 0x41d   : > { %v2909_v52 = vmul.f32 %v2893_v43, %v2877_v26  ;;  %v2633_v41 = vadd.f32 %v7586_v58, %v2632_v2  ;;  %v2927_v61 = vadd.f32 %v2911_v47, %v2460_v5  ;;  %v2898_v34 = vadd.f32 1.0, %v2641_v36  ;;  %v6204_v20 = vpop.eup %6203 }
 0x41e   : > { %v5522_v33 = vpop.f32.mrf.mxu0  ;;  %v5554_v55 = vpop.f32.mrf.mxu1  ;;  %v2880_v25 = vmul.f32 %v6196_v12, %v2832_v60  ;;  %v2881_v0 = vmul.f32 %v6198_v6, %v2833_v31  ;;  %v2473_v19 = vadd.f32 %v5521_v42, %v7602_v17  ;;  %v2837_v5 = vsub.f32 %v7486_v8, %v7567_v59 }
 0x41f   : > { %v2925_v16 = vadd.f32 %v2909_v52, %v2452_v23  ;;  %v2644_v9 = vadd.f32 %v5554_v55, %v7586_v58  ;;  %v2896_v44 = vadd.f32 1.0, %v2633_v41  ;;  %v2956_v27 = vpack.c.bf16 %v2927_v61, %v2926_v39  ;;  %v6206_v26 = vpop.eup %6205 }
 0x420   : > { %v2467_v35 = vpop.f32.mrf.mxu0  ;;  %v2635_v14 = vpop.f32.mrf.mxu1  ;;  %v2914_v38 = vmul.f32 %v2898_v34, %v2882_v4  ;;  %v2476_v46 = vadd.f32 %v5522_v33, %v7602_v17  ;;  %v2838_v42 = vsub.f32 %v7490_v30, %v7575_v32  ;;  %v2465_v47 = vadd.f32 %v7602_v17, %v2464_v7  ;;  %v7660_v4 = vld [vmem:[%s7063_s27 + $0xb0] ss:$12 sps:$4 sm:$0xff]  }
 0x421   : > { %v2899_v49 = vadd.f32 1.0, %v2644_v9  ;;  %v2636_v18 = vadd.f32 %v7586_v58, %v2635_v14  ;;  %v2955_v54 = vpack.c.bf16 %v2925_v16, %v2924_v45  ;;  %v2912_v53 = vmul.f32 %v2896_v44, %v2880_v25  ;;  %v6208_v3 = vpop.eup %6207  ;;  %5623 = vmatprep.subr.bf16.mxu0 %v7660_v4  ;;  %v7666_v25 = vld [vmem:[%s7063_s27 + $0x98] ss:$12 sps:$4 sm:$0xff]  }
 0x422   : > { %v5525_v1 = vpop.f32.mrf.mxu0  ;;  %v5557_v29 = vpop.f32.mrf.mxu1  ;;  %v2468_v15 = vadd.f32 %v7602_v17, %v2467_v35  ;;  %v2884_v63 = vmul.f32 %v6204_v20, %v2836_v13  ;;  %v2887_v60 = vmul.f32 %v6206_v26, %v2839_v40  ;;  %v2930_v51 = vadd.f32 %v2914_v38, %v2473_v19  ;;  %v6163_v40 = vld [vmem:[%s7070_s5 + $0x38] sm:$0xff]   ;;  %5624 = vmatpush3.bf16.msra.mxu0 %v7660_v4  ;;  %v6175_v19 = vld [vmem:[%s7070_s5 + $0x8] sm:$0xff]  }
 0x423   : > { %v2915_v11 = vmul.f32 %v2899_v49, %v2883_v48  ;;  %v2897_v50 = vadd.f32 1.0, %v2636_v18  ;;  %5579 = vmatprep.mubr.bf16.mxu0 %v2955_v54  ;;  %v2657_v43 = vadd.f32 %v5557_v29, %v7586_v58  ;;  %v6210_v6 = vpop.eup %6209  ;;  %v2928_v33 = vadd.f32 %v2912_v53, %v2465_v47  ;;  %5591 = vmatprep.subr.bf16.mxu1 %v6163_v40  ;;  %v6167_v29 = vld [vmem:[%s7070_s5 + $0x28] sm:$0xff]   ;;  %v7672_v54 = vld [vmem:[%s7063_s27 + $0x80] ss:$12 sps:$4 sm:$0xff]   ;;  %v7690_v20 = vld [vmem:[%s7063_s27 + $0x38] ss:$12 sps:$4 sm:$0xff]  }
 0x424   : > { %v2480_v56 = vpop.f32.mrf.mxu0  ;;  %v2648_v22 = vpop.f32.mrf.mxu1  ;;  %5580 = vmatmul.mubr.bf16.gmra.mxu0 %v2956_v27  ;;  %v2886_v30 = vmul.f32 %v6210_v6, %v2838_v42  ;;  %v2885_v7 = vmul.f32 %v6208_v3, %v2837_v5  ;;  %v2489_v35 = vadd.f32 %v5525_v1, %v7602_v17  ;;  %5592 = vmatpush3.bf16.msra.mxu1 %v6163_v40  ;;  %v6173_v27 = vld [vmem:[%s7070_s5 + $0x10] sm:$0xff]   ;;  %v7696_v38 = vld [vmem:[%s7063_s27 + $0x20] ss:$12 sps:$4 sm:$0xff]  }
 0x425   : > { %v2913_v62 = vmul.f32 %v2897_v50, %v2881_v0  ;;  %v2649_v12 = vadd.f32 %v7586_v58, %v2648_v22  ;;  %v2931_v37 = vadd.f32 %v2915_v11, %v2476_v46  ;;  %v2902_v55 = vadd.f32 1.0, %v2657_v43  ;;  %5625 = vmatprep.subr.bf16.mxu0 %v7666_v25  ;;  %v6169_v11 = vld [vmem:[%s7070_s5 + $0x20] sm:$0xff]   ;;  %v6171_v50 = vld [vmem:[%s7070_s5 + $0x18] sm:$0xff]  }
 0x426   : > { %v5526_v36 = vpop.f32.mrf.mxu0  ;;  %v5558_v2 = vpop.f32.mrf.mxu1  ;;  %v2481_v45 = vadd.f32 %v7602_v17, %v2480_v56  ;;  %5626 = vmatpush3.bf16.msra.mxu0 %v7666_v25  ;;  %v7678_v0 = vld [vmem:[%s7063_s27 + $0x68] ss:$12 sps:$4 sm:$0xff]   ;;  %v7684_v56 = vld [vmem:[%s7063_s27 + $0x50] ss:$12 sps:$4 sm:$0xff]   ;;  %v7715_v26 = vld [vmem:[%s991_s6] ss:$0 sm:$0xff] }
 0x427   : > { %v2929_v23 = vadd.f32 %v2913_v62, %v2468_v15  ;;  %v2900_v52 = vadd.f32 1.0, %v2649_v12  ;;  %v2660_v41 = vadd.f32 %v5558_v2, %v7586_v58  ;;  %v2958_v9 = vpack.c.bf16 %v2931_v37, %v2930_v51  ;;  %5627 = vmatprep.subr.bf16.mxu0 %v7672_v54  ;;  %v6177_v53 = vld [vmem:[%s7070_s5] sm:$0xff]  }
 0x428   : > { %v2651_v24 = vpop.f32.mrf.mxu1  ;;  %v2483_v32 = vpop.f32.mrf.mxu0  ;;  %v2918_v13 = vmul.f32 %v2902_v55, %v2886_v30  ;;  %v2492_v34 = vadd.f32 %v5526_v36, %v7602_v17  ;;  %v7702_v46 = vld [vmem:[%s7063_s27 + $0x8] ss:$12 sps:$4 sm:$0xff]  }
 0x429   : > { %v2903_v8 = vadd.f32 1.0, %v2660_v41  ;;  %v2652_v59 = vadd.f32 %v7586_v58, %v2651_v24  ;;  %v2957_v57 = vpack.c.bf16 %v2929_v23, %v2928_v33  ;;  %v2916_v31 = vmul.f32 %v2900_v52, %v2884_v63  ;;  %v8387_v22 = vld [vmem:[#allocation28_spill] sm:$0xff] }
 0x42a   : > { %v2484_v58 = vadd.f32 %v7602_v17, %v2483_v32  ;;  %v2934_v49 = vadd.f32 %v2918_v13, %v2489_v35  ;;  %v6165_v17 = vld [vmem:[%s7070_s5 + $0x30] sm:$0xff]   ;;  %5628 = vmatpush3.bf16.msra.mxu0 %v7672_v54  ;;  %s8395_s5 = sld [smem:[#allocation45_spill]] (!%p5098_p6) }
 0x42b   : > { %v2919_v61 = vmul.f32 %v2903_v8, %v2887_v60  ;;  %v2901_v16 = vadd.f32 1.0, %v2652_v59  ;;  %5583 = vmatprep.mubr.bf16.mxu0 %v2957_v57  ;;  %v2932_v14 = vadd.f32 %v2916_v31, %v2481_v45  ;;  %5593 = vmatprep.subr.bf16.mxu1 %v6165_v17 }
 0x42c   : > { %5584 = vmatmul.mubr.bf16.gmra.mxu0 %v2958_v9  ;;  %5594 = vmatpush3.bf16.msra.mxu1 %v6165_v17 }
 0x42d   : > { %v2917_v44 = vmul.f32 %v2901_v16, %v2885_v7  ;;  %v2935_v39 = vadd.f32 %v2919_v61, %v2492_v34  ;;  %5595 = vmatprep.subr.bf16.mxu1 %v6167_v29  ;;  %5629 = vmatprep.subr.bf16.mxu0 %v7678_v0 }
 0x42e   : > { %5630 = vmatpush3.bf16.msra.mxu0 %v7678_v0 }
 0x42f   : > { %v2933_v48 = vadd.f32 %v2917_v44, %v2484_v58  ;;  %v2960_v1 = vpack.c.bf16 %v2935_v39, %v2934_v49  ;;  %5631 = vmatprep.subr.bf16.mxu0 %v7684_v56 }
 0x430   : > { %5596 = vmatpush3.bf16.msra.mxu1 %v6167_v29 }
 0x431   : > { %v2959_v18 = vpack.c.bf16 %v2933_v48, %v2932_v14  ;;  %5597 = vmatprep.subr.bf16.mxu1 %v6169_v11 }
 0x432   : > { %5632 = vmatpush3.bf16.msra.mxu0 %v7684_v56 }
 0x433   : > { %5587 = vmatprep.mubr.bf16.mxu0 %v2959_v18  ;;  %5633 = vmatprep.subr.bf16.mxu0 %v7690_v20 }
 0x434   : > { %5588 = vmatmul.mubr.bf16.gmra.mxu0 %v2960_v1  ;;  %5598 = vmatpush3.bf16.msra.mxu1 %v6169_v11 }
 0x435   : > { %5639 = vmatprep.mubr.bf16.mxu0 %v7410_v10  ;;  %5599 = vmatprep.subr.bf16.mxu1 %v6171_v50 }
 0x436   : > { %5634 = vmatpush3.bf16.msra.mxu0 %v7690_v20 }
 0x437   : > { %5635 = vmatprep.subr.bf16.mxu0 %v7696_v38 }
 0x438   : > { %5600 = vmatpush3.bf16.msra.mxu1 %v6171_v50 }
 0x439   : > { %5601 = vmatprep.subr.bf16.mxu1 %v6173_v27 }
 0x43a   : > { %5636 = vmatpush3.bf16.msra.mxu0 %v7696_v38 }
 0x43b   : > { %5637 = vmatprep.subr.bf16.mxu0 %v7702_v46 }
 0x43c   : > { %5602 = vmatpush3.bf16.msra.mxu1 %v6173_v27 }
 0x43d   : > { %5603 = vmatprep.subr.bf16.mxu1 %v6175_v19 }
 0x43e   : > { %5638 = vmatpush3.bf16.msra.mxu0 %v7702_v46 }
 0x440   : > { %5604 = vmatpush3.bf16.msra.mxu1 %v6175_v19 }
 0x441   : > { %5605 = vmatprep.subr.bf16.mxu1 %v6177_v53  ;;  %5640 = vmatmul.mubr.bf16.vlgmr.msra.gmra.mxu0 %v7431_v21 }
 0x442   : > { %5643 = vmatprep.mubr.bf16.mxu0 %v7436_v28 }
 0x444   : > { %5606 = vmatpush3.bf16.msra.mxu1 %v6177_v53 }
 0x445   : > { %5755 = vmatprep.subr.bf16.mxu1 %v7660_v4 }
 0x449   : > { %5644 = vmatmul.mubr.bf16.gmra.mxu0 %v8387_v22 }
 0x4dc   : > { %v5577_v15 = vpop.f32.mrf.mxu0 }
 0x4dd   : > { %v7718_v62 = vadd.f32 %v5577_v15, %v7715_v26 }
 0x4de   : > { %v3049_v43 = vpop.f32.mrf.mxu0 }
 0x4df   : > { %v5066_v12 = vmul.f32 -1.442695, %v7718_v62  ;;  %v7722_v3 = vadd.f32 %v7715_v26, %v3049_v43 }
 0x4e0   : > { %v5578_v5 = vpop.f32.mrf.mxu0 }
 0x4e1   : > { %6211 = vpow2.f32 %v5066_v12  ;;  %v5064_v42 = vmul.f32 -1.442695, %v7722_v3  ;;  %v7726_v47 = vadd.f32 %v5578_v5, %v7715_v26 }
 0x4e2   : > { %v3052_v36 = vpop.f32.mrf.mxu0 }
 0x4e3   : > { %6213 = vpow2.f32 %v5064_v42  ;;  %v5067_v2 = vmul.f32 -1.442695, %v7726_v47  ;;  %v7730_v6 = vadd.f32 %v7715_v26, %v3052_v36 }
 0x4e4   : > { %v5581_v23 = vpop.f32.mrf.mxu0 }
 0x4e5   : > { %6215 = vpow2.f32 %v5067_v2  ;;  %v5065_v37 = vmul.f32 -1.442695, %v7730_v6  ;;  %v7734_v52 = vadd.f32 %v5581_v23, %v7715_v26 }
 0x4e6   : > { %v3065_v41 = vpop.f32.mrf.mxu0 }
 0x4e7   : > { %6217 = vpow2.f32 %v5065_v37  ;;  %v5070_v33 = vmul.f32 -1.442695, %v7734_v52  ;;  %v7738_v63 = vadd.f32 %v7715_v26, %v3065_v41 }
 0x4e8   : > { %v5582_v60 = vpop.f32.mrf.mxu0 }
 0x4e9   : > { %6219 = vpow2.f32 %v5070_v33  ;;  %v5068_v24 = vmul.f32 -1.442695, %v7738_v63  ;;  %v7742_v51 = vadd.f32 %v5582_v60, %v7715_v26 }
 0x4ea   : > { %v3068_v55 = vpop.f32.mrf.mxu0 }
 0x4eb   : > { %6221 = vpow2.f32 %v5068_v24  ;;  %v5071_v8 = vmul.f32 -1.442695, %v7742_v51  ;;  %v7746_v59 = vadd.f32 %v7715_v26, %v3068_v55 }
 0x4ec   : > { %v5585_v30 = vpop.f32.mrf.mxu0 }
 0x4ed   : > { %6223 = vpow2.f32 %v5071_v8  ;;  %v5069_v7 = vmul.f32 -1.442695, %v7746_v59  ;;  %v7750_v57 = vadd.f32 %v5585_v30, %v7715_v26 }
 0x4ee   : > { %v6212_v32 = vpop.eup %6211  ;;  %v3081_v61 = vpop.f32.mrf.mxu0 }
 0x4ef   : > { %v3162_v31 = vadd.f32 1.0, %v6212_v32  ;;  %6225 = vpow2.f32 %v5069_v7  ;;  %v5074_v9 = vmul.f32 -1.442695, %v7750_v57  ;;  %v7754_v35 = vadd.f32 %v7715_v26, %v3081_v61 }
 0x4f0   : > { %v6214_v16 = vpop.eup %6213  ;;  %v5586_v13 = vpop.f32.mrf.mxu0 }
 0x4f1   : > { %6227 = vrcp.f32 %v3162_v31  ;;  %v3160_v45 = vadd.f32 1.0, %v6214_v16  ;;  %v5072_v58 = vmul.f32 -1.442695, %v7754_v35  ;;  %v7758_v44 = vadd.f32 %v5586_v13, %v7715_v26 }
 0x4f2   : > { %v6216_v34 = vpop.eup %6215  ;;  %6229 = vpow2.f32 %v5074_v9  ;;  %v3084_v39 = vpop.f32.mrf.mxu0 }
 0x4f3   : > { %6231 = vrcp.f32 %v3160_v45  ;;  %v3163_v14 = vadd.f32 1.0, %v6216_v34  ;;  %v5075_v49 = vmul.f32 -1.442695, %v7758_v44  ;;  %v7762_v18 = vadd.f32 %v7715_v26, %v3084_v39 }
 0x4f4   : > { %v6218_v48 = vpop.eup %6217  ;;  %6233 = vpow2.f32 %v5072_v58  ;;  %v5589_v40 = vpop.f32.mrf.mxu0 }
 0x4f5   : > { %6235 = vrcp.f32 %v3163_v14  ;;  %v3161_v1 = vadd.f32 1.0, %v6218_v48  ;;  %v5073_v17 = vmul.f32 -1.442695, %v7762_v18  ;;  %v7766_v29 = vadd.f32 %v5589_v40, %v7715_v26 }
 0x4f6   : > { %6237 = vpow2.f32 %v5075_v49  ;;  %v6220_v11 = vpop.eup %6219  ;;  %v3097_v50 = vpop.f32.mrf.mxu0 }
 0x4f7   : > { %6239 = vrcp.f32 %v3161_v1  ;;  %v3166_v27 = vadd.f32 1.0, %v6220_v11  ;;  %v5078_v19 = vmul.f32 -1.442695, %v7766_v29  ;;  %v7770_v53 = vadd.f32 %v7715_v26, %v3097_v50 }
 0x4f8   : > { %6241 = vpow2.f32 %v5073_v17  ;;  %v6222_v22 = vpop.eup %6221  ;;  %v5590_v15 = vpop.f32.mrf.mxu0 }
 0x4f9   : > { %6243 = vrcp.f32 %v3166_v27  ;;  %v3164_v43 = vadd.f32 1.0, %v6222_v22  ;;  %v5076_v12 = vmul.f32 -1.442695, %v7770_v53  ;;  %v7774_v5 = vadd.f32 %v5590_v15, %v7715_v26 }
 0x4fa   : > { %v6224_v42 = vpop.eup %6223  ;;  %6245 = vpow2.f32 %v5078_v19  ;;  %v3100_v36 = vpop.f32.mrf.mxu0 }
 0x4fb   : > { %6247 = vrcp.f32 %v3164_v43  ;;  %v3167_v2 = vadd.f32 1.0, %v6224_v42  ;;  %v5079_v37 = vmul.f32 -1.442695, %v7774_v5  ;;  %v7778_v23 = vadd.f32 %v7715_v26, %v3100_v36 }
 0x4fc   : > { %v6226_v41 = vpop.eup %6225  ;;  %6249 = vpow2.f32 %v5076_v12 }
 0x4fd   : > { %6251 = vrcp.f32 %v3167_v2  ;;  %v3165_v60 = vadd.f32 1.0, %v6226_v41  ;;  %v5077_v24 = vmul.f32 -1.442695, %v7778_v23 }
 0x4fe   : > { %v6228_v33 = vpop.eup %6227  ;;  %6253 = vpow2.f32 %v5079_v37 }
 0x4ff   : > { %v6230_v55 = vpop.eup %6229  ;;  %6255 = vrcp.f32 %v3165_v60  ;;  %v3210_v58 = vmul.f32 %v6228_v33, %v7718_v62 }
 0x500   : > { %v6232_v8 = vpop.eup %6231  ;;  %6257 = vpow2.f32 %v5077_v24  ;;  %v3170_v61 = vadd.f32 1.0, %v6230_v55 }
 0x501   : > { %v6234_v30 = vpop.eup %6233  ;;  %v3208_v13 = vmul.f32 %v6232_v8, %v7722_v3 }
 0x502   : > { %v6236_v32 = vpop.eup %6235  ;;  %v3168_v7 = vadd.f32 1.0, %v6234_v30 }
 0x503   : > { %v6238_v31 = vpop.eup %6237  ;;  %v3211_v26 = vmul.f32 %v6236_v32, %v7726_v47 }
 0x504   : > { %v6240_v16 = vpop.eup %6239  ;;  %v3171_v9 = vadd.f32 1.0, %v6238_v31  ;;  %6259 = vrcp.f32 %v3168_v7  ;;  %v7813_v7 = vld [vmem:[%s7068_s9 + $0x2] ss:$0 sm:$0xff] }
 0x505   : > { %v6242_v45 = vpop.eup %6241  ;;  %v3209_v34 = vmul.f32 %v6240_v16, %v7730_v6  ;;  %v3242_v1 = vpack.c.bf16 %v3211_v26, %v3210_v58 }
 0x506   : > { %6261 = vrcp.f32 %v3171_v9  ;;  %v3169_v14 = vadd.f32 1.0, %v6242_v45  ;;  %v6244_v39 = vpop.eup %6243 }
 0x507   : > { %6263 = vrcp.f32 %v3170_v61  ;;  %v3241_v48 = vpack.c.bf16 %v3209_v34, %v3208_v13  ;;  %v6246_v49 = vpop.eup %6245  ;;  %v3214_v43 = vmul.f32 %v6244_v39, %v7734_v52  ;;  %v6279_v39 = vld [vmem:[#allocation2 + $0x58] sm:$0xff] }
 0x508   : > { %6265 = vrcp.f32 %v3169_v14  ;;  %v6248_v40 = vpop.eup %6247  ;;  %v3174_v6 = vadd.f32 1.0, %v6246_v49 }
 0x509   : > { %5607 = vmatprep.mubr.bf16.mxu1 %v3241_v48  ;;  %v6250_v47 = vpop.eup %6249  ;;  %v3212_v22 = vmul.f32 %v6248_v40, %v7738_v63 }
 0x50a   : > { %5608 = vmatmul.mubr.bf16.vlgmr.msra.gmra.mxu1 %v3242_v1  ;;  %v6252_v17 = vpop.eup %6251  ;;  %v3172_v11 = vadd.f32 1.0, %v6250_v47 }
 0x50b   : > { %5763 = vmatpush3.bf16.msra.mxu1 %v7660_v4  ;;  %v6254_v3 = vpop.eup %6253  ;;  %v3215_v50 = vmul.f32 %v6252_v17, %v7742_v51  ;;  %v6280_v17 = vld [vmem:[#allocation2 + $0x30] sm:$0xff] }
 0x50c   : > { %5756 = vmatprep.subr.bf16.mxu1 %v7666_v25  ;;  %v6256_v62 = vpop.eup %6255  ;;  %v3175_v27 = vadd.f32 1.0, %v6254_v3  ;;  %6267 = vrcp.f32 %v3172_v11 }
 0x50d   : > { %v6258_v19 = vpop.eup %6257  ;;  %v3213_v15 = vmul.f32 %v6256_v62, %v7746_v59  ;;  %v3244_v42 = vpack.c.bf16 %v3215_v50, %v3214_v43 }
 0x50e   : > { %6269 = vrcp.f32 %v3175_v27  ;;  %v3173_v12 = vadd.f32 1.0, %v6258_v19  ;;  %v6281_v27 = vld [vmem:[#allocation2 + $0x18] sm:$0xff] }
 0x50f   : > { %5764 = vmatpush3.bf16.msra.mxu1 %v7666_v25  ;;  %6271 = vrcp.f32 %v3174_v6  ;;  %v3243_v4 = vpack.c.bf16 %v3213_v15, %v3212_v22 }
 0x510   : > { %5757 = vmatprep.subr.bf16.mxu1 %v7672_v54  ;;  %6273 = vrcp.f32 %v3173_v12 }
 0x511   : > { %v6260_v51 = vpop.eup %6259  ;;  %5611 = vmatprep.mubr.bf16.mxu1 %v3243_v4  ;;  %v6282_v4 = vld [vmem:[#allocation2] sm:$0xff] }
 0x512   : > { %5612 = vmatmul.mubr.bf16.gmra.mxu1 %v3244_v42  ;;  %v3216_v25 = vmul.f32 %v6260_v51, %v7754_v35 }
 0x513   : > { %v6262_v36 = vpop.eup %6261  ;;  %5765 = vmatpush3.bf16.msra.mxu1 %v7672_v54 }
 0x514   : > { %v6264_v63 = vpop.eup %6263  ;;  %v3219_v52 = vmul.f32 %v6262_v36, %v7758_v44  ;;  %5758 = vmatprep.subr.bf16.mxu1 %v7678_v0 }
 0x515   : > { %v6266_v59 = vpop.eup %6265  ;;  %v3218_v37 = vmul.f32 %v6264_v63, %v7750_v57 }
 0x516   : > { %v3217_v2 = vmul.f32 %v6266_v59, %v7762_v18 }
 0x517   : > { %5766 = vmatpush3.bf16.msra.mxu1 %v7678_v0  ;;  %v3246_v33 = vpack.c.bf16 %v3219_v52, %v3218_v37 }
 0x518   : > { %v3245_v41 = vpack.c.bf16 %v3217_v2, %v3216_v25  ;;  %5759 = vmatprep.subr.bf16.mxu1 %v7684_v56  ;;  %v6283_v2 = vld [vmem:[#allocation2 + $0x8] sm:$0xff] }
 0x519   : > { %v6268_v60 = vpop.eup %6267 }
 0x51a   : > { %5615 = vmatprep.mubr.bf16.mxu1 %v3245_v41  ;;  %v3220_v57 = vmul.f32 %v6268_v60, %v7770_v53  ;;  %v6276_v53 = vld [vmem:[#allocation3 + $0x28] sm:$0xff]  }
 0x51b   : > { %5616 = vmatmul.mubr.bf16.gmra.mxu1 %v3246_v33  ;;  %v6270_v54 = vpop.eup %6269 }
 0x51c   : > { %5767 = vmatpush3.bf16.msra.mxu1 %v7684_v56  ;;  %v6272_v44 = vpop.eup %6271  ;;  %v3223_v18 = vmul.f32 %v6270_v54, %v7774_v5  ;;  %v6275_v56 = vld [vmem:[#allocation3 + $0x20] sm:$0xff]   ;;  %v5641_v5 = vpop.f32.mrf.mxu0 }
 0x51d   : > { %5760 = vmatprep.subr.bf16.mxu1 %v7690_v20  ;;  %v6274_v35 = vpop.eup %6273  ;;  %v3222_v24 = vmul.f32 %v6272_v44, %v7766_v29  ;;  %v6277_v29 = vld [vmem:[#allocation3 + $0x30] sm:$0xff]  }
 0x51e   : > { %v3221_v0 = vmul.f32 %v6274_v35, %v7778_v23  ;;  %v3505_v23 = vpop.f32.mrf.mxu0  ;;  %v6284_v44 = vld [vmem:[#allocation2 + $0x50] sm:$0xff] }
 0x51f   : > { %v3248_v8 = vpack.c.bf16 %v3223_v18, %v3222_v24  ;;  %v3506_v26 = vadd.f32 %v7813_v7, %v3505_v23  ;;  %v6285_v24 = vld [vmem:[#allocation2 + $0x48] sm:$0xff] }
 0x520   : > { %5768 = vmatpush3.bf16.msra.mxu1 %v7690_v20  ;;  %v3247_v55 = vpack.c.bf16 %v3221_v0, %v3220_v57  ;;  %v6278_v20 = vld [vmem:[#allocation3 + $0x38] sm:$0xff]   ;;  %v5642_v30 = vpop.f32.mrf.mxu0 }
 0x521   : > { %5761 = vmatprep.subr.bf16.mxu1 %v7696_v38  ;;  %v3517_v34 = vadd.f32 %v5642_v30, %v7813_v7 }
 0x522   : > { %5619 = vmatprep.mubr.bf16.mxu1 %v3247_v55  ;;  %v3508_v32 = vpop.f32.mrf.mxu0 }
 0x523   : > { %5620 = vmatmul.mubr.bf16.gmra.mxu1 %v3248_v8  ;;  %v3509_v40 = vadd.f32 %v7813_v7, %v3508_v32 }
 0x524   : > { %5769 = vmatpush3.bf16.msra.mxu1 %v7696_v38  ;;  %5647 = vmatprep.mubr.bf16.mxu1 %v6275_v56  ;;  %v7820_v38 = vld [vmem:[%s994_s2] ss:$0 sm:$0xff]  ;;  %v5645_v31 = vpop.f32.mrf.mxu0  ;;  %s8391_s2 = sld [smem:[#allocation46_spill]] (!%p5098_p6) }
 0x525   : > { %5762 = vmatprep.subr.bf16.mxu1 %v7702_v46  ;;  %v3530_v50 = vadd.f32 %v5645_v31, %v7813_v7 }
 0x526   : > { %v3521_v58 = vpop.f32.mrf.mxu0 }
 0x527   : > { %v3522_v12 = vadd.f32 %v7813_v7, %v3521_v58 }
 0x528   : > { %5770 = vmatpush3.bf16.msra.mxu1 %v7702_v46  ;;  %v3514_v46 = vadd.f32 %v5641_v5, %v7813_v7  ;;  %v5646_v62 = vpop.f32.mrf.mxu0 }
 0x529   : > { %v3533_v52 = vadd.f32 %v5646_v62, %v7813_v7 }
 0x52a   : > { %v3524_v36 = vpop.f32.mrf.mxu0 }
 0x52b   : > { %5648 = vmatmul.mubr.bf16.vlgmr.msra.gmra.mxu1 %v6276_v53  ;;  %v3525_v60 = vadd.f32 %v7813_v7, %v3524_v36  ;;  %v6286_v53 = vld [vmem:[#allocation2 + $0x68] sm:$0xff]  ;;  %v6290_v36 = vld [vmem:[#allocation2 + $0x20] sm:$0xff] }
 0x52c   : > { %5651 = vmatprep.mubr.bf16.mxu1 %v6277_v29 }
 0x533   : > { %5652 = vmatmul.mubr.bf16.gmra.mxu1 %v6278_v20 }
 0x5ca   : > { %v5609_v61 = vpop.f32.mrf.mxu1 }
 0x5cb   : > { %v3346_v16 = vadd.f32 %v5609_v61, %v7820_v38 }
 0x5cc   : > { %v3337_v9 = vpop.f32.mrf.mxu1 }
 0x5cd   : > { %v3570_v45 = vmul.f32 %v3514_v46, %v3346_v16  ;;  %v3338_v13 = vadd.f32 %v7820_v38, %v3337_v9 }
 0x5ce   : > { %v5610_v14 = vpop.f32.mrf.mxu1 }
 0x5cf   : > { %v7827_v48 = vadd.f32 %v6279_v39, %v3570_v45  ;;  %v3568_v49 = vmul.f32 %v3506_v26, %v3338_v13  ;;  %v3349_v1 = vadd.f32 %v5610_v14, %v7820_v38  ;;  %v6287_v14 = vld [vmem:[#allocation2 + $0x10] sm:$0xff] }
 0x5d0   : > { %v3340_v47 = vpop.f32.mrf.mxu1 }
 0x5d1   : > { %3602 = vst [vmem:[#allocation2 + $0x58] sm:$0xff] %v7827_v48  ;;  %v7832_v11 = vadd.f32 %v6280_v17, %v3568_v49  ;;  %v3571_v3 = vmul.f32 %v3517_v34, %v3349_v1  ;;  %v3341_v6 = vadd.f32 %v7820_v38, %v3340_v47  ;;  %v6288_v17 = vld [vmem:[#allocation2 + $0x40] sm:$0xff] }
 0x5d2   : > { %v5613_v15 = vpop.f32.mrf.mxu1 }
 0x5d3   : > { %3600 = vst [vmem:[#allocation2 + $0x30] sm:$0xff] %v7832_v11  ;;  %v7837_v19 = vadd.f32 %v6281_v27, %v3571_v3  ;;  %v3569_v22 = vmul.f32 %v3509_v40, %v3341_v6  ;;  %v3362_v43 = vadd.f32 %v5613_v15, %v7820_v38 }
 0x5d4   : > { %v3353_v51 = vpop.f32.mrf.mxu1 }
 0x5d5   : > { %3603 = vst [vmem:[#allocation2 + $0x18] sm:$0xff] %v7837_v19  ;;  %v7842_v42 = vadd.f32 %v6282_v4, %v3569_v22  ;;  %v3574_v63 = vmul.f32 %v3530_v50, %v3362_v43  ;;  %v3354_v59 = vadd.f32 %v7820_v38, %v3353_v51  ;;  %v6289_v22 = vld [vmem:[#allocation2 + $0x38] sm:$0xff] }
 0x5d6   : > { %v5614_v25 = vpop.f32.mrf.mxu1 }
 0x5d7   : > { %3601 = vst [vmem:[#allocation2] sm:$0xff] %v7842_v42  ;;  %v7847_v37 = vadd.f32 %v6283_v2, %v3574_v63  ;;  %v3572_v41 = vmul.f32 %v3522_v12, %v3354_v59  ;;  %v3365_v33 = vadd.f32 %v5614_v25, %v7820_v38 }
 0x5d8   : > { %v3356_v54 = vpop.f32.mrf.mxu1 }
 0x5d9   : > { %3606 = vst [vmem:[#allocation2 + $0x8] sm:$0xff] %v7847_v37  ;;  %v7852_v35 = vadd.f32 %v6284_v44, %v3572_v41  ;;  %v3575_v18 = vmul.f32 %v3533_v52, %v3365_v33  ;;  %v3357_v57 = vadd.f32 %v7820_v38, %v3356_v54  ;;  %v6291_v41 = vld [vmem:[#allocation2 + $0x78] sm:$0xff] }
 0x5db   : > { %v5617_v0 = vpop.f32.mrf.mxu1  ;;  %3604 = vst [vmem:[#allocation2 + $0x50] sm:$0xff] %v7852_v35  ;;  %v7856_v55 = vadd.f32 %v6285_v24, %v3575_v18  ;;  %v3573_v8 = vmul.f32 %v3525_v60, %v3357_v57  ;;  %v6292_v57 = vld [vmem:[#allocation2 + $0x60] sm:$0xff] }
 0x5dc   : > { %v3378_v61 = vadd.f32 %v5617_v0, %v7820_v38 }
 0x5dd   : > { %v3369_v56 = vpop.f32.mrf.mxu1  ;;  %3607 = vst [vmem:[#allocation2 + $0x48] sm:$0xff] %v7856_v55  ;;  %v7859_v29 = vadd.f32 %v6286_v53, %v3573_v8 }
 0x5de   : > { %v3370_v9 = vadd.f32 %v7820_v38, %v3369_v56  ;;  %v6293_v56 = vld [vmem:[#allocation2 + $0x28] sm:$0xff] }
 0x5df   : > { %v5618_v20 = vpop.f32.mrf.mxu1  ;;  %3605 = vst [vmem:[#allocation2 + $0x68] sm:$0xff] %v7859_v29 }
 0x5e0   : > { %v3381_v58 = vadd.f32 %v5618_v20, %v7820_v38 }
 0x5e1   : > { %v3372_v5 = vpop.f32.mrf.mxu1 }
 0x5e2   : > { %v3373_v47 = vadd.f32 %v7820_v38, %v3372_v5  ;;  %v6294_v5 = vld [vmem:[#allocation2 + $0x70] sm:$0xff] }
 0x5e3   : > { %v5621_v23 = vpop.f32.mrf.mxu1 }
 0x5e4   : > { %v3394_v27 = vadd.f32 %v5621_v23, %v7820_v38 }
 0x5e5   : > { %v3385_v30 = vpop.f32.mrf.mxu1 }
 0x5e6   : > { %v3386_v51 = vadd.f32 %v7820_v38, %v3385_v30 }
 0x5e7   : > { %v5622_v32 = vpop.f32.mrf.mxu1 }
 0x5e8   : > { %v3397_v2 = vadd.f32 %v5622_v32, %v7820_v38 }
 0x5e9   : > { %v3388_v46 = vpop.f32.mrf.mxu1 }
 0x5ea   : > { %v3389_v18 = vadd.f32 %v7820_v38, %v3388_v46 }
 0x5eb   : > { %v5649_v31 = vpop.f32.mrf.mxu1 }
 0x5ec   : > { %v3546_v16 = vadd.f32 %v5649_v31, %v7813_v7 }
 0x5ed   : > { %v3537_v26 = vpop.f32.mrf.mxu1 }
 0x5ee   : > { %v3578_v45 = vmul.f32 %v3546_v16, %v3378_v61  ;;  %v3538_v13 = vadd.f32 %v7813_v7, %v3537_v26 }
 0x5ef   : > { %v5650_v34 = vpop.f32.mrf.mxu1 }
 0x5f0   : > { %v7867_v39 = vadd.f32 %v6287_v14, %v3578_v45  ;;  %v3576_v49 = vmul.f32 %v3538_v13, %v3370_v9  ;;  %v3549_v1 = vadd.f32 %v5650_v34, %v7813_v7 }
 0x5f1   : > { %v3540_v40 = vpop.f32.mrf.mxu1 }
 0x5f2   : > { %3610 = vst [vmem:[#allocation2 + $0x10] sm:$0xff] %v7867_v39  ;;  %v7872_v3 = vadd.f32 %v6288_v17, %v3576_v49  ;;  %v3579_v6 = vmul.f32 %v3549_v1, %v3381_v58  ;;  %v3541_v62 = vadd.f32 %v7813_v7, %v3540_v40 }
 0x5f3   : > { %v5653_v50 = vpop.f32.mrf.mxu1 }
 0x5f4   : > { %3608 = vst [vmem:[#allocation2 + $0x40] sm:$0xff] %v7872_v3  ;;  %v7877_v15 = vadd.f32 %v6289_v22, %v3579_v6  ;;  %v3577_v43 = vmul.f32 %v3541_v62, %v3373_v47  ;;  %v3562_v12 = vadd.f32 %v5653_v50, %v7813_v7 }
 0x5f5   : > { %v3553_v4 = vpop.f32.mrf.mxu1 }
 0x5f6   : > { %3611 = vst [vmem:[#allocation2 + $0x38] sm:$0xff] %v7877_v15  ;;  %v7882_v63 = vadd.f32 %v6290_v36, %v3577_v43  ;;  %v3582_v59 = vmul.f32 %v3562_v12, %v3394_v27  ;;  %v3554_v52 = vadd.f32 %v7813_v7, %v3553_v4 }
 0x5f7   : > { %v5654_v25 = vpop.f32.mrf.mxu1 }
 0x5f8   : > { %3609 = vst [vmem:[#allocation2 + $0x20] sm:$0xff] %v7882_v63  ;;  %v7887_v33 = vadd.f32 %v6291_v41, %v3582_v59  ;;  %v3580_v60 = vmul.f32 %v3554_v52, %v3386_v51  ;;  %v3565_v54 = vadd.f32 %v5654_v25, %v7813_v7 }
 0x5f9   : > { %v3556_v44 = vpop.f32.mrf.mxu1 }
 0x5fa   : > { %3614 = vst [vmem:[#allocation2 + $0x78] sm:$0xff] %v7887_v33  ;;  %v7892_v0 = vadd.f32 %v6292_v57, %v3580_v60  ;;  %v3583_v24 = vmul.f32 %v3565_v54, %v3397_v2  ;;  %v3557_v8 = vadd.f32 %v7813_v7, %v3556_v44 }
 0x5fc   : > { %3612 = vst [vmem:[#allocation2 + $0x60] sm:$0xff] %v7892_v0  ;;  %v7896_v53 = vadd.f32 %v6293_v56, %v3583_v24  ;;  %v3581_v20 = vmul.f32 %v3557_v8, %v3389_v18  ;;  %3619 = sbr.rel (%p5098_p6) target bundleno = 2138 (0x85a), region = 156 }
 0x5fe   : > { %3615 = vst [vmem:[#allocation2 + $0x28] sm:$0xff] %v7896_v53  ;;  %v7899_v23 = vadd.f32 %v6294_v5, %v3581_v20 }
 0x600   : > { %3613 = vst [vmem:[#allocation2 + $0x70] sm:$0xff] %v7899_v23 }
 0x601   : > { %v6295_v38 = vld [vmem:[#allocation14 + $0x70] ss:$8 sps:$4 sm:$0xff]   ;;  %3956 = vadd.xlane.f32.xlu0 %v7832_v11  ;;  %3960 = vadd.xlane.f32.xlu1 %v7827_v48  ;;  %v6296_v7 = vld [vmem:[#allocation14 + $0x74] ss:$8 sps:$4 sm:$0xff]   ;;  %v6297_v30 = vld [vmem:[#allocation14 + $0x60] ss:$8 sps:$4 sm:$0xff]   ;;  %v4004_v61 = vmul.f32 %v7832_v11, %v7832_v11  ;;  %v4006_v9 = vmul.f32 %v7827_v48, %v7827_v48  ;;  %v4007_v45 = vmul.f32 %v7837_v19, %v7837_v19 }
 0x602   : > { %5671 = vmatprep.mubr.bf16.mxu0 %v7410_v10  ;;  %5703 = vmatprep.mubr.bf16.mxu1 %v7410_v10  ;;  %v6298_v32 = vld [vmem:[#allocation14 + $0x64] ss:$8 sps:$4 sm:$0xff]   ;;  %v6299_v46 = vld [vmem:[#allocation14 + $0x50] ss:$8 sps:$4 sm:$0xff]   ;;  %v6300_v31 = vld [vmem:[#allocation14 + $0x54] ss:$8 sps:$4 sm:$0xff]   ;;  %v4005_v10 = vmul.f32 %v7842_v42, %v7842_v42  ;;  %v4008_v40 = vmul.f32 %v7852_v35, %v7852_v35  ;;  %v4009_v47 = vmul.f32 %v7859_v29, %v7859_v29 }
 0x603   : > { %5655 = vmatprep.subr.bf16.mxu0 %v6295_v38  ;;  %5687 = vmatprep.subr.bf16.mxu1 %v6296_v7  ;;  %v6301_v16 = vld [vmem:[#allocation14 + $0x40] ss:$8 sps:$4 sm:$0xff]   ;;  %v6302_v26 = vld [vmem:[#allocation14 + $0x44] ss:$8 sps:$4 sm:$0xff]   ;;  %v6303_v13 = vld [vmem:[#allocation14 + $0x30] ss:$8 sps:$4 sm:$0xff]   ;;  %v4010_v62 = vmul.f32 %v7847_v37, %v7847_v37  ;;  %v4011_v50 = vmul.f32 %v7856_v55, %v7856_v55  ;;  %v4012_v27 = vmul.f32 %v7872_v3, %v7872_v3 }
 0x604   : > { %5656 = vmatpush3.bf16.msra.mxu0 %v6295_v38  ;;  %5688 = vmatpush3.bf16.msra.mxu1 %v6296_v7  ;;  %v6304_v34 = vld [vmem:[#allocation14 + $0x34] ss:$8 sps:$4 sm:$0xff]   ;;  %v6305_v58 = vld [vmem:[#allocation14 + $0x20] ss:$8 sps:$4 sm:$0xff]   ;;  %v6306_v14 = vld [vmem:[#allocation14 + $0x24] ss:$8 sps:$4 sm:$0xff]   ;;  %v4013_v22 = vmul.f32 %v7882_v63, %v7882_v63  ;;  %v4014_v43 = vmul.f32 %v7867_v39, %v7867_v39  ;;  %v4016_v52 = vmul.f32 %v7892_v0, %v7892_v0 }
 0x605   : > { %5657 = vmatprep.subr.bf16.mxu0 %v6297_v30  ;;  %5689 = vmatprep.subr.bf16.mxu1 %v6298_v32  ;;  %v6307_v49 = vld [vmem:[#allocation14 + $0x10] ss:$8 sps:$4 sm:$0xff]   ;;  %v6308_v1 = vld [vmem:[#allocation14 + $0x14] ss:$8 sps:$4 sm:$0xff]   ;;  %v6309_v17 = vld [vmem:[#allocation14] ss:$8 sps:$4 sm:$0xff]   ;;  %v4017_v25 = vmul.f32 %v7899_v23, %v7899_v23  ;;  %v4018_v41 = vmul.f32 %v7887_v33, %v7887_v33  ;;  %v4019_v54 = vmul.f32 %v7896_v53, %v7896_v53 }
 0x606   : > { %3958 = vadd.xlane.f32.xlu0 %v7842_v42  ;;  %3962 = vadd.xlane.f32.xlu1 %v7837_v19  ;;  %v6310_v6 = vld [vmem:[#allocation14 + $0x4] ss:$8 sps:$4 sm:$0xff]   ;;  %v6311_v4 = vld [vmem:[%s8391_s2 + $0x38] sm:$0xff]   ;;  %v8393_v59 = vld [vmem:[#allocation31_spill] sm:$0xff]  ;;  %vm4572_vm1 = vcmask 7168   ;;  %vm4452_vm2 = vcmask 261120  }
 0x607   : > { %v8389_v12 = vld [vmem:[#allocation28_spill] sm:$0xff]  ;;  %v8392_v51 = vld [vmem:[#allocation30_spill] sm:$0xff]  ;;  %v6312_v36 = vld [vmem:[%s8391_s2 + $0x30] sm:$0xff]  }
 0x608   : > { %5658 = vmatpush3.bf16.msra.mxu0 %v6297_v30  ;;  %5690 = vmatpush3.bf16.msra.mxu1 %v6298_v32  ;;  %v6313_v2 = vld [vmem:[%s8391_s2 + $0x28] sm:$0xff]   ;;  %v6314_v44 = vld [vmem:[%s8391_s2 + $0x20] sm:$0xff]   ;;  %v6315_v18 = vld [vmem:[%s8391_s2 + $0x18] sm:$0xff]  }
 0x609   : > { %5659 = vmatprep.subr.bf16.mxu0 %v6299_v46  ;;  %5691 = vmatprep.subr.bf16.mxu1 %v6300_v31  ;;  %v8394_v60 = vld [vmem:[#allocation32_spill] sm:$0xff]  ;;  %v6316_v57 = vld [vmem:[%s8391_s2 + $0x10] sm:$0xff]   ;;  %v6318_v8 = vld [vmem:[%s8391_s2] sm:$0xff]  }
 0x60a   : > { %4020 = vadd.xlane.f32.xlu0 %v4004_v61  ;;  %4022 = vadd.xlane.f32.xlu1 %v4005_v10  ;;  %v6317_v24 = vld [vmem:[%s8391_s2 + $0x8] sm:$0xff]  }
 0x60c   : > { %5660 = vmatpush3.bf16.msra.mxu0 %v6299_v46  ;;  %5692 = vmatpush3.bf16.msra.mxu1 %v6300_v31 }
 0x60d   : > { %5661 = vmatprep.subr.bf16.mxu0 %v6301_v16  ;;  %5693 = vmatprep.subr.bf16.mxu1 %v6302_v26 }
 0x60e   : > { %4024 = vadd.xlane.f32.xlu0 %v4006_v9  ;;  %4026 = vadd.xlane.f32.xlu1 %v4007_v45 }
 0x610   : > { %5662 = vmatpush3.bf16.msra.mxu0 %v6301_v16  ;;  %5694 = vmatpush3.bf16.msra.mxu1 %v6302_v26 }
 0x611   : > { %5663 = vmatprep.subr.bf16.mxu0 %v6303_v13  ;;  %5695 = vmatprep.subr.bf16.mxu1 %v6304_v34 }
 0x612   : > { %3964 = vadd.xlane.f32.xlu0 %v7852_v35  ;;  %3966 = vadd.xlane.f32.xlu1 %v7859_v29 }
 0x614   : > { %5664 = vmatpush3.bf16.msra.mxu0 %v6303_v13  ;;  %5696 = vmatpush3.bf16.msra.mxu1 %v6304_v34 }
 0x615   : > { %5665 = vmatprep.subr.bf16.mxu0 %v6305_v58  ;;  %5697 = vmatprep.subr.bf16.mxu1 %v6306_v14 }
 0x616   : > { %3968 = vadd.xlane.f32.xlu0 %v7847_v37  ;;  %3970 = vadd.xlane.f32.xlu1 %v7856_v55 }
 0x618   : > { %5666 = vmatpush3.bf16.msra.mxu0 %v6305_v58  ;;  %5698 = vmatpush3.bf16.msra.mxu1 %v6306_v14 }
 0x619   : > { %5667 = vmatprep.subr.bf16.mxu0 %v6307_v49  ;;  %5699 = vmatprep.subr.bf16.mxu1 %v6308_v1 }
 0x61a   : > { %4028 = vadd.xlane.f32.xlu0 %v4008_v40  ;;  %4030 = vadd.xlane.f32.xlu1 %v4009_v47 }
 0x61c   : > { %5668 = vmatpush3.bf16.msra.mxu0 %v6307_v49  ;;  %5700 = vmatpush3.bf16.msra.mxu1 %v6308_v1 }
 0x61d   : > { %5669 = vmatprep.subr.bf16.mxu0 %v6309_v17  ;;  %5701 = vmatprep.subr.bf16.mxu1 %v6310_v6 }
 0x61e   : > { %4032 = vadd.xlane.f32.xlu0 %v4010_v62  ;;  %4034 = vadd.xlane.f32.xlu1 %v4011_v50 }
 0x620   : > { %5670 = vmatpush3.bf16.msra.mxu0 %v6309_v17  ;;  %5702 = vmatpush3.bf16.msra.mxu1 %v6310_v6 }
 0x621   : > { %5719 = vmatprep.subr.bf16.mxu0 %v6311_v4  ;;  %5771 = vmatprep.subr.bf16.mxu1 %v6311_v4 }
 0x622   : > { %3972 = vadd.xlane.f32.xlu0 %v7872_v3  ;;  %3974 = vadd.xlane.f32.xlu1 %v7882_v63 }
 0x623   : > { %5672 = vmatmul.mubr.bf16.vlgmr.msra.gmra.mxu0 %v7431_v21  ;;  %5704 = vmatmul.mubr.bf16.vlgmr.msra.gmra.mxu1 %v7431_v21  ;;  %v4015_v21 = vmul.f32 %v7877_v15, %v7877_v15 }
 0x624   : > { %5675 = vmatprep.mubr.bf16.mxu0 %v7436_v28  ;;  %5707 = vmatprep.mubr.bf16.mxu1 %v7436_v28  ;;  %v8390_v28 = vld [vmem:[#allocation29_spill] sm:$0xff] }
 0x625   : > { %5720 = vmatpush3.bf16.msra.mxu0 %v6311_v4  ;;  %5779 = vmatpush3.bf16.msra.mxu1 %v6311_v4 }
 0x626   : > { %3976 = vadd.xlane.f32.xlu0 %v7867_v39  ;;  %3978 = vadd.xlane.f32.xlu1 %v7877_v15 }
 0x627   : > { %5721 = vmatprep.subr.bf16.mxu0 %v6312_v36  ;;  %5772 = vmatprep.subr.bf16.mxu1 %v6312_v36 }
 0x629   : > { %5722 = vmatpush3.bf16.msra.mxu0 %v6312_v36  ;;  %5780 = vmatpush3.bf16.msra.mxu1 %v6312_v36 }
 0x62a   : > { %4036 = vadd.xlane.f32.xlu0 %v4012_v27  ;;  %4038 = vadd.xlane.f32.xlu1 %v4013_v22 }
 0x62b   : > { %5676 = vmatmul.mubr.bf16.gmra.mxu0 %v8389_v12  ;;  %5708 = vmatmul.mubr.bf16.gmra.mxu1 %v8389_v12 }
 0x62c   : > { %5679 = vmatprep.mubr.bf16.mxu0 %v8390_v28  ;;  %5711 = vmatprep.mubr.bf16.mxu1 %v8390_v28 }
 0x62d   : > { %5723 = vmatprep.subr.bf16.mxu0 %v6313_v2  ;;  %5773 = vmatprep.subr.bf16.mxu1 %v6313_v2 }
 0x62e   : > { %4040 = vadd.xlane.f32.xlu0 %v4014_v43  ;;  %4042 = vadd.xlane.f32.xlu1 %v4015_v21 }
 0x62f   : > { %5724 = vmatpush3.bf16.msra.mxu0 %v6313_v2  ;;  %5781 = vmatpush3.bf16.msra.mxu1 %v6313_v2 }
 0x630   : > { %5725 = vmatprep.subr.bf16.mxu0 %v6314_v44  ;;  %5774 = vmatprep.subr.bf16.mxu1 %v6314_v44 }
 0x632   : > { %3980 = vadd.xlane.f32.xlu0 %v7892_v0  ;;  %3982 = vadd.xlane.f32.xlu1 %v7899_v23 }
 0x633   : > { %5680 = vmatmul.mubr.bf16.gmra.mxu0 %v8392_v51  ;;  %5712 = vmatmul.mubr.bf16.gmra.mxu1 %v8392_v51 }
 0x634   : > { %5683 = vmatprep.mubr.bf16.mxu0 %v8393_v59  ;;  %5715 = vmatprep.mubr.bf16.mxu1 %v8393_v59 }
 0x635   : > { %5726 = vmatpush3.bf16.msra.mxu0 %v6314_v44  ;;  %5782 = vmatpush3.bf16.msra.mxu1 %v6314_v44 }
 0x636   : > { %3984 = vadd.xlane.f32.xlu0 %v7887_v33  ;;  %3986 = vadd.xlane.f32.xlu1 %v7896_v53 }
 0x637   : > { %5727 = vmatprep.subr.bf16.mxu0 %v6315_v18  ;;  %5775 = vmatprep.subr.bf16.mxu1 %v6315_v18 }
 0x639   : > { %5728 = vmatpush3.bf16.msra.mxu0 %v6315_v18  ;;  %5783 = vmatpush3.bf16.msra.mxu1 %v6315_v18 }
 0x63a   : > { %4044 = vadd.xlane.f32.xlu0 %v4016_v52  ;;  %4046 = vadd.xlane.f32.xlu1 %v4017_v25 }
 0x63b   : > { %5684 = vmatmul.mubr.bf16.gmra.mxu0 %v8394_v60  ;;  %5716 = vmatmul.mubr.bf16.gmra.mxu1 %v8394_v60 }
 0x63c   : > { %5729 = vmatprep.subr.bf16.mxu0 %v6316_v57  ;;  %5776 = vmatprep.subr.bf16.mxu1 %v6316_v57 }
 0x63d   : > { %5730 = vmatpush3.bf16.msra.mxu0 %v6316_v57  ;;  %5784 = vmatpush3.bf16.msra.mxu1 %v6316_v57 }
 0x63e   : > { %4048 = vadd.xlane.f32.xlu0 %v4018_v41  ;;  %4050 = vadd.xlane.f32.xlu1 %v4019_v54 }
 0x63f   : > { %5731 = vmatprep.subr.bf16.mxu0 %v6317_v24  ;;  %5777 = vmatprep.subr.bf16.mxu1 %v6317_v24 }
 0x641   : > { %5732 = vmatpush3.bf16.msra.mxu0 %v6317_v24  ;;  %5785 = vmatpush3.bf16.msra.mxu1 %v6317_v24 }
 0x642   : > { %5733 = vmatprep.subr.bf16.mxu0 %v6318_v8  ;;  %5778 = vmatprep.subr.bf16.mxu1 %v6318_v8 }
 0x645   : > { %5734 = vmatpush3.bf16.msra.mxu0 %v6318_v8  ;;  %5786 = vmatpush3.bf16.msra.mxu1 %v6318_v8 }
 0x68a   : > { %v3957_v56 = vpop.xlane.xlu0 %3956  ;;  %v3961_v20 = vpop.xlane.xlu1 %3960 }
 0x68b   : > { %v7993_v47 = vmul.f32 0.0078125, %v3957_v56  ;;  %v7997_v62 = vmul.f32 0.0078125, %v3961_v20 }
 0x68d   : > { %v4068_v27 = vmul.f32 %v7993_v47, %v7993_v47  ;;  %v4070_v28 = vmul.f32 %v7997_v62, %v7997_v62 }
 0x68f   : > { %v3959_v5 = vpop.xlane.xlu0 %3958  ;;  %v3963_v38 = vpop.xlane.xlu1 %3962 }
 0x690   : > { %v7995_v17 = vmul.f32 0.0078125, %v3959_v5  ;;  %v7999_v50 = vmul.f32 0.0078125, %v3963_v38 }
 0x692   : > { %v4069_v22 = vmul.f32 %v7995_v17, %v7995_v17  ;;  %v4071_v4 = vmul.f32 %v7999_v50, %v7999_v50 }
 0x693   : > { %v4021_v7 = vpop.xlane.xlu0 %4020  ;;  %v4023_v30 = vpop.xlane.xlu1 %4022 }
 0x694   : > { %v4052_v43 = vmul.f32 0.0078125, %v4021_v7  ;;  %v4053_v12 = vmul.f32 0.0078125, %v4023_v30 }
 0x696   : > { %v4084_v51 = vsub.f32 %v4052_v43, %v4068_v27  ;;  %v4085_v36 = vsub.f32 %v4053_v12, %v4069_v22 }
 0x697   : > { %v4025_v32 = vpop.xlane.xlu0 %4024  ;;  %v4027_v46 = vpop.xlane.xlu1 %4026 }
 0x698   : > { %v4054_v59 = vmul.f32 0.0078125, %v4025_v32  ;;  %v4055_v52 = vmul.f32 0.0078125, %v4027_v46  ;;  %v4100_v60 = vmax.f32 %v4084_v51, 0.0  ;;  %v4101_v54 = vmax.f32 %v4085_v36, 0.0 }
 0x69a   : > { %v4086_v44 = vsub.f32 %v4054_v59, %v4070_v28  ;;  %v4087_v18 = vsub.f32 %v4055_v52, %v4071_v4  ;;  %v4132_v7 = vadd.f32 1e-06, %v4100_v60  ;;  %v4133_v30 = vadd.f32 1e-06, %v4101_v54 }
 0x69b   : > { %v3965_v31 = vpop.xlane.xlu0 %3964  ;;  %v3967_v61 = vpop.xlane.xlu1 %3966 }
 0x69c   : > { %v8009_v2 = vmul.f32 0.0078125, %v3965_v31  ;;  %v8011_v57 = vmul.f32 0.0078125, %v3967_v61  ;;  %v4102_v32 = vmax.f32 %v4086_v44, 0.0  ;;  %v4103_v46 = vmax.f32 %v4087_v18, 0.0 }
 0x69d   : > { %6319 = vrsqrt.f32 %v4132_v7 }
 0x69e   : > { %v4072_v24 = vmul.f32 %v8009_v2, %v8009_v2  ;;  %v4073_v31 = vmul.f32 %v8011_v57, %v8011_v57  ;;  %v4134_v51 = vadd.f32 1e-06, %v4102_v32  ;;  %6321 = vrsqrt.f32 %v4133_v30 }
 0x69f   : > { %v3969_v10 = vpop.xlane.xlu0 %3968  ;;  %v3971_v16 = vpop.xlane.xlu1 %3970 }
 0x6a0   : > { %v8015_v8 = vmul.f32 0.0078125, %v3969_v10  ;;  %v8017_v20 = vmul.f32 0.0078125, %v3971_v16  ;;  %6323 = vrsqrt.f32 %v4134_v51 }
 0x6a2   : > { %v4074_v61 = vmul.f32 %v8015_v8, %v8015_v8  ;;  %v4075_v16 = vmul.f32 %v8017_v20, %v8017_v20 }
 0x6a3   : > { %v4029_v26 = vpop.xlane.xlu0 %4028  ;;  %v4031_v9 = vpop.xlane.xlu1 %4030 }
 0x6a4   : > { %v4056_v56 = vmul.f32 0.0078125, %v4029_v26  ;;  %v4057_v27 = vmul.f32 0.0078125, %v4031_v9  ;;  %v4135_v9 = vadd.f32 1e-06, %v4103_v46 }
 0x6a6   : > { %v4088_v22 = vsub.f32 %v4056_v56, %v4072_v24  ;;  %v4089_v59 = vsub.f32 %v4057_v27, %v4073_v31  ;;  %6325 = vrsqrt.f32 %v4135_v9 }
 0x6a7   : > { %v4033_v45 = vpop.xlane.xlu0 %4032  ;;  %v4035_v13 = vpop.xlane.xlu1 %4034 }
 0x6a8   : > { %v4059_v26 = vmul.f32 0.0078125, %v4035_v13  ;;  %v4058_v43 = vmul.f32 0.0078125, %v4033_v45  ;;  %v4104_v52 = vmax.f32 %v4088_v22, 0.0  ;;  %v4105_v56 = vmax.f32 %v4089_v59, 0.0 }
 0x6aa   : > { %v4091_v60 = vsub.f32 %v4059_v26, %v4075_v16  ;;  %v4090_v54 = vsub.f32 %v4058_v43, %v4074_v61  ;;  %v4136_v7 = vadd.f32 1e-06, %v4104_v52  ;;  %v4137_v26 = vadd.f32 1e-06, %v4105_v56 }
 0x6ab   : > { %v3973_v34 = vpop.xlane.xlu0 %3972  ;;  %v3975_v58 = vpop.xlane.xlu1 %3974  ;;  %v4118_v56 = vsub.f32 %v7827_v48, %v7997_v62  ;;  %v4117_v48 = vsub.f32 %v7842_v42, %v7995_v17  ;;  %v4120_v62 = vsub.f32 %v7852_v35, %v8009_v2 }
 0x6ac   : > { %v8033_v44 = vmul.f32 0.0078125, %v3975_v58  ;;  %v4107_v58 = vmax.f32 %v4091_v60, 0.0  ;;  %v4106_v32 = vmax.f32 %v4090_v54, 0.0  ;;  %6327 = vrsqrt.f32 %v4136_v7  ;;  %v8065_v7 = vld [vmem:[%s8395_s5 + $0x1] ss:$0 sm:$0xff] }
 0x6ad   : > { %6329 = vrsqrt.f32 %v4137_v26  ;;  %v4121_v26 = vsub.f32 %v7859_v29, %v8011_v57 }
 0x6ae   : > { %v4077_v46 = vmul.f32 %v8033_v44, %v8033_v44  ;;  %v4138_v51 = vadd.f32 1e-06, %v4106_v32 }
 0x6af   : > { %v3977_v14 = vpop.xlane.xlu0 %3976  ;;  %v3979_v49 = vpop.xlane.xlu1 %3978 }
 0x6b0   : > { %v8019_v38 = vmul.f32 0.0078125, %v3977_v14  ;;  %v8027_v14 = vmul.f32 0.0078125, %v3973_v34  ;;  %v8029_v12 = vmul.f32 0.0078125, %v3979_v49  ;;  %6331 = vrsqrt.f32 %v4138_v51 }
 0x6b2   : > { %v4078_v28 = vmul.f32 %v8019_v38, %v8019_v38  ;;  %v4076_v45 = vmul.f32 %v8027_v14, %v8027_v14  ;;  %v4079_v13 = vmul.f32 %v8029_v12, %v8029_v12 }
 0x6b3   : > { %v4037_v1 = vpop.xlane.xlu0 %4036  ;;  %v7991_v40 = vpop.xlane.xlu1 %4038 }
 0x6b4   : > { %v4060_v34 = vmul.f32 0.0078125, %v4037_v1  ;;  %v4061_v31 = vmul.f32 0.0078125, %v7991_v40  ;;  %v4139_v40 = vadd.f32 1e-06, %v4107_v58 }
 0x6b6   : > { %v4092_v1 = vsub.f32 %v4060_v34, %v4076_v45  ;;  %v4093_v9 = vsub.f32 %v4061_v31, %v4077_v46  ;;  %6333 = vrsqrt.f32 %v4139_v40 }
 0x6b7   : > { %v4041_v6 = vpop.xlane.xlu0 %4040  ;;  %v4043_v21 = vpop.xlane.xlu1 %4042 }
 0x6b8   : > { %v4062_v4 = vmul.f32 0.0078125, %v4041_v6  ;;  %v4063_v49 = vmul.f32 0.0078125, %v4043_v21  ;;  %v4108_v59 = vmax.f32 %v4092_v1, 0.0  ;;  %v4109_v58 = vmax.f32 %v4093_v9, 0.0 }
 0x6ba   : > { %v4094_v6 = vsub.f32 %v4062_v4, %v4078_v28  ;;  %v4095_v21 = vsub.f32 %v4063_v49, %v4079_v13  ;;  %v6320_v13 = vpop.eup %6319  ;;  %v4140_v32 = vadd.f32 1e-06, %v4108_v59  ;;  %v4141_v35 = vadd.f32 1e-06, %v4109_v58  ;;  %v8087_v58 = vld [vmem:[%s8395_s5] ss:$0 sm:$0xff] }
 0x6bb   : > { %v3981_v25 = vpop.xlane.xlu0 %3980  ;;  %v3983_v41 = vpop.xlane.xlu1 %3982 }
 0x6bc   : > { %v8039_v24 = vmul.f32 0.0078125, %v3981_v25  ;;  %v4110_v27 = vmax.f32 %v4094_v6, 0.0  ;;  %v8046_v22 = vmul.f32 0.0078125, %v3983_v41  ;;  %v4111_v52 = vmax.f32 %v4095_v21, 0.0  ;;  %v6322_v49 = vpop.eup %6321 }
 0x6bd   : > { %v4116_v6 = vsub.f32 %v7832_v11, %v7993_v47  ;;  %v6324_v11 = vpop.eup %6323  ;;  %v4119_v47 = vsub.f32 %v7837_v19, %v7999_v50 }
 0x6be   : > { %v4080_v25 = vmul.f32 %v8039_v24, %v8039_v24  ;;  %v4142_v41 = vadd.f32 1e-06, %v4110_v27  ;;  %v4081_v60 = vmul.f32 %v8046_v22, %v8046_v22  ;;  %v4143_v46 = vadd.f32 1e-06, %v4111_v52 }
 0x6bf   : > { %v3985_v5 = vpop.xlane.xlu0 %3984  ;;  %v3987_v10 = vpop.xlane.xlu1 %3986  ;;  %v4164_v50 = vmul.f32 %v6320_v13, %v4116_v6  ;;  %v4124_v13 = vsub.f32 %v7872_v3, %v8027_v14 }
 0x6c0   : > { %v8041_v30 = vmul.f32 0.0078125, %v3985_v5  ;;  %v8050_v16 = vmul.f32 0.0078125, %v3987_v10  ;;  %6335 = vrsqrt.f32 %v4142_v41 }
 0x6c1   : > { %6337 = vrsqrt.f32 %v4140_v32 }
 0x6c2   : > { %v4082_v43 = vmul.f32 %v8041_v30, %v8041_v30  ;;  %v4083_v10 = vmul.f32 %v8050_v16, %v8050_v16  ;;  %6339 = vrsqrt.f32 %v4143_v46 }
 0x6c3   : > { %v4045_v36 = vpop.xlane.xlu0 %4044  ;;  %v4047_v18 = vpop.xlane.xlu1 %4046  ;;  %6341 = vrsqrt.f32 %v4141_v35 }
 0x6c4   : > { %v4064_v5 = vmul.f32 0.0078125, %v4045_v36  ;;  %v4065_v36 = vmul.f32 0.0078125, %v4047_v18 }
 0x6c6   : > { %v4096_v54 = vsub.f32 %v4064_v5, %v4080_v25  ;;  %v6326_v5 = vpop.eup %6325 }
 0x6c7   : > { %v4049_v61 = vpop.xlane.xlu0 %4048  ;;  %v4051_v28 = vpop.xlane.xlu1 %4050 }
 0x6c8   : > { %v4066_v4 = vmul.f32 0.0078125, %v4049_v61  ;;  %v4067_v45 = vmul.f32 0.0078125, %v4051_v28  ;;  %v4097_v61 = vsub.f32 %v4065_v36, %v4081_v60  ;;  %v4112_v1 = vmax.f32 %v4096_v54, 0.0  ;;  %v6328_v6 = vpop.eup %6327 }
 0x6c9   : > { %v4122_v28 = vsub.f32 %v7847_v37, %v8015_v8  ;;  %v4165_v60 = vmul.f32 %v6322_v49, %v4117_v48  ;;  %v4166_v36 = vmul.f32 %v6324_v11, %v4118_v56  ;;  %v4125_v49 = vsub.f32 %v7882_v63, %v8033_v44 }
 0x6ca   : > { %v4098_v34 = vsub.f32 %v4066_v4, %v4082_v43  ;;  %v4099_v21 = vsub.f32 %v4067_v45, %v4083_v10  ;;  %v4123_v43 = vsub.f32 %v7856_v55, %v8017_v20  ;;  %v4113_v40 = vmax.f32 %v4097_v61, 0.0 }
 0x6cb   : > { %v4144_v51 = vadd.f32 1e-06, %v4112_v1  ;;  %v4167_v45 = vmul.f32 %v6326_v5, %v4119_v47  ;;  %v4126_v61 = vsub.f32 %v7867_v39, %v8019_v38  ;;  %v6330_v5 = vpop.eup %6329 }
 0x6cc   : > { %v4114_v25 = vmax.f32 %v4098_v34, 0.0  ;;  %v4115_v9 = vmax.f32 %v4099_v21, 0.0  ;;  %v4145_v1 = vadd.f32 1e-06, %v4113_v40 }
 0x6cd   : > { %6343 = vrsqrt.f32 %v4144_v51 }
 0x6ce   : > { %v4146_v10 = vadd.f32 1e-06, %v4114_v25  ;;  %v4147_v21 = vadd.f32 1e-06, %v4115_v9 }
 0x6d0   : > { %6345 = vrsqrt.f32 %v4146_v10  ;;  %v4168_v10 = vmul.f32 %v6328_v6, %v4120_v62  ;;  %v4169_v62 = vmul.f32 %v6330_v5, %v4121_v26 }
 0x6d1   : > { %6347 = vrsqrt.f32 %v4145_v1 }
 0x6d2   : > { %6349 = vrsqrt.f32 %v4147_v21 }
 0x6e3   : > { %v5673_v18 = vpop.f32.mrf.mxu0  ;;  %v5705_v31 = vpop.f32.mrf.mxu1 }
 0x6e4   : > { %v3902_v42 = vadd.f32 %v5705_v31, %v8065_v7 }
 0x6e5   : > { %v3725_v27 = vpop.f32.mrf.mxu0  ;;  %v3893_v17 = vpop.f32.mrf.mxu1 }
 0x6e6   : > { %v3894_v19 = vadd.f32 %v8065_v7, %v3893_v17  ;;  %v4182_v54 = vadd.f32 1.0, %v3902_v42  ;;  %v3734_v42 = vadd.f32 %v5673_v18, %v8087_v58  ;;  %v3726_v39 = vadd.f32 %v8087_v58, %v3725_v27 }
 0x6e7   : > { %v5674_v4 = vpop.f32.mrf.mxu0  ;;  %v5706_v2 = vpop.f32.mrf.mxu1  ;;  %v4127_v18 = vsub.f32 %v7877_v15, %v8029_v12 }
 0x6e8   : > { %v4180_v59 = vadd.f32 1.0, %v3894_v19  ;;  %v3905_v52 = vadd.f32 %v5706_v2, %v8065_v7  ;;  %v4198_v17 = vmul.f32 %v4182_v54, %v4166_v36  ;;  %v3737_v19 = vadd.f32 %v5674_v4, %v8087_v58 }
 0x6e9   : > { %v3728_v41 = vpop.f32.mrf.mxu0  ;;  %v3896_v34 = vpop.f32.mrf.mxu1 }
 0x6ea   : > { %v4183_v32 = vadd.f32 1.0, %v3905_v52  ;;  %v3897_v46 = vadd.f32 %v8065_v7, %v3896_v34  ;;  %v4196_v11 = vmul.f32 %v4180_v59, %v4164_v50  ;;  %v6332_v52 = vpop.eup %6331  ;;  %v3729_v38 = vadd.f32 %v8087_v58, %v3728_v41 }
 0x6eb   : > { %v5677_v31 = vpop.f32.mrf.mxu0  ;;  %v5709_v56 = vpop.f32.mrf.mxu1  ;;  %v4214_v27 = vadd.f32 %v4198_v17, %v3734_v42  ;;  %v4170_v15 = vmul.f32 %v6332_v52, %v4122_v28 }
 0x6ec   : > { %v4199_v48 = vmul.f32 %v4183_v32, %v4167_v45  ;;  %v4181_v47 = vadd.f32 1.0, %v3897_v46  ;;  %v3918_v35 = vadd.f32 %v5709_v56, %v8065_v7  ;;  %v6334_v9 = vpop.eup %6333  ;;  %v4212_v36 = vadd.f32 %v4196_v11, %v3726_v39 }
 0x6ed   : > { %v3741_v25 = vpop.f32.mrf.mxu0  ;;  %v3909_v2 = vpop.f32.mrf.mxu1  ;;  %v4128_v56 = vsub.f32 %v7892_v0, %v8039_v24  ;;  %v3750_v37 = vadd.f32 %v5677_v31, %v8087_v58 }
 0x6ee   : > { %v4197_v40 = vmul.f32 %v4181_v47, %v4165_v60  ;;  %v3910_v50 = vadd.f32 %v8065_v7, %v3909_v2  ;;  %v4215_v59 = vadd.f32 %v4199_v48, %v3737_v19  ;;  %v6336_v4 = vpop.eup %6335  ;;  %v4186_v41 = vadd.f32 1.0, %v3918_v35 }
 0x6ef   : > { %v5678_v51 = vpop.f32.mrf.mxu0  ;;  %v5710_v45 = vpop.f32.mrf.mxu1  ;;  %v4171_v48 = vmul.f32 %v6334_v9, %v4123_v43  ;;  %v4174_v57 = vmul.f32 %v6336_v4, %v4126_v61  ;;  %v3742_v19 = vadd.f32 %v8087_v58, %v3741_v25 }
 0x6f0   : > { %v4213_v54 = vadd.f32 %v4197_v40, %v3729_v38  ;;  %v4184_v34 = vadd.f32 1.0, %v3910_v50  ;;  %v3921_v60 = vadd.f32 %v5710_v45, %v8065_v7  ;;  %v6338_v21 = vpop.eup %6337  ;;  %v4246_v11 = vpack.c.bf16 %v4215_v59, %v4214_v27 }
 0x6f1   : > { %v3744_v32 = vpop.f32.mrf.mxu0  ;;  %v3912_v46 = vpop.f32.mrf.mxu1  ;;  %v4202_v17 = vmul.f32 %v4186_v41, %v4170_v15  ;;  %v3753_v35 = vadd.f32 %v5678_v51, %v8087_v58  ;;  %v4129_v40 = vsub.f32 %v7899_v23, %v8046_v22  ;;  %v4172_v25 = vmul.f32 %v6338_v21, %v4124_v13 }
 0x6f2   : > { %v3913_v12 = vadd.f32 %v8065_v7, %v3912_v46  ;;  %v4245_v6 = vpack.c.bf16 %v4213_v54, %v4212_v36  ;;  %v4187_v47 = vadd.f32 1.0, %v3921_v60  ;;  %v6340_v26 = vpop.eup %6339  ;;  %v4200_v8 = vmul.f32 %v4184_v34, %v4168_v10 }
 0x6f3   : > { %v5681_v1 = vpop.f32.mrf.mxu0  ;;  %v5713_v29 = vpop.f32.mrf.mxu1  ;;  %v3745_v20 = vadd.f32 %v8087_v58, %v3744_v32  ;;  %v4175_v51 = vmul.f32 %v6340_v26, %v4127_v18  ;;  %v4218_v34 = vadd.f32 %v4202_v17, %v3750_v37  ;;  %v4130_v32 = vsub.f32 %v7887_v33, %v8041_v30 }
 0x6f4   : > { %v4185_v28 = vadd.f32 1.0, %v3913_v12  ;;  %5735 = vmatprep.mubr.bf16.mxu0 %v4245_v6  ;;  %v3934_v5 = vadd.f32 %v5713_v29, %v8065_v7  ;;  %v4203_v2 = vmul.f32 %v4187_v47, %v4171_v48  ;;  %v6342_v39 = vpop.eup %6341  ;;  %v4216_v59 = vadd.f32 %v4200_v8, %v3742_v19 }
 0x6f5   : > { %v3757_v42 = vpop.f32.mrf.mxu0  ;;  %5736 = vmatmul.mubr.bf16.vlgmr.msra.gmra.mxu0 %v4246_v11  ;;  %v3925_v55 = vpop.f32.mrf.mxu1  ;;  %v3766_v23 = vadd.f32 %v5681_v1, %v8087_v58  ;;  %v4173_v13 = vmul.f32 %v6342_v39, %v4125_v49  ;;  %v4131_v12 = vsub.f32 %v7896_v53, %v8050_v16 }
 0x6f6   : > { %v4201_v43 = vmul.f32 %v4185_v28, %v4169_v62  ;;  %v4190_v61 = vadd.f32 1.0, %v3934_v5  ;;  %v3926_v31 = vadd.f32 %v8065_v7, %v3925_v55  ;;  %v4219_v38 = vadd.f32 %v4203_v2, %v3753_v35  ;;  %v6344_v9 = vpop.eup %6343 }
 0x6f7   : > { %v5682_v52 = vpop.f32.mrf.mxu0  ;;  %v5714_v50 = vpop.f32.mrf.mxu1  ;;  %v3758_v62 = vadd.f32 %v8087_v58, %v3757_v42  ;;  %v4176_v47 = vmul.f32 %v6344_v9, %v4128_v56 }
 0x6f8   : > { %v4217_v10 = vadd.f32 %v4201_v43, %v3745_v20  ;;  %v4188_v45 = vadd.f32 1.0, %v3926_v31  ;;  %v3937_v4 = vadd.f32 %v5714_v50, %v8065_v7  ;;  %v6346_v54 = vpop.eup %6345  ;;  %v4206_v27 = vmul.f32 %v4190_v61, %v4174_v57 }
 0x6f9   : > { %v3760_v36 = vpop.f32.mrf.mxu0  ;;  %v3928_v22 = vpop.f32.mrf.mxu1  ;;  %v3769_v18 = vadd.f32 %v5682_v52, %v8087_v58  ;;  %v4248_v60 = vpack.c.bf16 %v4219_v38, %v4218_v34  ;;  %v4178_v57 = vmul.f32 %v6346_v54, %v4130_v32  ;;  %v4406_v54 = vld [vmem:[%s8397_s23 + $0x10] sm:$0xff] }
 0x6fa   : > { %v4247_v3 = vpack.c.bf16 %v4217_v10, %v4216_v59  ;;  %v4191_v14 = vadd.f32 1.0, %v3937_v4  ;;  %v4204_v46 = vmul.f32 %v4188_v45, %v4172_v25  ;;  %v3929_v15 = vadd.f32 %v8065_v7, %v3928_v22  ;;  %v6348_v30 = vpop.eup %6347 }
 0x6fb   : > { %v5685_v41 = vpop.f32.mrf.mxu0  ;;  %v5717_v33 = vpop.f32.mrf.mxu1  ;;  %v4222_v49 = vadd.f32 %v4206_v27, %v3766_v23  ;;  %v3761_v11 = vadd.f32 %v8087_v58, %v3760_v36  ;;  %v4177_v5 = vmul.f32 %v6348_v30, %v4129_v40  ;;  %v6701_v36 = vmov 0.0   ;;  %v4404_v27 = vld [vmem:[%s8397_s23] sm:$0xff] }
 0x6fc   : > { %5739 = vmatprep.mubr.bf16.mxu0 %v4247_v3  ;;  %v4207_v6 = vmul.f32 %v4191_v14, %v4175_v51  ;;  %v3950_v1 = vadd.f32 %v5717_v33, %v8065_v7  ;;  %v6350_v44 = vpop.eup %6349  ;;  %v4189_v21 = vadd.f32 1.0, %v3929_v15  ;;  %v4220_v37 = vadd.f32 %v4204_v46, %v3758_v62  ;;  %4581 = vst.msk [vmem:[%s8396_s21 + $0x40] sm:$0xff] %vm4572_vm1, %v6701_v36  ;;  %v4407_v14 = vld [vmem:[%s8397_s23 + $0x18] sm:$0xff]  ;;  %v4405_v46 = vld [vmem:[%s8397_s23 + $0x8] sm:$0xff] }
 0x6fd   : > { %v3773_v63 = vpop.f32.mrf.mxu0  ;;  %5740 = vmatmul.mubr.bf16.gmra.mxu0 %v4248_v60  ;;  %v3941_v48 = vpop.f32.mrf.mxu1  ;;  %v3782_v17 = vadd.f32 %v5685_v41, %v8087_v58  ;;  %v4179_v35 = vmul.f32 %v6350_v44, %v4131_v12  ;;  %4582 = vst.msk [vmem:[%s8396_s21 + $0x48] sm:$0xff] %vm4572_vm1, %v6701_v36  ;;  %4583 = vst.msk [vmem:[%s8396_s21 + $0x50] sm:$0xff] %vm4572_vm1, %v6701_v36  ;;  %v4410_v44 = vld [vmem:[%s8397_s23 + $0x30] sm:$0xff] }
 0x6fe   : > { %v4223_v29 = vadd.f32 %v4207_v6, %v3769_v18  ;;  %v4194_v26 = vadd.f32 1.0, %v3950_v1  ;;  %v3942_v53 = vadd.f32 %v8065_v7, %v3941_v48  ;;  %v4205_v8 = vmul.f32 %v4189_v21, %v4173_v13  ;;  %4584 = vst.msk [vmem:[%s8396_s21 + $0x58] sm:$0xff] %vm4572_vm1, %v6701_v36  ;;  %4585 = vst.msk [vmem:[%s8396_s21 + $0x60] sm:$0xff] %vm4572_vm1, %v6701_v36  ;;  %v4408_v21 = vld [vmem:[%s8397_s23 + $0x20] sm:$0xff] }
 0x6ff   : > { %v5686_v16 = vpop.f32.mrf.mxu0  ;;  %v5718_v28 = vpop.f32.mrf.mxu1  ;;  %v3774_v0 = vadd.f32 %v8087_v58, %v3773_v63  ;;  %4586 = vst.msk [vmem:[%s8396_s21 + $0x68] sm:$0xff] %vm4572_vm1, %v6701_v36  ;;  %4587 = vst.msk [vmem:[%s8396_s21 + $0x70] sm:$0xff] %vm4572_vm1, %v6701_v36 }
 0x700   : > { %v4192_v42 = vadd.f32 1.0, %v3942_v53  ;;  %v3953_v19 = vadd.f32 %v5718_v28, %v8065_v7  ;;  %v4250_v2 = vpack.c.bf16 %v4223_v29, %v4222_v49  ;;  %v4221_v55 = vadd.f32 %v4205_v8, %v3761_v11  ;;  %4588 = vst.msk [vmem:[%s8396_s21 + $0x78] sm:$0xff] %vm4572_vm1, %v6701_v36  ;;  %v4409_v28 = vld [vmem:[%s8397_s23 + $0x28] sm:$0xff] }
 0x701   : > { %v3944_v24 = vpop.f32.mrf.mxu1  ;;  %v3785_v56 = vadd.f32 %v5686_v16, %v8087_v58  ;;  %v3776_v20 = vpop.f32.mrf.mxu0  ;;  %v4210_v43 = vmul.f32 %v4194_v26, %v4178_v57 }
 0x702   : > { %v4208_v61 = vmul.f32 %v4192_v42, %v4176_v47  ;;  %v4195_v31 = vadd.f32 1.0, %v3953_v19  ;;  %v3945_v52 = vadd.f32 %v8065_v7, %v3944_v24  ;;  %v4249_v39 = vpack.c.bf16 %v4221_v55, %v4220_v37  ;;  %v5117_v7 = vld [vmem:[#allocation15] ss:$0 sm:$0xff]  ;;  %v4411_v37 = vld [vmem:[%s8397_s23 + $0x38] sm:$0xff] }
 0x703   : > { %v3777_v25 = vadd.f32 %v8087_v58, %v3776_v20  ;;  %v4226_v50 = vadd.f32 %v4210_v43, %v3782_v17 }
 0x704   : > { %v4211_v38 = vmul.f32 %v4195_v31, %v4179_v35  ;;  %v4193_v40 = vadd.f32 1.0, %v3945_v52  ;;  %5743 = vmatprep.mubr.bf16.mxu1 %v4249_v39  ;;  %v4224_v51 = vadd.f32 %v4208_v61, %v3774_v0 }
 0x705   : > { %5744 = vmatmul.mubr.bf16.vlgmr.msra.gmra.mxu1 %v4250_v2 }
 0x706   : > { %v4209_v9 = vmul.f32 %v4193_v40, %v4177_v5  ;;  %v4227_v59 = vadd.f32 %v4211_v38, %v3785_v56 }
 0x708   : > { %v4225_v10 = vadd.f32 %v4209_v9, %v3777_v25  ;;  %v4252_v4 = vpack.c.bf16 %v4227_v59, %v4226_v50 }
 0x70a   : > { %v4251_v45 = vpack.c.bf16 %v4225_v10, %v4224_v51 }
 0x70c   : > { %5747 = vmatprep.mubr.bf16.mxu1 %v4251_v45 }
 0x70d   : > { %5748 = vmatmul.mubr.bf16.gmra.mxu1 %v4252_v4 }
 0x7b5   : > { %v5737_v58 = vpop.f32.mrf.mxu0 }
 0x7b6   : > { %v4350_v34 = vadd.f32 %v5737_v58, %v5117_v7 }
 0x7b7   : > { %v4341_v32 = vpop.f32.mrf.mxu0 }
 0x7b8   : > { %v4422_v23 = vsub.f32 %v4350_v34, %v4406_v54  ;;  %v4342_v22 = vadd.f32 %v5117_v7, %v4341_v32 }
 0x7b9   : > { %v5738_v3 = vpop.f32.mrf.mxu0 }
 0x7ba   : > { %v4420_v13 = vsub.f32 %v4342_v22, %v4404_v27  ;;  %v4353_v18 = vadd.f32 %v5738_v3, %v5117_v7  ;;  %v4438_v41 = vmul.f32 %v4422_v23, %v4422_v23 }
 0x7bb   : > { %v4344_v60 = vpop.f32.mrf.mxu0 }
 0x7bc   : > { %v4423_v62 = vsub.f32 %v4353_v18, %v4407_v14  ;;  %v4345_v15 = vadd.f32 %v5117_v7, %v4344_v60  ;;  %v4459_v33 = vsel %vm4452_vm2, %v4438_v41, 0.0  ;;  %v4436_v30 = vmul.f32 %v4420_v13, %v4420_v13 }
 0x7bd   : > { %4460 = vadd.xlane.f32.xlu0 %v4459_v33  ;;  %v5741_v12 = vpop.f32.mrf.mxu0 }
 0x7be   : > { %v4421_v6 = vsub.f32 %v4345_v15, %v4405_v46  ;;  %v4366_v1 = vadd.f32 %v5741_v12, %v5117_v7  ;;  %v4439_v63 = vmul.f32 %v4423_v62, %v4423_v62  ;;  %v4453_v47 = vsel %vm4452_vm2, %v4436_v30, 0.0 }
 0x7bf   : > { %v4357_v49 = vpop.f32.mrf.mxu0 }
 0x7c0   : > { %v4358_v11 = vadd.f32 %v5117_v7, %v4357_v49  ;;  %v4462_v48 = vsel %vm4452_vm2, %v4439_v63, 0.0  ;;  %v4437_v29 = vmul.f32 %v4421_v6, %v4421_v6  ;;  %v4426_v26 = vsub.f32 %v4366_v1, %v4410_v44 }
 0x7c1   : > { %4463 = vadd.xlane.f32.xlu1 %v4462_v48  ;;  %v5742_v57 = vpop.f32.mrf.mxu0  ;;  %4454 = vadd.xlane.f32.xlu0 %v4453_v47 }
 0x7c2   : > { %v4424_v53 = vsub.f32 %v4358_v11, %v4408_v21  ;;  %v4369_v16 = vadd.f32 %v5742_v57, %v5117_v7  ;;  %v4456_v42 = vsel %vm4452_vm2, %v4437_v29, 0.0  ;;  %v4442_v55 = vmul.f32 %v4426_v26, %v4426_v26 }
 0x7c3   : > { %v4360_v8 = vpop.f32.mrf.mxu0 }
 0x7c4   : > { %v4361_v5 = vadd.f32 %v5117_v7, %v4360_v8  ;;  %v4440_v17 = vmul.f32 %v4424_v53, %v4424_v53  ;;  %v4427_v19 = vsub.f32 %v4369_v16, %v4411_v37  ;;  %v4471_v43 = vsel %vm4452_vm2, %v4442_v55, 0.0 }
 0x7c5   : > { %4457 = vadd.xlane.f32.xlu1 %v4456_v42  ;;  %v5745_v0 = vpop.f32.mrf.mxu1 }
 0x7c6   : > { %v4425_v35 = vsub.f32 %v4361_v5, %v4409_v28  ;;  %v4465_v2 = vsel %vm4452_vm2, %v4440_v17, 0.0  ;;  %v4443_v61 = vmul.f32 %v4427_v19, %v4427_v19 }
 0x7c7   : > { %4466 = vadd.xlane.f32.xlu0 %v4465_v2  ;;  %v4373_v56 = vpop.f32.mrf.mxu1 }
 0x7c8   : > { %v4441_v24 = vmul.f32 %v4425_v35, %v4425_v35  ;;  %v4474_v39 = vsel %vm4452_vm2, %v4443_v61, 0.0 }
 0x7c9   : > { %v5746_v31 = vpop.f32.mrf.mxu1 }
 0x7ca   : > { %v4468_v20 = vsel %vm4452_vm2, %v4441_v24, 0.0 }
 0x7cb   : > { %4469 = vadd.xlane.f32.xlu1 %v4468_v20  ;;  %4472 = vadd.xlane.f32.xlu0 %v4471_v43  ;;  %v4376_v52 = vpop.f32.mrf.mxu1 }
 0x7cd   : > { %v5749_v38 = vpop.f32.mrf.mxu1 }
 0x7cf   : > { %4475 = vadd.xlane.f32.xlu1 %v4474_v39  ;;  %v4389_v40 = vpop.f32.mrf.mxu1 }
 0x7d1   : > { %v5750_v25 = vpop.f32.mrf.mxu1 }
 0x7d3   : > { %v4392_v50 = vpop.f32.mrf.mxu1 }
 0x846   : > { %v4461_v51 = vpop.xlane.xlu0 %4460 }
 0x847   : > { %4575 = vst.msk [vmem:[%s8396_s21 + $0x10] sm:$0xff] %vm4572_vm1, %v4461_v51 }
 0x84a   : > { %v4464_v9 = vpop.xlane.xlu1 %4463  ;;  %v4455_v59 = vpop.xlane.xlu0 %4454 }
 0x84b   : > { %4576 = vst.msk [vmem:[%s8396_s21 + $0x18] sm:$0xff] %vm4572_vm1, %v4464_v9  ;;  %4573 = vst.msk [vmem:[%s8396_s21] sm:$0xff] %vm4572_vm1, %v4455_v59 }
 0x84e   : > { %v4458_v10 = vpop.xlane.xlu1 %4457 }
 0x84f   : > { %4574 = vst.msk [vmem:[%s8396_s21 + $0x8] sm:$0xff] %vm4572_vm1, %v4458_v10 }
 0x850   : > { %v4467_v45 = vpop.xlane.xlu0 %4466 }
 0x851   : > { %4577 = vst.msk [vmem:[%s8396_s21 + $0x20] sm:$0xff] %vm4572_vm1, %v4467_v45 }
 0x854   : > { %v4470_v4 = vpop.xlane.xlu1 %4469  ;;  %v4473_v36 = vpop.xlane.xlu0 %4472 }
 0x855   : > { %4578 = vst.msk [vmem:[%s8396_s21 + $0x28] sm:$0xff] %vm4572_vm1, %v4470_v4  ;;  %4579 = vst.msk [vmem:[%s8396_s21 + $0x30] sm:$0xff] %vm4572_vm1, %v4473_v36 }
 0x858   : > { %v4476_v7 = vpop.xlane.xlu1 %4475 }
 0x859   : > { %4580 = vst.msk [vmem:[%s8396_s21 + $0x38] sm:$0xff] %vm4572_vm1, %v4476_v7 }
 0x85a PF: > { %s37_s0 = sadd.s32 1, %s6685_s0   ;;  %s8398_s1 = sld [smem:[#allocation25_spill]] }
 0x85b   : > { %p34_p12 = scmp.ge.s32.totalorder %s37_s0, 4   ;;  %s8399_s29 = sld [smem:[#allocation27_spill]] }
 0x85c   : > { %s8400_s9 = sld [smem:[#allocation26_spill]]  ;;  %s8401_s3 = smov %s6669_s28 }
 0x85d   : > { %s8403_s30 = smov %s6681_s4 }
 0x85e   :  { %36 = sbr.rel (!%p34_p12) target bundleno = 27 (0x1b), region = 228 }
 0x860   : > { %s8402_s28 = smov %s8398_s1 }
 0x862   : > { %s8404_s4 = smov %s8400_s9 }
 0x863   :  { %4632 = vsyncpa [#allocation5], 1 }
 0x864   :  { %4634 = vsyncpa [#allocation5 + $0x1], 1 }
 0x865   :  { %4635 = vsyncpa [#allocation7], 1 }
 0x866   :  { %4636 = vsyncpa [#allocation10], 1 }
 0x867   :  { %4637 = vsyncpa [#allocation13], 1 }
 0x868   :  { %4638 = vsyncpa [#allocation16], 1 }

</bundles_post_ra>
